<compile_context>
chip_gen: v7x
topology: tpu7x:2x2x1
jax: 0.10.0
libtpu: 0.0.40
codegen_flags: <defaults>
</compile_context>

<pallas_src>
import math

import jax
import jax.numpy as jnp
from jax.experimental import pallas as pl
from jax.experimental.pallas import tpu as pltpu

# ----------------------------- static model config -----------------------------
GAT_IN = 8                      # gatv2_input_dims
GAT_OUT_DIMS = [16, 16]         # gatv2_output_dims
GAT_HEADS = 2                   # gatv2_num_heads
GAT_CONCAT = True               # gatv2_bool_concat
GMT_HIDDEN = 32                 # gmt_hidden_dims
GMT_OUT = 32                    # gmt_output_dims
GMT_HEADS = 4                   # GraphMultisetTransformer num_heads
GMT_SEEDS_G = math.ceil(300 * 0.25)   # = 75 seeds for GMPool_G (num_nodes=300, ratio=0.25)
FC_DIMS = [32, 16]              # fc_output_dims
BN_EPS = 1e-5
GN_EPS = 1e-5
NEG_SLOPE = 0.2                 # GATv2 leaky_relu negative slope


# ----------------------------- in-kernel math (on jnp values) -----------------------------
def _leaky_relu(x):
    return jnp.where(x > 0, x, NEG_SLOPE * x)


def _masked_softmax_rows(e, mask=None):
    """Row-wise softmax; optional {0,1} mask (masked entries get ~0 weight)."""
    if mask is not None:
        e = jnp.where(mask > 0, e, -1e30)
    e = e - jnp.max(e, axis=-1, keepdims=True)
    p = jnp.exp(e)
    # EUP approx reciprocal: the divide moves off the VPU slot (sits next to exp).
    return p * pl.reciprocal(jnp.sum(p, axis=-1, keepdims=True), approx=True)


def _gatv2(x, p, adj, *, heads, out_ch, concat):
    """GATv2Conv on a dense adjacency adj[dst, src] (self-loops included)."""
    gl = jnp.dot(x, p['wl'], preferred_element_type=jnp.float32) + p['bl']  # lin_l (source)
    gr = jnp.dot(x, p['wr'], preferred_element_type=jnp.float32) + p['br']  # lin_r (target)
    att = p['att']
    head_outs = []
    for h in range(heads):
        sl = slice(h * out_ch, (h + 1) * out_ch)
        gl_h = gl[:, sl]                       # (N, C) source-side features
        gr_h = gr[:, sl]                       # (N, C) target-side features
        a_h = att[h:h + 1, :]                  # (1, C)
        # e[i, j] = a_h . leaky_relu(gr_h[i] + gl_h[j]),  i = dst, j = src
        # NOTE: at the intended N=300 this (N, N, C) intermediate should be chunked
        # along dst and reduced on the MXU; at the tiny N used here it is a handful
        # of vregs so the simple VPU/XLU form is kept.
        s = _leaky_relu(gr_h[:, None, :] + gl_h[None, :, :])        # (N, N, C)
        e = jnp.sum(s * a_h[None, :, :], axis=-1)                   # (N, N)
        alpha = _masked_softmax_rows(e, mask=adj)                   # softmax over incoming edges
        head_outs.append(jnp.dot(alpha, gl_h, preferred_element_type=jnp.float32))
    if concat:
        out = jnp.concatenate(head_outs, axis=-1)                   # one lane-dense result
    else:
        acc = head_outs[0]
        for h in range(1, heads):
            acc = acc + head_outs[h]
        out = acc / float(heads)
    return out + p['bias']


def _graphnorm_relu(x, w, b, ms):
    """PyG GraphNorm over a single graph (batch=None) followed by ReLU."""
    n = x.shape[0]
    mean = jnp.sum(x, axis=0, keepdims=True) * (1.0 / n)
    out = x - mean * ms
    var = jnp.sum(out * out, axis=0, keepdims=True) * (1.0 / n)
    inv_std = jax.lax.rsqrt(var + GN_EPS)
    return jnp.maximum(w * out * inv_std + b, 0.0)


def _mab_attention(q, k, v, *, num_heads, dim_v):
    """GMT MAB core:  out = concat_h( Qh + softmax(Qh Kh^T / sqrt(dim_V)) Vh )."""
    d = dim_v // num_heads
    scale = 1.0 / math.sqrt(dim_v)   # GMT scales by sqrt(dim_V), not sqrt(head_dim)
    outs = []
    for h in range(num_heads):
        sl = slice(h * d, (h + 1) * d)
        qh, kh, vh = q[:, sl], k[:, sl], v[:, sl]
        s = jax.lax.dot_general(qh, kh, (((1,), (1,)), ((), ())),
                                preferred_element_type=jnp.float32) * scale
        a = _masked_softmax_rows(s)
        outs.append(qh + jnp.dot(a, vh, preferred_element_type=jnp.float32))
    return jnp.concatenate(outs, axis=-1)                           # lane-dense (S, dim_v)


def _mab(q_in, kv_in, mp, adj):
    q = jnp.dot(q_in, mp['fc_q_w'], preferred_element_type=jnp.float32) + mp['fc_q_b']
    if adj is not None:   # GMPool_G: K/V produced by GATv2Conv over the graph
        k = _gatv2(kv_in, mp['k_conv'], adj, heads=1, out_ch=GMT_HIDDEN, concat=True)
        v = _gatv2(kv_in, mp['v_conv'], adj, heads=1, out_ch=GMT_HIDDEN, concat=True)
    else:                 # SelfAtt / GMPool_I: plain linear K/V
        k = jnp.dot(kv_in, mp['k_w'], preferred_element_type=jnp.float32) + mp['k_b']
        v = jnp.dot(kv_in, mp['v_w'], preferred_element_type=jnp.float32) + mp['v_b']
    o = _mab_attention(q, k, v, num_heads=GMT_HEADS, dim_v=GMT_HIDDEN)
    ffn = jnp.dot(o, mp['fc_o_w'], preferred_element_type=jnp.float32) + mp['fc_o_b']
    return o + jnp.maximum(ffn, 0.0)                                # layer_norm=False


def _forward_math(x, adj, params):
    """Full critic forward, evaluated on VMEM-resident values inside the kernel."""
    # --- critic_state_gatv2_layer ---
    h = x
    for i, lp in enumerate(params['gatv2']):
        conv = _gatv2(h, lp['conv'], adj,
                      heads=GAT_HEADS, out_ch=GAT_OUT_DIMS[i], concat=GAT_CONCAT)
        h = _graphnorm_relu(conv, lp['gn_w'], lp['gn_b'], lp['gn_ms'])

    # --- critic_state_gmt_layer ---
    g = params['gmt']
    z = jnp.dot(h, g['lin1_w'], preferred_element_type=jnp.float32) + g['lin1_b']
    bx = _mab(g['pma_g']['S'], z, g['pma_g'], adj=adj)      # GMPool_G -> (75, hidden)
    bx = _mab(bx, bx, g['sab'], adj=None)                   # SelfAtt  -> (75, hidden)
    bx = _mab(g['pma_i']['S'], bx, g['pma_i'], adj=None)    # GMPool_I -> (1, hidden)
    out = jnp.dot(bx, g['lin2_w'], preferred_element_type=jnp.float32) + g['lin2_b']

    # --- critic_fc_layers : Linear(no bias) + BatchNorm1d(eval, folded) + ReLU + Dropout(id) ---
    for fp in params['fc']:
        y = jnp.dot(out, fp['w'], preferred_element_type=jnp.float32)
        out = jnp.maximum(y * fp['scale'] + fp['shift'], 0.0)

    # TODO(synk): `popart` class is not defined in the provided source; modeled as Linear(fc_out, 1).
    v = jnp.dot(out, params['popart']['w'],
                preferred_element_type=jnp.float32) + params['popart']['b']
    return v


# ----------------------------- fused pallas_call -----------------------------
def _make_fused_kernel(treedef):
    def kernel(*refs):
        o_ref = refs[-1]
        leaves = [r[...] for r in refs[:-1]]                       # load all params/inputs from VMEM
        inputs = jax.tree_util.tree_unflatten(treedef, leaves)
        o_ref[...] = _forward_math(inputs['x'], inputs['adj'], inputs['params'])
    return kernel


def critic_forward(params, x, adj, batch=None):
    # TODO(synk): multi-graph batching (to_dense_batch padding / key masks) not implemented;
    #             a single graph (batch vector all zeros, B=1) is assumed.  For a batch of
    #             graphs, add a leading grid axis with dimension_semantics=("parallel",) so
    #             both v7x TensorCores are used.
    inputs = dict(x=x, adj=adj, params=params)
    leaves, treedef = jax.tree_util.tree_flatten(inputs)
    vmem = pl.BlockSpec(memory_space=pltpu.MemorySpace.VMEM)
    return pl.pallas_call(
        _make_fused_kernel(treedef),
        out_shape=jax.ShapeDtypeStruct((1, 1), jnp.float32),
        in_specs=[vmem] * len(leaves),
        out_specs=vmem,
    )(*leaves)


# ----------------------------- parameter init (deterministic) -----------------------------
def _init_linear(key, fan_in, fan_out, bias=True):
    k1, k2 = jax.random.split(key)
    w = jax.random.normal(k1, (fan_in, fan_out), jnp.float32) * (1.0 / math.sqrt(fan_in))
    b = (jax.random.normal(k2, (1, fan_out), jnp.float32) * 0.01) if bias else None
    return w, b


def _init_gatv2(key, fan_in, out_ch, heads):
    ks = jax.random.split(key, 3)
    wl, bl = _init_linear(ks[0], fan_in, heads * out_ch)
    wr, br = _init_linear(ks[1], fan_in, heads * out_ch)
    att = jax.random.normal(ks[2], (heads, out_ch), jnp.float32) * (1.0 / math.sqrt(out_ch))
    bias = jnp.zeros((1, heads * out_ch), jnp.float32)
    return dict(wl=wl, bl=bl, wr=wr, br=br, att=att, bias=bias)


def _init_mab(key, conv_kv):
    ks = jax.random.split(key, 4)
    mp = {}
    mp['fc_q_w'], mp['fc_q_b'] = _init_linear(ks[0], GMT_HIDDEN, GMT_HIDDEN)
    if conv_kv:
        mp['k_conv'] = _init_gatv2(ks[1], GMT_HIDDEN, GMT_HIDDEN, 1)
        mp['v_conv'] = _init_gatv2(ks[2], GMT_HIDDEN, GMT_HIDDEN, 1)
    else:
        mp['k_w'], mp['k_b'] = _init_linear(ks[1], GMT_HIDDEN, GMT_HIDDEN)
        mp['v_w'], mp['v_b'] = _init_linear(ks[2], GMT_HIDDEN, GMT_HIDDEN)
    mp['fc_o_w'], mp['fc_o_b'] = _init_linear(ks[3], GMT_HIDDEN, GMT_HIDDEN)
    return mp


def init_params(key):
    keys = iter(jax.random.split(key, 32))
    params = {}

    # --- critic_state_gatv2_layer ---
    gat_layers = []
    in_dim = GAT_IN
    for out_ch in GAT_OUT_DIMS:
        conv = _init_gatv2(next(keys), in_dim, out_ch, GAT_HEADS)
        dim = out_ch * GAT_HEADS if GAT_CONCAT else out_ch
        gat_layers.append(dict(conv=conv,
                               gn_w=jnp.ones((1, dim), jnp.float32),
                               gn_b=jnp.zeros((1, dim), jnp.float32),
                               gn_ms=jnp.ones((1, dim), jnp.float32)))
        in_dim = dim
    params['gatv2'] = gat_layers

    # --- critic_state_gmt_layer ---
    lin1_w, lin1_b = _init_linear(next(keys), in_dim, GMT_HIDDEN)
    lin2_w, lin2_b = _init_linear(next(keys), GMT_HIDDEN, GMT_OUT)
    pma_g = _init_mab(next(keys), conv_kv=True)
    pma_g['S'] = jax.random.normal(next(keys), (GMT_SEEDS_G, GMT_HIDDEN), jnp.float32) * 0.1
    sab = _init_mab(next(keys), conv_kv=False)
    pma_i = _init_mab(next(keys), conv_kv=False)
    pma_i['S'] = jax.random.normal(next(keys), (1, GMT_HIDDEN), jnp.float32) * 0.1
    params['gmt'] = dict(lin1_w=lin1_w, lin1_b=lin1_b, lin2_w=lin2_w, lin2_b=lin2_b,
                         pma_g=pma_g, sab=sab, pma_i=pma_i)

    # --- critic_fc_layers : Linear(no bias) + BatchNorm1d(eval, default stats) + ReLU ---
    fc = []
    fin = GMT_OUT
    for fout in FC_DIMS:
        w, _ = _init_linear(next(keys), fin, fout, bias=False)
        scale = jnp.full((1, fout), 1.0 / math.sqrt(1.0 + BN_EPS), jnp.float32)  # gamma/sqrt(var+eps)
        shift = jnp.zeros((1, fout), jnp.float32)                                # beta - mean*scale
        fc.append(dict(w=w, scale=scale, shift=shift))
        fin = fout
    params['fc'] = fc

    pw, pb = _init_linear(next(keys), FC_DIMS[-1], 1)
    params['popart'] = dict(w=pw, b=pb)
    return params


# ----------------------------- main -----------------------------
if __name__ == "__main__":
    key = jax.random.PRNGKey(0)
    kx, kp = jax.random.split(key)

    N = 12  # number of nodes (agents) in the single graph
    x = jax.random.normal(kx, (N, GAT_IN), jnp.float32)

    # bidirectional ring graph, edge_index = [src; dst]
    src = jnp.arange(N, dtype=jnp.int32)
    dst = (src + 1) % N
    edge_index = jnp.stack([jnp.concatenate([src, dst]), jnp.concatenate([dst, src])])
    batch = jnp.zeros((N,), jnp.int32)  # single graph

    # dense adjacency adj[dst, src] with self-loops (GATv2Conv add_self_loops=True)
    adj = jnp.zeros((N, N), jnp.float32).at[edge_index[1], edge_index[0]].set(1.0)
    adj = jnp.maximum(adj, jnp.eye(N, dtype=jnp.float32))

    params = init_params(kp)
    v = critic_forward(params, x, adj, batch)
    v = jax.block_until_ready(v)
    assert v.shape == (1, 1) and jnp.all(jnp.isfinite(v))
    print("KERNEL_OK")
</pallas_src>

<mosaic_0001>
module attributes {stable_mosaic.version = 11 : i64} {
  func.func @kernel(%arg0: memref<12x12xf32, #tpu.memory_space<vmem>>, %arg1: memref<1x32xf32, #tpu.memory_space<vmem>>, %arg2: memref<1x32xf32, #tpu.memory_space<vmem>>, %arg3: memref<32x32xf32, #tpu.memory_space<vmem>>, %arg4: memref<1x16xf32, #tpu.memory_space<vmem>>, %arg5: memref<1x16xf32, #tpu.memory_space<vmem>>, %arg6: memref<32x16xf32, #tpu.memory_space<vmem>>, %arg7: memref<2x16xf32, #tpu.memory_space<vmem>>, %arg8: memref<1x32xf32, #tpu.memory_space<vmem>>, %arg9: memref<1x32xf32, #tpu.memory_space<vmem>>, %arg10: memref<1x32xf32, #tpu.memory_space<vmem>>, %arg11: memref<8x32xf32, #tpu.memory_space<vmem>>, %arg12: memref<8x32xf32, #tpu.memory_space<vmem>>, %arg13: memref<1x32xf32, #tpu.memory_space<vmem>>, %arg14: memref<1x32xf32, #tpu.memory_space<vmem>>, %arg15: memref<1x32xf32, #tpu.memory_space<vmem>>, %arg16: memref<2x16xf32, #tpu.memory_space<vmem>>, %arg17: memref<1x32xf32, #tpu.memory_space<vmem>>, %arg18: memref<1x32xf32, #tpu.memory_space<vmem>>, %arg19: memref<1x32xf32, #tpu.memory_space<vmem>>, %arg20: memref<32x32xf32, #tpu.memory_space<vmem>>, %arg21: memref<32x32xf32, #tpu.memory_space<vmem>>, %arg22: memref<1x32xf32, #tpu.memory_space<vmem>>, %arg23: memref<1x32xf32, #tpu.memory_space<vmem>>, %arg24: memref<1x32xf32, #tpu.memory_space<vmem>>, %arg25: memref<1x32xf32, #tpu.memory_space<vmem>>, %arg26: memref<32x32xf32, #tpu.memory_space<vmem>>, %arg27: memref<1x32xf32, #tpu.memory_space<vmem>>, %arg28: memref<32x32xf32, #tpu.memory_space<vmem>>, %arg29: memref<75x32xf32, #tpu.memory_space<vmem>>, %arg30: memref<1x32xf32, #tpu.memory_space<vmem>>, %arg31: memref<32x32xf32, #tpu.memory_space<vmem>>, %arg32: memref<1x32xf32, #tpu.memory_space<vmem>>, %arg33: memref<32x32xf32, #tpu.memory_space<vmem>>, %arg34: memref<1x32xf32, #tpu.memory_space<vmem>>, %arg35: memref<1x32xf32, #tpu.memory_space<vmem>>, %arg36: memref<1x32xf32, #tpu.memory_space<vmem>>, %arg37: memref<1x32xf32, #tpu.memory_space<vmem>>, %arg38: memref<32x32xf32, #tpu.memory_space<vmem>>, %arg39: memref<32x32xf32, #tpu.memory_space<vmem>>, %arg40: memref<1x32xf32, #tpu.memory_space<vmem>>, %arg41: memref<1x32xf32, #tpu.memory_space<vmem>>, %arg42: memref<1x32xf32, #tpu.memory_space<vmem>>, %arg43: memref<1x32xf32, #tpu.memory_space<vmem>>, %arg44: memref<32x32xf32, #tpu.memory_space<vmem>>, %arg45: memref<32x32xf32, #tpu.memory_space<vmem>>, %arg46: memref<1x32xf32, #tpu.memory_space<vmem>>, %arg47: memref<1x32xf32, #tpu.memory_space<vmem>>, %arg48: memref<32x32xf32, #tpu.memory_space<vmem>>, %arg49: memref<1x32xf32, #tpu.memory_space<vmem>>, %arg50: memref<32x32xf32, #tpu.memory_space<vmem>>, %arg51: memref<1x32xf32, #tpu.memory_space<vmem>>, %arg52: memref<32x32xf32, #tpu.memory_space<vmem>>, %arg53: memref<1x32xf32, #tpu.memory_space<vmem>>, %arg54: memref<32x32xf32, #tpu.memory_space<vmem>>, %arg55: memref<1x32xf32, #tpu.memory_space<vmem>>, %arg56: memref<32x32xf32, #tpu.memory_space<vmem>>, %arg57: memref<1x32xf32, #tpu.memory_space<vmem>>, %arg58: memref<32x32xf32, #tpu.memory_space<vmem>>, %arg59: memref<1x32xf32, #tpu.memory_space<vmem>>, %arg60: memref<32x32xf32, #tpu.memory_space<vmem>>, %arg61: memref<1x32xf32, #tpu.memory_space<vmem>>, %arg62: memref<32x32xf32, #tpu.memory_space<vmem>>, %arg63: memref<1x1xf32, #tpu.memory_space<vmem>>, %arg64: memref<16x1xf32, #tpu.memory_space<vmem>>, %arg65: memref<12x8xf32, #tpu.memory_space<vmem>>, %arg66: memref<1x1xf32, #tpu.memory_space<vmem>>) attributes {dimension_semantics = [], scalar_prefetch = 0 : i64, scratch_operands = 0 : i64, tpu.core_type = #tpu.core_type<tc>} {
    %c0 = arith.constant 0 : index
    %c0_0 = arith.constant 0 : index
    %0 = vector.load %arg0[%c0, %c0_0] : memref<12x12xf32, #tpu.memory_space<vmem>>, vector<12x12xf32>
    %c0_1 = arith.constant 0 : index
    %c0_2 = arith.constant 0 : index
    %1 = vector.load %arg1[%c0_1, %c0_2] : memref<1x32xf32, #tpu.memory_space<vmem>>, vector<1x32xf32>
    %c0_3 = arith.constant 0 : index
    %c0_4 = arith.constant 0 : index
    %2 = vector.load %arg2[%c0_3, %c0_4] : memref<1x32xf32, #tpu.memory_space<vmem>>, vector<1x32xf32>
    %c0_5 = arith.constant 0 : index
    %c0_6 = arith.constant 0 : index
    %3 = vector.load %arg3[%c0_5, %c0_6] : memref<32x32xf32, #tpu.memory_space<vmem>>, vector<32x32xf32>
    %c0_7 = arith.constant 0 : index
    %c0_8 = arith.constant 0 : index
    %4 = vector.load %arg4[%c0_7, %c0_8] : memref<1x16xf32, #tpu.memory_space<vmem>>, vector<1x16xf32>
    %c0_9 = arith.constant 0 : index
    %c0_10 = arith.constant 0 : index
    %5 = vector.load %arg5[%c0_9, %c0_10] : memref<1x16xf32, #tpu.memory_space<vmem>>, vector<1x16xf32>
    %c0_11 = arith.constant 0 : index
    %c0_12 = arith.constant 0 : index
    %6 = vector.load %arg6[%c0_11, %c0_12] : memref<32x16xf32, #tpu.memory_space<vmem>>, vector<32x16xf32>
    %c0_13 = arith.constant 0 : index
    %c0_14 = arith.constant 0 : index
    %7 = vector.load %arg7[%c0_13, %c0_14] : memref<2x16xf32, #tpu.memory_space<vmem>>, vector<2x16xf32>
    %c0_15 = arith.constant 0 : index
    %c0_16 = arith.constant 0 : index
    %8 = vector.load %arg8[%c0_15, %c0_16] : memref<1x32xf32, #tpu.memory_space<vmem>>, vector<1x32xf32>
    %c0_17 = arith.constant 0 : index
    %c0_18 = arith.constant 0 : index
    %9 = vector.load %arg9[%c0_17, %c0_18] : memref<1x32xf32, #tpu.memory_space<vmem>>, vector<1x32xf32>
    %c0_19 = arith.constant 0 : index
    %c0_20 = arith.constant 0 : index
    %10 = vector.load %arg10[%c0_19, %c0_20] : memref<1x32xf32, #tpu.memory_space<vmem>>, vector<1x32xf32>
    %c0_21 = arith.constant 0 : index
    %c0_22 = arith.constant 0 : index
    %11 = vector.load %arg11[%c0_21, %c0_22] : memref<8x32xf32, #tpu.memory_space<vmem>>, vector<8x32xf32>
    %c0_23 = arith.constant 0 : index
    %c0_24 = arith.constant 0 : index
    %12 = vector.load %arg12[%c0_23, %c0_24] : memref<8x32xf32, #tpu.memory_space<vmem>>, vector<8x32xf32>
    %c0_25 = arith.constant 0 : index
    %c0_26 = arith.constant 0 : index
    %13 = vector.load %arg13[%c0_25, %c0_26] : memref<1x32xf32, #tpu.memory_space<vmem>>, vector<1x32xf32>
    %c0_27 = arith.constant 0 : index
    %c0_28 = arith.constant 0 : index
    %14 = vector.load %arg14[%c0_27, %c0_28] : memref<1x32xf32, #tpu.memory_space<vmem>>, vector<1x32xf32>
    %c0_29 = arith.constant 0 : index
    %c0_30 = arith.constant 0 : index
    %15 = vector.load %arg15[%c0_29, %c0_30] : memref<1x32xf32, #tpu.memory_space<vmem>>, vector<1x32xf32>
    %c0_31 = arith.constant 0 : index
    %c0_32 = arith.constant 0 : index
    %16 = vector.load %arg16[%c0_31, %c0_32] : memref<2x16xf32, #tpu.memory_space<vmem>>, vector<2x16xf32>
    %c0_33 = arith.constant 0 : index
    %c0_34 = arith.constant 0 : index
    %17 = vector.load %arg17[%c0_33, %c0_34] : memref<1x32xf32, #tpu.memory_space<vmem>>, vector<1x32xf32>
    %c0_35 = arith.constant 0 : index
    %c0_36 = arith.constant 0 : index
    %18 = vector.load %arg18[%c0_35, %c0_36] : memref<1x32xf32, #tpu.memory_space<vmem>>, vector<1x32xf32>
    %c0_37 = arith.constant 0 : index
    %c0_38 = arith.constant 0 : index
    %19 = vector.load %arg19[%c0_37, %c0_38] : memref<1x32xf32, #tpu.memory_space<vmem>>, vector<1x32xf32>
    %c0_39 = arith.constant 0 : index
    %c0_40 = arith.constant 0 : index
    %20 = vector.load %arg20[%c0_39, %c0_40] : memref<32x32xf32, #tpu.memory_space<vmem>>, vector<32x32xf32>
    %c0_41 = arith.constant 0 : index
    %c0_42 = arith.constant 0 : index
    %21 = vector.load %arg21[%c0_41, %c0_42] : memref<32x32xf32, #tpu.memory_space<vmem>>, vector<32x32xf32>
    %c0_43 = arith.constant 0 : index
    %c0_44 = arith.constant 0 : index
    %22 = vector.load %arg22[%c0_43, %c0_44] : memref<1x32xf32, #tpu.memory_space<vmem>>, vector<1x32xf32>
    %c0_45 = arith.constant 0 : index
    %c0_46 = arith.constant 0 : index
    %23 = vector.load %arg23[%c0_45, %c0_46] : memref<1x32xf32, #tpu.memory_space<vmem>>, vector<1x32xf32>
    %c0_47 = arith.constant 0 : index
    %c0_48 = arith.constant 0 : index
    %24 = vector.load %arg24[%c0_47, %c0_48] : memref<1x32xf32, #tpu.memory_space<vmem>>, vector<1x32xf32>
    %c0_49 = arith.constant 0 : index
    %c0_50 = arith.constant 0 : index
    %25 = vector.load %arg25[%c0_49, %c0_50] : memref<1x32xf32, #tpu.memory_space<vmem>>, vector<1x32xf32>
    %c0_51 = arith.constant 0 : index
    %c0_52 = arith.constant 0 : index
    %26 = vector.load %arg26[%c0_51, %c0_52] : memref<32x32xf32, #tpu.memory_space<vmem>>, vector<32x32xf32>
    %c0_53 = arith.constant 0 : index
    %c0_54 = arith.constant 0 : index
    %27 = vector.load %arg27[%c0_53, %c0_54] : memref<1x32xf32, #tpu.memory_space<vmem>>, vector<1x32xf32>
    %c0_55 = arith.constant 0 : index
    %c0_56 = arith.constant 0 : index
    %28 = vector.load %arg28[%c0_55, %c0_56] : memref<32x32xf32, #tpu.memory_space<vmem>>, vector<32x32xf32>
    %c0_57 = arith.constant 0 : index
    %c0_58 = arith.constant 0 : index
    %29 = vector.load %arg29[%c0_57, %c0_58] : memref<75x32xf32, #tpu.memory_space<vmem>>, vector<75x32xf32>
    %c0_59 = arith.constant 0 : index
    %c0_60 = arith.constant 0 : index
    %30 = vector.load %arg30[%c0_59, %c0_60] : memref<1x32xf32, #tpu.memory_space<vmem>>, vector<1x32xf32>
    %c0_61 = arith.constant 0 : index
    %c0_62 = arith.constant 0 : index
    %31 = vector.load %arg31[%c0_61, %c0_62] : memref<32x32xf32, #tpu.memory_space<vmem>>, vector<32x32xf32>
    %c0_63 = arith.constant 0 : index
    %c0_64 = arith.constant 0 : index
    %32 = vector.load %arg32[%c0_63, %c0_64] : memref<1x32xf32, #tpu.memory_space<vmem>>, vector<1x32xf32>
    %c0_65 = arith.constant 0 : index
    %c0_66 = arith.constant 0 : index
    %33 = vector.load %arg33[%c0_65, %c0_66] : memref<32x32xf32, #tpu.memory_space<vmem>>, vector<32x32xf32>
    %c0_67 = arith.constant 0 : index
    %c0_68 = arith.constant 0 : index
    %34 = vector.load %arg34[%c0_67, %c0_68] : memref<1x32xf32, #tpu.memory_space<vmem>>, vector<1x32xf32>
    %c0_69 = arith.constant 0 : index
    %c0_70 = arith.constant 0 : index
    %35 = vector.load %arg35[%c0_69, %c0_70] : memref<1x32xf32, #tpu.memory_space<vmem>>, vector<1x32xf32>
    %c0_71 = arith.constant 0 : index
    %c0_72 = arith.constant 0 : index
    %36 = vector.load %arg36[%c0_71, %c0_72] : memref<1x32xf32, #tpu.memory_space<vmem>>, vector<1x32xf32>
    %c0_73 = arith.constant 0 : index
    %c0_74 = arith.constant 0 : index
    %37 = vector.load %arg37[%c0_73, %c0_74] : memref<1x32xf32, #tpu.memory_space<vmem>>, vector<1x32xf32>
    %c0_75 = arith.constant 0 : index
    %c0_76 = arith.constant 0 : index
    %38 = vector.load %arg38[%c0_75, %c0_76] : memref<32x32xf32, #tpu.memory_space<vmem>>, vector<32x32xf32>
    %c0_77 = arith.constant 0 : index
    %c0_78 = arith.constant 0 : index
    %39 = vector.load %arg39[%c0_77, %c0_78] : memref<32x32xf32, #tpu.memory_space<vmem>>, vector<32x32xf32>
    %c0_79 = arith.constant 0 : index
    %c0_80 = arith.constant 0 : index
    %40 = vector.load %arg40[%c0_79, %c0_80] : memref<1x32xf32, #tpu.memory_space<vmem>>, vector<1x32xf32>
    %c0_81 = arith.constant 0 : index
    %c0_82 = arith.constant 0 : index
    %41 = vector.load %arg41[%c0_81, %c0_82] : memref<1x32xf32, #tpu.memory_space<vmem>>, vector<1x32xf32>
    %c0_83 = arith.constant 0 : index
    %c0_84 = arith.constant 0 : index
    %42 = vector.load %arg42[%c0_83, %c0_84] : memref<1x32xf32, #tpu.memory_space<vmem>>, vector<1x32xf32>
    %c0_85 = arith.constant 0 : index
    %c0_86 = arith.constant 0 : index
    %43 = vector.load %arg43[%c0_85, %c0_86] : memref<1x32xf32, #tpu.memory_space<vmem>>, vector<1x32xf32>
    %c0_87 = arith.constant 0 : index
    %c0_88 = arith.constant 0 : index
    %44 = vector.load %arg44[%c0_87, %c0_88] : memref<32x32xf32, #tpu.memory_space<vmem>>, vector<32x32xf32>
    %c0_89 = arith.constant 0 : index
    %c0_90 = arith.constant 0 : index
    %45 = vector.load %arg45[%c0_89, %c0_90] : memref<32x32xf32, #tpu.memory_space<vmem>>, vector<32x32xf32>
    %c0_91 = arith.constant 0 : index
    %c0_92 = arith.constant 0 : index
    %46 = vector.load %arg46[%c0_91, %c0_92] : memref<1x32xf32, #tpu.memory_space<vmem>>, vector<1x32xf32>
    %c0_93 = arith.constant 0 : index
    %c0_94 = arith.constant 0 : index
    %47 = vector.load %arg47[%c0_93, %c0_94] : memref<1x32xf32, #tpu.memory_space<vmem>>, vector<1x32xf32>
    %c0_95 = arith.constant 0 : index
    %c0_96 = arith.constant 0 : index
    %48 = vector.load %arg48[%c0_95, %c0_96] : memref<32x32xf32, #tpu.memory_space<vmem>>, vector<32x32xf32>
    %c0_97 = arith.constant 0 : index
    %c0_98 = arith.constant 0 : index
    %49 = vector.load %arg49[%c0_97, %c0_98] : memref<1x32xf32, #tpu.memory_space<vmem>>, vector<1x32xf32>
    %c0_99 = arith.constant 0 : index
    %c0_100 = arith.constant 0 : index
    %50 = vector.load %arg50[%c0_99, %c0_100] : memref<32x32xf32, #tpu.memory_space<vmem>>, vector<32x32xf32>
    %c0_101 = arith.constant 0 : index
    %c0_102 = arith.constant 0 : index
    %51 = vector.load %arg51[%c0_101, %c0_102] : memref<1x32xf32, #tpu.memory_space<vmem>>, vector<1x32xf32>
    %c0_103 = arith.constant 0 : index
    %c0_104 = arith.constant 0 : index
    %52 = vector.load %arg52[%c0_103, %c0_104] : memref<32x32xf32, #tpu.memory_space<vmem>>, vector<32x32xf32>
    %c0_105 = arith.constant 0 : index
    %c0_106 = arith.constant 0 : index
    %53 = vector.load %arg53[%c0_105, %c0_106] : memref<1x32xf32, #tpu.memory_space<vmem>>, vector<1x32xf32>
    %c0_107 = arith.constant 0 : index
    %c0_108 = arith.constant 0 : index
    %54 = vector.load %arg54[%c0_107, %c0_108] : memref<32x32xf32, #tpu.memory_space<vmem>>, vector<32x32xf32>
    %c0_109 = arith.constant 0 : index
    %c0_110 = arith.constant 0 : index
    %55 = vector.load %arg55[%c0_109, %c0_110] : memref<1x32xf32, #tpu.memory_space<vmem>>, vector<1x32xf32>
    %c0_111 = arith.constant 0 : index
    %c0_112 = arith.constant 0 : index
    %56 = vector.load %arg56[%c0_111, %c0_112] : memref<32x32xf32, #tpu.memory_space<vmem>>, vector<32x32xf32>
    %c0_113 = arith.constant 0 : index
    %c0_114 = arith.constant 0 : index
    %57 = vector.load %arg57[%c0_113, %c0_114] : memref<1x32xf32, #tpu.memory_space<vmem>>, vector<1x32xf32>
    %c0_115 = arith.constant 0 : index
    %c0_116 = arith.constant 0 : index
    %58 = vector.load %arg58[%c0_115, %c0_116] : memref<32x32xf32, #tpu.memory_space<vmem>>, vector<32x32xf32>
    %c0_117 = arith.constant 0 : index
    %c0_118 = arith.constant 0 : index
    %59 = vector.load %arg59[%c0_117, %c0_118] : memref<1x32xf32, #tpu.memory_space<vmem>>, vector<1x32xf32>
    %c0_119 = arith.constant 0 : index
    %c0_120 = arith.constant 0 : index
    %60 = vector.load %arg60[%c0_119, %c0_120] : memref<32x32xf32, #tpu.memory_space<vmem>>, vector<32x32xf32>
    %c0_121 = arith.constant 0 : index
    %c0_122 = arith.constant 0 : index
    %61 = vector.load %arg61[%c0_121, %c0_122] : memref<1x32xf32, #tpu.memory_space<vmem>>, vector<1x32xf32>
    %c0_123 = arith.constant 0 : index
    %c0_124 = arith.constant 0 : index
    %62 = vector.load %arg62[%c0_123, %c0_124] : memref<32x32xf32, #tpu.memory_space<vmem>>, vector<32x32xf32>
    %c0_125 = arith.constant 0 : index
    %c0_126 = arith.constant 0 : index
    %63 = vector.load %arg63[%c0_125, %c0_126] : memref<1x1xf32, #tpu.memory_space<vmem>>, vector<1x1xf32>
    %c0_127 = arith.constant 0 : index
    %c0_128 = arith.constant 0 : index
    %64 = vector.load %arg64[%c0_127, %c0_128] : memref<16x1xf32, #tpu.memory_space<vmem>>, vector<16x1xf32>
    %c0_129 = arith.constant 0 : index
    %c0_130 = arith.constant 0 : index
    %65 = vector.load %arg65[%c0_129, %c0_130] : memref<12x8xf32, #tpu.memory_space<vmem>>, vector<12x8xf32>
    %cst = arith.constant dense<0.000000e+00> : vector<12x32xf32>
    %66 = tpu.matmul %65, %11, %cst {dimension_numbers = #tpu.dot_dimension_numbers<[1], [0], [0], [1], [0, 0, 1, 1], [], []>} : vector<12x8xf32>, vector<8x32xf32>, vector<12x32xf32> -> vector<12x32xf32>
    %67 = vector.broadcast %9 : vector<1x32xf32> to vector<12x32xf32>
    %68 = arith.addf %66, %67 : vector<12x32xf32>
    %cst_131 = arith.constant dense<0.000000e+00> : vector<12x32xf32>
    %69 = tpu.matmul %65, %12, %cst_131 {dimension_numbers = #tpu.dot_dimension_numbers<[1], [0], [0], [1], [0, 0, 1, 1], [], []>} : vector<12x8xf32>, vector<8x32xf32>, vector<12x32xf32> -> vector<12x32xf32>
    %70 = vector.broadcast %10 : vector<1x32xf32> to vector<12x32xf32>
    %71 = arith.addf %69, %70 : vector<12x32xf32>
    %72 = vector.extract_strided_slice %68 {offsets = [0, 0], sizes = [12, 16], strides = [1, 1]} : vector<12x32xf32> to vector<12x16xf32>
    %73 = vector.extract_strided_slice %71 {offsets = [0, 0], sizes = [12, 16], strides = [1, 1]} : vector<12x32xf32> to vector<12x16xf32>
    %74 = vector.extract_strided_slice %7 {offsets = [0, 0], sizes = [1, 16], strides = [1, 1]} : vector<2x16xf32> to vector<1x16xf32>
    %75 = vector.shape_cast %73 : vector<12x16xf32> to vector<12x1x16xf32>
    %76 = vector.shape_cast %72 : vector<12x16xf32> to vector<1x12x16xf32>
    %77 = vector.broadcast %75 : vector<12x1x16xf32> to vector<12x12x16xf32>
    %78 = vector.broadcast %76 : vector<1x12x16xf32> to vector<12x12x16xf32>
    %79 = arith.addf %77, %78 : vector<12x12x16xf32>
    %cst_132 = arith.constant 0.000000e+00 : f32
    %80 = vector.broadcast %cst_132 : f32 to vector<12x12x16xf32>
    %81 = arith.cmpf ogt, %79, %80 : vector<12x12x16xf32>
    %cst_133 = arith.constant 2.000000e-01 : f32
    %82 = vector.broadcast %cst_133 : f32 to vector<12x12x16xf32>
    %83 = arith.mulf %82, %79 : vector<12x12x16xf32>
    %84 = arith.select %81, %79, %83 : vector<12x12x16xi1>, vector<12x12x16xf32>
    %85 = vector.shape_cast %74 : vector<1x16xf32> to vector<1x1x16xf32>
    %86 = vector.broadcast %85 : vector<1x1x16xf32> to vector<12x12x16xf32>
    %87 = arith.mulf %84, %86 : vector<12x12x16xf32>
    %cst_134 = arith.constant dense<0.000000e+00> : vector<12x12xf32>
    %88 = vector.multi_reduction <add>, %87, %cst_134 [2] : vector<12x12x16xf32> to vector<12x12xf32>
    %cst_135 = arith.constant 0.000000e+00 : f32
    %89 = vector.broadcast %cst_135 : f32 to vector<12x12xf32>
    %90 = arith.cmpf ogt, %0, %89 : vector<12x12xf32>
    %cst_136 = arith.constant -1.000000e+30 : f32
    %91 = vector.broadcast %cst_136 : f32 to vector<12x12xf32>
    %92 = arith.select %90, %88, %91 : vector<12x12xi1>, vector<12x12xf32>
    %cst_137 = arith.constant dense<0xFF800000> : vector<12xf32>
    %93 = vector.multi_reduction <maximumf>, %92, %cst_137 [1] : vector<12x12xf32> to vector<12xf32>
    %94 = vector.shape_cast %93 : vector<12xf32> to vector<12x1xf32>
    %95 = vector.broadcast %94 : vector<12x1xf32> to vector<12x12xf32>
    %96 = arith.subf %92, %95 : vector<12x12xf32>
    %97 = math.exp %96 : vector<12x12xf32>
    %cst_138 = arith.constant dense<0.000000e+00> : vector<12xf32>
    %98 = vector.multi_reduction <add>, %97, %cst_138 [1] : vector<12x12xf32> to vector<12xf32>
    %99 = vector.shape_cast %98 : vector<12xf32> to vector<12x1xf32>
    %100 = tpu.reciprocal %99 {approx = true} : vector<12x1xf32> -> vector<12x1xf32>
    %101 = vector.broadcast %100 : vector<12x1xf32> to vector<12x12xf32>
    %102 = arith.mulf %97, %101 : vector<12x12xf32>
    %cst_139 = arith.constant dense<0.000000e+00> : vector<12x16xf32>
    %103 = tpu.matmul %102, %72, %cst_139 {dimension_numbers = #tpu.dot_dimension_numbers<[1], [0], [0], [1], [0, 0, 1, 1], [], []>} : vector<12x12xf32>, vector<12x16xf32>, vector<12x16xf32> -> vector<12x16xf32>
    %104 = vector.extract_strided_slice %68 {offsets = [0, 16], sizes = [12, 16], strides = [1, 1]} : vector<12x32xf32> to vector<12x16xf32>
    %105 = vector.extract_strided_slice %71 {offsets = [0, 16], sizes = [12, 16], strides = [1, 1]} : vector<12x32xf32> to vector<12x16xf32>
    %106 = vector.extract_strided_slice %7 {offsets = [1, 0], sizes = [1, 16], strides = [1, 1]} : vector<2x16xf32> to vector<1x16xf32>
    %107 = vector.shape_cast %105 : vector<12x16xf32> to vector<12x1x16xf32>
    %108 = vector.shape_cast %104 : vector<12x16xf32> to vector<1x12x16xf32>
    %109 = vector.broadcast %107 : vector<12x1x16xf32> to vector<12x12x16xf32>
    %110 = vector.broadcast %108 : vector<1x12x16xf32> to vector<12x12x16xf32>
    %111 = arith.addf %109, %110 : vector<12x12x16xf32>
    %cst_140 = arith.constant 0.000000e+00 : f32
    %112 = vector.broadcast %cst_140 : f32 to vector<12x12x16xf32>
    %113 = arith.cmpf ogt, %111, %112 : vector<12x12x16xf32>
    %cst_141 = arith.constant 2.000000e-01 : f32
    %114 = vector.broadcast %cst_141 : f32 to vector<12x12x16xf32>
    %115 = arith.mulf %114, %111 : vector<12x12x16xf32>
    %116 = arith.select %113, %111, %115 : vector<12x12x16xi1>, vector<12x12x16xf32>
    %117 = vector.shape_cast %106 : vector<1x16xf32> to vector<1x1x16xf32>
    %118 = vector.broadcast %117 : vector<1x1x16xf32> to vector<12x12x16xf32>
    %119 = arith.mulf %116, %118 : vector<12x12x16xf32>
    %cst_142 = arith.constant dense<0.000000e+00> : vector<12x12xf32>
    %120 = vector.multi_reduction <add>, %119, %cst_142 [2] : vector<12x12x16xf32> to vector<12x12xf32>
    %cst_143 = arith.constant 0.000000e+00 : f32
    %121 = vector.broadcast %cst_143 : f32 to vector<12x12xf32>
    %122 = arith.cmpf ogt, %0, %121 : vector<12x12xf32>
    %cst_144 = arith.constant -1.000000e+30 : f32
    %123 = vector.broadcast %cst_144 : f32 to vector<12x12xf32>
    %124 = arith.select %122, %120, %123 : vector<12x12xi1>, vector<12x12xf32>
    %cst_145 = arith.constant dense<0xFF800000> : vector<12xf32>
    %125 = vector.multi_reduction <maximumf>, %124, %cst_145 [1] : vector<12x12xf32> to vector<12xf32>
    %126 = vector.shape_cast %125 : vector<12xf32> to vector<12x1xf32>
    %127 = vector.broadcast %126 : vector<12x1xf32> to vector<12x12xf32>
    %128 = arith.subf %124, %127 : vector<12x12xf32>
    %129 = math.exp %128 : vector<12x12xf32>
    %cst_146 = arith.constant dense<0.000000e+00> : vector<12xf32>
    %130 = vector.multi_reduction <add>, %129, %cst_146 [1] : vector<12x12xf32> to vector<12xf32>
    %131 = vector.shape_cast %130 : vector<12xf32> to vector<12x1xf32>
    %132 = tpu.reciprocal %131 {approx = true} : vector<12x1xf32> -> vector<12x1xf32>
    %133 = vector.broadcast %132 : vector<12x1xf32> to vector<12x12xf32>
    %134 = arith.mulf %129, %133 : vector<12x12xf32>
    %cst_147 = arith.constant dense<0.000000e+00> : vector<12x16xf32>
    %135 = tpu.matmul %134, %104, %cst_147 {dimension_numbers = #tpu.dot_dimension_numbers<[1], [0], [0], [1], [0, 0, 1, 1], [], []>} : vector<12x12xf32>, vector<12x16xf32>, vector<12x16xf32> -> vector<12x16xf32>
    %136 = tpu.concatenate %103, %135 in 1 : vector<12x16xf32>, vector<12x16xf32> -> vector<12x32xf32>
    %137 = vector.broadcast %8 : vector<1x32xf32> to vector<12x32xf32>
    %138 = arith.addf %136, %137 : vector<12x32xf32>
    %cst_148 = arith.constant dense<0.000000e+00> : vector<32xf32>
    %139 = vector.multi_reduction <add>, %138, %cst_148 [0] : vector<12x32xf32> to vector<32xf32>
    %140 = vector.shape_cast %139 : vector<32xf32> to vector<1x32xf32>
    %cst_149 = arith.constant 0.0833333358 : f32
    %141 = vector.broadcast %cst_149 : f32 to vector<1x32xf32>
    %142 = arith.mulf %140, %141 : vector<1x32xf32>
    %143 = arith.mulf %142, %14 : vector<1x32xf32>
    %144 = vector.broadcast %143 : vector<1x32xf32> to vector<12x32xf32>
    %145 = arith.subf %138, %144 : vector<12x32xf32>
    %146 = arith.mulf %145, %145 : vector<12x32xf32>
    %cst_150 = arith.constant dense<0.000000e+00> : vector<32xf32>
    %147 = vector.multi_reduction <add>, %146, %cst_150 [0] : vector<12x32xf32> to vector<32xf32>
    %148 = vector.shape_cast %147 : vector<32xf32> to vector<1x32xf32>
    %cst_151 = arith.constant 0.0833333358 : f32
    %149 = vector.broadcast %cst_151 : f32 to vector<1x32xf32>
    %150 = arith.mulf %148, %149 : vector<1x32xf32>
    %cst_152 = arith.constant 9.99999974E-6 : f32
    %151 = vector.broadcast %cst_152 : f32 to vector<1x32xf32>
    %152 = arith.addf %150, %151 : vector<1x32xf32>
    %153 = math.rsqrt %152 : vector<1x32xf32>
    %154 = vector.broadcast %15 : vector<1x32xf32> to vector<12x32xf32>
    %155 = arith.mulf %154, %145 : vector<12x32xf32>
    %156 = vector.broadcast %153 : vector<1x32xf32> to vector<12x32xf32>
    %157 = arith.mulf %155, %156 : vector<12x32xf32>
    %158 = vector.broadcast %13 : vector<1x32xf32> to vector<12x32xf32>
    %159 = arith.addf %157, %158 : vector<12x32xf32>
    %cst_153 = arith.constant 0.000000e+00 : f32
    %160 = vector.broadcast %cst_153 : f32 to vector<12x32xf32>
    %161 = arith.maximumf %159, %160 : vector<12x32xf32>
    %cst_154 = arith.constant dense<0.000000e+00> : vector<12x32xf32>
    %162 = tpu.matmul %161, %20, %cst_154 {dimension_numbers = #tpu.dot_dimension_numbers<[1], [0], [0], [1], [0, 0, 1, 1], [], []>} : vector<12x32xf32>, vector<32x32xf32>, vector<12x32xf32> -> vector<12x32xf32>
    %163 = vector.broadcast %18 : vector<1x32xf32> to vector<12x32xf32>
    %164 = arith.addf %162, %163 : vector<12x32xf32>
    %cst_155 = arith.constant dense<0.000000e+00> : vector<12x32xf32>
    %165 = tpu.matmul %161, %21, %cst_155 {dimension_numbers = #tpu.dot_dimension_numbers<[1], [0], [0], [1], [0, 0, 1, 1], [], []>} : vector<12x32xf32>, vector<32x32xf32>, vector<12x32xf32> -> vector<12x32xf32>
    %166 = vector.broadcast %19 : vector<1x32xf32> to vector<12x32xf32>
    %167 = arith.addf %165, %166 : vector<12x32xf32>
    %168 = vector.extract_strided_slice %164 {offsets = [0, 0], sizes = [12, 16], strides = [1, 1]} : vector<12x32xf32> to vector<12x16xf32>
    %169 = vector.extract_strided_slice %167 {offsets = [0, 0], sizes = [12, 16], strides = [1, 1]} : vector<12x32xf32> to vector<12x16xf32>
    %170 = vector.extract_strided_slice %16 {offsets = [0, 0], sizes = [1, 16], strides = [1, 1]} : vector<2x16xf32> to vector<1x16xf32>
    %171 = vector.shape_cast %169 : vector<12x16xf32> to vector<12x1x16xf32>
    %172 = vector.shape_cast %168 : vector<12x16xf32> to vector<1x12x16xf32>
    %173 = vector.broadcast %171 : vector<12x1x16xf32> to vector<12x12x16xf32>
    %174 = vector.broadcast %172 : vector<1x12x16xf32> to vector<12x12x16xf32>
    %175 = arith.addf %173, %174 : vector<12x12x16xf32>
    %cst_156 = arith.constant 0.000000e+00 : f32
    %176 = vector.broadcast %cst_156 : f32 to vector<12x12x16xf32>
    %177 = arith.cmpf ogt, %175, %176 : vector<12x12x16xf32>
    %cst_157 = arith.constant 2.000000e-01 : f32
    %178 = vector.broadcast %cst_157 : f32 to vector<12x12x16xf32>
    %179 = arith.mulf %178, %175 : vector<12x12x16xf32>
    %180 = arith.select %177, %175, %179 : vector<12x12x16xi1>, vector<12x12x16xf32>
    %181 = vector.shape_cast %170 : vector<1x16xf32> to vector<1x1x16xf32>
    %182 = vector.broadcast %181 : vector<1x1x16xf32> to vector<12x12x16xf32>
    %183 = arith.mulf %180, %182 : vector<12x12x16xf32>
    %cst_158 = arith.constant dense<0.000000e+00> : vector<12x12xf32>
    %184 = vector.multi_reduction <add>, %183, %cst_158 [2] : vector<12x12x16xf32> to vector<12x12xf32>
    %cst_159 = arith.constant 0.000000e+00 : f32
    %185 = vector.broadcast %cst_159 : f32 to vector<12x12xf32>
    %186 = arith.cmpf ogt, %0, %185 : vector<12x12xf32>
    %cst_160 = arith.constant -1.000000e+30 : f32
    %187 = vector.broadcast %cst_160 : f32 to vector<12x12xf32>
    %188 = arith.select %186, %184, %187 : vector<12x12xi1>, vector<12x12xf32>
    %cst_161 = arith.constant dense<0xFF800000> : vector<12xf32>
    %189 = vector.multi_reduction <maximumf>, %188, %cst_161 [1] : vector<12x12xf32> to vector<12xf32>
    %190 = vector.shape_cast %189 : vector<12xf32> to vector<12x1xf32>
    %191 = vector.broadcast %190 : vector<12x1xf32> to vector<12x12xf32>
    %192 = arith.subf %188, %191 : vector<12x12xf32>
    %193 = math.exp %192 : vector<12x12xf32>
    %cst_162 = arith.constant dense<0.000000e+00> : vector<12xf32>
    %194 = vector.multi_reduction <add>, %193, %cst_162 [1] : vector<12x12xf32> to vector<12xf32>
    %195 = vector.shape_cast %194 : vector<12xf32> to vector<12x1xf32>
    %196 = tpu.reciprocal %195 {approx = true} : vector<12x1xf32> -> vector<12x1xf32>
    %197 = vector.broadcast %196 : vector<12x1xf32> to vector<12x12xf32>
    %198 = arith.mulf %193, %197 : vector<12x12xf32>
    %cst_163 = arith.constant dense<0.000000e+00> : vector<12x16xf32>
    %199 = tpu.matmul %198, %168, %cst_163 {dimension_numbers = #tpu.dot_dimension_numbers<[1], [0], [0], [1], [0, 0, 1, 1], [], []>} : vector<12x12xf32>, vector<12x16xf32>, vector<12x16xf32> -> vector<12x16xf32>
    %200 = vector.extract_strided_slice %164 {offsets = [0, 16], sizes = [12, 16], strides = [1, 1]} : vector<12x32xf32> to vector<12x16xf32>
    %201 = vector.extract_strided_slice %167 {offsets = [0, 16], sizes = [12, 16], strides = [1, 1]} : vector<12x32xf32> to vector<12x16xf32>
    %202 = vector.extract_strided_slice %16 {offsets = [1, 0], sizes = [1, 16], strides = [1, 1]} : vector<2x16xf32> to vector<1x16xf32>
    %203 = vector.shape_cast %201 : vector<12x16xf32> to vector<12x1x16xf32>
    %204 = vector.shape_cast %200 : vector<12x16xf32> to vector<1x12x16xf32>
    %205 = vector.broadcast %203 : vector<12x1x16xf32> to vector<12x12x16xf32>
    %206 = vector.broadcast %204 : vector<1x12x16xf32> to vector<12x12x16xf32>
    %207 = arith.addf %205, %206 : vector<12x12x16xf32>
    %cst_164 = arith.constant 0.000000e+00 : f32
    %208 = vector.broadcast %cst_164 : f32 to vector<12x12x16xf32>
    %209 = arith.cmpf ogt, %207, %208 : vector<12x12x16xf32>
    %cst_165 = arith.constant 2.000000e-01 : f32
    %210 = vector.broadcast %cst_165 : f32 to vector<12x12x16xf32>
    %211 = arith.mulf %210, %207 : vector<12x12x16xf32>
    %212 = arith.select %209, %207, %211 : vector<12x12x16xi1>, vector<12x12x16xf32>
    %213 = vector.shape_cast %202 : vector<1x16xf32> to vector<1x1x16xf32>
    %214 = vector.broadcast %213 : vector<1x1x16xf32> to vector<12x12x16xf32>
    %215 = arith.mulf %212, %214 : vector<12x12x16xf32>
    %cst_166 = arith.constant dense<0.000000e+00> : vector<12x12xf32>
    %216 = vector.multi_reduction <add>, %215, %cst_166 [2] : vector<12x12x16xf32> to vector<12x12xf32>
    %cst_167 = arith.constant 0.000000e+00 : f32
    %217 = vector.broadcast %cst_167 : f32 to vector<12x12xf32>
    %218 = arith.cmpf ogt, %0, %217 : vector<12x12xf32>
    %cst_168 = arith.constant -1.000000e+30 : f32
    %219 = vector.broadcast %cst_168 : f32 to vector<12x12xf32>
    %220 = arith.select %218, %216, %219 : vector<12x12xi1>, vector<12x12xf32>
    %cst_169 = arith.constant dense<0xFF800000> : vector<12xf32>
    %221 = vector.multi_reduction <maximumf>, %220, %cst_169 [1] : vector<12x12xf32> to vector<12xf32>
    %222 = vector.shape_cast %221 : vector<12xf32> to vector<12x1xf32>
    %223 = vector.broadcast %222 : vector<12x1xf32> to vector<12x12xf32>
    %224 = arith.subf %220, %223 : vector<12x12xf32>
    %225 = math.exp %224 : vector<12x12xf32>
    %cst_170 = arith.constant dense<0.000000e+00> : vector<12xf32>
    %226 = vector.multi_reduction <add>, %225, %cst_170 [1] : vector<12x12xf32> to vector<12xf32>
    %227 = vector.shape_cast %226 : vector<12xf32> to vector<12x1xf32>
    %228 = tpu.reciprocal %227 {approx = true} : vector<12x1xf32> -> vector<12x1xf32>
    %229 = vector.broadcast %228 : vector<12x1xf32> to vector<12x12xf32>
    %230 = arith.mulf %225, %229 : vector<12x12xf32>
    %cst_171 = arith.constant dense<0.000000e+00> : vector<12x16xf32>
    %231 = tpu.matmul %230, %200, %cst_171 {dimension_numbers = #tpu.dot_dimension_numbers<[1], [0], [0], [1], [0, 0, 1, 1], [], []>} : vector<12x12xf32>, vector<12x16xf32>, vector<12x16xf32> -> vector<12x16xf32>
    %232 = tpu.concatenate %199, %231 in 1 : vector<12x16xf32>, vector<12x16xf32> -> vector<12x32xf32>
    %233 = vector.broadcast %17 : vector<1x32xf32> to vector<12x32xf32>
    %234 = arith.addf %232, %233 : vector<12x32xf32>
    %cst_172 = arith.constant dense<0.000000e+00> : vector<32xf32>
    %235 = vector.multi_reduction <add>, %234, %cst_172 [0] : vector<12x32xf32> to vector<32xf32>
    %236 = vector.shape_cast %235 : vector<32xf32> to vector<1x32xf32>
    %cst_173 = arith.constant 0.0833333358 : f32
    %237 = vector.broadcast %cst_173 : f32 to vector<1x32xf32>
    %238 = arith.mulf %236, %237 : vector<1x32xf32>
    %239 = arith.mulf %238, %23 : vector<1x32xf32>
    %240 = vector.broadcast %239 : vector<1x32xf32> to vector<12x32xf32>
    %241 = arith.subf %234, %240 : vector<12x32xf32>
    %242 = arith.mulf %241, %241 : vector<12x32xf32>
    %cst_174 = arith.constant dense<0.000000e+00> : vector<32xf32>
    %243 = vector.multi_reduction <add>, %242, %cst_174 [0] : vector<12x32xf32> to vector<32xf32>
    %244 = vector.shape_cast %243 : vector<32xf32> to vector<1x32xf32>
    %cst_175 = arith.constant 0.0833333358 : f32
    %245 = vector.broadcast %cst_175 : f32 to vector<1x32xf32>
    %246 = arith.mulf %244, %245 : vector<1x32xf32>
    %cst_176 = arith.constant 9.99999974E-6 : f32
    %247 = vector.broadcast %cst_176 : f32 to vector<1x32xf32>
    %248 = arith.addf %246, %247 : vector<1x32xf32>
    %249 = math.rsqrt %248 : vector<1x32xf32>
    %250 = vector.broadcast %24 : vector<1x32xf32> to vector<12x32xf32>
    %251 = arith.mulf %250, %241 : vector<12x32xf32>
    %252 = vector.broadcast %249 : vector<1x32xf32> to vector<12x32xf32>
    %253 = arith.mulf %251, %252 : vector<12x32xf32>
    %254 = vector.broadcast %22 : vector<1x32xf32> to vector<12x32xf32>
    %255 = arith.addf %253, %254 : vector<12x32xf32>
    %cst_177 = arith.constant 0.000000e+00 : f32
    %256 = vector.broadcast %cst_177 : f32 to vector<12x32xf32>
    %257 = arith.maximumf %255, %256 : vector<12x32xf32>
    %cst_178 = arith.constant dense<0.000000e+00> : vector<12x32xf32>
    %258 = tpu.matmul %257, %26, %cst_178 {dimension_numbers = #tpu.dot_dimension_numbers<[1], [0], [0], [1], [0, 0, 1, 1], [], []>} : vector<12x32xf32>, vector<32x32xf32>, vector<12x32xf32> -> vector<12x32xf32>
    %259 = vector.broadcast %25 : vector<1x32xf32> to vector<12x32xf32>
    %260 = arith.addf %258, %259 : vector<12x32xf32>
    %cst_179 = arith.constant dense<0.000000e+00> : vector<75x32xf32>
    %261 = tpu.matmul %29, %33, %cst_179 {dimension_numbers = #tpu.dot_dimension_numbers<[1], [0], [0], [1], [0, 0, 1, 1], [], []>} : vector<75x32xf32>, vector<32x32xf32>, vector<75x32xf32> -> vector<75x32xf32>
    %262 = vector.broadcast %32 : vector<1x32xf32> to vector<75x32xf32>
    %263 = arith.addf %261, %262 : vector<75x32xf32>
    %cst_180 = arith.constant dense<0.000000e+00> : vector<12x32xf32>
    %264 = tpu.matmul %260, %38, %cst_180 {dimension_numbers = #tpu.dot_dimension_numbers<[1], [0], [0], [1], [0, 0, 1, 1], [], []>} : vector<12x32xf32>, vector<32x32xf32>, vector<12x32xf32> -> vector<12x32xf32>
    %265 = vector.broadcast %36 : vector<1x32xf32> to vector<12x32xf32>
    %266 = arith.addf %264, %265 : vector<12x32xf32>
    %cst_181 = arith.constant dense<0.000000e+00> : vector<12x32xf32>
    %267 = tpu.matmul %260, %39, %cst_181 {dimension_numbers = #tpu.dot_dimension_numbers<[1], [0], [0], [1], [0, 0, 1, 1], [], []>} : vector<12x32xf32>, vector<32x32xf32>, vector<12x32xf32> -> vector<12x32xf32>
    %268 = vector.broadcast %37 : vector<1x32xf32> to vector<12x32xf32>
    %269 = arith.addf %267, %268 : vector<12x32xf32>
    %270 = vector.shape_cast %269 : vector<12x32xf32> to vector<12x1x32xf32>
    %271 = vector.shape_cast %266 : vector<12x32xf32> to vector<1x12x32xf32>
    %272 = vector.broadcast %270 : vector<12x1x32xf32> to vector<12x12x32xf32>
    %273 = vector.broadcast %271 : vector<1x12x32xf32> to vector<12x12x32xf32>
    %274 = arith.addf %272, %273 : vector<12x12x32xf32>
    %cst_182 = arith.constant 0.000000e+00 : f32
    %275 = vector.broadcast %cst_182 : f32 to vector<12x12x32xf32>
    %276 = arith.cmpf ogt, %274, %275 : vector<12x12x32xf32>
    %cst_183 = arith.constant 2.000000e-01 : f32
    %277 = vector.broadcast %cst_183 : f32 to vector<12x12x32xf32>
    %278 = arith.mulf %277, %274 : vector<12x12x32xf32>
    %279 = arith.select %276, %274, %278 : vector<12x12x32xi1>, vector<12x12x32xf32>
    %280 = vector.shape_cast %34 : vector<1x32xf32> to vector<1x1x32xf32>
    %281 = vector.broadcast %280 : vector<1x1x32xf32> to vector<12x12x32xf32>
    %282 = arith.mulf %279, %281 : vector<12x12x32xf32>
    %cst_184 = arith.constant dense<0.000000e+00> : vector<12x12xf32>
    %283 = vector.multi_reduction <add>, %282, %cst_184 [2] : vector<12x12x32xf32> to vector<12x12xf32>
    %cst_185 = arith.constant 0.000000e+00 : f32
    %284 = vector.broadcast %cst_185 : f32 to vector<12x12xf32>
    %285 = arith.cmpf ogt, %0, %284 : vector<12x12xf32>
    %cst_186 = arith.constant -1.000000e+30 : f32
    %286 = vector.broadcast %cst_186 : f32 to vector<12x12xf32>
    %287 = arith.select %285, %283, %286 : vector<12x12xi1>, vector<12x12xf32>
    %cst_187 = arith.constant dense<0xFF800000> : vector<12xf32>
    %288 = vector.multi_reduction <maximumf>, %287, %cst_187 [1] : vector<12x12xf32> to vector<12xf32>
    %289 = vector.shape_cast %288 : vector<12xf32> to vector<12x1xf32>
    %290 = vector.broadcast %289 : vector<12x1xf32> to vector<12x12xf32>
    %291 = arith.subf %287, %290 : vector<12x12xf32>
    %292 = math.exp %291 : vector<12x12xf32>
    %cst_188 = arith.constant dense<0.000000e+00> : vector<12xf32>
    %293 = vector.multi_reduction <add>, %292, %cst_188 [1] : vector<12x12xf32> to vector<12xf32>
    %294 = vector.shape_cast %293 : vector<12xf32> to vector<12x1xf32>
    %295 = tpu.reciprocal %294 {approx = true} : vector<12x1xf32> -> vector<12x1xf32>
    %296 = vector.broadcast %295 : vector<12x1xf32> to vector<12x12xf32>
    %297 = arith.mulf %292, %296 : vector<12x12xf32>
    %cst_189 = arith.constant dense<0.000000e+00> : vector<12x32xf32>
    %298 = tpu.matmul %297, %266, %cst_189 {dimension_numbers = #tpu.dot_dimension_numbers<[1], [0], [0], [1], [0, 0, 1, 1], [], []>} : vector<12x12xf32>, vector<12x32xf32>, vector<12x32xf32> -> vector<12x32xf32>
    %299 = vector.broadcast %35 : vector<1x32xf32> to vector<12x32xf32>
    %300 = arith.addf %298, %299 : vector<12x32xf32>
    %cst_190 = arith.constant dense<0.000000e+00> : vector<12x32xf32>
    %301 = tpu.matmul %260, %44, %cst_190 {dimension_numbers = #tpu.dot_dimension_numbers<[1], [0], [0], [1], [0, 0, 1, 1], [], []>} : vector<12x32xf32>, vector<32x32xf32>, vector<12x32xf32> -> vector<12x32xf32>
    %302 = vector.broadcast %42 : vector<1x32xf32> to vector<12x32xf32>
    %303 = arith.addf %301, %302 : vector<12x32xf32>
    %cst_191 = arith.constant dense<0.000000e+00> : vector<12x32xf32>
    %304 = tpu.matmul %260, %45, %cst_191 {dimension_numbers = #tpu.dot_dimension_numbers<[1], [0], [0], [1], [0, 0, 1, 1], [], []>} : vector<12x32xf32>, vector<32x32xf32>, vector<12x32xf32> -> vector<12x32xf32>
    %305 = vector.broadcast %43 : vector<1x32xf32> to vector<12x32xf32>
    %306 = arith.addf %304, %305 : vector<12x32xf32>
    %307 = vector.shape_cast %306 : vector<12x32xf32> to vector<12x1x32xf32>
    %308 = vector.shape_cast %303 : vector<12x32xf32> to vector<1x12x32xf32>
    %309 = vector.broadcast %307 : vector<12x1x32xf32> to vector<12x12x32xf32>
    %310 = vector.broadcast %308 : vector<1x12x32xf32> to vector<12x12x32xf32>
    %311 = arith.addf %309, %310 : vector<12x12x32xf32>
    %cst_192 = arith.constant 0.000000e+00 : f32
    %312 = vector.broadcast %cst_192 : f32 to vector<12x12x32xf32>
    %313 = arith.cmpf ogt, %311, %312 : vector<12x12x32xf32>
    %cst_193 = arith.constant 2.000000e-01 : f32
    %314 = vector.broadcast %cst_193 : f32 to vector<12x12x32xf32>
    %315 = arith.mulf %314, %311 : vector<12x12x32xf32>
    %316 = arith.select %313, %311, %315 : vector<12x12x32xi1>, vector<12x12x32xf32>
    %317 = vector.shape_cast %40 : vector<1x32xf32> to vector<1x1x32xf32>
    %318 = vector.broadcast %317 : vector<1x1x32xf32> to vector<12x12x32xf32>
    %319 = arith.mulf %316, %318 : vector<12x12x32xf32>
    %cst_194 = arith.constant dense<0.000000e+00> : vector<12x12xf32>
    %320 = vector.multi_reduction <add>, %319, %cst_194 [2] : vector<12x12x32xf32> to vector<12x12xf32>
    %cst_195 = arith.constant 0.000000e+00 : f32
    %321 = vector.broadcast %cst_195 : f32 to vector<12x12xf32>
    %322 = arith.cmpf ogt, %0, %321 : vector<12x12xf32>
    %cst_196 = arith.constant -1.000000e+30 : f32
    %323 = vector.broadcast %cst_196 : f32 to vector<12x12xf32>
    %324 = arith.select %322, %320, %323 : vector<12x12xi1>, vector<12x12xf32>
    %cst_197 = arith.constant dense<0xFF800000> : vector<12xf32>
    %325 = vector.multi_reduction <maximumf>, %324, %cst_197 [1] : vector<12x12xf32> to vector<12xf32>
    %326 = vector.shape_cast %325 : vector<12xf32> to vector<12x1xf32>
    %327 = vector.broadcast %326 : vector<12x1xf32> to vector<12x12xf32>
    %328 = arith.subf %324, %327 : vector<12x12xf32>
    %329 = math.exp %328 : vector<12x12xf32>
    %cst_198 = arith.constant dense<0.000000e+00> : vector<12xf32>
    %330 = vector.multi_reduction <add>, %329, %cst_198 [1] : vector<12x12xf32> to vector<12xf32>
    %331 = vector.shape_cast %330 : vector<12xf32> to vector<12x1xf32>
    %332 = tpu.reciprocal %331 {approx = true} : vector<12x1xf32> -> vector<12x1xf32>
    %333 = vector.broadcast %332 : vector<12x1xf32> to vector<12x12xf32>
    %334 = arith.mulf %329, %333 : vector<12x12xf32>
    %cst_199 = arith.constant dense<0.000000e+00> : vector<12x32xf32>
    %335 = tpu.matmul %334, %303, %cst_199 {dimension_numbers = #tpu.dot_dimension_numbers<[1], [0], [0], [1], [0, 0, 1, 1], [], []>} : vector<12x12xf32>, vector<12x32xf32>, vector<12x32xf32> -> vector<12x32xf32>
    %336 = vector.broadcast %41 : vector<1x32xf32> to vector<12x32xf32>
    %337 = arith.addf %335, %336 : vector<12x32xf32>
    %338 = vector.extract_strided_slice %263 {offsets = [0, 0], sizes = [75, 8], strides = [1, 1]} : vector<75x32xf32> to vector<75x8xf32>
    %339 = vector.extract_strided_slice %300 {offsets = [0, 0], sizes = [12, 8], strides = [1, 1]} : vector<12x32xf32> to vector<12x8xf32>
    %340 = vector.extract_strided_slice %337 {offsets = [0, 0], sizes = [12, 8], strides = [1, 1]} : vector<12x32xf32> to vector<12x8xf32>
    %cst_200 = arith.constant dense<0.000000e+00> : vector<75x12xf32>
    %341 = tpu.matmul %338, %339, %cst_200 {dimension_numbers = #tpu.dot_dimension_numbers<[1], [1], [0], [0], [0, 0, 1, 0], [], []>} : vector<75x8xf32>, vector<12x8xf32>, vector<75x12xf32> -> vector<75x12xf32>
    %cst_201 = arith.constant 0.176776692 : f32
    %342 = vector.broadcast %cst_201 : f32 to vector<75x12xf32>
    %343 = arith.mulf %341, %342 : vector<75x12xf32>
    %cst_202 = arith.constant dense<0xFF800000> : vector<75xf32>
    %344 = vector.multi_reduction <maximumf>, %343, %cst_202 [1] : vector<75x12xf32> to vector<75xf32>
    %345 = vector.shape_cast %344 : vector<75xf32> to vector<75x1xf32>
    %346 = vector.broadcast %345 : vector<75x1xf32> to vector<75x12xf32>
    %347 = arith.subf %343, %346 : vector<75x12xf32>
    %348 = math.exp %347 : vector<75x12xf32>
    %cst_203 = arith.constant dense<0.000000e+00> : vector<75xf32>
    %349 = vector.multi_reduction <add>, %348, %cst_203 [1] : vector<75x12xf32> to vector<75xf32>
    %350 = vector.shape_cast %349 : vector<75xf32> to vector<75x1xf32>
    %351 = tpu.reciprocal %350 {approx = true} : vector<75x1xf32> -> vector<75x1xf32>
    %352 = vector.broadcast %351 : vector<75x1xf32> to vector<75x12xf32>
    %353 = arith.mulf %348, %352 : vector<75x12xf32>
    %cst_204 = arith.constant dense<0.000000e+00> : vector<75x8xf32>
    %354 = tpu.matmul %353, %340, %cst_204 {dimension_numbers = #tpu.dot_dimension_numbers<[1], [0], [0], [1], [0, 0, 1, 1], [], []>} : vector<75x12xf32>, vector<12x8xf32>, vector<75x8xf32> -> vector<75x8xf32>
    %355 = arith.addf %338, %354 : vector<75x8xf32>
    %356 = vector.extract_strided_slice %263 {offsets = [0, 8], sizes = [75, 8], strides = [1, 1]} : vector<75x32xf32> to vector<75x8xf32>
    %357 = vector.extract_strided_slice %300 {offsets = [0, 8], sizes = [12, 8], strides = [1, 1]} : vector<12x32xf32> to vector<12x8xf32>
    %358 = vector.extract_strided_slice %337 {offsets = [0, 8], sizes = [12, 8], strides = [1, 1]} : vector<12x32xf32> to vector<12x8xf32>
    %cst_205 = arith.constant dense<0.000000e+00> : vector<75x12xf32>
    %359 = tpu.matmul %356, %357, %cst_205 {dimension_numbers = #tpu.dot_dimension_numbers<[1], [1], [0], [0], [0, 0, 1, 0], [], []>} : vector<75x8xf32>, vector<12x8xf32>, vector<75x12xf32> -> vector<75x12xf32>
    %cst_206 = arith.constant 0.176776692 : f32
    %360 = vector.broadcast %cst_206 : f32 to vector<75x12xf32>
    %361 = arith.mulf %359, %360 : vector<75x12xf32>
    %cst_207 = arith.constant dense<0xFF800000> : vector<75xf32>
    %362 = vector.multi_reduction <maximumf>, %361, %cst_207 [1] : vector<75x12xf32> to vector<75xf32>
    %363 = vector.shape_cast %362 : vector<75xf32> to vector<75x1xf32>
    %364 = vector.broadcast %363 : vector<75x1xf32> to vector<75x12xf32>
    %365 = arith.subf %361, %364 : vector<75x12xf32>
    %366 = math.exp %365 : vector<75x12xf32>
    %cst_208 = arith.constant dense<0.000000e+00> : vector<75xf32>
    %367 = vector.multi_reduction <add>, %366, %cst_208 [1] : vector<75x12xf32> to vector<75xf32>
    %368 = vector.shape_cast %367 : vector<75xf32> to vector<75x1xf32>
    %369 = tpu.reciprocal %368 {approx = true} : vector<75x1xf32> -> vector<75x1xf32>
    %370 = vector.broadcast %369 : vector<75x1xf32> to vector<75x12xf32>
    %371 = arith.mulf %366, %370 : vector<75x12xf32>
    %cst_209 = arith.constant dense<0.000000e+00> : vector<75x8xf32>
    %372 = tpu.matmul %371, %358, %cst_209 {dimension_numbers = #tpu.dot_dimension_numbers<[1], [0], [0], [1], [0, 0, 1, 1], [], []>} : vector<75x12xf32>, vector<12x8xf32>, vector<75x8xf32> -> vector<75x8xf32>
    %373 = arith.addf %356, %372 : vector<75x8xf32>
    %374 = vector.extract_strided_slice %263 {offsets = [0, 16], sizes = [75, 8], strides = [1, 1]} : vector<75x32xf32> to vector<75x8xf32>
    %375 = vector.extract_strided_slice %300 {offsets = [0, 16], sizes = [12, 8], strides = [1, 1]} : vector<12x32xf32> to vector<12x8xf32>
    %376 = vector.extract_strided_slice %337 {offsets = [0, 16], sizes = [12, 8], strides = [1, 1]} : vector<12x32xf32> to vector<12x8xf32>
    %cst_210 = arith.constant dense<0.000000e+00> : vector<75x12xf32>
    %377 = tpu.matmul %374, %375, %cst_210 {dimension_numbers = #tpu.dot_dimension_numbers<[1], [1], [0], [0], [0, 0, 1, 0], [], []>} : vector<75x8xf32>, vector<12x8xf32>, vector<75x12xf32> -> vector<75x12xf32>
    %cst_211 = arith.constant 0.176776692 : f32
    %378 = vector.broadcast %cst_211 : f32 to vector<75x12xf32>
    %379 = arith.mulf %377, %378 : vector<75x12xf32>
    %cst_212 = arith.constant dense<0xFF800000> : vector<75xf32>
    %380 = vector.multi_reduction <maximumf>, %379, %cst_212 [1] : vector<75x12xf32> to vector<75xf32>
    %381 = vector.shape_cast %380 : vector<75xf32> to vector<75x1xf32>
    %382 = vector.broadcast %381 : vector<75x1xf32> to vector<75x12xf32>
    %383 = arith.subf %379, %382 : vector<75x12xf32>
    %384 = math.exp %383 : vector<75x12xf32>
    %cst_213 = arith.constant dense<0.000000e+00> : vector<75xf32>
    %385 = vector.multi_reduction <add>, %384, %cst_213 [1] : vector<75x12xf32> to vector<75xf32>
    %386 = vector.shape_cast %385 : vector<75xf32> to vector<75x1xf32>
    %387 = tpu.reciprocal %386 {approx = true} : vector<75x1xf32> -> vector<75x1xf32>
    %388 = vector.broadcast %387 : vector<75x1xf32> to vector<75x12xf32>
    %389 = arith.mulf %384, %388 : vector<75x12xf32>
    %cst_214 = arith.constant dense<0.000000e+00> : vector<75x8xf32>
    %390 = tpu.matmul %389, %376, %cst_214 {dimension_numbers = #tpu.dot_dimension_numbers<[1], [0], [0], [1], [0, 0, 1, 1], [], []>} : vector<75x12xf32>, vector<12x8xf32>, vector<75x8xf32> -> vector<75x8xf32>
    %391 = arith.addf %374, %390 : vector<75x8xf32>
    %392 = vector.extract_strided_slice %263 {offsets = [0, 24], sizes = [75, 8], strides = [1, 1]} : vector<75x32xf32> to vector<75x8xf32>
    %393 = vector.extract_strided_slice %300 {offsets = [0, 24], sizes = [12, 8], strides = [1, 1]} : vector<12x32xf32> to vector<12x8xf32>
    %394 = vector.extract_strided_slice %337 {offsets = [0, 24], sizes = [12, 8], strides = [1, 1]} : vector<12x32xf32> to vector<12x8xf32>
    %cst_215 = arith.constant dense<0.000000e+00> : vector<75x12xf32>
    %395 = tpu.matmul %392, %393, %cst_215 {dimension_numbers = #tpu.dot_dimension_numbers<[1], [1], [0], [0], [0, 0, 1, 0], [], []>} : vector<75x8xf32>, vector<12x8xf32>, vector<75x12xf32> -> vector<75x12xf32>
    %cst_216 = arith.constant 0.176776692 : f32
    %396 = vector.broadcast %cst_216 : f32 to vector<75x12xf32>
    %397 = arith.mulf %395, %396 : vector<75x12xf32>
    %cst_217 = arith.constant dense<0xFF800000> : vector<75xf32>
    %398 = vector.multi_reduction <maximumf>, %397, %cst_217 [1] : vector<75x12xf32> to vector<75xf32>
    %399 = vector.shape_cast %398 : vector<75xf32> to vector<75x1xf32>
    %400 = vector.broadcast %399 : vector<75x1xf32> to vector<75x12xf32>
    %401 = arith.subf %397, %400 : vector<75x12xf32>
    %402 = math.exp %401 : vector<75x12xf32>
    %cst_218 = arith.constant dense<0.000000e+00> : vector<75xf32>
    %403 = vector.multi_reduction <add>, %402, %cst_218 [1] : vector<75x12xf32> to vector<75xf32>
    %404 = vector.shape_cast %403 : vector<75xf32> to vector<75x1xf32>
    %405 = tpu.reciprocal %404 {approx = true} : vector<75x1xf32> -> vector<75x1xf32>
    %406 = vector.broadcast %405 : vector<75x1xf32> to vector<75x12xf32>
    %407 = arith.mulf %402, %406 : vector<75x12xf32>
    %cst_219 = arith.constant dense<0.000000e+00> : vector<75x8xf32>
    %408 = tpu.matmul %407, %394, %cst_219 {dimension_numbers = #tpu.dot_dimension_numbers<[1], [0], [0], [1], [0, 0, 1, 1], [], []>} : vector<75x12xf32>, vector<12x8xf32>, vector<75x8xf32> -> vector<75x8xf32>
    %409 = arith.addf %392, %408 : vector<75x8xf32>
    %410 = tpu.concatenate %355, %373, %391, %409 in 1 : vector<75x8xf32>, vector<75x8xf32>, vector<75x8xf32>, vector<75x8xf32> -> vector<75x32xf32>
    %cst_220 = arith.constant dense<0.000000e+00> : vector<75x32xf32>
    %411 = tpu.matmul %410, %31, %cst_220 {dimension_numbers = #tpu.dot_dimension_numbers<[1], [0], [0], [1], [0, 0, 1, 1], [], []>} : vector<75x32xf32>, vector<32x32xf32>, vector<75x32xf32> -> vector<75x32xf32>
    %412 = vector.broadcast %30 : vector<1x32xf32> to vector<75x32xf32>
    %413 = arith.addf %411, %412 : vector<75x32xf32>
    %cst_221 = arith.constant 0.000000e+00 : f32
    %414 = vector.broadcast %cst_221 : f32 to vector<75x32xf32>
    %415 = arith.maximumf %413, %414 : vector<75x32xf32>
    %416 = arith.addf %410, %415 : vector<75x32xf32>
    %cst_222 = arith.constant dense<0.000000e+00> : vector<75x32xf32>
    %417 = tpu.matmul %416, %58, %cst_222 {dimension_numbers = #tpu.dot_dimension_numbers<[1], [0], [0], [1], [0, 0, 1, 1], [], []>} : vector<75x32xf32>, vector<32x32xf32>, vector<75x32xf32> -> vector<75x32xf32>
    %418 = vector.broadcast %57 : vector<1x32xf32> to vector<75x32xf32>
    %419 = arith.addf %417, %418 : vector<75x32xf32>
    %cst_223 = arith.constant dense<0.000000e+00> : vector<75x32xf32>
    %420 = tpu.matmul %416, %60, %cst_223 {dimension_numbers = #tpu.dot_dimension_numbers<[1], [0], [0], [1], [0, 0, 1, 1], [], []>} : vector<75x32xf32>, vector<32x32xf32>, vector<75x32xf32> -> vector<75x32xf32>
    %421 = vector.broadcast %59 : vector<1x32xf32> to vector<75x32xf32>
    %422 = arith.addf %420, %421 : vector<75x32xf32>
    %cst_224 = arith.constant dense<0.000000e+00> : vector<75x32xf32>
    %423 = tpu.matmul %416, %62, %cst_224 {dimension_numbers = #tpu.dot_dimension_numbers<[1], [0], [0], [1], [0, 0, 1, 1], [], []>} : vector<75x32xf32>, vector<32x32xf32>, vector<75x32xf32> -> vector<75x32xf32>
    %424 = vector.broadcast %61 : vector<1x32xf32> to vector<75x32xf32>
    %425 = arith.addf %423, %424 : vector<75x32xf32>
    %426 = vector.extract_strided_slice %419 {offsets = [0, 0], sizes = [75, 8], strides = [1, 1]} : vector<75x32xf32> to vector<75x8xf32>
    %427 = vector.extract_strided_slice %422 {offsets = [0, 0], sizes = [75, 8], strides = [1, 1]} : vector<75x32xf32> to vector<75x8xf32>
    %428 = vector.extract_strided_slice %425 {offsets = [0, 0], sizes = [75, 8], strides = [1, 1]} : vector<75x32xf32> to vector<75x8xf32>
    %cst_225 = arith.constant dense<0.000000e+00> : vector<75x75xf32>
    %429 = tpu.matmul %426, %427, %cst_225 {dimension_numbers = #tpu.dot_dimension_numbers<[1], [1], [0], [0], [0, 0, 1, 0], [], []>} : vector<75x8xf32>, vector<75x8xf32>, vector<75x75xf32> -> vector<75x75xf32>
    %cst_226 = arith.constant 0.176776692 : f32
    %430 = vector.broadcast %cst_226 : f32 to vector<75x75xf32>
    %431 = arith.mulf %429, %430 : vector<75x75xf32>
    %cst_227 = arith.constant dense<0xFF800000> : vector<75xf32>
    %432 = vector.multi_reduction <maximumf>, %431, %cst_227 [1] : vector<75x75xf32> to vector<75xf32>
    %433 = vector.shape_cast %432 : vector<75xf32> to vector<75x1xf32>
    %434 = vector.broadcast %433 : vector<75x1xf32> to vector<75x75xf32>
    %435 = arith.subf %431, %434 : vector<75x75xf32>
    %436 = math.exp %435 : vector<75x75xf32>
    %cst_228 = arith.constant dense<0.000000e+00> : vector<75xf32>
    %437 = vector.multi_reduction <add>, %436, %cst_228 [1] : vector<75x75xf32> to vector<75xf32>
    %438 = vector.shape_cast %437 : vector<75xf32> to vector<75x1xf32>
    %439 = tpu.reciprocal %438 {approx = true} : vector<75x1xf32> -> vector<75x1xf32>
    %440 = vector.broadcast %439 : vector<75x1xf32> to vector<75x75xf32>
    %441 = arith.mulf %436, %440 : vector<75x75xf32>
    %cst_229 = arith.constant dense<0.000000e+00> : vector<75x8xf32>
    %442 = tpu.matmul %441, %428, %cst_229 {dimension_numbers = #tpu.dot_dimension_numbers<[1], [0], [0], [1], [0, 0, 1, 1], [], []>} : vector<75x75xf32>, vector<75x8xf32>, vector<75x8xf32> -> vector<75x8xf32>
    %443 = arith.addf %426, %442 : vector<75x8xf32>
    %444 = vector.extract_strided_slice %419 {offsets = [0, 8], sizes = [75, 8], strides = [1, 1]} : vector<75x32xf32> to vector<75x8xf32>
    %445 = vector.extract_strided_slice %422 {offsets = [0, 8], sizes = [75, 8], strides = [1, 1]} : vector<75x32xf32> to vector<75x8xf32>
    %446 = vector.extract_strided_slice %425 {offsets = [0, 8], sizes = [75, 8], strides = [1, 1]} : vector<75x32xf32> to vector<75x8xf32>
    %cst_230 = arith.constant dense<0.000000e+00> : vector<75x75xf32>
    %447 = tpu.matmul %444, %445, %cst_230 {dimension_numbers = #tpu.dot_dimension_numbers<[1], [1], [0], [0], [0, 0, 1, 0], [], []>} : vector<75x8xf32>, vector<75x8xf32>, vector<75x75xf32> -> vector<75x75xf32>
    %cst_231 = arith.constant 0.176776692 : f32
    %448 = vector.broadcast %cst_231 : f32 to vector<75x75xf32>
    %449 = arith.mulf %447, %448 : vector<75x75xf32>
    %cst_232 = arith.constant dense<0xFF800000> : vector<75xf32>
    %450 = vector.multi_reduction <maximumf>, %449, %cst_232 [1] : vector<75x75xf32> to vector<75xf32>
    %451 = vector.shape_cast %450 : vector<75xf32> to vector<75x1xf32>
    %452 = vector.broadcast %451 : vector<75x1xf32> to vector<75x75xf32>
    %453 = arith.subf %449, %452 : vector<75x75xf32>
    %454 = math.exp %453 : vector<75x75xf32>
    %cst_233 = arith.constant dense<0.000000e+00> : vector<75xf32>
    %455 = vector.multi_reduction <add>, %454, %cst_233 [1] : vector<75x75xf32> to vector<75xf32>
    %456 = vector.shape_cast %455 : vector<75xf32> to vector<75x1xf32>
    %457 = tpu.reciprocal %456 {approx = true} : vector<75x1xf32> -> vector<75x1xf32>
    %458 = vector.broadcast %457 : vector<75x1xf32> to vector<75x75xf32>
    %459 = arith.mulf %454, %458 : vector<75x75xf32>
    %cst_234 = arith.constant dense<0.000000e+00> : vector<75x8xf32>
    %460 = tpu.matmul %459, %446, %cst_234 {dimension_numbers = #tpu.dot_dimension_numbers<[1], [0], [0], [1], [0, 0, 1, 1], [], []>} : vector<75x75xf32>, vector<75x8xf32>, vector<75x8xf32> -> vector<75x8xf32>
    %461 = arith.addf %444, %460 : vector<75x8xf32>
    %462 = vector.extract_strided_slice %419 {offsets = [0, 16], sizes = [75, 8], strides = [1, 1]} : vector<75x32xf32> to vector<75x8xf32>
    %463 = vector.extract_strided_slice %422 {offsets = [0, 16], sizes = [75, 8], strides = [1, 1]} : vector<75x32xf32> to vector<75x8xf32>
    %464 = vector.extract_strided_slice %425 {offsets = [0, 16], sizes = [75, 8], strides = [1, 1]} : vector<75x32xf32> to vector<75x8xf32>
    %cst_235 = arith.constant dense<0.000000e+00> : vector<75x75xf32>
    %465 = tpu.matmul %462, %463, %cst_235 {dimension_numbers = #tpu.dot_dimension_numbers<[1], [1], [0], [0], [0, 0, 1, 0], [], []>} : vector<75x8xf32>, vector<75x8xf32>, vector<75x75xf32> -> vector<75x75xf32>
    %cst_236 = arith.constant 0.176776692 : f32
    %466 = vector.broadcast %cst_236 : f32 to vector<75x75xf32>
    %467 = arith.mulf %465, %466 : vector<75x75xf32>
    %cst_237 = arith.constant dense<0xFF800000> : vector<75xf32>
    %468 = vector.multi_reduction <maximumf>, %467, %cst_237 [1] : vector<75x75xf32> to vector<75xf32>
    %469 = vector.shape_cast %468 : vector<75xf32> to vector<75x1xf32>
    %470 = vector.broadcast %469 : vector<75x1xf32> to vector<75x75xf32>
    %471 = arith.subf %467, %470 : vector<75x75xf32>
    %472 = math.exp %471 : vector<75x75xf32>
    %cst_238 = arith.constant dense<0.000000e+00> : vector<75xf32>
    %473 = vector.multi_reduction <add>, %472, %cst_238 [1] : vector<75x75xf32> to vector<75xf32>
    %474 = vector.shape_cast %473 : vector<75xf32> to vector<75x1xf32>
    %475 = tpu.reciprocal %474 {approx = true} : vector<75x1xf32> -> vector<75x1xf32>
    %476 = vector.broadcast %475 : vector<75x1xf32> to vector<75x75xf32>
    %477 = arith.mulf %472, %476 : vector<75x75xf32>
    %cst_239 = arith.constant dense<0.000000e+00> : vector<75x8xf32>
    %478 = tpu.matmul %477, %464, %cst_239 {dimension_numbers = #tpu.dot_dimension_numbers<[1], [0], [0], [1], [0, 0, 1, 1], [], []>} : vector<75x75xf32>, vector<75x8xf32>, vector<75x8xf32> -> vector<75x8xf32>
    %479 = arith.addf %462, %478 : vector<75x8xf32>
    %480 = vector.extract_strided_slice %419 {offsets = [0, 24], sizes = [75, 8], strides = [1, 1]} : vector<75x32xf32> to vector<75x8xf32>
    %481 = vector.extract_strided_slice %422 {offsets = [0, 24], sizes = [75, 8], strides = [1, 1]} : vector<75x32xf32> to vector<75x8xf32>
    %482 = vector.extract_strided_slice %425 {offsets = [0, 24], sizes = [75, 8], strides = [1, 1]} : vector<75x32xf32> to vector<75x8xf32>
    %cst_240 = arith.constant dense<0.000000e+00> : vector<75x75xf32>
    %483 = tpu.matmul %480, %481, %cst_240 {dimension_numbers = #tpu.dot_dimension_numbers<[1], [1], [0], [0], [0, 0, 1, 0], [], []>} : vector<75x8xf32>, vector<75x8xf32>, vector<75x75xf32> -> vector<75x75xf32>
    %cst_241 = arith.constant 0.176776692 : f32
    %484 = vector.broadcast %cst_241 : f32 to vector<75x75xf32>
    %485 = arith.mulf %483, %484 : vector<75x75xf32>
    %cst_242 = arith.constant dense<0xFF800000> : vector<75xf32>
    %486 = vector.multi_reduction <maximumf>, %485, %cst_242 [1] : vector<75x75xf32> to vector<75xf32>
    %487 = vector.shape_cast %486 : vector<75xf32> to vector<75x1xf32>
    %488 = vector.broadcast %487 : vector<75x1xf32> to vector<75x75xf32>
    %489 = arith.subf %485, %488 : vector<75x75xf32>
    %490 = math.exp %489 : vector<75x75xf32>
    %cst_243 = arith.constant dense<0.000000e+00> : vector<75xf32>
    %491 = vector.multi_reduction <add>, %490, %cst_243 [1] : vector<75x75xf32> to vector<75xf32>
    %492 = vector.shape_cast %491 : vector<75xf32> to vector<75x1xf32>
    %493 = tpu.reciprocal %492 {approx = true} : vector<75x1xf32> -> vector<75x1xf32>
    %494 = vector.broadcast %493 : vector<75x1xf32> to vector<75x75xf32>
    %495 = arith.mulf %490, %494 : vector<75x75xf32>
    %cst_244 = arith.constant dense<0.000000e+00> : vector<75x8xf32>
    %496 = tpu.matmul %495, %482, %cst_244 {dimension_numbers = #tpu.dot_dimension_numbers<[1], [0], [0], [1], [0, 0, 1, 1], [], []>} : vector<75x75xf32>, vector<75x8xf32>, vector<75x8xf32> -> vector<75x8xf32>
    %497 = arith.addf %480, %496 : vector<75x8xf32>
    %498 = tpu.concatenate %443, %461, %479, %497 in 1 : vector<75x8xf32>, vector<75x8xf32>, vector<75x8xf32>, vector<75x8xf32> -> vector<75x32xf32>
    %cst_245 = arith.constant dense<0.000000e+00> : vector<75x32xf32>
    %499 = tpu.matmul %498, %56, %cst_245 {dimension_numbers = #tpu.dot_dimension_numbers<[1], [0], [0], [1], [0, 0, 1, 1], [], []>} : vector<75x32xf32>, vector<32x32xf32>, vector<75x32xf32> -> vector<75x32xf32>
    %500 = vector.broadcast %55 : vector<1x32xf32> to vector<75x32xf32>
    %501 = arith.addf %499, %500 : vector<75x32xf32>
    %cst_246 = arith.constant 0.000000e+00 : f32
    %502 = vector.broadcast %cst_246 : f32 to vector<75x32xf32>
    %503 = arith.maximumf %501, %502 : vector<75x32xf32>
    %504 = arith.addf %498, %503 : vector<75x32xf32>
    %cst_247 = arith.constant dense<0.000000e+00> : vector<1x32xf32>
    %505 = tpu.matmul %46, %50, %cst_247 {dimension_numbers = #tpu.dot_dimension_numbers<[1], [0], [0], [1], [0, 0, 1, 1], [], []>} : vector<1x32xf32>, vector<32x32xf32>, vector<1x32xf32> -> vector<1x32xf32>
    %506 = arith.addf %505, %49 : vector<1x32xf32>
    %cst_248 = arith.constant dense<0.000000e+00> : vector<75x32xf32>
    %507 = tpu.matmul %504, %52, %cst_248 {dimension_numbers = #tpu.dot_dimension_numbers<[1], [0], [0], [1], [0, 0, 1, 1], [], []>} : vector<75x32xf32>, vector<32x32xf32>, vector<75x32xf32> -> vector<75x32xf32>
    %508 = vector.broadcast %51 : vector<1x32xf32> to vector<75x32xf32>
    %509 = arith.addf %507, %508 : vector<75x32xf32>
    %cst_249 = arith.constant dense<0.000000e+00> : vector<75x32xf32>
    %510 = tpu.matmul %504, %54, %cst_249 {dimension_numbers = #tpu.dot_dimension_numbers<[1], [0], [0], [1], [0, 0, 1, 1], [], []>} : vector<75x32xf32>, vector<32x32xf32>, vector<75x32xf32> -> vector<75x32xf32>
    %511 = vector.broadcast %53 : vector<1x32xf32> to vector<75x32xf32>
    %512 = arith.addf %510, %511 : vector<75x32xf32>
    %513 = vector.extract_strided_slice %506 {offsets = [0, 0], sizes = [1, 8], strides = [1, 1]} : vector<1x32xf32> to vector<1x8xf32>
    %514 = vector.extract_strided_slice %509 {offsets = [0, 0], sizes = [75, 8], strides = [1, 1]} : vector<75x32xf32> to vector<75x8xf32>
    %515 = vector.extract_strided_slice %512 {offsets = [0, 0], sizes = [75, 8], strides = [1, 1]} : vector<75x32xf32> to vector<75x8xf32>
    %cst_250 = arith.constant dense<0.000000e+00> : vector<1x75xf32>
    %516 = tpu.matmul %513, %514, %cst_250 {dimension_numbers = #tpu.dot_dimension_numbers<[1], [1], [0], [0], [0, 0, 1, 0], [], []>} : vector<1x8xf32>, vector<75x8xf32>, vector<1x75xf32> -> vector<1x75xf32>
    %cst_251 = arith.constant 0.176776692 : f32
    %517 = vector.broadcast %cst_251 : f32 to vector<1x75xf32>
    %518 = arith.mulf %516, %517 : vector<1x75xf32>
    %cst_252 = arith.constant dense<0xFF800000> : vector<1xf32>
    %519 = vector.multi_reduction <maximumf>, %518, %cst_252 [1] : vector<1x75xf32> to vector<1xf32>
    %520 = vector.shape_cast %519 : vector<1xf32> to vector<1x1xf32>
    %521 = vector.broadcast %520 : vector<1x1xf32> to vector<1x75xf32>
    %522 = arith.subf %518, %521 : vector<1x75xf32>
    %523 = math.exp %522 : vector<1x75xf32>
    %cst_253 = arith.constant dense<0.000000e+00> : vector<1xf32>
    %524 = vector.multi_reduction <add>, %523, %cst_253 [1] : vector<1x75xf32> to vector<1xf32>
    %525 = vector.shape_cast %524 : vector<1xf32> to vector<1x1xf32>
    %526 = tpu.reciprocal %525 {approx = true} : vector<1x1xf32> -> vector<1x1xf32>
    %527 = vector.broadcast %526 : vector<1x1xf32> to vector<1x75xf32>
    %528 = arith.mulf %523, %527 : vector<1x75xf32>
    %cst_254 = arith.constant dense<0.000000e+00> : vector<1x8xf32>
    %529 = tpu.matmul %528, %515, %cst_254 {dimension_numbers = #tpu.dot_dimension_numbers<[1], [0], [0], [1], [0, 0, 1, 1], [], []>} : vector<1x75xf32>, vector<75x8xf32>, vector<1x8xf32> -> vector<1x8xf32>
    %530 = arith.addf %513, %529 : vector<1x8xf32>
    %531 = vector.extract_strided_slice %506 {offsets = [0, 8], sizes = [1, 8], strides = [1, 1]} : vector<1x32xf32> to vector<1x8xf32>
    %532 = vector.extract_strided_slice %509 {offsets = [0, 8], sizes = [75, 8], strides = [1, 1]} : vector<75x32xf32> to vector<75x8xf32>
    %533 = vector.extract_strided_slice %512 {offsets = [0, 8], sizes = [75, 8], strides = [1, 1]} : vector<75x32xf32> to vector<75x8xf32>
    %cst_255 = arith.constant dense<0.000000e+00> : vector<1x75xf32>
    %534 = tpu.matmul %531, %532, %cst_255 {dimension_numbers = #tpu.dot_dimension_numbers<[1], [1], [0], [0], [0, 0, 1, 0], [], []>} : vector<1x8xf32>, vector<75x8xf32>, vector<1x75xf32> -> vector<1x75xf32>
    %cst_256 = arith.constant 0.176776692 : f32
    %535 = vector.broadcast %cst_256 : f32 to vector<1x75xf32>
    %536 = arith.mulf %534, %535 : vector<1x75xf32>
    %cst_257 = arith.constant dense<0xFF800000> : vector<1xf32>
    %537 = vector.multi_reduction <maximumf>, %536, %cst_257 [1] : vector<1x75xf32> to vector<1xf32>
    %538 = vector.shape_cast %537 : vector<1xf32> to vector<1x1xf32>
    %539 = vector.broadcast %538 : vector<1x1xf32> to vector<1x75xf32>
    %540 = arith.subf %536, %539 : vector<1x75xf32>
    %541 = math.exp %540 : vector<1x75xf32>
    %cst_258 = arith.constant dense<0.000000e+00> : vector<1xf32>
    %542 = vector.multi_reduction <add>, %541, %cst_258 [1] : vector<1x75xf32> to vector<1xf32>
    %543 = vector.shape_cast %542 : vector<1xf32> to vector<1x1xf32>
    %544 = tpu.reciprocal %543 {approx = true} : vector<1x1xf32> -> vector<1x1xf32>
    %545 = vector.broadcast %544 : vector<1x1xf32> to vector<1x75xf32>
    %546 = arith.mulf %541, %545 : vector<1x75xf32>
    %cst_259 = arith.constant dense<0.000000e+00> : vector<1x8xf32>
    %547 = tpu.matmul %546, %533, %cst_259 {dimension_numbers = #tpu.dot_dimension_numbers<[1], [0], [0], [1], [0, 0, 1, 1], [], []>} : vector<1x75xf32>, vector<75x8xf32>, vector<1x8xf32> -> vector<1x8xf32>
    %548 = arith.addf %531, %547 : vector<1x8xf32>
    %549 = vector.extract_strided_slice %506 {offsets = [0, 16], sizes = [1, 8], strides = [1, 1]} : vector<1x32xf32> to vector<1x8xf32>
    %550 = vector.extract_strided_slice %509 {offsets = [0, 16], sizes = [75, 8], strides = [1, 1]} : vector<75x32xf32> to vector<75x8xf32>
    %551 = vector.extract_strided_slice %512 {offsets = [0, 16], sizes = [75, 8], strides = [1, 1]} : vector<75x32xf32> to vector<75x8xf32>
    %cst_260 = arith.constant dense<0.000000e+00> : vector<1x75xf32>
    %552 = tpu.matmul %549, %550, %cst_260 {dimension_numbers = #tpu.dot_dimension_numbers<[1], [1], [0], [0], [0, 0, 1, 0], [], []>} : vector<1x8xf32>, vector<75x8xf32>, vector<1x75xf32> -> vector<1x75xf32>
    %cst_261 = arith.constant 0.176776692 : f32
    %553 = vector.broadcast %cst_261 : f32 to vector<1x75xf32>
    %554 = arith.mulf %552, %553 : vector<1x75xf32>
    %cst_262 = arith.constant dense<0xFF800000> : vector<1xf32>
    %555 = vector.multi_reduction <maximumf>, %554, %cst_262 [1] : vector<1x75xf32> to vector<1xf32>
    %556 = vector.shape_cast %555 : vector<1xf32> to vector<1x1xf32>
    %557 = vector.broadcast %556 : vector<1x1xf32> to vector<1x75xf32>
    %558 = arith.subf %554, %557 : vector<1x75xf32>
    %559 = math.exp %558 : vector<1x75xf32>
    %cst_263 = arith.constant dense<0.000000e+00> : vector<1xf32>
    %560 = vector.multi_reduction <add>, %559, %cst_263 [1] : vector<1x75xf32> to vector<1xf32>
    %561 = vector.shape_cast %560 : vector<1xf32> to vector<1x1xf32>
    %562 = tpu.reciprocal %561 {approx = true} : vector<1x1xf32> -> vector<1x1xf32>
    %563 = vector.broadcast %562 : vector<1x1xf32> to vector<1x75xf32>
    %564 = arith.mulf %559, %563 : vector<1x75xf32>
    %cst_264 = arith.constant dense<0.000000e+00> : vector<1x8xf32>
    %565 = tpu.matmul %564, %551, %cst_264 {dimension_numbers = #tpu.dot_dimension_numbers<[1], [0], [0], [1], [0, 0, 1, 1], [], []>} : vector<1x75xf32>, vector<75x8xf32>, vector<1x8xf32> -> vector<1x8xf32>
    %566 = arith.addf %549, %565 : vector<1x8xf32>
    %567 = vector.extract_strided_slice %506 {offsets = [0, 24], sizes = [1, 8], strides = [1, 1]} : vector<1x32xf32> to vector<1x8xf32>
    %568 = vector.extract_strided_slice %509 {offsets = [0, 24], sizes = [75, 8], strides = [1, 1]} : vector<75x32xf32> to vector<75x8xf32>
    %569 = vector.extract_strided_slice %512 {offsets = [0, 24], sizes = [75, 8], strides = [1, 1]} : vector<75x32xf32> to vector<75x8xf32>
    %cst_265 = arith.constant dense<0.000000e+00> : vector<1x75xf32>
    %570 = tpu.matmul %567, %568, %cst_265 {dimension_numbers = #tpu.dot_dimension_numbers<[1], [1], [0], [0], [0, 0, 1, 0], [], []>} : vector<1x8xf32>, vector<75x8xf32>, vector<1x75xf32> -> vector<1x75xf32>
    %cst_266 = arith.constant 0.176776692 : f32
    %571 = vector.broadcast %cst_266 : f32 to vector<1x75xf32>
    %572 = arith.mulf %570, %571 : vector<1x75xf32>
    %cst_267 = arith.constant dense<0xFF800000> : vector<1xf32>
    %573 = vector.multi_reduction <maximumf>, %572, %cst_267 [1] : vector<1x75xf32> to vector<1xf32>
    %574 = vector.shape_cast %573 : vector<1xf32> to vector<1x1xf32>
    %575 = vector.broadcast %574 : vector<1x1xf32> to vector<1x75xf32>
    %576 = arith.subf %572, %575 : vector<1x75xf32>
    %577 = math.exp %576 : vector<1x75xf32>
    %cst_268 = arith.constant dense<0.000000e+00> : vector<1xf32>
    %578 = vector.multi_reduction <add>, %577, %cst_268 [1] : vector<1x75xf32> to vector<1xf32>
    %579 = vector.shape_cast %578 : vector<1xf32> to vector<1x1xf32>
    %580 = tpu.reciprocal %579 {approx = true} : vector<1x1xf32> -> vector<1x1xf32>
    %581 = vector.broadcast %580 : vector<1x1xf32> to vector<1x75xf32>
    %582 = arith.mulf %577, %581 : vector<1x75xf32>
    %cst_269 = arith.constant dense<0.000000e+00> : vector<1x8xf32>
    %583 = tpu.matmul %582, %569, %cst_269 {dimension_numbers = #tpu.dot_dimension_numbers<[1], [0], [0], [1], [0, 0, 1, 1], [], []>} : vector<1x75xf32>, vector<75x8xf32>, vector<1x8xf32> -> vector<1x8xf32>
    %584 = arith.addf %567, %583 : vector<1x8xf32>
    %585 = tpu.concatenate %530, %548, %566, %584 in 1 : vector<1x8xf32>, vector<1x8xf32>, vector<1x8xf32>, vector<1x8xf32> -> vector<1x32xf32>
    %cst_270 = arith.constant dense<0.000000e+00> : vector<1x32xf32>
    %586 = tpu.matmul %585, %48, %cst_270 {dimension_numbers = #tpu.dot_dimension_numbers<[1], [0], [0], [1], [0, 0, 1, 1], [], []>} : vector<1x32xf32>, vector<32x32xf32>, vector<1x32xf32> -> vector<1x32xf32>
    %587 = arith.addf %586, %47 : vector<1x32xf32>
    %cst_271 = arith.constant 0.000000e+00 : f32
    %588 = vector.broadcast %cst_271 : f32 to vector<1x32xf32>
    %589 = arith.maximumf %587, %588 : vector<1x32xf32>
    %590 = arith.addf %585, %589 : vector<1x32xf32>
    %cst_272 = arith.constant dense<0.000000e+00> : vector<1x32xf32>
    %591 = tpu.matmul %590, %28, %cst_272 {dimension_numbers = #tpu.dot_dimension_numbers<[1], [0], [0], [1], [0, 0, 1, 1], [], []>} : vector<1x32xf32>, vector<32x32xf32>, vector<1x32xf32> -> vector<1x32xf32>
    %592 = arith.addf %591, %27 : vector<1x32xf32>
    %cst_273 = arith.constant dense<0.000000e+00> : vector<1x32xf32>
    %593 = tpu.matmul %592, %3, %cst_273 {dimension_numbers = #tpu.dot_dimension_numbers<[1], [0], [0], [1], [0, 0, 1, 1], [], []>} : vector<1x32xf32>, vector<32x32xf32>, vector<1x32xf32> -> vector<1x32xf32>
    %594 = arith.mulf %593, %1 : vector<1x32xf32>
    %595 = arith.addf %594, %2 : vector<1x32xf32>
    %cst_274 = arith.constant 0.000000e+00 : f32
    %596 = vector.broadcast %cst_274 : f32 to vector<1x32xf32>
    %597 = arith.maximumf %595, %596 : vector<1x32xf32>
    %cst_275 = arith.constant dense<0.000000e+00> : vector<1x16xf32>
    %598 = tpu.matmul %597, %6, %cst_275 {dimension_numbers = #tpu.dot_dimension_numbers<[1], [0], [0], [1], [0, 0, 1, 1], [], []>} : vector<1x32xf32>, vector<32x16xf32>, vector<1x16xf32> -> vector<1x16xf32>
    %599 = arith.mulf %598, %4 : vector<1x16xf32>
    %600 = arith.addf %599, %5 : vector<1x16xf32>
    %cst_276 = arith.constant 0.000000e+00 : f32
    %601 = vector.broadcast %cst_276 : f32 to vector<1x16xf32>
    %602 = arith.maximumf %600, %601 : vector<1x16xf32>
    %cst_277 = arith.constant dense<0.000000e+00> : vector<1x1xf32>
    %603 = tpu.matmul %602, %64, %cst_277 {dimension_numbers = #tpu.dot_dimension_numbers<[1], [0], [0], [1], [0, 0, 1, 1], [], []>} : vector<1x16xf32>, vector<16x1xf32>, vector<1x1xf32> -> vector<1x1xf32>
    %604 = arith.addf %603, %63 : vector<1x1xf32>
    %c0_278 = arith.constant 0 : index
    %c0_279 = arith.constant 0 : index
    %605 = vector.load %arg66[%c0_278, %c0_279] : memref<1x1xf32, #tpu.memory_space<vmem>>, vector<1x1xf32>
    tpu.vector_store %arg66[%c0_278, %c0_279], %604 {strides = array<i32>} : memref<1x1xf32, #tpu.memory_space<vmem>>, vector<1x1xf32>,
    return
  }
}

</mosaic_0001>

<bundles_post_ra>
// kernel: tpu_custom_call.1
= control target key start
LH: loop header
LB: loop body
LE: loop exit
PB: predicated region body
PF: predicated region fallthrough
CT: control target
= control target key end

     0   :  { %s16310_s6 = smov 1   ;;  %s16311_s10 = smov 2   ;;  %s20589_s0 = inlined_call_operand.smem [shape: u32[67], index: -1, kind: input, shape index: {}] }
   0x1   :  { %s16444_s5 = sld [smem:[%s20589_s0]]   ;;  %s16312_s14 = smov 3  }
   0x2   :  { %s16449_s9 = sld [smem:[%s20589_s0 + %s16310_s6]]   ;;  %s16313_s18 = smov 4  }
   0x3   :  { %s16454_s13 = sld [smem:[%s20589_s0 + %s16311_s10]]   ;;  %s16314_s22 = smov 5  }
   0x4   :  { %s16459_s17 = sld [smem:[%s20589_s0 + %s16312_s14]]   ;;  %s16315_s26 = smov 6  }
   0x5   :  { %s16464_s21 = sld [smem:[%s20589_s0 + %s16313_s18]]   ;;  %s16316_s30 = smov 7  }
   0x6   :  { %s16469_s25 = sld [smem:[%s20589_s0 + %s16314_s22]]   ;;  %s16317_s4 = smov 8  }
   0x7   :  { %20655 = sst [smem:[#allocation101_spill]] %s16444_s5  ;;  %s16318_s10 = smov 9  }
   0x8   :  { %s16474_s29 = sld [smem:[%s20589_s0 + %s16315_s26]]   ;;  %s16319_s15 = smov 10  }
   0x9   :  { %20656 = sst [smem:[#allocation102_spill]] %s16454_s13  ;;  %s16320_s20 = smov 11  }
   0xa   :  { %20657 = sst [smem:[#allocation103_spill]] %s16459_s17  ;;  %s16321_s26 = smov 12  }
   0xb   :  { %s16479_s3 = sld [smem:[%s20589_s0 + %s16316_s30]]   ;;  %s16322_s1 = smov 13  }
   0xc   :  { %20658 = sst [smem:[#allocation104_spill]] %s16469_s25  ;;  %s16323_s7 = smov 14  }
   0xd   :  { %s16484_s8 = sld [smem:[%s20589_s0 + %s16317_s4]]   ;;  %s16325_s22 = smov 16  }
   0xe   :  { %20659 = sst [smem:[#allocation105_spill]] %s16474_s29  ;;  %s16326_s28 = smov 17  }
   0xf   :  { %s16489_s14 = sld [smem:[%s20589_s0 + %s16318_s10]]   ;;  %s16373_s23 = smov 64  }
  0x10   :  { %s16494_s19 = sld [smem:[%s20589_s0 + %s16319_s15]]   ;;  %s16324_s15 = smov 15  }
  0x11   :  { %s16499_s24 = sld [smem:[%s20589_s0 + %s16320_s20]]   ;;  %s16375_s10 = smov 66  }
  0x12   :  { %s16504_s30 = sld [smem:[%s20589_s0 + %s16321_s26]]  }
  0x13   :  { %20660 = sst [smem:[#allocation106_spill]] %s16484_s8 }
  0x14   :  { %s16509_s6 = sld [smem:[%s20589_s0 + %s16322_s1]]   ;;  %s16374_s1 = smov 65  }
  0x15   :  { %s16514_s12 = sld [smem:[%s20589_s0 + %s16323_s7]]   ;;  %s16327_s7 = smov 18  }
  0x16   :  { %20661 = sst [smem:[#allocation107_spill]] %s16494_s19 }
  0x17   :  { %s16519_s20 = sld [smem:[%s20589_s0 + %s16324_s15]]   ;;  %s16328_s15 = smov 19  }
  0x18   :  { %20662 = sst [smem:[#allocation108_spill]] %s16504_s30 }
  0x19   :  { %s16524_s27 = sld [smem:[%s20589_s0 + %s16325_s22]]   ;;  %s16329_s22 = smov 20  }
  0x1a   :  { %s16529_s4 = sld [smem:[%s20589_s0 + %s16326_s28]]   ;;  %s16330_s28 = smov 21  }
  0x1b   :  { %20663 = sst [smem:[#allocation109_spill]] %s16514_s12 }
  0x1c   :  { %s16534_s29 = sld [smem:[%s20589_s0 + %s16327_s7]]   ;;  %s16331_s7 = smov 22  }
  0x1d   :  { %s16539_s17 = sld [smem:[%s20589_s0 + %s16328_s15]]   ;;  %s16332_s15 = smov 23  }
  0x1e   :  { %s16549_s12 = sld [smem:[%s20589_s0 + %s16330_s28]]   ;;  %s16334_s28 = smov 25  }
  0x1f   :  { %20664 = sst [smem:[#allocation110_spill]] %s16524_s27 }
  0x20   :  { %s16544_s27 = sld [smem:[%s20589_s0 + %s16329_s22]]   ;;  %s16333_s22 = smov 24  }
  0x21   :  { %s16559_s30 = sld [smem:[%s20589_s0 + %s16332_s15]]   ;;  %s16336_s15 = smov 27  }
  0x22   :  { %20665 = sst [smem:[#allocation111_spill]] %s16534_s29 }
  0x23   :  { %s16554_s29 = sld [smem:[%s20589_s0 + %s16331_s7]]   ;;  %s16335_s7 = smov 26  }
  0x24   :  { %20667 = sst [smem:[#allocation113_spill]] %s16549_s12 }
  0x25   :  { %s16569_s12 = sld [smem:[%s20589_s0 + %s16334_s28]]   ;;  %s16338_s28 = smov 29  }
  0x26   :  { %20666 = sst [smem:[#allocation112_spill]] %s16544_s27 }
  0x27   :  { %s16564_s27 = sld [smem:[%s20589_s0 + %s16333_s22]]   ;;  %s16337_s22 = smov 28  }
  0x28   :  { %s16579_s19 = sld [smem:[%s20589_s0 + %s16336_s15]]   ;;  %s16340_s15 = smov 31  }
  0x29   :  { %20668 = sst [smem:[#allocation114_spill]] %s16554_s29 }
  0x2a   :  { %s16574_s29 = sld [smem:[%s20589_s0 + %s16335_s7]]   ;;  %s16339_s7 = smov 30  }
  0x2b   :  { %s16589_s8 = sld [smem:[%s20589_s0 + %s16338_s28]]   ;;  %s16342_s28 = smov 33  }
  0x2d   :  { %20669 = sst [smem:[#allocation115_spill]] %s16564_s27 }
  0x2e   :  { %20671 = sst [smem:[#allocation117_spill]] %s16579_s19 }
  0x2f   :  { %s16584_s27 = sld [smem:[%s20589_s0 + %s16337_s22]]   ;;  %s16341_s22 = smov 32  }
  0x30   :  { %20670 = sst [smem:[#allocation116_spill]] %s16574_s29 }
  0x31   :  { %20673 = sst [smem:[#allocation119_spill]] %s16589_s8 }
  0x32   :  { %s16594_s29 = sld [smem:[%s20589_s0 + %s16339_s7]]   ;;  %s16343_s7 = smov 34  }
  0x33   :  { %s16599_s19 = sld [smem:[%s20589_s0 + %s16340_s15]]   ;;  %s16344_s15 = smov 35  }
  0x34   :  { %s16609_s8 = sld [smem:[%s20589_s0 + %s16342_s28]]   ;;  %s16346_s28 = smov 37  }
  0x35   :  { %20672 = sst [smem:[#allocation118_spill]] %s16584_s27 }
  0x36   :  { %s16604_s27 = sld [smem:[%s20589_s0 + %s16341_s22]]   ;;  %s16345_s22 = smov 36  }
  0x37   :  { %s16614_s25 = sld [smem:[%s20589_s0 + %s16343_s7]]   ;;  %s16347_s7 = smov 38  }
  0x38   :  { %s16634_s13 = sld [smem:[%s20589_s0 + %s16347_s7]]   ;;  %s16351_s7 = smov 42  }
  0x39   :  { %20674 = sst [smem:[#allocation120_spill]] %s16599_s19 }
  0x3a   :  { %20676 = sst [smem:[#allocation122_spill]] %s16609_s8 }
  0x3b   :  { %s16619_s19 = sld [smem:[%s20589_s0 + %s16344_s15]]   ;;  %s16348_s15 = smov 39  }
  0x3c   :  { %20675 = sst [smem:[#allocation121_spill]] %s16604_s27 }
  0x3d   :  { %s16624_s27 = sld [smem:[%s20589_s0 + %s16345_s22]]   ;;  %s16349_s22 = smov 40  }
  0x3e   :  { %s16629_s8 = sld [smem:[%s20589_s0 + %s16346_s28]]   ;;  %s16350_s28 = smov 41  }
  0x3f   :  { %20679 = sst [smem:[#allocation125_spill]] %s16634_s13 }
  0x40   :  { %s16644_s5 = sld [smem:[%s20589_s0 + %s16349_s22]]   ;;  %s16353_s22 = smov 44  }
  0x41   :  { %20677 = sst [smem:[#allocation123_spill]] %s16619_s19 }
  0x42   :  { %s16639_s19 = sld [smem:[%s20589_s0 + %s16348_s15]]   ;;  %s16352_s15 = smov 43  }
  0x43   :  { %s16654_s13 = sld [smem:[%s20589_s0 + %s16351_s7]]   ;;  %s16355_s7 = smov 46  }
  0x44   :  { %20678 = sst [smem:[#allocation124_spill]] %s16629_s8 }
  0x45   :  { %s16649_s8 = sld [smem:[%s20589_s0 + %s16350_s28]]   ;;  %s16354_s28 = smov 45  }
  0x46   :  { %20681 = sst [smem:[#allocation127_spill]] %s16644_s5 }
  0x47   :  { %s16664_s5 = sld [smem:[%s20589_s0 + %s16353_s22]]   ;;  %s16357_s22 = smov 48  }
  0x48   :  { %20680 = sst [smem:[#allocation126_spill]] %s16639_s19 }
  0x49   :  { %20683 = sst [smem:[#allocation129_spill]] %s16654_s13 }
  0x4a   :  { %s16659_s19 = sld [smem:[%s20589_s0 + %s16352_s15]]   ;;  %s16356_s15 = smov 47  }
  0x4b   :  { %20682 = sst [smem:[#allocation128_spill]] %s16649_s8 }
  0x4c   :  { %s16669_s8 = sld [smem:[%s20589_s0 + %s16354_s28]]   ;;  %s16358_s28 = smov 49  }
  0x4d   :  { %20685 = sst [smem:[#allocation131_spill]] %s16664_s5 }
  0x4e   :  { %s16674_s13 = sld [smem:[%s20589_s0 + %s16355_s7]]   ;;  %s16359_s7 = smov 50  }
  0x4f   :  { %s16684_s5 = sld [smem:[%s20589_s0 + %s16357_s22]]   ;;  %s16361_s22 = smov 52  }
  0x50   :  { %20684 = sst [smem:[#allocation130_spill]] %s16659_s19 }
  0x51   :  { %s16679_s19 = sld [smem:[%s20589_s0 + %s16356_s15]]   ;;  %s16360_s15 = smov 51  }
  0x52   :  { %20686 = sst [smem:[#allocation132_spill]] %s16669_s8 }
  0x53   :  { %s16689_s8 = sld [smem:[%s20589_s0 + %s16358_s28]]   ;;  %s16362_s28 = smov 53  }
  0x54   :  { %20687 = sst [smem:[#allocation133_spill]] %s16674_s13 }
  0x55   :  { %20689 = sst [smem:[#allocation135_spill]] %s16684_s5 }
  0x56   :  { %s16694_s13 = sld [smem:[%s20589_s0 + %s16359_s7]]   ;;  %s16363_s7 = smov 54  }
  0x57   :  { %20688 = sst [smem:[#allocation134_spill]] %s16679_s19 }
  0x58   :  { %s16699_s19 = sld [smem:[%s20589_s0 + %s16360_s15]]   ;;  %s16364_s15 = smov 55  }
  0x59   :  { %20690 = sst [smem:[#allocation136_spill]] %s16689_s8 }
  0x5a   :  { %s16704_s5 = sld [smem:[%s20589_s0 + %s16361_s22]]   ;;  %s16365_s22 = smov 56  }
  0x5b   :  { %s16709_s8 = sld [smem:[%s20589_s0 + %s16362_s28]]   ;;  %s16366_s28 = smov 57  }
  0x5c   :  { %20691 = sst [smem:[#allocation137_spill]] %s16694_s13 }
  0x5d   :  { %s16714_s13 = sld [smem:[%s20589_s0 + %s16363_s7]]   ;;  %s16367_s7 = smov 58  }
  0x5e   :  { %20692 = sst [smem:[#allocation138_spill]] %s16699_s19 }
  0x5f   :  { %s16719_s19 = sld [smem:[%s20589_s0 + %s16364_s15]]   ;;  %s16368_s15 = smov 59  }
  0x60   :  { %20693 = sst [smem:[#allocation139_spill]] %s16704_s5 }
  0x61   :  { %20694 = sst [smem:[#allocation140_spill]] %s16709_s8 }
  0x62   :  { %s16724_s5 = sld [smem:[%s20589_s0 + %s16365_s22]]   ;;  %s16369_s22 = smov 60  }
  0x63   :  { %20695 = sst [smem:[#allocation141_spill]] %s16714_s13 }
  0x64   :  { %s16729_s8 = sld [smem:[%s20589_s0 + %s16366_s28]]   ;;  %s16370_s28 = smov 61  }
  0x65   :  { %20696 = sst [smem:[#allocation142_spill]] %s16719_s19 }
  0x66   :  { %s16734_s13 = sld [smem:[%s20589_s0 + %s16367_s7]]   ;;  %s16371_s7 = smov 62  }
  0x67   :  { %s16739_s19 = sld [smem:[%s20589_s0 + %s16368_s15]]   ;;  %s16372_s15 = smov 63  }
  0x68   :  { %20697 = sst [smem:[#allocation143_spill]] %s16724_s5 }
  0x69   :  { %s16744_s5 = sld [smem:[%s20589_s0 + %s16369_s22]]  }
  0x6a   :  { %20698 = sst [smem:[#allocation144_spill]] %s16729_s8 }
  0x6b   :  { %s16749_s8 = sld [smem:[%s20589_s0 + %s16370_s28]]  }
  0x6c   :  { %20699 = sst [smem:[#allocation145_spill]] %s16734_s13 }
  0x6d   :  { %20700 = sst [smem:[#allocation146_spill]] %s16739_s19 }
  0x6e   :  { %s16754_s13 = sld [smem:[%s20589_s0 + %s16371_s7]]  }
  0x6f   :  { %20701 = sst [smem:[#allocation147_spill]] %s16744_s5 }
  0x70   :  { %s11793_s19 = sld [smem:[%s20589_s0 + %s16372_s15]]  }
  0x71   :  { %20702 = sst [smem:[#allocation148_spill]] %s16749_s8 }
  0x72   :  { %s16762_s5 = sld [smem:[%s20589_s0 + %s16373_s23]]  }
  0x73   :  { %s16767_s8 = sld [smem:[%s20589_s0 + %s16374_s1]]  }
  0x74   :  { %20703 = sst [smem:[#allocation149_spill]] %s16754_s13 }
  0x75   :  { %s16772_s13 = sld [smem:[%s20589_s0 + %s16375_s10]]  }
  0x76   :  { %v138_v0 = vstv %s11793_s19 }
  0x77   :  { %139 = vst [vmem:[#allocation2] sm:$0x1] %v138_v0 }
  0x78   :  { %140 = vsyncpa [#allocation4], 0 }
  0x79   :  { %141 = vsyncpa [#allocation7], 0 }
  0x7a   :  { %142 = vsyncpa [#allocation10], 0 }
  0x7b   :  { %143 = vsyncpa [#allocation13], 0 }
  0x7c   :  { %144 = vsyncpa [#allocation16], 0 }
  0x7d   :  { %145 = vsyncpa [#allocation19], 0 }
  0x7e   :  { %146 = vsyncpa [#allocation22], 0 }
  0x7f   :  { %147 = vsyncpa [#allocation25], 0 }
  0x80   :  { %148 = vsyncpa [#allocation28], 0 }
  0x81   :  { %149 = vsyncpa [#allocation31], 0 }
  0x82   :  { %150 = vsyncpa [#allocation34], 0 }
  0x83   :  { %151 = vsyncpa [#allocation37], 0 }
  0x84   :  { %152 = vsyncpa [#allocation40], 0 }
  0x85   :  { %153 = vsyncpa [#allocation43], 0 }
  0x86   :  { %154 = vsyncpa [#allocation46], 0 }
  0x87   :  { %155 = vsyncpa [#allocation49], 0 }
  0x88   :  { %156 = vsyncpa [#allocation52], 0 }
  0x89   :  { %157 = vsyncpa [#allocation55], 0 }
  0x8a   :  { %158 = vsyncpa [#allocation58], 0 }
  0x8b   :  { %159 = vsyncpa [#allocation61], 0 }
  0x8c   :  { %160 = vsyncpa [#allocation64], 0 }
  0x8d   :  { %161 = vsyncpa [#allocation67], 0 }
  0x8e   :  { %162 = vsyncpa [#allocation70], 0 }
  0x8f   :  { %163 = vsyncpa [#allocation73], 0 }
  0x90   :  { %164 = vsyncpa [#allocation5], 0  ;;  %s16376_s0 = smov [#allocation6]   ;;  %s16377_s15 = smov [#allocation9]  }
  0x91   :  { %s183_s19 = sshll.u32 %s16376_s0, 4  ;;  %s205_s16 = sshll.u32 %s16377_s15, 4  ;;  %s184_s19 = int_to_ptr.vmem [resolvable:$true] %s183_s19  ;;  %s206_s16 = int_to_ptr.vmem [resolvable:$true] %s205_s16 }
  0x92   :  { %s15204_s18 = scalar_lea.hbm %s16449_s9, 16 }
  0x93   :  { %p15205_p0 = scmp.ne.s32.totalorder %s16449_s9, %s15204_s18  ;;  %p15208_p1 = scmp.lt.u32.totalorder %s15204_s18, %s16449_s9 }
  0x95   :  { %p15210_p2 = pnand %p15208_p1, %p15205_p0 }
  0x97   :  { %15213 = shalt.err (!%p15210_p2)
}
  0x98   :  { %s15214_s23 = scalar_lea.vmem %s184_s19, 16  ;;  %s15218_s22 = scalar_lea.vmem %s184_s19, 32 }
  0x99   :  { %p15215_p3 = scmp.ne.s32.totalorder %s184_s19, %s15214_s23  ;;  %p15219_p4 = scmp.lt.s32.totalorder %s184_s19, %s184_s19 }
  0x9a   :  { %p15220_p5 = scmp.lt.s32.totalorder %s15218_s22, %s15214_s23 }
  0x9c   :  { %p15221_p6 = por %p15220_p5, %p15219_p4 }
  0x9e   :  { %p15222_p7 = pnand %p15221_p6, %p15215_p3 }
  0xa0   :  { %15225 = shalt.err (!%p15222_p7)
}
  0xa1   :  { %186 = dma.hbm_to_vmem [thread:$0]  %s16449_s9, 16, %s184_s19, [#allocation7]  }
  0xa2   :  { %s15226_s26 = scalar_lea.hbm %s16464_s21, 16 }
  0xa3   :  { %p15227_p8 = scmp.ne.s32.totalorder %s16464_s21, %s15226_s26  ;;  %p15230_p9 = scmp.lt.u32.totalorder %s15226_s26, %s16464_s21 }
  0xa5   :  { %p15232_p10 = pnand %p15230_p9, %p15227_p8 }
  0xa7   :  { %15235 = shalt.err (!%p15232_p10)
}
  0xa8   :  { %s15236_s1 = scalar_lea.vmem %s206_s16, 16  ;;  %s15240_s28 = scalar_lea.vmem %s206_s16, 32 }
  0xa9   :  { %p15237_p11 = scmp.ne.s32.totalorder %s206_s16, %s15236_s1  ;;  %p15241_p12 = scmp.lt.s32.totalorder %s206_s16, %s206_s16 }
  0xaa   :  { %p15242_p13 = scmp.lt.s32.totalorder %s15240_s28, %s15236_s1 }
  0xac   :  { %p15243_p0 = por %p15242_p13, %p15241_p12 }
  0xae   :  { %p15244_p1 = pnand %p15243_p0, %p15237_p11 }
  0xb0   :  { %15247 = shalt.err (!%p15244_p1)
}
  0xb1   :  { %208 = dma.hbm_to_vmem [thread:$0]  %s16464_s21, 16, %s206_s16, [#allocation10]  }
  0xb2   :  { %s16378_s2 = smov [#allocation12]   ;;  %s16379_s10 = smov [#allocation15]  }
  0xb3   :  { %s227_s9 = sshll.u32 %s16378_s2, 4  ;;  %s247_s7 = sshll.u32 %s16379_s10, 4  ;;  %s228_s9 = int_to_ptr.vmem [resolvable:$true] %s227_s9  ;;  %s248_s7 = int_to_ptr.vmem [resolvable:$true] %s247_s7 }
  0xb4   :  { %s15248_s11 = scalar_lea.hbm %s16479_s3, 32 }
  0xb5   :  { %p15249_p2 = scmp.ne.s32.totalorder %s16479_s3, %s15248_s11  ;;  %p15252_p3 = scmp.lt.u32.totalorder %s15248_s11, %s16479_s3 }
  0xb7   :  { %p15254_p4 = pnand %p15252_p3, %p15249_p2 }
  0xb9   :  { %15257 = shalt.err (!%p15254_p4)
}
  0xba   :  { %s15258_s0 = scalar_lea.vmem %s228_s9, 32  ;;  %p15263_p6 = scmp.lt.s32.totalorder %s228_s9, %s228_s9 }
  0xbb   :  { %p15259_p5 = scmp.ne.s32.totalorder %s228_s9, %s15258_s0  ;;  %p15264_p7 = scmp.lt.s32.totalorder %s15258_s0, %s15258_s0 }
  0xbd   :  { %p15265_p8 = por %p15264_p7, %p15263_p6 }
  0xbf   :  { %p15266_p9 = pnand %p15265_p8, %p15259_p5 }
  0xc1   :  { %15269 = shalt.err (!%p15266_p9)
}
  0xc2   :  { %230 = dma.hbm_to_vmem [thread:$0]  %s16479_s3, 32, %s228_s9, [#allocation13]  }
  0xc3   :  { %s15270_s21 = scalar_lea.hbm %s16489_s14, 16 }
  0xc4   :  { %p15271_p10 = scmp.ne.s32.totalorder %s16489_s14, %s15270_s21  ;;  %p15274_p11 = scmp.lt.u32.totalorder %s15270_s21, %s16489_s14 }
  0xc6   :  { %p15276_p12 = pnand %p15274_p11, %p15271_p10 }
  0xc8   :  { %15279 = shalt.err (!%p15276_p12)
}
  0xc9   :  { %s15280_s19 = scalar_lea.vmem %s248_s7, 16  ;;  %s15284_s15 = scalar_lea.vmem %s248_s7, 32 }
  0xca   :  { %p15281_p13 = scmp.ne.s32.totalorder %s248_s7, %s15280_s19  ;;  %p15285_p0 = scmp.lt.s32.totalorder %s248_s7, %s248_s7 }
  0xcb   :  { %p15286_p1 = scmp.lt.s32.totalorder %s15284_s15, %s15280_s19 }
  0xcd   :  { %p15287_p2 = por %p15286_p1, %p15285_p0 }
  0xcf   :  { %p15288_p3 = pnand %p15287_p2, %p15281_p13 }
  0xd1   :  { %15291 = shalt.err (!%p15288_p3)
}
  0xd2   :  { %250 = dma.hbm_to_vmem [thread:$0]  %s16489_s14, 16, %s248_s7, [#allocation16]  }
  0xd3   :  { %s16380_s16 = smov [#allocation18]   ;;  %s16381_s18 = smov [#allocation21]  }
  0xd4   :  { %s267_s3 = sshll.u32 %s16380_s16, 4  ;;  %s287_s23 = sshll.u32 %s16381_s18, 4  ;;  %s268_s3 = int_to_ptr.vmem [resolvable:$true] %s267_s3  ;;  %s288_s23 = int_to_ptr.vmem [resolvable:$true] %s287_s23 }
  0xd5   :  { %s15292_s22 = scalar_lea.hbm %s16499_s24, 128 }
  0xd6   :  { %p15293_p4 = scmp.ne.s32.totalorder %s16499_s24, %s15292_s22  ;;  %p15296_p5 = scmp.lt.u32.totalorder %s15292_s22, %s16499_s24 }
  0xd8   :  { %p15298_p6 = pnand %p15296_p5, %p15293_p4 }
  0xda   :  { %15301 = shalt.err (!%p15298_p6)
}
  0xdb   :  { %s15302_s26 = scalar_lea.vmem %s268_s3, 128  ;;  %p15307_p8 = scmp.lt.s32.totalorder %s268_s3, %s268_s3 }
  0xdc   :  { %p15303_p7 = scmp.ne.s32.totalorder %s268_s3, %s15302_s26  ;;  %p15308_p9 = scmp.lt.s32.totalorder %s15302_s26, %s15302_s26 }
  0xde   :  { %p15309_p10 = por %p15308_p9, %p15307_p8 }
  0xe0   :  { %p15310_p11 = pnand %p15309_p10, %p15303_p7 }
  0xe2   :  { %15313 = shalt.err (!%p15310_p11)
}
  0xe3   :  { %270 = dma.hbm_to_vmem [thread:$0]  %s16499_s24, 128, %s268_s3, [#allocation19]  }
  0xe4   :  { %s15314_s14 = scalar_lea.hbm %s16509_s6, 16 }
  0xe5   :  { %p15315_p12 = scmp.ne.s32.totalorder %s16509_s6, %s15314_s14  ;;  %p15318_p13 = scmp.lt.u32.totalorder %s15314_s14, %s16509_s6 }
  0xe7   :  { %p15320_p0 = pnand %p15318_p13, %p15315_p12 }
  0xe9   :  { %15323 = shalt.err (!%p15320_p0)
}
  0xea   :  { %s15324_s1 = scalar_lea.vmem %s288_s23, 16  ;;  %s15328_s28 = scalar_lea.vmem %s288_s23, 32 }
  0xeb   :  { %p15325_p1 = scmp.ne.s32.totalorder %s288_s23, %s15324_s1  ;;  %p15329_p2 = scmp.lt.s32.totalorder %s288_s23, %s288_s23 }
  0xec   :  { %p15330_p3 = scmp.lt.s32.totalorder %s15328_s28, %s15324_s1 }
  0xee   :  { %p15331_p4 = por %p15330_p3, %p15329_p2 }
  0xf0   :  { %p15332_p5 = pnand %p15331_p4, %p15325_p1 }
  0xf2   :  { %15335 = shalt.err (!%p15332_p5)
}
  0xf3   :  { %290 = dma.hbm_to_vmem [thread:$0]  %s16509_s6, 16, %s288_s23, [#allocation22]  }
  0xf4   :  { %s16382_s2 = smov [#allocation24]   ;;  %s16383_s9 = smov [#allocation27]  }
  0xf5   :  { %s307_s24 = sshll.u32 %s16382_s2, 4  ;;  %s327_s10 = sshll.u32 %s16383_s9, 4  ;;  %s308_s24 = int_to_ptr.vmem [resolvable:$true] %s307_s24  ;;  %s328_s10 = int_to_ptr.vmem [resolvable:$true] %s327_s10 }
  0xf6   :  { %s15336_s7 = scalar_lea.hbm %s16519_s20, 16 }
  0xf7   :  { %p15337_p6 = scmp.ne.s32.totalorder %s16519_s20, %s15336_s7  ;;  %p15340_p7 = scmp.lt.u32.totalorder %s15336_s7, %s16519_s20 }
  0xf9   :  { %p15342_p8 = pnand %p15340_p7, %p15337_p6 }
  0xfb   :  { %15345 = shalt.err (!%p15342_p8)
}
  0xfc   :  { %s15346_s11 = scalar_lea.vmem %s308_s24, 16  ;;  %s15350_s0 = scalar_lea.vmem %s308_s24, 32 }
  0xfd   :  { %p15347_p9 = scmp.ne.s32.totalorder %s308_s24, %s15346_s11  ;;  %p15351_p10 = scmp.lt.s32.totalorder %s308_s24, %s308_s24 }
  0xfe   :  { %p15352_p11 = scmp.lt.s32.totalorder %s15350_s0, %s15346_s11 }
 0x100   :  { %p15353_p12 = por %p15352_p11, %p15351_p10 }
 0x102   :  { %p15354_p13 = pnand %p15353_p12, %p15347_p9 }
 0x104   :  { %15357 = shalt.err (!%p15354_p13)
}
 0x105   :  { %310 = dma.hbm_to_vmem [thread:$0]  %s16519_s20, 16, %s308_s24, [#allocation25]  }
 0x106   :  { %s15358_s6 = scalar_lea.hbm %s16529_s4, 16 }
 0x107   :  { %p15359_p0 = scmp.ne.s32.totalorder %s16529_s4, %s15358_s6  ;;  %p15362_p1 = scmp.lt.u32.totalorder %s15358_s6, %s16529_s4 }
 0x109   :  { %p15364_p2 = pnand %p15362_p1, %p15359_p0 }
 0x10b   :  { %15367 = shalt.err (!%p15364_p2)
}
 0x10c   :  { %s15368_s21 = scalar_lea.vmem %s328_s10, 16  ;;  %s15372_s19 = scalar_lea.vmem %s328_s10, 32 }
 0x10d   :  { %p15369_p3 = scmp.ne.s32.totalorder %s328_s10, %s15368_s21  ;;  %p15373_p4 = scmp.lt.s32.totalorder %s328_s10, %s328_s10 }
 0x10e   :  { %p15374_p5 = scmp.lt.s32.totalorder %s15372_s19, %s15368_s21 }
 0x110   :  { %p15375_p6 = por %p15374_p5, %p15373_p4 }
 0x112   :  { %p15376_p7 = pnand %p15375_p6, %p15369_p3 }
 0x114   :  { %15379 = shalt.err (!%p15376_p7)
}
 0x115   :  { %330 = dma.hbm_to_vmem [thread:$0]  %s16529_s4, 16, %s328_s10, [#allocation28]  }
 0x116   :  { %s16384_s15 = smov [#allocation30]   ;;  %s16385_s16 = smov [#allocation33]  }
 0x117   :  { %s347_s20 = sshll.u32 %s16384_s15, 4  ;;  %s371_s3 = sshll.u32 %s16385_s16, 4  ;;  %s348_s20 = int_to_ptr.vmem [resolvable:$true] %s347_s20  ;;  %s372_s3 = int_to_ptr.vmem [resolvable:$true] %s371_s3 }
 0x118   :  { %s15380_s18 = scalar_lea.hbm %s16539_s17, 16 }
 0x119   :  { %p15381_p8 = scmp.ne.s32.totalorder %s16539_s17, %s15380_s18  ;;  %p15384_p9 = scmp.lt.u32.totalorder %s15380_s18, %s16539_s17 }
 0x11b   :  { %p15386_p10 = pnand %p15384_p9, %p15381_p8 }
 0x11d   :  { %15389 = shalt.err (!%p15386_p10)
}
 0x11e   :  { %s15390_s23 = scalar_lea.vmem %s348_s20, 16  ;;  %s15394_s22 = scalar_lea.vmem %s348_s20, 32 }
 0x11f   :  { %p15391_p11 = scmp.ne.s32.totalorder %s348_s20, %s15390_s23  ;;  %p15395_p12 = scmp.lt.s32.totalorder %s348_s20, %s348_s20 }
 0x120   :  { %p15396_p13 = scmp.lt.s32.totalorder %s15394_s22, %s15390_s23 }
 0x122   :  { %p15397_p0 = por %p15396_p13, %p15395_p12 }
 0x124   :  { %p15398_p1 = pnand %p15397_p0, %p15391_p11 }
 0x126   :  { %15401 = shalt.err (!%p15398_p1)
}
 0x127   :  { %350 = dma.hbm_to_vmem [thread:$0]  %s16539_s17, 16, %s348_s20, [#allocation31]  }
 0x128   :  { %s15402_s4 = scalar_lea.hbm %s16559_s30, 16 }
 0x129   :  { %p15403_p2 = scmp.ne.s32.totalorder %s16559_s30, %s15402_s4  ;;  %p15406_p3 = scmp.lt.u32.totalorder %s15402_s4, %s16559_s30 }
 0x12b   :  { %p15408_p4 = pnand %p15406_p3, %p15403_p2 }
 0x12d   :  { %15411 = shalt.err (!%p15408_p4)
}
 0x12e   :  { %s15412_s26 = scalar_lea.vmem %s372_s3, 16  ;;  %s15416_s14 = scalar_lea.vmem %s372_s3, 32 }
 0x12f   :  { %p15413_p5 = scmp.ne.s32.totalorder %s372_s3, %s15412_s26  ;;  %p15417_p6 = scmp.lt.s32.totalorder %s372_s3, %s372_s3 }
 0x130   :  { %p15418_p7 = scmp.lt.s32.totalorder %s15416_s14, %s15412_s26 }
 0x132   :  { %p15419_p8 = por %p15418_p7, %p15417_p6 }
 0x134   :  { %p15420_p9 = pnand %p15419_p8, %p15413_p5 }
 0x136   :  { %15423 = shalt.err (!%p15420_p9)
}
 0x137   :  { %374 = dma.hbm_to_vmem [thread:$0]  %s16559_s30, 16, %s372_s3, [#allocation34]  }
 0x138   :  { %s16386_s1 = smov [#allocation36]   ;;  %s16387_s28 = smov [#allocation39]  }
 0x139   :  { %s391_s17 = sshll.u32 %s16386_s1, 4  ;;  %s417_s2 = sshll.u32 %s16387_s28, 4  ;;  %s392_s17 = int_to_ptr.vmem [resolvable:$true] %s391_s17  ;;  %s418_s2 = int_to_ptr.vmem [resolvable:$true] %s417_s2 }
 0x13a   :  { %s15424_s24 = scalar_lea.hbm %s16569_s12, 16 }
 0x13b   :  { %p15425_p10 = scmp.ne.s32.totalorder %s16569_s12, %s15424_s24  ;;  %p15428_p11 = scmp.lt.u32.totalorder %s15424_s24, %s16569_s12 }
 0x13d   :  { %p15430_p12 = pnand %p15428_p11, %p15425_p10 }
 0x13f   :  { %15433 = shalt.err (!%p15430_p12)
}
 0x140   :  { %s15434_s9 = scalar_lea.vmem %s392_s17, 16  ;;  %s15438_s10 = scalar_lea.vmem %s392_s17, 32 }
 0x141   :  { %p15435_p13 = scmp.ne.s32.totalorder %s392_s17, %s15434_s9  ;;  %p15439_p0 = scmp.lt.s32.totalorder %s392_s17, %s392_s17 }
 0x142   :  { %p15440_p1 = scmp.lt.s32.totalorder %s15438_s10, %s15434_s9 }
 0x144   :  { %p15441_p2 = por %p15440_p1, %p15439_p0 }
 0x146   :  { %p15442_p3 = pnand %p15441_p2, %p15435_p13 }
 0x148   :  { %15445 = shalt.err (!%p15442_p3)
}
 0x149   :  { %394 = dma.hbm_to_vmem [thread:$0]  %s16569_s12, 16, %s392_s17, [#allocation37]  }
 0x14a   :  { %s15446_s30 = scalar_lea.hbm %s16594_s29, 16 }
 0x14b   :  { %p15447_p4 = scmp.ne.s32.totalorder %s16594_s29, %s15446_s30  ;;  %p15450_p5 = scmp.lt.u32.totalorder %s15446_s30, %s16594_s29 }
 0x14d   :  { %p15452_p6 = pnand %p15450_p5, %p15447_p4 }
 0x14f   :  { %15455 = shalt.err (!%p15452_p6)
}
 0x150   :  { %s15456_s7 = scalar_lea.vmem %s418_s2, 16  ;;  %s15460_s11 = scalar_lea.vmem %s418_s2, 32 }
 0x151   :  { %p15457_p7 = scmp.ne.s32.totalorder %s418_s2, %s15456_s7  ;;  %p15461_p8 = scmp.lt.s32.totalorder %s418_s2, %s418_s2 }
 0x152   :  { %p15462_p9 = scmp.lt.s32.totalorder %s15460_s11, %s15456_s7 }
 0x154   :  { %p15463_p10 = por %p15462_p9, %p15461_p8 }
 0x156   :  { %p15464_p11 = pnand %p15463_p10, %p15457_p7 }
 0x158   :  { %15467 = shalt.err (!%p15464_p11)
}
 0x159   :  { %420 = dma.hbm_to_vmem [thread:$0]  %s16594_s29, 16, %s418_s2, [#allocation40]  }
 0x15a   :  { %s16388_s0 = smov [#allocation42]   ;;  %s16389_s6 = smov [#allocation45]  }
 0x15b   :  { %s441_s12 = sshll.u32 %s16388_s0, 4  ;;  %s461_s21 = sshll.u32 %s16389_s6, 4  ;;  %s442_s12 = int_to_ptr.vmem [resolvable:$true] %s441_s12  ;;  %s462_s21 = int_to_ptr.vmem [resolvable:$true] %s461_s21 }
 0x15c   :  { %s15468_s19 = scalar_lea.hbm %s16614_s25, 16 }
 0x15d   :  { %p15469_p12 = scmp.ne.s32.totalorder %s16614_s25, %s15468_s19  ;;  %p15472_p13 = scmp.lt.u32.totalorder %s15468_s19, %s16614_s25 }
 0x15f   :  { %p15474_p0 = pnand %p15472_p13, %p15469_p12 }
 0x161   :  { %15477 = shalt.err (!%p15474_p0)
}
 0x162   :  { %s15478_s15 = scalar_lea.vmem %s442_s12, 16  ;;  %s15482_s20 = scalar_lea.vmem %s442_s12, 32 }
 0x163   :  { %p15479_p1 = scmp.ne.s32.totalorder %s442_s12, %s15478_s15  ;;  %p15483_p2 = scmp.lt.s32.totalorder %s442_s12, %s442_s12 }
 0x164   :  { %p15484_p3 = scmp.lt.s32.totalorder %s15482_s20, %s15478_s15 }
 0x166   :  { %p15485_p4 = por %p15484_p3, %p15483_p2 }
 0x168   :  { %p15486_p5 = pnand %p15485_p4, %p15479_p1 }
 0x16a   :  { %15489 = shalt.err (!%p15486_p5)
}
 0x16b   :  { %444 = dma.hbm_to_vmem [thread:$0]  %s16614_s25, 16, %s442_s12, [#allocation43]  }
 0x16c   :  { %s15490_s29 = scalar_lea.hbm %s16624_s27, 16 }
 0x16d   :  { %p15491_p6 = scmp.ne.s32.totalorder %s16624_s27, %s15490_s29  ;;  %p15494_p7 = scmp.lt.u32.totalorder %s15490_s29, %s16624_s27 }
 0x16f   :  { %p15496_p8 = pnand %p15494_p7, %p15491_p6 }
 0x171   :  { %15499 = shalt.err (!%p15496_p8)
}
 0x172   :  { %s15500_s16 = scalar_lea.vmem %s462_s21, 16  ;;  %s15504_s3 = scalar_lea.vmem %s462_s21, 32 }
 0x173   :  { %p15501_p9 = scmp.ne.s32.totalorder %s462_s21, %s15500_s16  ;;  %p15505_p10 = scmp.lt.s32.totalorder %s462_s21, %s462_s21 }
 0x174   :  { %p15506_p11 = scmp.lt.s32.totalorder %s15504_s3, %s15500_s16 }
 0x176   :  { %p15507_p12 = por %p15506_p11, %p15505_p10 }
 0x178   :  { %p15508_p13 = pnand %p15507_p12, %p15501_p9 }
 0x17a   :  { %15511 = shalt.err (!%p15508_p13)
}
 0x17b   :  { %s20704_s18 = sld [smem:[#allocation127_spill]]  ;;  %s16390_s23 = smov [#allocation48]  }
 0x17c   :  { %464 = dma.hbm_to_vmem [thread:$0]  %s16624_s27, 16, %s462_s21, [#allocation46]  }
 0x17d   :  { %s485_s25 = sshll.u32 %s16390_s23, 4  ;;  %s16391_s22 = smov [#allocation51]   ;;  %s486_s25 = int_to_ptr.vmem [resolvable:$true] %s485_s25 }
 0x17e   :  { %s505_s4 = sshll.u32 %s16391_s22, 4  ;;  %s506_s4 = int_to_ptr.vmem [resolvable:$true] %s505_s4 }
 0x181   :  { %s15512_s26 = scalar_lea.hbm %s20704_s18, 16 }
 0x182   :  { %p15513_p0 = scmp.ne.s32.totalorder %s20704_s18, %s15512_s26  ;;  %p15516_p1 = scmp.lt.u32.totalorder %s15512_s26, %s20704_s18 }
 0x184   :  { %p15518_p2 = pnand %p15516_p1, %p15513_p0 }
 0x186   :  { %15521 = shalt.err (!%p15518_p2)
}
 0x187   :  { %s15522_s14 = scalar_lea.vmem %s486_s25, 16  ;;  %s15526_s1 = scalar_lea.vmem %s486_s25, 32 }
 0x188   :  { %p15523_p3 = scmp.ne.s32.totalorder %s486_s25, %s15522_s14  ;;  %p15527_p4 = scmp.lt.s32.totalorder %s486_s25, %s486_s25 }
 0x189   :  { %p15528_p5 = scmp.lt.s32.totalorder %s15526_s1, %s15522_s14 }
 0x18b   :  { %p15529_p6 = por %p15528_p5, %p15527_p4 }
 0x18d   :  { %p15530_p7 = pnand %p15529_p6, %p15523_p3 }
 0x18f   :  { %15533 = shalt.err (!%p15530_p7)
}
 0x190   :  { %s20705_s27 = sld [smem:[#allocation129_spill]] }
 0x191   :  { %488 = dma.hbm_to_vmem [thread:$0]  %s20704_s18, 16, %s486_s25, [#allocation49]  }
 0x196   :  { %s15534_s17 = scalar_lea.hbm %s20705_s27, 16 }
 0x197   :  { %p15535_p8 = scmp.ne.s32.totalorder %s20705_s27, %s15534_s17  ;;  %p15538_p9 = scmp.lt.u32.totalorder %s15534_s17, %s20705_s27 }
 0x199   :  { %p15540_p10 = pnand %p15538_p9, %p15535_p8 }
 0x19b   :  { %15543 = shalt.err (!%p15540_p10)
}
 0x19c   :  { %s15544_s28 = scalar_lea.vmem %s506_s4, 16  ;;  %s15548_s2 = scalar_lea.vmem %s506_s4, 32 }
 0x19d   :  { %p15545_p11 = scmp.ne.s32.totalorder %s506_s4, %s15544_s28  ;;  %p15549_p12 = scmp.lt.s32.totalorder %s506_s4, %s506_s4 }
 0x19e   :  { %p15550_p13 = scmp.lt.s32.totalorder %s15548_s2, %s15544_s28 }
 0x1a0   :  { %p15551_p0 = por %p15550_p13, %p15549_p12 }
 0x1a2   :  { %p15552_p1 = pnand %p15551_p0, %p15545_p11 }
 0x1a4   :  { %15555 = shalt.err (!%p15552_p1)
}
 0x1a5   :  { %s20706_s24 = sld [smem:[#allocation132_spill]]  ;;  %s16392_s9 = smov [#allocation54]  }
 0x1a6   :  { %508 = dma.hbm_to_vmem [thread:$0]  %s20705_s27, 16, %s506_s4, [#allocation52]  }
 0x1a7   :  { %s526_s10 = sshll.u32 %s16392_s9, 4  ;;  %s16393_s30 = smov [#allocation57]   ;;  %s527_s10 = int_to_ptr.vmem [resolvable:$true] %s526_s10 }
 0x1a8   :  { %s549_s7 = sshll.u32 %s16393_s30, 4  ;;  %s16838_s7 = int_to_ptr.vmem [resolvable:$true] %s549_s7 }
 0x1ab   :  { %s15556_s11 = scalar_lea.hbm %s20706_s24, 512 }
 0x1ac   :  { %p15557_p2 = scmp.ne.s32.totalorder %s20706_s24, %s15556_s11  ;;  %p15560_p3 = scmp.lt.u32.totalorder %s15556_s11, %s20706_s24 }
 0x1ae   :  { %p15562_p4 = pnand %p15560_p3, %p15557_p2 }
 0x1b0   :  { %15565 = shalt.err (!%p15562_p4)
}
 0x1b1   :  { %s15566_s0 = scalar_lea.vmem %s527_s10, 512  ;;  %p15571_p6 = scmp.lt.s32.totalorder %s527_s10, %s527_s10 }
 0x1b2   :  { %p15567_p5 = scmp.ne.s32.totalorder %s527_s10, %s15566_s0  ;;  %p15572_p7 = scmp.lt.s32.totalorder %s15566_s0, %s15566_s0 }
 0x1b4   :  { %p15573_p8 = por %p15572_p7, %p15571_p6 }
 0x1b6   :  { %p15574_p9 = pnand %p15573_p8, %p15567_p5 }
 0x1b8   :  { %15577 = shalt.err (!%p15574_p9)
}
 0x1b9   :  { %s16394_s12 = smov 128   ;;  %s20707_s6 = sld [smem:[#allocation134_spill]] }
 0x1ba   :  { %s16395_s21 = smov 8  }
 0x1bb   :  { %532 = dma.hbm_to_vmem [thread:$0]  %s20706_s24, 512, %s527_s10, [#allocation55], %s16394_s12, %s16394_s12, %s16395_s21  }
 0x1bf   :  { %s15578_s19 = scalar_lea.hbm %s20707_s6, 16 }
 0x1c0   :  { %p15579_p10 = scmp.ne.s32.totalorder %s20707_s6, %s15578_s19  ;;  %p15582_p11 = scmp.lt.u32.totalorder %s15578_s19, %s20707_s6 }
 0x1c2   :  { %p15584_p12 = pnand %p15582_p11, %p15579_p10 }
 0x1c4   :  { %15587 = shalt.err (!%p15584_p12)
}
 0x1c5   :  { %s15588_s15 = scalar_lea.vmem %s16838_s7, 16  ;;  %s15592_s20 = scalar_lea.vmem %s16838_s7, 32 }
 0x1c6   :  { %p15589_p13 = scmp.ne.s32.totalorder %s16838_s7, %s15588_s15  ;;  %p15593_p0 = scmp.lt.s32.totalorder %s16838_s7, %s16838_s7 }
 0x1c7   :  { %p15594_p1 = scmp.lt.s32.totalorder %s15592_s20, %s15588_s15 }
 0x1c9   :  { %p15595_p2 = por %p15594_p1, %p15593_p0 }
 0x1cb   :  { %p15596_p3 = pnand %p15595_p2, %p15589_p13 }
 0x1cd   :  { %15599 = shalt.err (!%p15596_p3)
}
 0x1ce   :  { %s20708_s29 = sld [smem:[#allocation136_spill]]  ;;  %s16396_s16 = smov [#allocation60]  }
 0x1cf   :  { %552 = dma.hbm_to_vmem [thread:$0]  %s20707_s6, 16, %s16838_s7, [#allocation58]  }
 0x1d0   :  { %s571_s3 = sshll.u32 %s16396_s16, 4  ;;  %s16397_s18 = smov [#allocation63]   ;;  %s572_s3 = int_to_ptr.vmem [resolvable:$true] %s571_s3 }
 0x1d1   :  { %s592_s23 = sshll.u32 %s16397_s18, 4  ;;  %s16857_s23 = int_to_ptr.vmem [resolvable:$true] %s592_s23 }
 0x1d4   :  { %s15600_s25 = scalar_lea.hbm %s20708_s29, 16 }
 0x1d5   :  { %p15601_p4 = scmp.ne.s32.totalorder %s20708_s29, %s15600_s25  ;;  %p15604_p5 = scmp.lt.u32.totalorder %s15600_s25, %s20708_s29 }
 0x1d7   :  { %p15606_p6 = pnand %p15604_p5, %p15601_p4 }
 0x1d9   :  { %15609 = shalt.err (!%p15606_p6)
}
 0x1da   :  { %s15610_s22 = scalar_lea.vmem %s572_s3, 16  ;;  %s15614_s4 = scalar_lea.vmem %s572_s3, 32 }
 0x1db   :  { %p15611_p7 = scmp.ne.s32.totalorder %s572_s3, %s15610_s22  ;;  %p15615_p8 = scmp.lt.s32.totalorder %s572_s3, %s572_s3 }
 0x1dc   :  { %p15616_p9 = scmp.lt.s32.totalorder %s15614_s4, %s15610_s22 }
 0x1de   :  { %p15617_p10 = por %p15616_p9, %p15615_p8 }
 0x1e0   :  { %p15618_p11 = pnand %p15617_p10, %p15611_p7 }
 0x1e2   :  { %15621 = shalt.err (!%p15618_p11)
}
 0x1e3   :  { %s20709_s26 = sld [smem:[#allocation139_spill]] }
 0x1e4   :  { %574 = dma.hbm_to_vmem [thread:$0]  %s20708_s29, 16, %s572_s3, [#allocation61]  }
 0x1e9   :  { %s15622_s14 = scalar_lea.hbm %s20709_s26, 512 }
 0x1ea   :  { %p15623_p12 = scmp.ne.s32.totalorder %s20709_s26, %s15622_s14  ;;  %p15626_p13 = scmp.lt.u32.totalorder %s15622_s14, %s20709_s26 }
 0x1ec   :  { %p15628_p0 = pnand %p15626_p13, %p15623_p12 }
 0x1ee   :  { %15631 = shalt.err (!%p15628_p0)
}
 0x1ef   :  { %s15632_s1 = scalar_lea.vmem %s16857_s23, 512  ;;  %p15637_p2 = scmp.lt.s32.totalorder %s16857_s23, %s16857_s23 }
 0x1f0   :  { %p15633_p1 = scmp.ne.s32.totalorder %s16857_s23, %s15632_s1  ;;  %p15638_p3 = scmp.lt.s32.totalorder %s15632_s1, %s15632_s1 }
 0x1f2   :  { %p15639_p4 = por %p15638_p3, %p15637_p2 }
 0x1f4   :  { %p15640_p5 = pnand %p15639_p4, %p15633_p1 }
 0x1f6   :  { %15643 = shalt.err (!%p15640_p5)
}
 0x1f7   :  { %s20710_s27 = sld [smem:[#allocation141_spill]]  ;;  %s16398_s17 = smov [#allocation66]  }
 0x1f8   :  { %598 = dma.hbm_to_vmem [thread:$0]  %s20709_s26, 512, %s16857_s23, [#allocation64], %s16394_s12, %s16394_s12, %s16395_s21  }
 0x1f9   :  { %s614_s28 = sshll.u32 %s16398_s17, 4  ;;  %s16399_s2 = smov [#allocation69]   ;;  %s615_s28 = int_to_ptr.vmem [resolvable:$true] %s614_s28 }
 0x1fa   :  { %s636_s24 = sshll.u32 %s16399_s2, 4  ;;  %s16875_s24 = int_to_ptr.vmem [resolvable:$true] %s636_s24 }
 0x1fd   :  { %s15644_s9 = scalar_lea.hbm %s20710_s27, 512 }
 0x1fe   :  { %p15645_p6 = scmp.ne.s32.totalorder %s20710_s27, %s15644_s9  ;;  %p15648_p7 = scmp.lt.u32.totalorder %s15644_s9, %s20710_s27 }
 0x200   :  { %p15650_p8 = pnand %p15648_p7, %p15645_p6 }
 0x202   :  { %15653 = shalt.err (!%p15650_p8)
}
 0x203   :  { %s15654_s10 = scalar_lea.vmem %s615_s28, 512  ;;  %p15659_p10 = scmp.lt.s32.totalorder %s615_s28, %s615_s28 }
 0x204   :  { %p15655_p9 = scmp.ne.s32.totalorder %s615_s28, %s15654_s10  ;;  %p15660_p11 = scmp.lt.s32.totalorder %s15654_s10, %s15654_s10 }
 0x206   :  { %p15661_p12 = por %p15660_p11, %p15659_p10 }
 0x208   :  { %p15662_p13 = pnand %p15661_p12, %p15655_p9 }
 0x20a   :  { %15665 = shalt.err (!%p15662_p13)
}
 0x20b   :  { %s20711_s30 = sld [smem:[#allocation143_spill]] }
 0x20c   :  { %620 = dma.hbm_to_vmem [thread:$0]  %s20710_s27, 512, %s615_s28, [#allocation67], %s16394_s12, %s16394_s12, %s16395_s21  }
 0x211   :  { %s15666_s7 = scalar_lea.hbm %s20711_s30, 512 }
 0x212   :  { %p15667_p0 = scmp.ne.s32.totalorder %s20711_s30, %s15666_s7  ;;  %p15670_p1 = scmp.lt.u32.totalorder %s15666_s7, %s20711_s30 }
 0x214   :  { %p15672_p2 = pnand %p15670_p1, %p15667_p0 }
 0x216   :  { %15675 = shalt.err (!%p15672_p2)
}
 0x217   :  { %s15676_s11 = scalar_lea.vmem %s16875_s24, 512  ;;  %p15681_p4 = scmp.lt.s32.totalorder %s16875_s24, %s16875_s24 }
 0x218   :  { %p15677_p3 = scmp.ne.s32.totalorder %s16875_s24, %s15676_s11  ;;  %p15682_p5 = scmp.lt.s32.totalorder %s15676_s11, %s15676_s11 }
 0x21a   :  { %p15683_p6 = por %p15682_p5, %p15681_p4 }
 0x21c   :  { %p15684_p7 = pnand %p15683_p6, %p15677_p3 }
 0x21e   :  { %15687 = shalt.err (!%p15684_p7)
}
 0x21f   :  { %s20712_s0 = sld [smem:[#allocation147_spill]]  ;;  %s16400_s6 = smov [#allocation72]  }
 0x220   :  { %642 = dma.hbm_to_vmem [thread:$0]  %s20711_s30, 512, %s16875_s24, [#allocation70], %s16394_s12, %s16394_s12, %s16395_s21  }
 0x221   :  { %s662_s19 = sshll.u32 %s16400_s6, 4  ;;  %s16401_s15 = smov [#allocation3]   ;;  %s663_s19 = int_to_ptr.vmem [resolvable:$true] %s662_s19 }
 0x222   :  { %s170_s20 = sshll.u32 %s16401_s15, 4  ;;  %s16896_s20 = int_to_ptr.vmem [resolvable:$true] %s170_s20 }
 0x225   :  { %s15688_s29 = scalar_lea.hbm %s20712_s0, 512 }
 0x226   :  { %p15689_p8 = scmp.ne.s32.totalorder %s20712_s0, %s15688_s29  ;;  %p15692_p9 = scmp.lt.u32.totalorder %s15688_s29, %s20712_s0 }
 0x228   :  { %p15694_p10 = pnand %p15692_p9, %p15689_p8 }
 0x22a   :  { %15697 = shalt.err (!%p15694_p10)
}
 0x22b   :  { %s15698_s16 = scalar_lea.vmem %s663_s19, 512  ;;  %p15703_p12 = scmp.lt.s32.totalorder %s663_s19, %s663_s19 }
 0x22c   :  { %p15699_p11 = scmp.ne.s32.totalorder %s663_s19, %s15698_s16  ;;  %p15704_p13 = scmp.lt.s32.totalorder %s15698_s16, %s15698_s16 }
 0x22e   :  { %p15705_p0 = por %p15704_p13, %p15703_p12 }
 0x230   :  { %p15706_p1 = pnand %p15705_p0, %p15699_p11 }
 0x232   :  { %15709 = shalt.err (!%p15706_p1)
}
 0x233   :  { %s20713_s3 = sld [smem:[#allocation101_spill]] }
 0x234   :  { %668 = dma.hbm_to_vmem [thread:$0]  %s20712_s0, 512, %s663_s19, [#allocation73], %s16394_s12, %s16394_s12, %s16395_s21  }
 0x239   :  { %s15710_s18 = scalar_lea.hbm %s20713_s3, 256 }
 0x23a   :  { %p15711_p2 = scmp.ne.s32.totalorder %s20713_s3, %s15710_s18  ;;  %p15714_p3 = scmp.lt.u32.totalorder %s15710_s18, %s20713_s3 }
 0x23c   :  { %p15716_p4 = pnand %p15714_p3, %p15711_p2 }
 0x23e   :  { %15719 = shalt.err (!%p15716_p4)
}
 0x23f   :  { %s15720_s23 = scalar_lea.vmem %s16896_s20, 256  ;;  %p15725_p6 = scmp.lt.s32.totalorder %s16896_s20, %s16896_s20 }
 0x240   :  { %p15721_p5 = scmp.ne.s32.totalorder %s16896_s20, %s15720_s23  ;;  %p15726_p7 = scmp.lt.s32.totalorder %s15720_s23, %s15720_s23 }
 0x242   :  { %p15727_p8 = por %p15726_p7, %p15725_p6 }
 0x244   :  { %p15728_p9 = pnand %p15727_p8, %p15721_p5 }
 0x246   :  { %15731 = shalt.err (!%p15728_p9)
}
 0x247   :  { %s20714_s25 = sld [smem:[#allocation102_spill]]  ;;  %s16402_s22 = smov [#allocation8]  }
 0x248   :  { %176 = dma.hbm_to_vmem [thread:$0]  %s20713_s3, 256, %s16896_s20, [#allocation4], %s16394_s12, %s16394_s12, %s16395_s21  }
 0x249   :  { %s193_s4 = sshll.u32 %s16402_s22, 4  ;;  %s16403_s26 = smov [#allocation11]   ;;  %s194_s4 = int_to_ptr.vmem [resolvable:$true] %s193_s4 }
 0x24a   :  { %s215_s14 = sshll.u32 %s16403_s26, 4  ;;  %s216_s14 = int_to_ptr.vmem [resolvable:$true] %s215_s14 }
 0x24d   :  { %s15732_s1 = scalar_lea.hbm %s20714_s25, 16 }
 0x24e   :  { %p15733_p10 = scmp.ne.s32.totalorder %s20714_s25, %s15732_s1  ;;  %p15736_p11 = scmp.lt.u32.totalorder %s15732_s1, %s20714_s25 }
 0x250   :  { %p15738_p12 = pnand %p15736_p11, %p15733_p10 }
 0x252   :  { %15741 = shalt.err (!%p15738_p12)
}
 0x253   :  { %s15742_s27 = scalar_lea.vmem %s194_s4, 16  ;;  %s15746_s17 = scalar_lea.vmem %s194_s4, 32 }
 0x254   :  { %p15743_p13 = scmp.ne.s32.totalorder %s194_s4, %s15742_s27  ;;  %p15747_p0 = scmp.lt.s32.totalorder %s194_s4, %s194_s4 }
 0x255   :  { %p15748_p1 = scmp.lt.s32.totalorder %s15746_s17, %s15742_s27 }
 0x257   :  { %p15749_p2 = por %p15748_p1, %p15747_p0 }
 0x259   :  { %p15750_p3 = pnand %p15749_p2, %p15743_p13 }
 0x25b   :  { %15753 = shalt.err (!%p15750_p3)
}
 0x25c   :  { %s20715_s28 = sld [smem:[#allocation104_spill]] }
 0x25d   :  { %196 = dma.hbm_to_vmem [thread:$0]  %s20714_s25, 16, %s194_s4, [#allocation7]  }
 0x262   :  { %s15754_s2 = scalar_lea.hbm %s20715_s28, 16 }
 0x263   :  { %p15755_p4 = scmp.ne.s32.totalorder %s20715_s28, %s15754_s2  ;;  %p15758_p5 = scmp.lt.u32.totalorder %s15754_s2, %s20715_s28 }
 0x265   :  { %p15760_p6 = pnand %p15758_p5, %p15755_p4 }
 0x267   :  { %15763 = shalt.err (!%p15760_p6)
}
 0x268   :  { %s15764_s24 = scalar_lea.vmem %s216_s14, 16  ;;  %s15768_s9 = scalar_lea.vmem %s216_s14, 32 }
 0x269   :  { %p15765_p7 = scmp.ne.s32.totalorder %s216_s14, %s15764_s24  ;;  %p15769_p8 = scmp.lt.s32.totalorder %s216_s14, %s216_s14 }
 0x26a   :  { %p15770_p9 = scmp.lt.s32.totalorder %s15768_s9, %s15764_s24 }
 0x26c   :  { %p15771_p10 = por %p15770_p9, %p15769_p8 }
 0x26e   :  { %p15772_p11 = pnand %p15771_p10, %p15765_p7 }
 0x270   :  { %15775 = shalt.err (!%p15772_p11)
}
 0x271   :  { %s20716_s10 = sld [smem:[#allocation106_spill]]  ;;  %s16404_s30 = smov [#allocation14]  }
 0x272   :  { %218 = dma.hbm_to_vmem [thread:$0]  %s20715_s28, 16, %s216_s14, [#allocation10]  }
 0x273   :  { %s237_s7 = sshll.u32 %s16404_s30, 4  ;;  %s16405_s11 = smov [#allocation17]   ;;  %s238_s7 = int_to_ptr.vmem [resolvable:$true] %s237_s7 }
 0x274   :  { %s257_s0 = sshll.u32 %s16405_s11, 4  ;;  %s258_s0 = int_to_ptr.vmem [resolvable:$true] %s257_s0 }
 0x277   :  { %s15776_s6 = scalar_lea.hbm %s20716_s10, 16 }
 0x278   :  { %p15777_p12 = scmp.ne.s32.totalorder %s20716_s10, %s15776_s6  ;;  %p15780_p13 = scmp.lt.u32.totalorder %s15776_s6, %s20716_s10 }
 0x27a   :  { %p15782_p0 = pnand %p15780_p13, %p15777_p12 }
 0x27c   :  { %15785 = shalt.err (!%p15782_p0)
}
 0x27d   :  { %s15786_s19 = scalar_lea.vmem %s238_s7, 16  ;;  %s15790_s15 = scalar_lea.vmem %s238_s7, 32 }
 0x27e   :  { %p15787_p1 = scmp.ne.s32.totalorder %s238_s7, %s15786_s19  ;;  %p15791_p2 = scmp.lt.s32.totalorder %s238_s7, %s238_s7 }
 0x27f   :  { %p15792_p3 = scmp.lt.s32.totalorder %s15790_s15, %s15786_s19 }
 0x281   :  { %p15793_p4 = por %p15792_p3, %p15791_p2 }
 0x283   :  { %p15794_p5 = pnand %p15793_p4, %p15787_p1 }
 0x285   :  { %15797 = shalt.err (!%p15794_p5)
}
 0x286   :  { %s20717_s20 = sld [smem:[#allocation107_spill]] }
 0x287   :  { %240 = dma.hbm_to_vmem [thread:$0]  %s20716_s10, 16, %s238_s7, [#allocation13]  }
 0x28c   :  { %s15798_s29 = scalar_lea.hbm %s20717_s20, 16 }
 0x28d   :  { %p15799_p6 = scmp.ne.s32.totalorder %s20717_s20, %s15798_s29  ;;  %p15802_p7 = scmp.lt.u32.totalorder %s15798_s29, %s20717_s20 }
 0x28f   :  { %p15804_p8 = pnand %p15802_p7, %p15799_p6 }
 0x291   :  { %15807 = shalt.err (!%p15804_p8)
}
 0x292   :  { %s15808_s16 = scalar_lea.vmem %s258_s0, 16  ;;  %s15812_s3 = scalar_lea.vmem %s258_s0, 32 }
 0x293   :  { %p15809_p9 = scmp.ne.s32.totalorder %s258_s0, %s15808_s16  ;;  %p15813_p10 = scmp.lt.s32.totalorder %s258_s0, %s258_s0 }
 0x294   :  { %p15814_p11 = scmp.lt.s32.totalorder %s15812_s3, %s15808_s16 }
 0x296   :  { %p15815_p12 = por %p15814_p11, %p15813_p10 }
 0x298   :  { %p15816_p13 = pnand %p15815_p12, %p15809_p9 }
 0x29a   :  { %15819 = shalt.err (!%p15816_p13)
}
 0x29b   :  { %s20718_s18 = sld [smem:[#allocation108_spill]]  ;;  %s16406_s23 = smov [#allocation20]  }
 0x29c   :  { %260 = dma.hbm_to_vmem [thread:$0]  %s20717_s20, 16, %s258_s0, [#allocation16]  }
 0x29d   :  { %s277_s25 = sshll.u32 %s16406_s23, 4  ;;  %s16407_s22 = smov [#allocation23]   ;;  %s278_s25 = int_to_ptr.vmem [resolvable:$true] %s277_s25 }
 0x29e   :  { %s297_s4 = sshll.u32 %s16407_s22, 4  ;;  %s298_s4 = int_to_ptr.vmem [resolvable:$true] %s297_s4 }
 0x2a1   :  { %s15820_s26 = scalar_lea.hbm %s20718_s18, 128 }
 0x2a2   :  { %p15821_p0 = scmp.ne.s32.totalorder %s20718_s18, %s15820_s26  ;;  %p15824_p1 = scmp.lt.u32.totalorder %s15820_s26, %s20718_s18 }
 0x2a4   :  { %p15826_p2 = pnand %p15824_p1, %p15821_p0 }
 0x2a6   :  { %15829 = shalt.err (!%p15826_p2)
}
 0x2a7   :  { %s15830_s14 = scalar_lea.vmem %s278_s25, 128  ;;  %p15835_p4 = scmp.lt.s32.totalorder %s278_s25, %s278_s25 }
 0x2a8   :  { %p15831_p3 = scmp.ne.s32.totalorder %s278_s25, %s15830_s14  ;;  %p15836_p5 = scmp.lt.s32.totalorder %s15830_s14, %s15830_s14 }
 0x2aa   :  { %p15837_p6 = por %p15836_p5, %p15835_p4 }
 0x2ac   :  { %p15838_p7 = pnand %p15837_p6, %p15831_p3 }
 0x2ae   :  { %15841 = shalt.err (!%p15838_p7)
}
 0x2af   :  { %s20719_s1 = sld [smem:[#allocation109_spill]] }
 0x2b0   :  { %280 = dma.hbm_to_vmem [thread:$0]  %s20718_s18, 128, %s278_s25, [#allocation19]  }
 0x2b5   :  { %s15842_s27 = scalar_lea.hbm %s20719_s1, 16 }
 0x2b6   :  { %p15843_p8 = scmp.ne.s32.totalorder %s20719_s1, %s15842_s27  ;;  %p15846_p9 = scmp.lt.u32.totalorder %s15842_s27, %s20719_s1 }
 0x2b8   :  { %p15848_p10 = pnand %p15846_p9, %p15843_p8 }
 0x2ba   :  { %15851 = shalt.err (!%p15848_p10)
}
 0x2bb   :  { %s15852_s17 = scalar_lea.vmem %s298_s4, 16  ;;  %s15856_s28 = scalar_lea.vmem %s298_s4, 32 }
 0x2bc   :  { %p15853_p11 = scmp.ne.s32.totalorder %s298_s4, %s15852_s17  ;;  %p15857_p12 = scmp.lt.s32.totalorder %s298_s4, %s298_s4 }
 0x2bd   :  { %p15858_p13 = scmp.lt.s32.totalorder %s15856_s28, %s15852_s17 }
 0x2bf   :  { %p15859_p0 = por %p15858_p13, %p15857_p12 }
 0x2c1   :  { %p15860_p1 = pnand %p15859_p0, %p15853_p11 }
 0x2c3   :  { %15863 = shalt.err (!%p15860_p1)
}
 0x2c4   :  { %s20720_s2 = sld [smem:[#allocation110_spill]]  ;;  %s16408_s24 = smov [#allocation26]  }
 0x2c5   :  { %300 = dma.hbm_to_vmem [thread:$0]  %s20719_s1, 16, %s298_s4, [#allocation22]  }
 0x2c6   :  { %s317_s9 = sshll.u32 %s16408_s24, 4  ;;  %s16409_s10 = smov [#allocation29]   ;;  %s318_s9 = int_to_ptr.vmem [resolvable:$true] %s317_s9 }
 0x2c7   :  { %s337_s30 = sshll.u32 %s16409_s10, 4  ;;  %s338_s30 = int_to_ptr.vmem [resolvable:$true] %s337_s30 }
 0x2ca   :  { %s15864_s7 = scalar_lea.hbm %s20720_s2, 32 }
 0x2cb   :  { %p15865_p2 = scmp.ne.s32.totalorder %s20720_s2, %s15864_s7  ;;  %p15868_p3 = scmp.lt.u32.totalorder %s15864_s7, %s20720_s2 }
 0x2cd   :  { %p15870_p4 = pnand %p15868_p3, %p15865_p2 }
 0x2cf   :  { %15873 = shalt.err (!%p15870_p4)
}
 0x2d0   :  { %s15874_s11 = scalar_lea.vmem %s318_s9, 32  ;;  %p15879_p6 = scmp.lt.s32.totalorder %s318_s9, %s318_s9 }
 0x2d1   :  { %p15875_p5 = scmp.ne.s32.totalorder %s318_s9, %s15874_s11  ;;  %p15880_p7 = scmp.lt.s32.totalorder %s15874_s11, %s15874_s11 }
 0x2d3   :  { %p15881_p8 = por %p15880_p7, %p15879_p6 }
 0x2d5   :  { %p15882_p9 = pnand %p15881_p8, %p15875_p5 }
 0x2d7   :  { %15885 = shalt.err (!%p15882_p9)
}
 0x2d8   :  { %s20721_s0 = sld [smem:[#allocation111_spill]] }
 0x2d9   :  { %320 = dma.hbm_to_vmem [thread:$0]  %s20720_s2, 32, %s318_s9, [#allocation25]  }
 0x2de   :  { %s15886_s6 = scalar_lea.hbm %s20721_s0, 16 }
 0x2df   :  { %p15887_p10 = scmp.ne.s32.totalorder %s20721_s0, %s15886_s6  ;;  %p15890_p11 = scmp.lt.u32.totalorder %s15886_s6, %s20721_s0 }
 0x2e1   :  { %p15892_p12 = pnand %p15890_p11, %p15887_p10 }
 0x2e3   :  { %15895 = shalt.err (!%p15892_p12)
}
 0x2e4   :  { %s15896_s19 = scalar_lea.vmem %s338_s30, 16  ;;  %s15900_s15 = scalar_lea.vmem %s338_s30, 32 }
 0x2e5   :  { %p15897_p13 = scmp.ne.s32.totalorder %s338_s30, %s15896_s19  ;;  %p15901_p0 = scmp.lt.s32.totalorder %s338_s30, %s338_s30 }
 0x2e6   :  { %p15902_p1 = scmp.lt.s32.totalorder %s15900_s15, %s15896_s19 }
 0x2e8   :  { %p15903_p2 = por %p15902_p1, %p15901_p0 }
 0x2ea   :  { %p15904_p3 = pnand %p15903_p2, %p15897_p13 }
 0x2ec   :  { %15907 = shalt.err (!%p15904_p3)
}
 0x2ed   :  { %s20722_s20 = sld [smem:[#allocation114_spill]]  ;;  %s16410_s29 = smov [#allocation32]  }
 0x2ee   :  { %340 = dma.hbm_to_vmem [thread:$0]  %s20721_s0, 16, %s338_s30, [#allocation28]  }
 0x2ef   :  { %s361_s16 = sshll.u32 %s16410_s29, 4  ;;  %s16411_s3 = smov [#allocation35]   ;;  %s362_s16 = int_to_ptr.vmem [resolvable:$true] %s361_s16 }
 0x2f0   :  { %s381_s18 = sshll.u32 %s16411_s3, 4  ;;  %s382_s18 = int_to_ptr.vmem [resolvable:$true] %s381_s18 }
 0x2f3   :  { %s15908_s23 = scalar_lea.hbm %s20722_s20, 16 }
 0x2f4   :  { %p15909_p4 = scmp.ne.s32.totalorder %s20722_s20, %s15908_s23  ;;  %p15912_p5 = scmp.lt.u32.totalorder %s15908_s23, %s20722_s20 }
 0x2f6   :  { %p15914_p6 = pnand %p15912_p5, %p15909_p4 }
 0x2f8   :  { %15917 = shalt.err (!%p15914_p6)
}
 0x2f9   :  { %s15918_s25 = scalar_lea.vmem %s362_s16, 16  ;;  %s15922_s22 = scalar_lea.vmem %s362_s16, 32 }
 0x2fa   :  { %p15919_p7 = scmp.ne.s32.totalorder %s362_s16, %s15918_s25  ;;  %p15923_p8 = scmp.lt.s32.totalorder %s362_s16, %s362_s16 }
 0x2fb   :  { %p15924_p9 = scmp.lt.s32.totalorder %s15922_s22, %s15918_s25 }
 0x2fd   :  { %p15925_p10 = por %p15924_p9, %p15923_p8 }
 0x2ff   :  { %p15926_p11 = pnand %p15925_p10, %p15919_p7 }
 0x301   :  { %15929 = shalt.err (!%p15926_p11)
}
 0x302   :  { %s20723_s4 = sld [smem:[#allocation115_spill]] }
 0x303   :  { %364 = dma.hbm_to_vmem [thread:$0]  %s20722_s20, 16, %s362_s16, [#allocation31]  }
 0x308   :  { %s15930_s26 = scalar_lea.hbm %s20723_s4, 16 }
 0x309   :  { %p15931_p12 = scmp.ne.s32.totalorder %s20723_s4, %s15930_s26  ;;  %p15934_p13 = scmp.lt.u32.totalorder %s15930_s26, %s20723_s4 }
 0x30b   :  { %p15936_p0 = pnand %p15934_p13, %p15931_p12 }
 0x30d   :  { %15939 = shalt.err (!%p15936_p0)
}
 0x30e   :  { %s15940_s14 = scalar_lea.vmem %s382_s18, 16  ;;  %s15944_s1 = scalar_lea.vmem %s382_s18, 32 }
 0x30f   :  { %p15941_p1 = scmp.ne.s32.totalorder %s382_s18, %s15940_s14  ;;  %p15945_p2 = scmp.lt.s32.totalorder %s382_s18, %s382_s18 }
 0x310   :  { %p15946_p3 = scmp.lt.s32.totalorder %s15944_s1, %s15940_s14 }
 0x312   :  { %p15947_p4 = por %p15946_p3, %p15945_p2 }
 0x314   :  { %p15948_p5 = pnand %p15947_p4, %p15941_p1 }
 0x316   :  { %15951 = shalt.err (!%p15948_p5)
}
 0x317   :  { %s20724_s27 = sld [smem:[#allocation117_spill]]  ;;  %s16412_s17 = smov [#allocation38]  }
 0x318   :  { %384 = dma.hbm_to_vmem [thread:$0]  %s20723_s4, 16, %s382_s18, [#allocation34]  }
 0x319   :  { %s403_s28 = sshll.u32 %s16412_s17, 4  ;;  %s16413_s2 = smov [#allocation41]   ;;  %s404_s28 = int_to_ptr.vmem [resolvable:$true] %s403_s28 }
 0x31a   :  { %s429_s24 = sshll.u32 %s16413_s2, 4  ;;  %s430_s24 = int_to_ptr.vmem [resolvable:$true] %s429_s24 }
 0x31d   :  { %s15952_s9 = scalar_lea.hbm %s20724_s27, 16 }
 0x31e   :  { %p15953_p6 = scmp.ne.s32.totalorder %s20724_s27, %s15952_s9  ;;  %p15956_p7 = scmp.lt.u32.totalorder %s15952_s9, %s20724_s27 }
 0x320   :  { %p15958_p8 = pnand %p15956_p7, %p15953_p6 }
 0x322   :  { %15961 = shalt.err (!%p15958_p8)
}
 0x323   :  { %s15962_s10 = scalar_lea.vmem %s404_s28, 16  ;;  %s15966_s30 = scalar_lea.vmem %s404_s28, 32 }
 0x324   :  { %p15963_p9 = scmp.ne.s32.totalorder %s404_s28, %s15962_s10  ;;  %p15967_p10 = scmp.lt.s32.totalorder %s404_s28, %s404_s28 }
 0x325   :  { %p15968_p11 = scmp.lt.s32.totalorder %s15966_s30, %s15962_s10 }
 0x327   :  { %p15969_p12 = por %p15968_p11, %p15967_p10 }
 0x329   :  { %p15970_p13 = pnand %p15969_p12, %p15963_p9 }
 0x32b   :  { %15973 = shalt.err (!%p15970_p13)
}
 0x32c   :  { %s20725_s7 = sld [smem:[#allocation121_spill]] }
 0x32d   :  { %406 = dma.hbm_to_vmem [thread:$0]  %s20724_s27, 16, %s404_s28, [#allocation37]  }
 0x332   :  { %s15974_s11 = scalar_lea.hbm %s20725_s7, 16 }
 0x333   :  { %p15975_p0 = scmp.ne.s32.totalorder %s20725_s7, %s15974_s11  ;;  %p15978_p1 = scmp.lt.u32.totalorder %s15974_s11, %s20725_s7 }
 0x335   :  { %p15980_p2 = pnand %p15978_p1, %p15975_p0 }
 0x337   :  { %15983 = shalt.err (!%p15980_p2)
}
 0x338   :  { %s15984_s0 = scalar_lea.vmem %s430_s24, 16  ;;  %s15988_s6 = scalar_lea.vmem %s430_s24, 32 }
 0x339   :  { %p15985_p3 = scmp.ne.s32.totalorder %s430_s24, %s15984_s0  ;;  %p15989_p4 = scmp.lt.s32.totalorder %s430_s24, %s430_s24 }
 0x33a   :  { %p15990_p5 = scmp.lt.s32.totalorder %s15988_s6, %s15984_s0 }
 0x33c   :  { %p15991_p6 = por %p15990_p5, %p15989_p4 }
 0x33e   :  { %p15992_p7 = pnand %p15991_p6, %p15985_p3 }
 0x340   :  { %15995 = shalt.err (!%p15992_p7)
}
 0x341   :  { %s20726_s19 = sld [smem:[#allocation123_spill]]  ;;  %s16414_s15 = smov [#allocation44]  }
 0x342   :  { %432 = dma.hbm_to_vmem [thread:$0]  %s20725_s7, 16, %s430_s24, [#allocation40]  }
 0x343   :  { %s451_s20 = sshll.u32 %s16414_s15, 4  ;;  %s16415_s29 = smov [#allocation47]   ;;  %s452_s20 = int_to_ptr.vmem [resolvable:$true] %s451_s20 }
 0x344   :  { %s471_s16 = sshll.u32 %s16415_s29, 4  ;;  %s472_s16 = int_to_ptr.vmem [resolvable:$true] %s471_s16 }
 0x347   :  { %s15996_s3 = scalar_lea.hbm %s20726_s19, 16 }
 0x348   :  { %p15997_p8 = scmp.ne.s32.totalorder %s20726_s19, %s15996_s3  ;;  %p16000_p9 = scmp.lt.u32.totalorder %s15996_s3, %s20726_s19 }
 0x34a   :  { %p16002_p10 = pnand %p16000_p9, %p15997_p8 }
 0x34c   :  { %16005 = shalt.err (!%p16002_p10)
}
 0x34d   :  { %s16006_s18 = scalar_lea.vmem %s452_s20, 16  ;;  %s16010_s23 = scalar_lea.vmem %s452_s20, 32 }
 0x34e   :  { %p16007_p11 = scmp.ne.s32.totalorder %s452_s20, %s16006_s18  ;;  %p16011_p12 = scmp.lt.s32.totalorder %s452_s20, %s452_s20 }
 0x34f   :  { %p16012_p13 = scmp.lt.s32.totalorder %s16010_s23, %s16006_s18 }
 0x351   :  { %p16013_p0 = por %p16012_p13, %p16011_p12 }
 0x353   :  { %p16014_p1 = pnand %p16013_p0, %p16007_p11 }
 0x355   :  { %16017 = shalt.err (!%p16014_p1)
}
 0x356   :  { %s20727_s25 = sld [smem:[#allocation124_spill]] }
 0x357   :  { %454 = dma.hbm_to_vmem [thread:$0]  %s20726_s19, 16, %s452_s20, [#allocation43]  }
 0x35c   :  { %s16018_s22 = scalar_lea.hbm %s20727_s25, 16 }
 0x35d   :  { %p16019_p2 = scmp.ne.s32.totalorder %s20727_s25, %s16018_s22  ;;  %p16022_p3 = scmp.lt.u32.totalorder %s16018_s22, %s20727_s25 }
 0x35f   :  { %p16024_p4 = pnand %p16022_p3, %p16019_p2 }
 0x361   :  { %16027 = shalt.err (!%p16024_p4)
}
 0x362   :  { %s16028_s4 = scalar_lea.vmem %s472_s16, 16  ;;  %s16032_s26 = scalar_lea.vmem %s472_s16, 32 }
 0x363   :  { %p16029_p5 = scmp.ne.s32.totalorder %s472_s16, %s16028_s4  ;;  %p16033_p6 = scmp.lt.s32.totalorder %s472_s16, %s472_s16 }
 0x364   :  { %p16034_p7 = scmp.lt.s32.totalorder %s16032_s26, %s16028_s4 }
 0x366   :  { %p16035_p8 = por %p16034_p7, %p16033_p6 }
 0x368   :  { %p16036_p9 = pnand %p16035_p8, %p16029_p5 }
 0x36a   :  { %16039 = shalt.err (!%p16036_p9)
}
 0x36b   :  { %s20728_s14 = sld [smem:[#allocation128_spill]]  ;;  %s16416_s1 = smov [#allocation50]  }
 0x36c   :  { %474 = dma.hbm_to_vmem [thread:$0]  %s20727_s25, 16, %s472_s16, [#allocation46]  }
 0x36d   :  { %s495_s27 = sshll.u32 %s16416_s1, 4  ;;  %s16417_s17 = smov [#allocation53]   ;;  %s496_s27 = int_to_ptr.vmem [resolvable:$true] %s495_s27 }
 0x36e   :  { %s515_s28 = sshll.u32 %s16417_s17, 4  ;;  %s516_s28 = int_to_ptr.vmem [resolvable:$true] %s515_s28 }
 0x371   :  { %s16040_s2 = scalar_lea.hbm %s20728_s14, 16 }
 0x372   :  { %p16041_p10 = scmp.ne.s32.totalorder %s20728_s14, %s16040_s2  ;;  %p16044_p11 = scmp.lt.u32.totalorder %s16040_s2, %s20728_s14 }
 0x374   :  { %p16046_p12 = pnand %p16044_p11, %p16041_p10 }
 0x376   :  { %16049 = shalt.err (!%p16046_p12)
}
 0x377   :  { %s16050_s24 = scalar_lea.vmem %s496_s27, 16  ;;  %s16054_s9 = scalar_lea.vmem %s496_s27, 32 }
 0x378   :  { %p16051_p13 = scmp.ne.s32.totalorder %s496_s27, %s16050_s24  ;;  %p16055_p0 = scmp.lt.s32.totalorder %s496_s27, %s496_s27 }
 0x379   :  { %p16056_p1 = scmp.lt.s32.totalorder %s16054_s9, %s16050_s24 }
 0x37b   :  { %p16057_p2 = por %p16056_p1, %p16055_p0 }
 0x37d   :  { %p16058_p3 = pnand %p16057_p2, %p16051_p13 }
 0x37f   :  { %16061 = shalt.err (!%p16058_p3)
}
 0x380   :  { %s20729_s10 = sld [smem:[#allocation130_spill]] }
 0x381   :  { %498 = dma.hbm_to_vmem [thread:$0]  %s20728_s14, 16, %s496_s27, [#allocation49]  }
 0x386   :  { %s16062_s30 = scalar_lea.hbm %s20729_s10, 16 }
 0x387   :  { %p16063_p4 = scmp.ne.s32.totalorder %s20729_s10, %s16062_s30  ;;  %p16066_p5 = scmp.lt.u32.totalorder %s16062_s30, %s20729_s10 }
 0x389   :  { %p16068_p6 = pnand %p16066_p5, %p16063_p4 }
 0x38b   :  { %16071 = shalt.err (!%p16068_p6)
}
 0x38c   :  { %s16072_s7 = scalar_lea.vmem %s516_s28, 16  ;;  %s16076_s11 = scalar_lea.vmem %s516_s28, 32 }
 0x38d   :  { %p16073_p7 = scmp.ne.s32.totalorder %s516_s28, %s16072_s7  ;;  %p16077_p8 = scmp.lt.s32.totalorder %s516_s28, %s516_s28 }
 0x38e   :  { %p16078_p9 = scmp.lt.s32.totalorder %s16076_s11, %s16072_s7 }
 0x390   :  { %p16079_p10 = por %p16078_p9, %p16077_p8 }
 0x392   :  { %p16080_p11 = pnand %p16079_p10, %p16073_p7 }
 0x394   :  { %16083 = shalt.err (!%p16080_p11)
}
 0x395   :  { %s20730_s0 = sld [smem:[#allocation133_spill]]  ;;  %s16418_s6 = smov [#allocation56]  }
 0x396   :  { %518 = dma.hbm_to_vmem [thread:$0]  %s20729_s10, 16, %s516_s28, [#allocation52]  }
 0x397   :  { %s539_s19 = sshll.u32 %s16418_s6, 4  ;;  %s16419_s15 = smov [#allocation59]   ;;  %s540_s19 = int_to_ptr.vmem [resolvable:$true] %s539_s19 }
 0x398   :  { %s558_s20 = sshll.u32 %s16419_s15, 4  ;;  %s16981_s20 = int_to_ptr.vmem [resolvable:$true] %s558_s20 }
 0x39b   :  { %s16084_s29 = scalar_lea.hbm %s20730_s0, 16 }
 0x39c   :  { %p16085_p12 = scmp.ne.s32.totalorder %s20730_s0, %s16084_s29  ;;  %p16088_p13 = scmp.lt.u32.totalorder %s16084_s29, %s20730_s0 }
 0x39e   :  { %p16090_p0 = pnand %p16088_p13, %p16085_p12 }
 0x3a0   :  { %16093 = shalt.err (!%p16090_p0)
}
 0x3a1   :  { %s16094_s16 = scalar_lea.vmem %s540_s19, 16  ;;  %s16098_s3 = scalar_lea.vmem %s540_s19, 32 }
 0x3a2   :  { %p16095_p1 = scmp.ne.s32.totalorder %s540_s19, %s16094_s16  ;;  %p16099_p2 = scmp.lt.s32.totalorder %s540_s19, %s540_s19 }
 0x3a3   :  { %p16100_p3 = scmp.lt.s32.totalorder %s16098_s3, %s16094_s16 }
 0x3a5   :  { %p16101_p4 = por %p16100_p3, %p16099_p2 }
 0x3a7   :  { %p16102_p5 = pnand %p16101_p4, %p16095_p1 }
 0x3a9   :  { %16105 = shalt.err (!%p16102_p5)
}
 0x3aa   :  { %s20731_s18 = sld [smem:[#allocation135_spill]] }
 0x3ab   :  { %542 = dma.hbm_to_vmem [thread:$0]  %s20730_s0, 16, %s540_s19, [#allocation55]  }
 0x3b0   :  { %s16106_s23 = scalar_lea.hbm %s20731_s18, 512 }
 0x3b1   :  { %p16107_p6 = scmp.ne.s32.totalorder %s20731_s18, %s16106_s23  ;;  %p16110_p7 = scmp.lt.u32.totalorder %s16106_s23, %s20731_s18 }
 0x3b3   :  { %p16112_p8 = pnand %p16110_p7, %p16107_p6 }
 0x3b5   :  { %16115 = shalt.err (!%p16112_p8)
}
 0x3b6   :  { %s16116_s25 = scalar_lea.vmem %s16981_s20, 512  ;;  %p16121_p10 = scmp.lt.s32.totalorder %s16981_s20, %s16981_s20 }
 0x3b7   :  { %p16117_p9 = scmp.ne.s32.totalorder %s16981_s20, %s16116_s25  ;;  %p16122_p11 = scmp.lt.s32.totalorder %s16116_s25, %s16116_s25 }
 0x3b9   :  { %p16123_p12 = por %p16122_p11, %p16121_p10 }
 0x3bb   :  { %p16124_p13 = pnand %p16123_p12, %p16117_p9 }
 0x3bd   :  { %16127 = shalt.err (!%p16124_p13)
}
 0x3be   :  { %s20732_s22 = sld [smem:[#allocation138_spill]]  ;;  %s16420_s4 = smov [#allocation62]  }
 0x3bf   :  { %564 = dma.hbm_to_vmem [thread:$0]  %s20731_s18, 512, %s16981_s20, [#allocation58], %s16394_s12, %s16394_s12, %s16395_s21  }
 0x3c0   :  { %s583_s26 = sshll.u32 %s16420_s4, 4  ;;  %s16421_s14 = smov [#allocation65]   ;;  %s584_s26 = int_to_ptr.vmem [resolvable:$true] %s583_s26 }
 0x3c1   :  { %s605_s1 = sshll.u32 %s16421_s14, 4  ;;  %s606_s1 = int_to_ptr.vmem [resolvable:$true] %s605_s1 }
 0x3c4   :  { %s16128_s27 = scalar_lea.hbm %s20732_s22, 16 }
 0x3c5   :  { %p16129_p0 = scmp.ne.s32.totalorder %s20732_s22, %s16128_s27  ;;  %p16132_p1 = scmp.lt.u32.totalorder %s16128_s27, %s20732_s22 }
 0x3c7   :  { %p16134_p2 = pnand %p16132_p1, %p16129_p0 }
 0x3c9   :  { %16137 = shalt.err (!%p16134_p2)
}
 0x3ca   :  { %s16138_s17 = scalar_lea.vmem %s584_s26, 16  ;;  %s16142_s28 = scalar_lea.vmem %s584_s26, 32 }
 0x3cb   :  { %p16139_p3 = scmp.ne.s32.totalorder %s584_s26, %s16138_s17  ;;  %p16143_p4 = scmp.lt.s32.totalorder %s584_s26, %s584_s26 }
 0x3cc   :  { %p16144_p5 = scmp.lt.s32.totalorder %s16142_s28, %s16138_s17 }
 0x3ce   :  { %p16145_p6 = por %p16144_p5, %p16143_p4 }
 0x3d0   :  { %p16146_p7 = pnand %p16145_p6, %p16139_p3 }
 0x3d2   :  { %16149 = shalt.err (!%p16146_p7)
}
 0x3d3   :  { %s20733_s2 = sld [smem:[#allocation140_spill]] }
 0x3d4   :  { %586 = dma.hbm_to_vmem [thread:$0]  %s20732_s22, 16, %s584_s26, [#allocation61]  }
 0x3d9   :  { %s16150_s24 = scalar_lea.hbm %s20733_s2, 16 }
 0x3da   :  { %p16151_p8 = scmp.ne.s32.totalorder %s20733_s2, %s16150_s24  ;;  %p16154_p9 = scmp.lt.u32.totalorder %s16150_s24, %s20733_s2 }
 0x3dc   :  { %p16156_p10 = pnand %p16154_p9, %p16151_p8 }
 0x3de   :  { %16159 = shalt.err (!%p16156_p10)
}
 0x3df   :  { %s16160_s9 = scalar_lea.vmem %s606_s1, 16  ;;  %s16164_s10 = scalar_lea.vmem %s606_s1, 32 }
 0x3e0   :  { %p16161_p11 = scmp.ne.s32.totalorder %s606_s1, %s16160_s9  ;;  %p16165_p12 = scmp.lt.s32.totalorder %s606_s1, %s606_s1 }
 0x3e1   :  { %p16166_p13 = scmp.lt.s32.totalorder %s16164_s10, %s16160_s9 }
 0x3e3   :  { %p16167_p0 = por %p16166_p13, %p16165_p12 }
 0x3e5   :  { %p16168_p1 = pnand %p16167_p0, %p16161_p11 }
 0x3e7   :  { %16171 = shalt.err (!%p16168_p1)
}
 0x3e8   :  { %s20734_s30 = sld [smem:[#allocation142_spill]]  ;;  %s16422_s7 = smov [#allocation68]  }
 0x3e9   :  { %608 = dma.hbm_to_vmem [thread:$0]  %s20733_s2, 16, %s606_s1, [#allocation64]  }
 0x3ea   :  { %s627_s11 = sshll.u32 %s16422_s7, 4  ;;  %s16423_s0 = smov [#allocation71]   ;;  %s628_s11 = int_to_ptr.vmem [resolvable:$true] %s627_s11 }
 0x3eb   :  { %s649_s6 = sshll.u32 %s16423_s0, 4  ;;  %s650_s6 = int_to_ptr.vmem [resolvable:$true] %s649_s6 }
 0x3ee   :  { %s16172_s19 = scalar_lea.hbm %s20734_s30, 16 }
 0x3ef   :  { %p16173_p2 = scmp.ne.s32.totalorder %s20734_s30, %s16172_s19  ;;  %p16176_p3 = scmp.lt.u32.totalorder %s16172_s19, %s20734_s30 }
 0x3f1   :  { %p16178_p4 = pnand %p16176_p3, %p16173_p2 }
 0x3f3   :  { %16181 = shalt.err (!%p16178_p4)
}
 0x3f4   :  { %s16182_s15 = scalar_lea.vmem %s628_s11, 16  ;;  %s16186_s20 = scalar_lea.vmem %s628_s11, 32 }
 0x3f5   :  { %p16183_p5 = scmp.ne.s32.totalorder %s628_s11, %s16182_s15  ;;  %p16187_p6 = scmp.lt.s32.totalorder %s628_s11, %s628_s11 }
 0x3f6   :  { %p16188_p7 = scmp.lt.s32.totalorder %s16186_s20, %s16182_s15 }
 0x3f8   :  { %p16189_p8 = por %p16188_p7, %p16187_p6 }
 0x3fa   :  { %p16190_p9 = pnand %p16189_p8, %p16183_p5 }
 0x3fc   :  { %16193 = shalt.err (!%p16190_p9)
}
 0x3fd   :  { %s20735_s29 = sld [smem:[#allocation144_spill]] }
 0x3fe   :  { %630 = dma.hbm_to_vmem [thread:$0]  %s20734_s30, 16, %s628_s11, [#allocation67]  }
 0x403   :  { %s16194_s16 = scalar_lea.hbm %s20735_s29, 16 }
 0x404   :  { %p16195_p10 = scmp.ne.s32.totalorder %s20735_s29, %s16194_s16  ;;  %p16198_p11 = scmp.lt.u32.totalorder %s16194_s16, %s20735_s29 }
 0x406   :  { %p16200_p12 = pnand %p16198_p11, %p16195_p10 }
 0x408   :  { %16203 = shalt.err (!%p16200_p12)
}
 0x409   :  { %s16204_s3 = scalar_lea.vmem %s650_s6, 16  ;;  %s16208_s18 = scalar_lea.vmem %s650_s6, 32 }
 0x40a   :  { %p16205_p13 = scmp.ne.s32.totalorder %s650_s6, %s16204_s3  ;;  %p16209_p0 = scmp.lt.s32.totalorder %s650_s6, %s650_s6 }
 0x40b   :  { %p16210_p1 = scmp.lt.s32.totalorder %s16208_s18, %s16204_s3 }
 0x40d   :  { %p16211_p2 = por %p16210_p1, %p16209_p0 }
 0x40f   :  { %p16212_p3 = pnand %p16211_p2, %p16205_p13 }
 0x411   :  { %16215 = shalt.err (!%p16212_p3)
}
 0x412   :  { %s20736_s23 = sld [smem:[#allocation149_spill]]  ;;  %s16424_s25 = smov [#allocation74]  }
 0x413   :  { %652 = dma.hbm_to_vmem [thread:$0]  %s20735_s29, 16, %s650_s6, [#allocation70]  }
 0x414   :  { %s676_s22 = sshll.u32 %s16424_s25, 4  ;;  %s677_s22 = int_to_ptr.vmem [resolvable:$true] %s676_s22 }
 0x418   :  { %s16216_s4 = scalar_lea.hbm %s20736_s23, 512 }
 0x419   :  { %p16217_p4 = scmp.ne.s32.totalorder %s20736_s23, %s16216_s4  ;;  %p16220_p5 = scmp.lt.u32.totalorder %s16216_s4, %s20736_s23 }
 0x41b   :  { %p16222_p6 = pnand %p16220_p5, %p16217_p4 }
 0x41d   :  { %16225 = shalt.err (!%p16222_p6)
}
 0x41e   :  { %s16226_s26 = scalar_lea.vmem %s677_s22, 512  ;;  %p16231_p8 = scmp.lt.s32.totalorder %s677_s22, %s677_s22 }
 0x41f   :  { %p16227_p7 = scmp.ne.s32.totalorder %s677_s22, %s16226_s26  ;;  %p16232_p9 = scmp.lt.s32.totalorder %s16226_s26, %s16226_s26 }
 0x421   :  { %p16233_p10 = por %p16232_p9, %p16231_p8 }
 0x423   :  { %p16234_p11 = pnand %p16233_p10, %p16227_p7 }
 0x425   :  { %16237 = shalt.err (!%p16234_p11)
}
 0x426   :  { %682 = dma.hbm_to_vmem [thread:$0]  %s20736_s23, 512, %s677_s22, [#allocation73], %s16394_s12, %s16394_s12, %s16395_s21  }
 0x427   :  { %16260 = dma.done.wait [#allocation4], 256  }
 0x428   :  { %16261 = vsyncadd [#allocation4], 4294967040 }
 0x429   :  { %16262 = dma.done.wait [#allocation7], 32  }
 0x42a   :  { %16263 = vsyncadd [#allocation7], 4294967264 }
 0x42b   :  { %16264 = dma.done.wait [#allocation10], 32  }
 0x42c   :  { %16265 = vsyncadd [#allocation10], 4294967264 }
 0x42d   :  { %16266 = dma.done.wait [#allocation13], 48  }
 0x42e   :  { %16267 = vsyncadd [#allocation13], 4294967248 }
 0x42f   :  { %16268 = dma.done.wait [#allocation16], 32  }
 0x430   :  { %16269 = vsyncadd [#allocation16], 4294967264 }
 0x431   :  { %16270 = dma.done.wait [#allocation19], 256  }
 0x432   :  { %16271 = vsyncadd [#allocation19], 4294967040 }
 0x433   :  { %16272 = dma.done.wait [#allocation22], 32  }
 0x434   :  { %16273 = vsyncadd [#allocation22], 4294967264 }
 0x435   :  { %16274 = dma.done.wait [#allocation25], 48  }
 0x436   :  { %16275 = vsyncadd [#allocation25], 4294967248 }
 0x437   :  { %16276 = dma.done.wait [#allocation28], 32  }
 0x438   :  { %16277 = vsyncadd [#allocation28], 4294967264 }
 0x439   :  { %16278 = dma.done.wait [#allocation31], 32  }
 0x43a   :  { %16279 = vsyncadd [#allocation31], 4294967264 }
 0x43b   :  { %16280 = dma.done.wait [#allocation34], 32  }
 0x43c   :  { %16281 = vsyncadd [#allocation34], 4294967264 }
 0x43d   :  { %16282 = dma.done.wait [#allocation37], 32  }
 0x43e   :  { %16283 = vsyncadd [#allocation37], 4294967264 }
 0x43f   :  { %16284 = dma.done.wait [#allocation40], 32  }
 0x440   :  { %16285 = vsyncadd [#allocation40], 4294967264 }
 0x441   :  { %16286 = dma.done.wait [#allocation43], 32  }
 0x442   :  { %16287 = vsyncadd [#allocation43], 4294967264 }
 0x443   :  { %16288 = dma.done.wait [#allocation46], 32  }
 0x444   :  { %16289 = vsyncadd [#allocation46], 4294967264 }
 0x445   :  { %16290 = dma.done.wait [#allocation49], 32  }
 0x446   :  { %16291 = vsyncadd [#allocation49], 4294967264 }
 0x447   :  { %16292 = dma.done.wait [#allocation52], 32  }
 0x448   :  { %16293 = vsyncadd [#allocation52], 4294967264 }
 0x449   :  { %16294 = dma.done.wait [#allocation55], 528  }
 0x44a   :  { %16295 = vsyncadd [#allocation55], 4294966768 }
 0x44b   :  { %16296 = dma.done.wait [#allocation58], 528  }
 0x44c   :  { %16297 = vsyncadd [#allocation58], 4294966768 }
 0x44d   :  { %16298 = dma.done.wait [#allocation61], 32  }
 0x44e   :  { %16299 = vsyncadd [#allocation61], 4294967264 }
 0x44f   :  { %16300 = dma.done.wait [#allocation64], 528  }
 0x450   :  { %16301 = vsyncadd [#allocation64], 4294966768 }
 0x451   :  { %16302 = dma.done.wait [#allocation67], 528  }
 0x452   :  { %16303 = vsyncadd [#allocation67], 4294966768 }
 0x453   :  { %16304 = dma.done.wait [#allocation70], 528  }
 0x454   :  { %16305 = vsyncadd [#allocation70], 4294966768 }
 0x455   :  { %16306 = dma.done.wait [#allocation73], 1024  }
 0x456   :  { %16307 = vsyncadd [#allocation73], 4294966272  ;;  %v1143_v1 = vlaneseq  ;;  %vm20638_vm0 = vcmask 64512   ;;  %v849_v8 = vld [vmem:[#allocation20] sm:$0xff]  ;;  %v966_v9 = vld [vmem:[%s16767_s8] sm:$0xff]  ;;  %s16425_s12 = smov 16  }
 0x457   :  { %v967_v10 = vld [vmem:[%s16767_s8 + $0x8] sm:$0xf]  ;;  %12775 = vmatprep.subr.mxu1 %v849_v8  ;;  %12777 = vmatprep.mubr.msk.f32.mxu1 %vm20638_vm0, %v966_v9  ;;  %v17034_v12 = vld [vmem:[#allocation12] sm:$0x3]  ;;  %v16426_v14 = vmov 1966171168  }
 0x458   :  { %v17022_v2 = vshrl.u32 %v1143_v1, 7  ;;  %v1497_v3 = vand.u32 127, %v1143_v1  ;;  %v848_v11 = vld [vmem:[#allocation18] sm:$0xff]  ;;  %12776 = vmatpush3.msra.mxu1 %v849_v8  ;;  %12772 = vmatprep.mubr.msk.f32.mxu0 %vm20638_vm0, %v966_v9  ;;  %v1141_v15 = vunpack.c.l.s4 %v16426_v14  ;;  %v11800_v17 = vld [vmem:[#allocation17] ss:$0 sm:$0xff]  ;;  %vm1659_vm1 = vcmask 1043456  }
 0x459   :  { %12770 = vmatprep.subr.mxu0 %v848_v11  ;;  %12778 = vmatmul.mubr.msk.f32.vlgmr.msra.gmra.mrb[0].mxu1 %vm20638_vm0, %v967_v10  ;;  %v11797_v20 = vld [vmem:[#allocation15] ss:$0 sm:$0xff]  ;;  %vm20637_vm2 = vmmov 1   ;;  %s16428_s8 = smov 112   ;;  %s20739_s14 = sld [smem:[#allocation112_spill]] }
 0x45a   :  { %v17025_v4 = vsub.s32 %v1497_v3, %v17022_v2  ;;  %v1502_v5 = vadd.s32 4294967288, %v1497_v3  ;;  %v1740_v6 = vsub.s32 1, %v17022_v2  ;;  %12771 = vmatpush3.msra.mxu0 %v848_v11  ;;  %v1142_v16 = vunpack.c.0.s8 %v1141_v15  ;;  %vm17057_vm3 = vmpackc.low %vm1659_vm1, %vm20637_vm2  ;;  %s20740_s1 = sld [smem:[#allocation113_spill]]  ;;  %s20759_s27 = sld [smem:[#allocation116_spill]] }
 0x45b   :  { %12773 = vmatmul.mubr.msk.f32.vlgmr.msra.gmra.mrb[0].mxu0 %vm20638_vm0, %v967_v10  ;;  %v17047_v25 = vsub.s32 0, %v17022_v2  ;;  %vm20639_vm2 = vcmask 93184   ;;  %vm20640_vm0 = vcmask 257024   ;;  %s20762_s17 = sld [smem:[#allocation122_spill]]  ;;  %s20763_s28 = sld [smem:[#allocation119_spill]] }
 0x45c   :  { %v17029_v7 = vsub.s32 %v1502_v5, %v17022_v2  ;;  %v1741_v13 = vrot.slane %v17034_v12, %v1740_v6  ;;  %v17044_v18 = vsub.s32 %v1142_v16, %v17022_v2  ;;  %s20764_s2 = sld [smem:[#allocation125_spill]]  ;;  %s20765_s24 = sld [smem:[#allocation131_spill]] }
 0x45d   :  { %s20778_s9 = sld [smem:[#allocation126_spill]]  ;;  %s16429_s10 = smov 120  }
 0x45e   :  { %1743 = vrot.lane.b32.xlu0 %v1741_v13, %s16425_s12  ;;  %s16430_s30 = smov 104   ;;  %s21003_s7 = sld [smem:[#allocation120_spill]] }
 0x45f   :  { %s16431_s11 = smov 24   ;;  %s21030_s0 = sld [smem:[#allocation145_spill]] }
 0x460   :  { %s21052_s6 = sld [smem:[#allocation146_spill]]  ;;  %s21067_s19 = sld [smem:[#allocation148_spill]] }
 0x461   :  { %s21114_s15 = sld [smem:[#allocation137_spill]]  ;;  %s21171_s20 = sld [smem:[#allocation103_spill]] }
 0x462   :  { %s21175_s29 = sld [smem:[#allocation105_spill]]  ;;  %s16435_s16 = smov [#allocation75]  }
 0x463   :  { %s11699_s3 = sshll.u32 %s16435_s16, 4  ;;  %s11700_s3 = int_to_ptr.vmem [resolvable:$true] %s11699_s3 }
 0x464   :  { %s16242_s18 = scalar_lea.vmem %s11700_s3, 32  ;;  %p16243_p13 = scmp.lt.s32.totalorder %s11700_s3, %s11700_s3 }
 0x4d0   :  { %v17089_v53 = vpop.permute.xlu0 %1743 }
 0x52c   :  { %v12779_v19 = vpop.f32.mrb[0].mxu1 }
 0x52d   :  { %v1134_v21 = vadd.f32 %v12779_v19, %v11800_v17  ;;  %v1128_v22 = vpop.f32.mrb[1].mxu1 }
 0x52e   :  { %v1129_v23 = vadd.f32 %v11800_v17, %v1128_v22  ;;  %v12774_v24 = vpop.f32.mrb[0].mxu0 }
 0x52f   :  { %v1194_v26 = vrot.slane %v1134_v21, %v17044_v18  ;;  %v17050_v27 = vadd.f32 %v12774_v24, %v11797_v20  ;;  %v1047_v28 = vpop.f32.mrb[1].mxu0 }
 0x530   :  { %v1139_v29 = vcombine.high %v1129_v23, %v1129_v23  ;;  %v1146_v30 = vrot.slane %v1129_v23, %v17044_v18  ;;  %v17053_v31 = vadd.f32 %v11797_v20, %v1047_v28 }
 0x531   :  { %v1195_v32 = vcombine.high %v1194_v26, %v1194_v26  ;;  %v1202_v33 = vrot.slane %v1194_v26, %v17044_v18 }
 0x532   :  { %v1153_v35 = vrot.slane %v1139_v29, %v17044_v18  ;;  %v1162_v36 = vrot.slane %v1146_v30, %v17044_v18  ;;  %v13761_v37 = vpack.c.bf16 %v17050_v27, %v17053_v31  ;;  %v14476_v41 = vpack.i.bf16 %v17050_v27, %v17053_v31 }
 0x533   :  { %v17066_v38 = vrot.slane %v1195_v32, %v17044_v18  ;;  %v1210_v39 = vcombine.high %v1202_v33, %v1202_v33  ;;  %v1247_v40 = vrot.slane %v1202_v33, %v17047_v25  ;;  %v1154_v42 = vcombine.high %v1146_v30, %v1146_v30 }
 0x534   :  { %v1155_v43 = vcombine.high %v1153_v35, %v1153_v35  ;;  %13763 = vmatprep.subr.msk.bf16.mxu0 %vm17057_vm3, %v13761_v37  ;;  %v1215_v44 = vrot.slane %v1162_v36, %v17047_v25  ;;  %v17080_v47 = vrot.slane %v1153_v35, %v17044_v18  ;;  %v1184_v52 = vcombine.high %v1162_v36, %v1162_v36 }
 0x535   :  { %13766 = vmatpush3.bf16.msk.msra.mxu0 %vm17057_vm3, %v13761_v37  ;;  %v1251_v45 = vrot.slane %v17066_v38, %v17047_v25  ;;  %v1255_v46 = vrot.slane %v1210_v39, %v17047_v25  ;;  %v1289_v48 = vadd.f32 %v1247_v40, %v17050_v27  ;;  %v1211_v49 = vcombine.high %v17066_v38, %v17066_v38 }
 0x536   :  { %v1176_v50 = vrot.slane %v1154_v42, %v17044_v18  ;;  %v17087_v51 = vrot.slane %v1155_v43, %v17044_v18  ;;  %v1288_v55 = vadd.f32 %v1247_v40, %v17053_v31  ;;  %v1273_v56 = vadd.f32 %v1215_v44, %v17050_v27 }
 0x537   :  { %vm1313_vm4 = vcmp.gt.f32.partialorder %v1289_v48, 0.0  ;;  %v1337_v54 = vmul.f32 0.2, %v1289_v48  ;;  %v1272_v57 = vadd.f32 %v1215_v44, %v17053_v31  ;;  %v1290_v58 = vadd.f32 %v1251_v45, %v17053_v31 }
 0x538   :  { %v1291_v59 = vadd.f32 %v1251_v45, %v17050_v27  ;;  %v1292_v60 = vadd.f32 %v1255_v46, %v17053_v31  ;;  %vm1312_vm5 = vcmp.gt.f32.partialorder %v1288_v55, 0.0  ;;  %v1336_v62 = vmul.f32 0.2, %v1288_v55 }
 0x539   :  { %v17097_v61 = vsel %vm1313_vm4, %v1289_v48, %v1337_v54  ;;  %vm1297_vm6 = vcmp.gt.f32.partialorder %v1273_v56, 0.0  ;;  %v1321_v0 = vmul.f32 0.2, %v1273_v56  ;;  %vm1296_vm7 = vcmp.gt.f32.partialorder %v1272_v57, 0.0 }
 0x53a   :  { %v1763_v63 = vmul.f32 %v17089_v53, %v17097_v61  ;;  %v1320_v1 = vmul.f32 0.2, %v1272_v57  ;;  %v1186_v3 = vcombine.high %v1176_v50, %v1176_v50  ;;  %v1219_v5 = vrot.slane %v1176_v50, %v17047_v25 }
 0x53b   :  { %v1223_v8 = vrot.slane %v1184_v52, %v17047_v25  ;;  %v17103_v9 = vsel %vm1312_vm5, %v1288_v55, %v1336_v62  ;;  %vm1315_vm8 = vcmp.gt.f32.partialorder %v1291_v59, 0.0  ;;  %v1339_v13 = vmul.f32 0.2, %v1291_v59 }
 0x53c   :  { %1828 = vrot.lane.b32.xlu0 %v1763_v63, %s16428_s8  ;;  %v1762_v10 = vmul.f32 %v17089_v53, %v17103_v9  ;;  %v17108_v11 = vsel %vm1296_vm7, %v1272_v57, %v1320_v1  ;;  %v1231_v14 = vrot.slane %v17080_v47, %v17047_v25  ;;  %v17113_v15 = vsel %vm1297_vm6, %v1273_v56, %v1321_v0 }
 0x53d   :  { %vm1314_vm9 = vcmp.gt.f32.partialorder %v1290_v58, 0.0  ;;  %v1338_v16 = vmul.f32 0.2, %v1290_v58  ;;  %v1746_v17 = vmul.f32 %v17089_v53, %v17108_v11  ;;  %vm1316_vm10 = vcmp.gt.f32.partialorder %v1292_v60, 0.0 }
 0x53e   :  { %1826 = vrot.lane.b32.xlu1 %v1762_v10, %s16428_s8  ;;  %v1340_v19 = vmul.f32 0.2, %v1292_v60  ;;  %v1293_v20 = vadd.f32 %v1255_v46, %v17050_v27  ;;  %v17119_v21 = vsel %vm1315_vm8, %v1291_v59, %v1339_v13  ;;  %v1274_v22 = vadd.f32 %v1219_v5, %v17053_v31 }
 0x53f   :  { %v1275_v23 = vadd.f32 %v1219_v5, %v17050_v27  ;;  %v1276_v24 = vadd.f32 %v1223_v8, %v17053_v31  ;;  %v1747_v26 = vmul.f32 %v17089_v53, %v17113_v15  ;;  %v1277_v29 = vadd.f32 %v1223_v8, %v17050_v27 }
 0x540   :  { %1794 = vrot.lane.b32.xlu0 %v1746_v17, %s16428_s8  ;;  %vm1317_vm11 = vcmp.gt.f32.partialorder %v1293_v20, 0.0  ;;  %v1341_v28 = vmul.f32 0.2, %v1293_v20  ;;  %v1185_v30 = vcombine.high %v17080_v47, %v17080_v47  ;;  %v17131_v32 = vsel %vm1314_vm9, %v1290_v58, %v1338_v16 }
 0x541   :  { %v1259_v33 = vrot.slane %v1211_v49, %v17047_v25  ;;  %v1765_v35 = vmul.f32 %v17089_v53, %v17119_v21  ;;  %v17138_v36 = vsel %vm1316_vm10, %v1292_v60, %v1340_v19  ;;  %v1322_v37 = vmul.f32 0.2, %v1274_v22 }
 0x542   :  { %1796 = vrot.lane.b32.xlu1 %v1747_v26, %s16428_s8  ;;  %v1227_v38 = vrot.slane %v1186_v3, %v17047_v25  ;;  %v17141_v39 = vsel %vm1317_vm11, %v1293_v20, %v1341_v28  ;;  %vm1298_vm12 = vcmp.gt.f32.partialorder %v1274_v22, 0.0  ;;  %v1323_v40 = vmul.f32 0.2, %v1275_v23 }
 0x543   :  { %v1235_v42 = vrot.slane %v17087_v51, %v17047_v25  ;;  %v1764_v43 = vmul.f32 %v17089_v53, %v17131_v32  ;;  %vm1299_vm13 = vcmp.gt.f32.partialorder %v1275_v23, 0.0  ;;  %v1280_v44 = vadd.f32 %v1231_v14, %v17053_v31 }
 0x544   :  { %1832 = vrot.lane.b32.xlu0 %v1765_v35, %s16428_s8  ;;  %v1766_v45 = vmul.f32 %v17089_v53, %v17138_v36  ;;  %vm1300_vm14 = vcmp.gt.f32.partialorder %v1276_v24, 0.0  ;;  %v1324_v46 = vmul.f32 0.2, %v1276_v24  ;;  %v1281_v47 = vadd.f32 %v1231_v14, %v17050_v27 }
 0x545   :  { %v1767_v48 = vmul.f32 %v17089_v53, %v17141_v39  ;;  %v17155_v49 = vsel %vm1298_vm12, %v1274_v22, %v1322_v37  ;;  %v1325_v50 = vmul.f32 0.2, %v1277_v29  ;;  %v1294_v52 = vadd.f32 %v1259_v33, %v17053_v31 }
 0x546   :  { %1830 = vrot.lane.b32.xlu1 %v1764_v43, %s16428_s8  ;;  %v1347_v54 = vsel %vm1299_vm13, %v1275_v23, %v1323_v40  ;;  %v1328_v55 = vmul.f32 0.2, %v1280_v44  ;;  %v1295_v56 = vadd.f32 %v1259_v33, %v17050_v27  ;;  %v1278_v57 = vadd.f32 %v1227_v38, %v17053_v31 }
 0x547   :  { %vm1301_vm15 = vcmp.gt.f32.partialorder %v1277_v29, 0.0  ;;  %vm1304_vm1 = vcmp.gt.f32.partialorder %v1280_v44, 0.0  ;;  %v1329_v58 = vmul.f32 0.2, %v1281_v47  ;;  %v1279_v59 = vadd.f32 %v1227_v38, %v17050_v27 }
 0x548   :  { %1836 = vrot.lane.b32.xlu0 %v1767_v48, %s16428_s8  ;;  %v17164_v60 = vrot.slane %v17034_v12, %v17047_v25  ;;  %v1187_v62 = vcombine.high %v17087_v51, %v17087_v51  ;;  %v1239_v63 = vrot.slane %v1185_v30, %v17047_v25  ;;  %vm1305_vm4 = vcmp.gt.f32.partialorder %v1281_v47, 0.0 }
 0x549   :  { %v1748_v0 = vmul.f32 %v17089_v53, %v17155_v49  ;;  %v1749_v1 = vmul.f32 %v17089_v53, %v1347_v54  ;;  %v1348_v3 = vsel %vm1300_vm14, %v1276_v24, %v1324_v46  ;;  %v1343_v5 = vmul.f32 0.2, %v1295_v56 }
 0x54a   :  { %1834 = vrot.lane.b32.xlu1 %v1766_v45, %s16428_s8  ;;  %v1349_v8 = vsel %vm1301_vm15, %v1277_v29, %v1325_v50  ;;  %v1352_v10 = vsel %vm1304_vm1, %v1280_v44, %v1328_v55  ;;  %v1342_v12 = vmul.f32 0.2, %v1294_v52  ;;  %vm1319_vm5 = vcmp.gt.f32.partialorder %v1295_v56, 0.0 }
 0x54b   :  { %v1353_v51 = vsel %vm1305_vm4, %v1281_v47, %v1329_v58  ;;  %vm1318_vm6 = vcmp.gt.f32.partialorder %v1294_v52, 0.0  ;;  %v1282_v13 = vadd.f32 %v1235_v42, %v17053_v31  ;;  %v1283_v14 = vadd.f32 %v1235_v42, %v17050_v27 }
 0x54c   :  { %1800 = vrot.lane.b32.xlu0 %v1749_v1, %s16428_s8  ;;  %v1284_v16 = vadd.f32 %v1239_v63, %v17053_v31  ;;  %v1285_v17 = vadd.f32 %v1239_v63, %v17050_v27  ;;  %v1750_v19 = vmul.f32 %v17089_v53, %v1348_v3  ;;  %v1751_v20 = vmul.f32 %v17089_v53, %v1349_v8 }
 0x54d   :  { %v1754_v22 = vmul.f32 %v17089_v53, %v1352_v10  ;;  %v17183_v23 = vsel %vm1319_vm5, %v1295_v56, %v1343_v5  ;;  %v1755_v24 = vmul.f32 %v17089_v53, %v1353_v51  ;;  %v17186_v26 = vsel %vm1318_vm6, %v1294_v52, %v1342_v12 }
 0x54e   :  { %1798 = vrot.lane.b32.xlu1 %v1748_v0, %s16428_s8  ;;  %vm1302_vm7 = vcmp.gt.f32.partialorder %v1278_v57, 0.0  ;;  %v1327_v28 = vmul.f32 0.2, %v1279_v59  ;;  %v1326_v29 = vmul.f32 0.2, %v1278_v57  ;;  %vm1303_vm8 = vcmp.gt.f32.partialorder %v1279_v59, 0.0 }
 0x54f   :  { %v1243_v30 = vrot.slane %v1187_v62, %v17047_v25  ;;  %v17192_v33 = vmul.f32 %v17164_v60, %v17113_v15  ;;  %v1769_v35 = vmul.f32 %v17089_v53, %v17183_v23  ;;  %v1330_v37 = vmul.f32 0.2, %v1282_v13 }
 0x550   :  { %1804 = vrot.lane.b32.xlu0 %v1751_v20, %s16428_s8  ;;  %v1331_v38 = vmul.f32 0.2, %v1283_v14  ;;  %v17198_v40 = vmul.f32 %v17164_v60, %v17108_v11  ;;  %vm1306_vm9 = vcmp.gt.f32.partialorder %v1282_v13, 0.0  ;;  %vm1307_vm10 = vcmp.gt.f32.partialorder %v1283_v14, 0.0 }
 0x551   :  { %v1333_v42 = vmul.f32 0.2, %v1285_v17  ;;  %v1286_v43 = vadd.f32 %v1243_v30, %v17053_v31  ;;  %v1351_v44 = vsel %vm1303_vm8, %v1279_v59, %v1327_v28  ;;  %v1332_v45 = vmul.f32 0.2, %v1284_v16 }
 0x552   :  { %1802 = vrot.lane.b32.xlu1 %v1750_v19, %s16428_s8  ;;  %vm1309_vm11 = vcmp.gt.f32.partialorder %v1285_v17, 0.0  ;;  %v1287_v15 = vadd.f32 %v1243_v30, %v17050_v27  ;;  %v1350_v46 = vsel %vm1302_vm7, %v1278_v57, %v1326_v29  ;;  %vm1308_vm12 = vcmp.gt.f32.partialorder %v1284_v16, 0.0 }
 0x553   :  { %v17206_v11 = vmul.f32 %v17164_v60, %v1347_v54  ;;  %v17210_v47 = vmul.f32 %v17164_v60, %v17155_v49  ;;  %v1354_v48 = vsel %vm1306_vm9, %v1282_v13, %v1330_v37  ;;  %v1355_v50 = vsel %vm1307_vm10, %v1283_v14, %v1331_v38 }
 0x554   :  { %1812 = vrot.lane.b32.xlu0 %v1755_v24, %s16428_s8  ;;  %v17213_v52 = vmul.f32 %v17164_v60, %v1349_v8  ;;  %v17216_v55 = vmul.f32 %v17164_v60, %v1348_v3  ;;  %v1357_v56 = vsel %vm1309_vm11, %v1285_v17, %v1333_v42  ;;  %v1334_v57 = vmul.f32 0.2, %v1286_v43 }
 0x555   :  { %v1335_v58 = vmul.f32 0.2, %v1287_v15  ;;  %v17220_v54 = vmul.f32 %v17164_v60, %v1351_v44  ;;  %v1356_v59 = vsel %vm1308_vm12, %v1284_v16, %v1332_v45  ;;  %vm1310_vm13 = vcmp.gt.f32.partialorder %v1286_v43, 0.0 }
 0x556   :  { %1810 = vrot.lane.b32.xlu1 %v1754_v22, %s16428_s8  ;;  %vm1311_vm14 = vcmp.gt.f32.partialorder %v1287_v15, 0.0  ;;  %v1768_v49 = vmul.f32 %v17089_v53, %v17186_v26  ;;  %v1753_v62 = vmul.f32 %v17089_v53, %v1351_v44  ;;  %v17227_v63 = vmul.f32 %v17164_v60, %v1350_v46 }
 0x557   :  { %v17230_v0 = vmul.f32 %v17164_v60, %v1353_v51  ;;  %v17233_v1 = vmul.f32 %v17164_v60, %v1352_v10  ;;  %v17236_v3 = vmul.f32 %v17164_v60, %v1355_v50  ;;  %v17239_v5 = vmul.f32 %v17164_v60, %v1354_v48 }
 0x558   :  { %1840 = vrot.lane.b32.xlu0 %v1769_v35, %s16428_s8  ;;  %v17242_v8 = vmul.f32 %v17164_v60, %v1357_v56  ;;  %v1358_v12 = vsel %vm1310_vm13, %v1286_v43, %v1334_v57  ;;  %v1359_v13 = vsel %vm1311_vm14, %v1287_v15, %v1335_v58  ;;  %v17246_v14 = vmul.f32 %v17164_v60, %v1356_v59 }
 0x559   :  { %v17250_v10 = vmul.f32 %v17164_v60, %v17097_v61  ;;  %v1752_v51 = vmul.f32 %v17089_v53, %v1350_v46  ;;  %v17256_v16 = vmul.f32 %v17164_v60, %v17103_v9  ;;  %v17260_v17 = vmul.f32 %v17164_v60, %v17119_v21 }
 0x55a   :  { %1838 = vrot.lane.b32.xlu1 %v1768_v49, %s16428_s8  ;;  %v17264_v19 = vmul.f32 %v17164_v60, %v17131_v32  ;;  %v17267_v20 = vmul.f32 %v17164_v60, %v1359_v13  ;;  %v17270_v61 = vmul.f32 %v17164_v60, %v1358_v12  ;;  %v17274_v22 = vmul.f32 %v17164_v60, %v17141_v39 }
 0x55b   :  { %v1757_v9 = vmul.f32 %v17089_v53, %v1355_v50  ;;  %v17280_v21 = vmul.f32 %v17164_v60, %v17138_v36  ;;  %v17284_v32 = vmul.f32 %v17164_v60, %v17183_v23  ;;  %v1756_v24 = vmul.f32 %v17089_v53, %v1354_v48 }
 0x55c   :  { %1808 = vrot.lane.b32.xlu0 %v1753_v62, %s16428_s8  ;;  %v17290_v39 = vmul.f32 %v17164_v60, %v17186_v26  ;;  %v1759_v28 = vmul.f32 %v17089_v53, %v1357_v56  ;;  %v1758_v29 = vmul.f32 %v17089_v53, %v1356_v59  ;;  %v1761_v36 = vmul.f32 %v17089_v53, %v1359_v13 }
 0x55d   :  { %v1760_v23 = vmul.f32 %v17089_v53, %v1358_v12  ;;  %vm1400_vm15 = vcmask 125952   ;;  %vm20647_vm1 = vcmask 130048   ;;  %vm1507_vm4 = vcmask 130112  }
 0x55e   :  { %1806 = vrot.lane.b32.xlu1 %v1752_v51, %s16428_s8  ;;  %vm1608_vm5 = vcmask 1041409   ;;  %vm1610_vm6 = vcmask 1042434   ;;  %vm1612_vm7 = vcmask 1043459   ;;  %vm1614_vm8 = vcmask 1044484  }
 0x55f   :  { %vm1616_vm9 = vcmask 1045509   ;;  %vm20646_vm10 = vcmask 1046534   ;;  %vm20645_vm11 = vcmask 1047559   ;;  %vm20643_vm13 = vcmask 97280  }
 0x560   :  { %1816 = vrot.lane.b32.xlu0 %v1757_v9, %s16428_s8 }
 0x562   :  { %1814 = vrot.lane.b32.xlu1 %v1756_v24, %s16428_s8 }
 0x564   :  { %1820 = vrot.lane.b32.xlu0 %v1759_v28, %s16428_s8 }
 0x566   :  { %1818 = vrot.lane.b32.xlu1 %v1758_v29, %s16428_s8 }
 0x568   :  { %1824 = vrot.lane.b32.xlu0 %v1761_v36, %s16428_s8 }
 0x56a   :  { %1822 = vrot.lane.b32.xlu1 %v1760_v23, %s16428_s8 }
 0x5ae   :  { %v1829_v60 = vpop.permute.xlu0 %1828 }
 0x5af   :  { %v1917_v26 = vsel %vm1400_vm15, %v1829_v60, 0.0 }
 0x5b0   :  { %v1827_v30 = vpop.permute.xlu1 %1826  ;;  %1918 = vadd.xlane.f32.xlu1 %v1917_v26 }
 0x5b1   :  { %v1914_v35 = vsel %vm20647_vm1, %v1827_v30, 0.0 }
 0x5b2   :  { %1915 = vadd.xlane.f32.xlu0 %v1914_v35  ;;  %v1795_v37 = vpop.permute.xlu0 %1794 }
 0x5b3   :  { %v1866_v38 = vsel %vm20647_vm1, %v1795_v37, 0.0 }
 0x5b4   :  { %v1797_v42 = vpop.permute.xlu1 %1796  ;;  %1867 = vadd.xlane.f32.xlu1 %v1866_v38 }
 0x5b5   :  { %v1869_v53 = vsel %vm1400_vm15, %v1797_v42, 0.0 }
 0x5b6   :  { %1870 = vadd.xlane.f32.xlu0 %v1869_v53  ;;  %v1833_v43 = vpop.permute.xlu0 %1832 }
 0x5b7   :  { %v1923_v44 = vsel %vm1400_vm15, %v1833_v43, 0.0 }
 0x5b8   :  { %v1831_v45 = vpop.permute.xlu1 %1830  ;;  %1924 = vadd.xlane.f32.xlu1 %v1923_v44 }
 0x5b9   :  { %v1920_v15 = vsel %vm20647_vm1, %v1831_v45, 0.0 }
 0x5ba   :  { %1921 = vadd.xlane.f32.xlu0 %v1920_v15  ;;  %v1837_v46 = vpop.permute.xlu0 %1836 }
 0x5bb   :  { %v1929_v48 = vsel %vm1400_vm15, %v1837_v46, 0.0 }
 0x5bc   :  { %v1835_v50 = vpop.permute.xlu1 %1834  ;;  %1930 = vadd.xlane.f32.xlu1 %v1929_v48 }
 0x5bd   :  { %v1926_v56 = vsel %vm20647_vm1, %v1835_v50, 0.0 }
 0x5be   :  { %1927 = vadd.xlane.f32.xlu0 %v1926_v56  ;;  %v1801_v57 = vpop.permute.xlu0 %1800 }
 0x5bf   :  { %v1875_v58 = vsel %vm1400_vm15, %v1801_v57, 0.0 }
 0x5c0   :  { %v1799_v59 = vpop.permute.xlu1 %1798  ;;  %1876 = vadd.xlane.f32.xlu1 %v1875_v58 }
 0x5c1   :  { %v1872_v49 = vsel %vm20647_vm1, %v1799_v59, 0.0  ;;  %v1401_v59 = vsel %vm1400_vm15, %v17192_v33, 0.0  ;;  %v1410_v33 = vsel %vm20647_vm1, %v17216_v55, 0.0  ;;  %v1431_v55 = vsel %vm1400_vm15, %v17236_v3, 0.0 }
 0x5c2   :  { %1873 = vadd.xlane.f32.xlu0 %v1872_v49  ;;  %v1805_v62 = vpop.permute.xlu0 %1804  ;;  %v1397_v49 = vsel %vm20647_vm1, %v17198_v40, 0.0  ;;  %v1419_v40 = vsel %vm1400_vm15, %v17220_v54, 0.0  ;;  %v1428_v54 = vsel %vm20647_vm1, %v17239_v5, 0.0  ;;  %v1446_v3 = vsel %vm20647_vm1, %v17256_v16, 0.0 }
 0x5c3   :  { %v1881_v12 = vsel %vm1400_vm15, %v1805_v62, 0.0  ;;  %v1407_v62 = vsel %vm1400_vm15, %v17206_v11, 0.0  ;;  %v1416_v11 = vsel %vm20647_vm1, %v17227_v63, 0.0  ;;  %v1437_v63 = vsel %vm1400_vm15, %v17242_v8, 0.0 }
 0x5c4   :  { %v1803_v13 = vpop.permute.xlu1 %1802  ;;  %1882 = vadd.xlane.f32.xlu1 %v1881_v12  ;;  %v1404_v12 = vsel %vm20647_vm1, %v17210_v47, 0.0  ;;  %v1425_v47 = vsel %vm1400_vm15, %v17230_v0, 0.0  ;;  %v1434_v0 = vsel %vm20647_vm1, %v17246_v14, 0.0  ;;  %v1455_v5 = vsel %vm1400_vm15, %v17260_v17, 0.0 }
 0x5c5   :  { %v1878_v51 = vsel %vm20647_vm1, %v1803_v13, 0.0  ;;  %v1413_v13 = vsel %vm1400_vm15, %v17213_v52, 0.0  ;;  %v1422_v52 = vsel %vm20647_vm1, %v17233_v1, 0.0  ;;  %v1449_v1 = vsel %vm1400_vm15, %v17250_v10, 0.0 }
 0x5c6   :  { %1879 = vadd.xlane.f32.xlu0 %v1878_v51  ;;  %v1813_v9 = vpop.permute.xlu0 %1812  ;;  %v1452_v8 = vsel %vm20647_vm1, %v17264_v19, 0.0  ;;  %v1443_v14 = vsel %vm1400_vm15, %v17267_v20, 0.0  ;;  %v1440_v10 = vsel %vm20647_vm1, %v17270_v61, 0.0  ;;  %v1461_v16 = vsel %vm1400_vm15, %v17274_v22, 0.0 }
 0x5c7   :  { %v1893_v24 = vsel %vm1400_vm15, %v1813_v9, 0.0  ;;  %v1458_v17 = vsel %vm20647_vm1, %v17280_v21, 0.0  ;;  %v1467_v19 = vsel %vm1400_vm15, %v17284_v32, 0.0  ;;  %v1464_v20 = vsel %vm20647_vm1, %v17290_v39, 0.0 }
 0x5c8   :  { %v1811_v28 = vpop.permute.xlu1 %1810  ;;  %1894 = vadd.xlane.f32.xlu1 %v1893_v24 }
 0x5c9   :  { %v1890_v29 = vsel %vm20647_vm1, %v1811_v28, 0.0 }
 0x5ca   :  { %1891 = vadd.xlane.f32.xlu0 %v1890_v29  ;;  %v1841_v36 = vpop.permute.xlu0 %1840 }
 0x5cb   :  { %v1935_v57 = vsel %vm1400_vm15, %v1841_v36, 0.0 }
 0x5cc   :  { %v1839_v23 = vpop.permute.xlu1 %1838 }
 0x5cd   :  { %v1932_v58 = vsel %vm20647_vm1, %v1839_v23, 0.0 }
 0x5ce   :  { %v1809_v60 = vpop.permute.xlu0 %1808 }
 0x5cf   :  { %v1887_v26 = vsel %vm1400_vm15, %v1809_v60, 0.0 }
 0x5d0   :  { %v1807_v30 = vpop.permute.xlu1 %1806  ;;  %1888 = vadd.xlane.f32.xlu1 %v1887_v26 }
 0x5d1   :  { %v1884_v35 = vsel %vm20647_vm1, %v1807_v30, 0.0 }
 0x5d2   :  { %1885 = vadd.xlane.f32.xlu0 %v1884_v35  ;;  %v1817_v37 = vpop.permute.xlu0 %1816 }
 0x5d3   :  { %v1899_v38 = vsel %vm1400_vm15, %v1817_v37, 0.0 }
 0x5d4   :  { %v1815_v42 = vpop.permute.xlu1 %1814  ;;  %1900 = vadd.xlane.f32.xlu1 %v1899_v38 }
 0x5d5   :  { %v1896_v53 = vsel %vm20647_vm1, %v1815_v42, 0.0 }
 0x5d6   :  { %1897 = vadd.xlane.f32.xlu0 %v1896_v53  ;;  %v1821_v43 = vpop.permute.xlu0 %1820 }
 0x5d7   :  { %v1905_v44 = vsel %vm1400_vm15, %v1821_v43, 0.0 }
 0x5d8   :  { %v1819_v45 = vpop.permute.xlu1 %1818  ;;  %1906 = vadd.xlane.f32.xlu1 %v1905_v44 }
 0x5d9   :  { %v1902_v15 = vsel %vm20647_vm1, %v1819_v45, 0.0 }
 0x5da   :  { %1903 = vadd.xlane.f32.xlu0 %v1902_v15  ;;  %v1825_v46 = vpop.permute.xlu0 %1824 }
 0x5db   :  { %v1911_v48 = vsel %vm1400_vm15, %v1825_v46, 0.0 }
 0x5dc   :  { %v1823_v50 = vpop.permute.xlu1 %1822  ;;  %1912 = vadd.xlane.f32.xlu1 %v1911_v48 }
 0x5dd   :  { %v1908_v56 = vsel %vm20647_vm1, %v1823_v50, 0.0 }
 0x5de   :  { %1909 = vadd.xlane.f32.xlu0 %v1908_v56 }
 0x5e0   :  { %1936 = vadd.xlane.f32.xlu1 %v1935_v57 }
 0x5e2   :  { %1933 = vadd.xlane.f32.xlu0 %v1932_v58 }
 0x5e4   :  { %1402 = vadd.xlane.f32.xlu1 %v1401_v59 }
 0x5e6   :  { %1398 = vadd.xlane.f32.xlu0 %v1397_v49 }
 0x5e8   :  { %1408 = vadd.xlane.f32.xlu1 %v1407_v62 }
 0x5ea   :  { %1405 = vadd.xlane.f32.xlu0 %v1404_v12 }
 0x5ec   :  { %1414 = vadd.xlane.f32.xlu1 %v1413_v13 }
 0x5ee   :  { %1411 = vadd.xlane.f32.xlu0 %v1410_v33 }
 0x5f0   :  { %1420 = vadd.xlane.f32.xlu1 %v1419_v40 }
 0x5f2   :  { %1417 = vadd.xlane.f32.xlu0 %v1416_v11 }
 0x5f4   :  { %1426 = vadd.xlane.f32.xlu1 %v1425_v47 }
 0x5f6   :  { %1423 = vadd.xlane.f32.xlu0 %v1422_v52 }
 0x5f8   :  { %1432 = vadd.xlane.f32.xlu1 %v1431_v55 }
 0x5fa   :  { %1429 = vadd.xlane.f32.xlu0 %v1428_v54 }
 0x5fc   :  { %1438 = vadd.xlane.f32.xlu1 %v1437_v63 }
 0x5fe   :  { %1435 = vadd.xlane.f32.xlu0 %v1434_v0 }
 0x600   :  { %1450 = vadd.xlane.f32.xlu1 %v1449_v1 }
 0x602   :  { %1447 = vadd.xlane.f32.xlu0 %v1446_v3 }
 0x604   :  { %1456 = vadd.xlane.f32.xlu1 %v1455_v5  ;;  %v17412_v5 = vld [vmem:[#allocation3] sm:$0xff] }
 0x605   :  { %vm20644_vm12 = vcmp.gt.f32.partialorder %v17412_v5, 0.0 }
 0x606   :  { %1453 = vadd.xlane.f32.xlu0 %v1452_v8 }
 0x608   :  { %1444 = vadd.xlane.f32.xlu1 %v1443_v14 }
 0x60a   :  { %1441 = vadd.xlane.f32.xlu0 %v1440_v10 }
 0x60c   :  { %1462 = vadd.xlane.f32.xlu1 %v1461_v16 }
 0x60e   :  { %1459 = vadd.xlane.f32.xlu0 %v1458_v17 }
 0x610   :  { %1468 = vadd.xlane.f32.xlu1 %v1467_v19 }
 0x612   :  { %1465 = vadd.xlane.f32.xlu0 %v1464_v20 }
 0x63d   :  { %v17373_v51 = vpop.xlane.xlu1 %1918 }
 0x63e   :  { %v2041_v19 = vrot.slane %v17373_v51, %v17029_v7 }
 0x63f   :  { %v17375_v61 = vpop.xlane.xlu0 %1915 }
 0x640   :  { %v2037_v20 = vrot.slane %v17375_v61, %v17025_v4 }
 0x641   :  { %v1868_v9 = vpop.xlane.xlu1 %1867 }
 0x642   :  { %v1965_v44 = vrot.slane %v1868_v9, %v17025_v4 }
 0x643   :  { %v1871_v24 = vpop.xlane.xlu0 %1870 }
 0x644   :  { %v1969_v45 = vrot.slane %v1871_v24, %v17029_v7 }
 0x645   :  { %v17377_v22 = vpop.xlane.xlu1 %1924 }
 0x646   :  { %v1970_v58 = vsel %vm1507_vm4, %v1969_v45, %v1965_v44  ;;  %v2050_v63 = vrot.slane %v17377_v22, %v17029_v7 }
 0x647   :  { %v17379_v28 = vpop.xlane.xlu0 %1921 }
 0x648   :  { %v2046_v0 = vrot.slane %v17379_v28, %v17025_v4 }
 0x649   :  { %v17381_v21 = vpop.xlane.xlu1 %1930 }
 0x64a   :  { %v2059_v8 = vrot.slane %v17381_v21, %v17029_v7  ;;  %v2051_v21 = vsel %vm1507_vm4, %v2050_v63, %v2046_v0 }
 0x64b   :  { %v17383_v29 = vpop.xlane.xlu0 %1927 }
 0x64c   :  { %v2055_v14 = vrot.slane %v17383_v29, %v17025_v4 }
 0x64d   :  { %v1877_v32 = vpop.xlane.xlu1 %1876 }
 0x64e   :  { %v1978_v37 = vrot.slane %v1877_v32, %v17029_v7  ;;  %v2060_v61 = vsel %vm1507_vm4, %v2059_v8, %v2055_v14 }
 0x64f   :  { %v1874_v36 = vpop.xlane.xlu0 %1873 }
 0x650   :  { %v1974_v38 = vrot.slane %v1874_v36, %v17025_v4  ;;  %v17432_v36 = vld [vmem:[#allocation3 + $0x8] sm:$0xf] }
 0x651   :  { %v1883_v23 = vpop.xlane.xlu1 %1882  ;;  %vm20642_vm14 = vcmp.gt.f32.partialorder %v17432_v36, 0.0 }
 0x652   :  { %v1987_v42 = vrot.slane %v1883_v23, %v17029_v7  ;;  %v1979_v50 = vsel %vm1507_vm4, %v1978_v37, %v1974_v38 }
 0x653   :  { %v1880_v60 = vpop.xlane.xlu0 %1879  ;;  %v2070_v12 = vsel %vm1608_vm5, %v1979_v50, %v1970_v58 }
 0x654   :  { %v1983_v53 = vrot.slane %v1880_v60, %v17025_v4 }
 0x655   :  { %v1895_v39 = vpop.xlane.xlu1 %1894 }
 0x656   :  { %v1988_v56 = vsel %vm1507_vm4, %v1987_v42, %v1983_v53  ;;  %v2005_v13 = vrot.slane %v1895_v39, %v17029_v7  ;;  %v2042_v39 = vsel %vm1507_vm4, %v2041_v19, %v2037_v20 }
 0x657   :  { %v1892_v26 = vpop.xlane.xlu0 %1891  ;;  %v2071_v47 = vsel %vm1610_vm6, %v1988_v56, %v2070_v12  ;;  %v2077_v38 = vsel %vm1608_vm5, %v2051_v21, %v2042_v39 }
 0x658   :  { %v2001_v33 = vrot.slane %v1892_v26, %v17025_v4  ;;  %v2078_v53 = vsel %vm1610_vm6, %v2060_v61, %v2077_v38 }
 0x65a   :  { %v2006_v10 = vsel %vm1507_vm4, %v2005_v13, %v2001_v33 }
 0x65d   :  { %v1889_v30 = vpop.xlane.xlu1 %1888 }
 0x65e   :  { %v1996_v15 = vrot.slane %v1889_v30, %v17029_v7 }
 0x65f   :  { %v1886_v35 = vpop.xlane.xlu0 %1885 }
 0x660   :  { %v1992_v46 = vrot.slane %v1886_v35, %v17025_v4 }
 0x661   :  { %v1901_v43 = vpop.xlane.xlu1 %1900 }
 0x662   :  { %v1997_v59 = vsel %vm1507_vm4, %v1996_v15, %v1992_v46  ;;  %v2014_v49 = vrot.slane %v1901_v43, %v17029_v7 }
 0x663   :  { %v1898_v48 = vpop.xlane.xlu0 %1897  ;;  %v2072_v55 = vsel %vm1612_vm7, %v1997_v59, %v2071_v47 }
 0x664   :  { %v2010_v62 = vrot.slane %v1898_v48, %v17025_v4  ;;  %v2073_v24 = vsel %vm1614_vm8, %v2006_v10, %v2072_v55 }
 0x665   :  { %v1907_v57 = vpop.xlane.xlu1 %1906 }
 0x666   :  { %v2023_v40 = vrot.slane %v1907_v57, %v17029_v7  ;;  %v2015_v1 = vsel %vm1507_vm4, %v2014_v49, %v2010_v62 }
 0x667   :  { %v1904_v11 = vpop.xlane.xlu0 %1903  ;;  %v2074_v28 = vsel %vm1616_vm9, %v2015_v1, %v2073_v24 }
 0x668   :  { %v2019_v52 = vrot.slane %v1904_v11, %v17025_v4 }
 0x669   :  { %v1913_v54 = vpop.xlane.xlu1 %1912 }
 0x66a   :  { %v2032_v3 = vrot.slane %v1913_v54, %v17029_v7  ;;  %v2024_v16 = vsel %vm1507_vm4, %v2023_v40, %v2019_v52 }
 0x66b   :  { %v1910_v17 = vpop.xlane.xlu0 %1909  ;;  %v2075_v51 = vsel %vm20646_vm10, %v2024_v16, %v2074_v28 }
 0x66c   :  { %v2028_v9 = vrot.slane %v1910_v17, %v17025_v4 }
 0x66d   :  { %v1937_v22 = vpop.xlane.xlu1 %1936 }
 0x66e   :  { %v2068_v29 = vrot.slane %v1937_v22, %v17029_v7  ;;  %v2033_v32 = vsel %vm1507_vm4, %v2032_v3, %v2028_v9 }
 0x66f   :  { %v1934_v23 = vpop.xlane.xlu0 %1933  ;;  %v2076_v60 = vsel %vm20645_vm11, %v2033_v32, %v2075_v51 }
 0x670   :  { %v2064_v26 = vrot.slane %v1934_v23, %v17025_v4  ;;  %v17440_v30 = vsel %vm20644_vm12, %v2076_v60, -1e+30 }
 0x671   :  { %v2084_v35 = vsel %vm20643_vm13, %v17440_v30, -inf  ;;  %v1403_v37 = vpop.xlane.xlu1 %1402 }
 0x672   :  { %2085 = vmax.xlane.f32.xlu0 %v2084_v35  ;;  %v2069_v42 = vsel %vm1507_vm4, %v2068_v29, %v2064_v26  ;;  %v1506_v63 = vrot.slane %v1403_v37, %v17029_v7 }
 0x673   :  { %v1399_v43 = vpop.xlane.xlu0 %1398  ;;  %v2079_v44 = vsel %vm1612_vm7, %v2069_v42, %v2078_v53 }
 0x674   :  { %v17451_v45 = vsel %vm20642_vm14, %v2079_v44, -1e+30  ;;  %v1501_v0 = vrot.slane %v1399_v43, %v17025_v4 }
 0x675   :  { %v2087_v15 = vsel %vm20639_vm2, %v17451_v45, -inf  ;;  %v1409_v46 = vpop.xlane.xlu1 %1408 }
 0x676   :  { %2088 = vmax.xlane.f32.xlu1 %v2087_v15  ;;  %v1516_v11 = vrot.slane %v1409_v46, %v17029_v7  ;;  %v1508_v28 = vsel %vm1507_vm4, %v1506_v63, %v1501_v0 }
 0x677   :  { %v1406_v48 = vpop.xlane.xlu0 %1405 }
 0x678   :  { %v1512_v47 = vrot.slane %v1406_v48, %v17025_v4 }
 0x679   :  { %v1415_v50 = vpop.xlane.xlu1 %1414 }
 0x67a   :  { %v1525_v52 = vrot.slane %v1415_v50, %v17029_v7  ;;  %v1517_v16 = vsel %vm1507_vm4, %v1516_v11, %v1512_v47 }
 0x67b   :  { %v1412_v56 = vpop.xlane.xlu0 %1411  ;;  %v1609_v29 = vsel %vm1608_vm5, %v1517_v16, %v1508_v28 }
 0x67c   :  { %v1521_v55 = vrot.slane %v1412_v56, %v17025_v4 }
 0x67d   :  { %v1421_v57 = vpop.xlane.xlu1 %1420 }
 0x67e   :  { %v1534_v1 = vrot.slane %v1421_v57, %v17029_v7  ;;  %v1526_v20 = vsel %vm1507_vm4, %v1525_v52, %v1521_v55 }
 0x67f   :  { %v1418_v58 = vpop.xlane.xlu0 %1417  ;;  %v1611_v61 = vsel %vm1610_vm6, %v1526_v20, %v1609_v29 }
 0x680   :  { %v1530_v3 = vrot.slane %v1418_v58, %v17025_v4 }
 0x681   :  { %v1427_v59 = vpop.xlane.xlu1 %1426 }
 0x682   :  { %v1543_v8 = vrot.slane %v1427_v59, %v17029_v7  ;;  %v1535_v21 = vsel %vm1507_vm4, %v1534_v1, %v1530_v3 }
 0x683   :  { %v1424_v49 = vpop.xlane.xlu0 %1423  ;;  %v1613_v39 = vsel %vm1612_vm7, %v1535_v21, %v1611_v61 }
 0x684   :  { %v1539_v14 = vrot.slane %v1424_v49, %v17025_v4 }
 0x685   :  { %v1433_v62 = vpop.xlane.xlu1 %1432 }
 0x686   :  { %v1552_v17 = vrot.slane %v1433_v62, %v17029_v7  ;;  %v1544_v32 = vsel %vm1507_vm4, %v1543_v8, %v1539_v14 }
 0x687   :  { %v1430_v12 = vpop.xlane.xlu0 %1429  ;;  %v1615_v37 = vsel %vm1614_vm8, %v1544_v32, %v1613_v39 }
 0x688   :  { %v1548_v19 = vrot.slane %v1430_v12, %v17025_v4 }
 0x689   :  { %v1439_v13 = vpop.xlane.xlu1 %1438 }
 0x68a   :  { %v1561_v9 = vrot.slane %v1439_v13, %v17029_v7  ;;  %v1553_v23 = vsel %vm1507_vm4, %v1552_v17, %v1548_v19 }
 0x68b   :  { %v1436_v33 = vpop.xlane.xlu0 %1435  ;;  %v1617_v53 = vsel %vm1616_vm9, %v1553_v23, %v1615_v37 }
 0x68c   :  { %v1557_v24 = vrot.slane %v1436_v33, %v17025_v4 }
 0x68d   :  { %v1451_v40 = vpop.xlane.xlu1 %1450 }
 0x68e   :  { %v1562_v26 = vsel %vm1507_vm4, %v1561_v9, %v1557_v24  ;;  %v1579_v57 = vrot.slane %v1451_v40, %v17029_v7 }
 0x68f   :  { %v1448_v54 = vpop.xlane.xlu0 %1447  ;;  %v1619_v46 = vsel %vm20646_vm10, %v1562_v26, %v1617_v53 }
 0x690   :  { %v1575_v58 = vrot.slane %v1448_v54, %v17025_v4 }
 0x691   :  { %v1457_v10 = vpop.xlane.xlu1 %1456 }
 0x692   :  { %v1588_v43 = vrot.slane %v1457_v10, %v17029_v7  ;;  %v1580_v40 = vsel %vm1507_vm4, %v1579_v57, %v1575_v58  ;;  %v857_v58 = vld [vmem:[%s20739_s14] sm:$0xff] }
 0x693   :  { %v1454_v22 = vpop.xlane.xlu0 %1453 }
 0x694   :  { %v1584_v44 = vrot.slane %v1454_v22, %v17025_v4 }
 0x695   :  { %v1445_v51 = vpop.xlane.xlu1 %1444 }
 0x696   :  { %v1570_v60 = vrot.slane %v1445_v51, %v17029_v7  ;;  %v1589_v13 = vsel %vm1507_vm4, %v1588_v43, %v1584_v44 }
 0x697   :  { %v1442_v35 = vpop.xlane.xlu0 %1441  ;;  %v1622_v55 = vsel %vm1608_vm5, %v1589_v13, %v1580_v40  ;;  %v862_v13 = vld [vmem:[%s20740_s1 + $0x8] sm:$0xff] }
 0x698   :  { %v1566_v38 = vrot.slane %v1442_v35, %v17025_v4 }
 0x699   :  { %v1463_v42 = vpop.xlane.xlu1 %1462 }
 0x69a   :  { %v1571_v15 = vsel %vm1507_vm4, %v1570_v60, %v1566_v38  ;;  %v1597_v48 = vrot.slane %v1463_v42, %v17029_v7 }
 0x69b   :  { %v1460_v50 = vpop.xlane.xlu0 %1459  ;;  %v1621_v56 = vsel %vm20645_vm11, %v1571_v15, %v1619_v46 }
 0x69c   :  { %v1593_v59 = vrot.slane %v1460_v50, %v17025_v4  ;;  %v1627_v49 = vsel %vm20644_vm12, %v1621_v56, -1e+30 }
 0x69d   :  { %v1630_v62 = vsel %vm20643_vm13, %v1627_v49, -inf  ;;  %v1469_v12 = vpop.xlane.xlu1 %1468 }
 0x69e   :  { %1631 = vmax.xlane.f32.xlu0 %v1630_v62  ;;  %v1606_v33 = vrot.slane %v1469_v12, %v17029_v7  ;;  %v1598_v11 = vsel %vm1507_vm4, %v1597_v48, %v1593_v59  ;;  %v858_v59 = vld [vmem:[%s20739_s14 + $0x8] sm:$0xff] }
 0x69f   :  { %v1466_v47 = vpop.xlane.xlu0 %1465  ;;  %v1623_v63 = vsel %vm1610_vm6, %v1598_v11, %v1622_v55  ;;  %v13773_v12 = vpack.c.bf16 %v858_v59, %v857_v58  ;;  %v860_v11 = vld [vmem:[%s20739_s14 + $0x18] sm:$0xff]  ;;  %v863_v55 = vld [vmem:[%s20740_s1 + $0x10] sm:$0xff] }
 0x6a0   :  { %v1602_v52 = vrot.slane %v1466_v47, %v17025_v4 }
 0x6a1   :  { %13774 = vmatprep.subr.bf16.mxu0 %v13773_v12 }
 0x6a2   :  { %v1607_v54 = vsel %vm1507_vm4, %v1606_v33, %v1602_v52  ;;  %v859_v33 = vld [vmem:[%s20739_s14 + $0x10] sm:$0xff] }
 0x6a3   :  { %v1624_v0 = vsel %vm1612_vm7, %v1607_v54, %v1623_v63  ;;  %v13777_v52 = vpack.c.bf16 %v860_v11, %v859_v33  ;;  %v864_v54 = vld [vmem:[%s20740_s1 + $0x18] sm:$0xff] }
 0x6a4   :  { %v1628_v1 = vsel %vm20642_vm14, %v1624_v0, -1e+30  ;;  %v13785_v63 = vpack.c.bf16 %v864_v54, %v863_v55  ;;  %v17535_v0 = vld [vmem:[#allocation26] sm:$0x3]  ;;  %v11815_v33 = vld [vmem:[#allocation30] ss:$0 sm:$0xff] }
 0x6a5   :  { %v1634_v3 = vsel %vm20639_vm2, %v1628_v1, -inf }
 0x6a6   :  { %1635 = vmax.xlane.f32.xlu1 %v1634_v3  ;;  %v11809_v3 = vld [vmem:[#allocation14] ss:$0 sm:$0xff] }
 0x6ff   :  { %v2086_v8 = vpop.xlane.xlu0 %2085 }
 0x700   :  { %v2090_v14 = vsub.f32 %v17440_v30, %v2086_v8 }
 0x702   :  { %v2092_v10 = vmul.f32 1.442695, %v2090_v14 }
 0x703   :  { %v2089_v16 = vpop.xlane.xlu1 %2088 }
 0x704   :  { %14816 = vpow2.f32 %v2092_v10  ;;  %v2091_v17 = vsub.f32 %v17451_v45, %v2089_v16 }
 0x706   :  { %v2094_v19 = vmul.f32 1.442695, %v2091_v17 }
 0x708   :  { %14818 = vpow2.f32 %v2094_v19 }
 0x70e   :  { %v14817_v20 = vpop.eup %14816 }
 0x70f   :  { %v2096_v9 = vsel %vm20643_vm13, %v14817_v20, 0.0 }
 0x710   :  { %2097 = vadd.xlane.f32.xlu0 %v2096_v9 }
 0x712   :  { %v14819_v24 = vpop.eup %14818 }
 0x713   :  { %v2099_v22 = vsel %vm20639_vm2, %v14819_v24, 0.0 }
 0x714   :  { %2100 = vadd.xlane.f32.xlu1 %v2099_v22 }
 0x726   :  { %14477 = vrot.lane.b32.xlu0 %v14476_v41, %s16428_s8 }
 0x72b   :  { %v1632_v30 = vpop.xlane.xlu0 %1631 }
 0x72c   :  { %v1637_v28 = vsub.f32 %v1627_v49, %v1632_v30  ;;  %v861_v49 = vld [vmem:[%s20740_s1] sm:$0xff] }
 0x72d   :  { %v13781_v40 = vpack.c.bf16 %v862_v13, %v861_v49  ;;  %v11812_v13 = vld [vmem:[#allocation29] ss:$0 sm:$0xff] }
 0x72e   :  { %v1639_v21 = vmul.f32 1.442695, %v1637_v28 }
 0x730   :  { %14820 = vpow2.f32 %v1639_v21 }
 0x733   :  { %v1636_v45 = vpop.xlane.xlu1 %1635 }
 0x734   :  { %v1638_v29 = vsub.f32 %v1628_v1, %v1636_v45  ;;  %v3020_v1 = vrot.slane %v17535_v0, %v1740_v6  ;;  %v851_v45 = vld [vmem:[#allocation23] sm:$0x1] }
 0x736   :  { %v1641_v32 = vmul.f32 1.442695, %v1638_v29 }
 0x738   :  { %14822 = vpow2.f32 %v1641_v32 }
 0x73a   :  { %v14821_v51 = vpop.eup %14820 }
 0x73b   :  { %v1643_v61 = vsel %vm20643_vm13, %v14821_v51, 0.0 }
 0x73c   :  { %1644 = vadd.xlane.f32.xlu1 %v1643_v61 }
 0x742   :  { %v14823_v23 = vpop.eup %14822 }
 0x743   :  { %v1646_v60 = vsel %vm20639_vm2, %v14823_v23, 0.0  ;;  %vm20641_vm2 = vcmask 261120  }
 0x744   :  { %1647 = vadd.xlane.f32.xlu1 %v1646_v60 }
 0x79d   :  { %v2098_v39 = vpop.xlane.xlu0 %2097 }
 0x79e   :  { %14824 = vrcp.f32 %v2098_v39 }
 0x7a1   :  { %v2101_v27 = vpop.xlane.xlu1 %2100  ;;  %v14478_v31 = vpop.permute.xlu0 %14477 }
 0x7a2   :  { %14826 = vrcp.f32 %v2101_v27  ;;  %v14480_v41 = vunpack.i.h.bf16 %v14478_v31  ;;  %v14479_v26 = vunpack.i.l.bf16 %v14478_v31 }
 0x7a4   :  { %v13767_v35 = vpack.c.bf16 %v14480_v41, %v14479_v26 }
 0x7a6   :  { %13769 = vmatprep.subr.msk.bf16.mxu1 %vm17057_vm3, %v13767_v35 }
 0x7a7   :  { %13772 = vmatpush3.bf16.msk.msra.mxu1 %vm17057_vm3, %v13767_v35 }
 0x7a8   :  { %v14825_v37 = vpop.eup %14824  ;;  %13782 = vmatprep.subr.bf16.mxu1 %v13781_v40 }
 0x7a9   :  { %v2104_v38 = vmul.f32 %v14825_v37, %v14817_v20 }
 0x7ab   :  { %12791 = vmatprep.mubr.msk.f32.mxu1 %vm20643_vm13, %v2104_v38 }
 0x7ac   :  { %v14827_v42 = vpop.eup %14826 }
 0x7ad   :  { %v2105_v53 = vmul.f32 %v14827_v42, %v14819_v24 }
 0x7af   :  { %12792 = vmatmul.mubr.msk.f32.vlgmr.msra.gmra.mrb[2].mxu1 %vm20643_vm13, %v2105_v53 }
 0x7b0   :  { %13784 = vmatpush3.bf16.msra.mxu1 %v13781_v40 }
 0x7b1   :  { %13786 = vmatprep.subr.bf16.mxu1 %v13785_v63 }
 0x7b4   :  { %13788 = vmatpush3.bf16.msra.mxu1 %v13785_v63 }
 0x7c9   :  { %v1645_v43 = vpop.xlane.xlu1 %1644 }
 0x7ca   :  { %14828 = vrcp.f32 %v1645_v43 }
 0x7d1   :  { %v1648_v44 = vpop.xlane.xlu1 %1647 }
 0x7d2   :  { %14830 = vrcp.f32 %v1648_v44 }
 0x7d4   :  { %v14829_v15 = vpop.eup %14828 }
 0x7d5   :  { %v1651_v46 = vmul.f32 %v14829_v15, %v14821_v51  ;;  %v11810_v15 = vld [vmem:[#allocation24] ss:$0 sm:$0xff] }
 0x7d7   :  { %12784 = vmatprep.mubr.msk.f32.mxu0 %vm20643_vm13, %v1651_v46 }
 0x7dc   :  { %v14831_v48 = vpop.eup %14830 }
 0x7dd   :  { %v1652_v50 = vmul.f32 %v14831_v48, %v14823_v23 }
 0x7df   :  { %12785 = vmatmul.mubr.msk.f32.vlgmr.msra.gmra.mrb[2].mxu0 %vm20643_vm13, %v1652_v50 }
 0x7e0   :  { %13776 = vmatpush3.bf16.msra.mxu0 %v13773_v12 }
 0x7e1   :  { %13778 = vmatprep.subr.bf16.mxu0 %v13777_v52 }
 0x7e4   :  { %13780 = vmatpush3.bf16.msra.mxu0 %v13777_v52 }
 0x882   :  { %v12793_v56 = vpop.f32.mrb[2].mxu1 }
 0x883   :  { %2199 = vrot.lane.b32.xlu0 %v12793_v56, %s16425_s12  ;;  %v2186_v57 = vpop.f32.mrb[3].mxu1  ;;  %v11811_v56 = vld [vmem:[#allocation21] ss:$0 sm:$0xff] }
 0x884   :  { %2197 = vrot.lane.b32.xlu1 %v2186_v57, %s16425_s12 }
 0x887   :  { %3022 = vrot.lane.b32.xlu0 %v3020_v1, %s16425_s12 }
 0x8b2   :  { %v12786_v62 = vpop.f32.mrb[2].mxu0 }
 0x8b3   :  { %v1729_v47 = vpop.f32.mrb[3].mxu0 }
 0x8f5   :  { %v2200_v8 = vpop.permute.xlu0 %2199 }
 0x8f6   :  { %v2204_v14 = vsel %vm20647_vm1, %v12786_v62, %v2200_v8  ;;  %v2198_v10 = vpop.permute.xlu1 %2197 }
 0x8f7   :  { %v2212_v16 = vadd.f32 %v11809_v3, %v2204_v14  ;;  %v2203_v17 = vsel %vm20647_vm1, %v1729_v47, %v2198_v10 }
 0x8f8   :  { %v2211_v19 = vadd.f32 %v11809_v3, %v2203_v17 }
 0x8f9   :  { %v2216_v20 = vsel %vm20640_vm0, %v2212_v16, 0.0 }
 0x8fa   :  { %v2214_v2 = vsel %vm20641_vm2, %v2211_v19, 0.0 }
 0x8fb   :  { %v2217_v9 = vadd.f32 %v2216_v20, %v2214_v2 }
 0x8fd   :  { %v2218_v6 = vrot.slane %v2217_v9, 4 }
 0x8ff   :  { %v2219_v24 = vadd.f32 %v2218_v6, %v2217_v9 }
 0x901   :  { %v2220_v22 = vrot.slane %v2219_v24, 2 }
 0x903   :  { %v2221_v30 = vadd.f32 %v2220_v22, %v2219_v24 }
 0x905   :  { %v2222_v28 = vrot.slane %v2221_v30, 1 }
 0x907   :  { %v2223_v21 = vadd.f32 %v2222_v28, %v2221_v30 }
 0x909   :  { %v2224_v29 = vmul.f32 0.083333336, %v2223_v21 }
 0x90b   :  { %v2225_v32 = vmul.f32 %v2224_v29, %v851_v45 }
 0x90d   :  { %v2229_v51 = vrot.slane %v2225_v32, %v17047_v25 }
 0x90f   :  { %v2230_v61 = vsub.f32 %v2211_v19, %v2229_v51  ;;  %v2231_v23 = vsub.f32 %v2212_v16, %v2229_v51 }
 0x911   :  { %v2232_v60 = vmul.f32 %v2230_v61, %v2230_v61  ;;  %v2233_v39 = vmul.f32 %v2231_v23, %v2231_v23  ;;  %v2252_v46 = vmul.f32 %v11810_v15, %v2230_v61  ;;  %v2253_v48 = vmul.f32 %v11810_v15, %v2231_v23 }
 0x913   :  { %v2234_v27 = vsel %vm20641_vm2, %v2232_v60, 0.0  ;;  %v2235_v31 = vsel %vm20640_vm0, %v2233_v39, 0.0 }
 0x914   :  { %v2236_v41 = vadd.f32 %v2235_v31, %v2234_v27 }
 0x916   :  { %v2237_v26 = vrot.slane %v2236_v41, 4 }
 0x918   :  { %v2238_v35 = vadd.f32 %v2237_v26, %v2236_v41 }
 0x91a   :  { %v2239_v37 = vrot.slane %v2238_v35, 2 }
 0x91c   :  { %v2240_v38 = vadd.f32 %v2239_v37, %v2238_v35 }
 0x91e   :  { %v2241_v42 = vrot.slane %v2240_v38, 1 }
 0x920   :  { %v2242_v53 = vadd.f32 %v2241_v42, %v2240_v38 }
 0x922   :  { %v2243_v43 = vmul.f32 0.083333336, %v2242_v53 }
 0x924   :  { %v2244_v44 = vadd.f32 1e-05, %v2243_v43 }
 0x926   :  { %14832 = vrsqrt.f32 %v2244_v44 }
 0x930   :  { %v14833_v50 = vpop.eup %14832 }
 0x931   :  { %v2254_v57 = vmul.f32 %v14833_v50, %v2252_v46  ;;  %v2255_v58 = vmul.f32 %v14833_v50, %v2253_v48 }
 0x933   :  { %v2262_v59 = vadd.f32 %v11811_v56, %v2254_v57  ;;  %v2263_v49 = vadd.f32 %v11811_v56, %v2255_v58  ;;  %v17618_v57 = vpop.permute.xlu0 %3022 }
 0x935   :  { %v2264_v62 = vmax.f32 %v2262_v59, 0.0  ;;  %v2265_v12 = vmax.f32 %v2263_v49, 0.0 }
 0x937   :  { %12802 = vmatprep.mubr.msk.f32.mxu0 %vm20641_vm2, %v2264_v62  ;;  %12813 = vmatprep.mubr.msk.f32.mxu1 %vm20641_vm2, %v2264_v62 }
 0x938   :  { %12803 = vmatmul.mubr.msk.f32.vlgmr.msra.gmra.mrb[4].mxu0 %vm20641_vm2, %v2265_v12  ;;  %12814 = vmatmul.mubr.msk.f32.vlgmr.msra.gmra.mrb[4].mxu1 %vm20641_vm2, %v2265_v12 }
 0xa0b   :  { %v12804_v11 = vpop.f32.mrb[4].mxu0  ;;  %v12815_v47 = vpop.f32.mrb[4].mxu1 }
 0xa0c   :  { %v17552_v40 = vadd.f32 %v12804_v11, %v11812_v13  ;;  %v2431_v52 = vadd.f32 %v12815_v47, %v11815_v33  ;;  %v2344_v55 = vpop.f32.mrb[5].mxu0  ;;  %v2425_v54 = vpop.f32.mrb[5].mxu1 }
 0xa0d   :  { %v17554_v63 = vadd.f32 %v11812_v13, %v2344_v55  ;;  %v2426_v1 = vadd.f32 %v11815_v33, %v2425_v54 }
 0xa0e   :  { %v2491_v3 = vrot.slane %v2431_v52, %v17044_v18 }
 0xa0f   :  { %v2436_v8 = vcombine.high %v2426_v1, %v2426_v1  ;;  %v2443_v14 = vrot.slane %v2426_v1, %v17044_v18  ;;  %v13789_v10 = vpack.c.bf16 %v17552_v40, %v17554_v63  ;;  %v14481_v16 = vpack.i.bf16 %v17552_v40, %v17554_v63 }
 0xa10   :  { %v2492_v17 = vcombine.high %v2491_v3, %v2491_v3  ;;  %v2499_v19 = vrot.slane %v2491_v3, %v17044_v18 }
 0xa11   :  { %v2450_v20 = vrot.slane %v2436_v8, %v17044_v18  ;;  %v2451_v2 = vcombine.high %v2443_v14, %v2443_v14  ;;  %v2459_v9 = vrot.slane %v2443_v14, %v17044_v18  ;;  %13791 = vmatprep.subr.msk.bf16.mxu0 %vm17057_vm3, %v13789_v10 }
 0xa12   :  { %v2506_v6 = vrot.slane %v2492_v17, %v17044_v18  ;;  %v2544_v24 = vrot.slane %v2499_v19, %v17047_v25  ;;  %13794 = vmatpush3.bf16.msk.msra.mxu0 %vm17057_vm3, %v13789_v10  ;;  %v2507_v21 = vcombine.high %v2499_v19, %v2499_v19 }
 0xa13   :  { %v2452_v22 = vcombine.high %v2450_v20, %v2450_v20  ;;  %v2466_v30 = vrot.slane %v2450_v20, %v17044_v18  ;;  %v2473_v28 = vrot.slane %v2451_v2, %v17044_v18  ;;  %v2512_v23 = vrot.slane %v2459_v9, %v17047_v25 }
 0xa14   :  { %v2508_v45 = vcombine.high %v2506_v6, %v2506_v6  ;;  %v2586_v29 = vadd.f32 %v2544_v24, %v17552_v40  ;;  %v2481_v39 = vcombine.high %v2459_v9, %v2459_v9  ;;  %v2548_v31 = vrot.slane %v2506_v6, %v17047_v25 }
 0xa15   :  { %v17575_v32 = vrot.slane %v2452_v22, %v17044_v18  ;;  %v2482_v51 = vcombine.high %v2466_v30, %v2466_v30  ;;  %v2483_v61 = vcombine.high %v2473_v28, %v2473_v28  ;;  %v17582_v27 = vrot.slane %v2466_v30, %v17047_v25 }
 0xa16   :  { %v17579_v60 = vrot.slane %v2508_v45, %v17047_v25  ;;  %v2569_v38 = vadd.f32 %v2512_v23, %v17554_v63  ;;  %v2570_v42 = vadd.f32 %v2512_v23, %v17552_v40  ;;  %v2552_v43 = vrot.slane %v2507_v21, %v17047_v25 }
 0xa17   :  { %v2524_v41 = vrot.slane %v2483_v61, %v17047_v25  ;;  %v2532_v26 = vrot.slane %v17575_v32, %v17047_v25  ;;  %v2536_v35 = vrot.slane %v2482_v51, %v17047_v25  ;;  %v17597_v53 = vadd.f32 %v17582_v27, %v17552_v40 }
 0xa18   :  { %v17591_v37 = vadd.f32 %v17579_v60, %v17552_v40  ;;  %vm2610_vm0 = vcmp.gt.f32.partialorder %v2586_v29, 0.0  ;;  %v2634_v58 = vmul.f32 0.2, %v2586_v29  ;;  %v2585_v59 = vadd.f32 %v2544_v24, %v17554_v63 }
 0xa19   :  { %v17601_v44 = vadd.f32 %v2524_v41, %v17554_v63  ;;  %v17604_v15 = vadd.f32 %v2524_v41, %v17552_v40  ;;  %v17607_v46 = vadd.f32 %v2532_v26, %v17554_v63  ;;  %v17610_v48 = vadd.f32 %v2532_v26, %v17552_v40 }
 0xa1a   :  { %v17613_v50 = vadd.f32 %v2536_v35, %v17554_v63  ;;  %v17616_v56 = vadd.f32 %v2536_v35, %v17552_v40  ;;  %vm2594_vm2 = vcmp.gt.f32.partialorder %v2570_v42, 0.0  ;;  %v2618_v49 = vmul.f32 0.2, %v2570_v42 }
 0xa1b   :  { %v2516_v62 = vrot.slane %v2473_v28, %v17047_v25  ;;  %v2520_v12 = vrot.slane %v2481_v39, %v17047_v25  ;;  %v2588_v13 = vadd.f32 %v2548_v31, %v17552_v40  ;;  %v2587_v33 = vadd.f32 %v2548_v31, %v17554_v63 }
 0xa1c   :  { %v17625_v11 = vsel %vm2610_vm0, %v2586_v29, %v2634_v58  ;;  %vm2609_vm14 = vcmp.gt.f32.partialorder %v2585_v59, 0.0  ;;  %v2633_v47 = vmul.f32 0.2, %v2585_v59  ;;  %v2617_v52 = vmul.f32 0.2, %v2569_v38 }
 0xa1d   :  { %v3042_v55 = vmul.f32 %v17618_v57, %v17625_v11  ;;  %v17629_v54 = vsel %vm2594_vm2, %v2570_v42, %v2618_v49  ;;  %vm2593_vm13 = vcmp.gt.f32.partialorder %v2569_v38, 0.0  ;;  %vm2612_vm12 = vcmp.gt.f32.partialorder %v2588_v13, 0.0 }
 0xa1e   :  { %v17631_v1 = vsel %vm2609_vm14, %v2585_v59, %v2633_v47  ;;  %v2636_v3 = vmul.f32 0.2, %v2588_v13  ;;  %vm2611_vm11 = vcmp.gt.f32.partialorder %v2587_v33, 0.0  ;;  %v2635_v14 = vmul.f32 0.2, %v2587_v33 }
 0xa1f   :  { %3107 = vrot.lane.b32.xlu0 %v3042_v55, %s16428_s8  ;;  %v3041_v8 = vmul.f32 %v17618_v57, %v17631_v1  ;;  %v2590_v10 = vadd.f32 %v2552_v43, %v17552_v40  ;;  %v2589_v17 = vadd.f32 %v2552_v43, %v17554_v63  ;;  %v17638_v19 = vsel %vm2593_vm13, %v2569_v38, %v2617_v52 }
 0xa20   :  { %v2572_v20 = vadd.f32 %v2516_v62, %v17552_v40  ;;  %v2571_v2 = vadd.f32 %v2516_v62, %v17554_v63  ;;  %v2574_v9 = vadd.f32 %v2520_v12, %v17552_v40  ;;  %v3026_v6 = vmul.f32 %v17618_v57, %v17629_v54 }
 0xa21   :  { %3105 = vrot.lane.b32.xlu1 %v3041_v8, %s16428_s8  ;;  %v17646_v24 = vsel %vm2612_vm12, %v2588_v13, %v2636_v3  ;;  %v17648_v22 = vsel %vm2611_vm11, %v2587_v33, %v2635_v14  ;;  %v2638_v30 = vmul.f32 0.2, %v2590_v10  ;;  %v3025_v28 = vmul.f32 %v17618_v57, %v17638_v19 }
 0xa22   :  { %vm2614_vm0 = vcmp.gt.f32.partialorder %v2590_v10, 0.0  ;;  %v2637_v21 = vmul.f32 0.2, %v2589_v17  ;;  %vm2613_vm2 = vcmp.gt.f32.partialorder %v2589_v17, 0.0  ;;  %v3044_v45 = vmul.f32 %v17618_v57, %v17646_v24 }
 0xa23   :  { %3075 = vrot.lane.b32.xlu0 %v3026_v6, %s16428_s8  ;;  %v3043_v29 = vmul.f32 %v17618_v57, %v17648_v22  ;;  %v2573_v51 = vadd.f32 %v2520_v12, %v17554_v63  ;;  %v17659_v61 = vsel %vm2614_vm0, %v2590_v10, %v2638_v30  ;;  %vm2596_vm11 = vcmp.gt.f32.partialorder %v2572_v20, 0.0 }
 0xa24   :  { %v2620_v23 = vmul.f32 0.2, %v2572_v20  ;;  %vm2595_vm12 = vcmp.gt.f32.partialorder %v2571_v2, 0.0  ;;  %v17662_v39 = vsel %vm2613_vm2, %v2589_v17, %v2637_v21  ;;  %v2619_v31 = vmul.f32 0.2, %v2571_v2 }
 0xa25   :  { %3073 = vrot.lane.b32.xlu1 %v3025_v28, %s16428_s8  ;;  %vm2598_vm13 = vcmp.gt.f32.partialorder %v2574_v9, 0.0  ;;  %v2622_v41 = vmul.f32 0.2, %v2574_v9  ;;  %v2621_v26 = vmul.f32 0.2, %v2573_v51  ;;  %v2577_v38 = vadd.f32 %v17582_v27, %v17554_v63 }
 0xa26   :  { %v2626_v35 = vmul.f32 0.2, %v17597_v53  ;;  %v17669_v42 = vadd.f32 %v17579_v60, %v17554_v63  ;;  %v2484_v43 = vcombine.high %v17575_v32, %v17575_v32  ;;  %v3046_v58 = vmul.f32 %v17618_v57, %v17659_v61 }
 0xa27   :  { %3111 = vrot.lane.b32.xlu0 %v3044_v45, %s16428_s8  ;;  %vm2597_vm14 = vcmp.gt.f32.partialorder %v2573_v51, 0.0  ;;  %vm2602_vm0 = vcmp.gt.f32.partialorder %v17597_v53, 0.0  ;;  %v2644_v59 = vsel %vm2596_vm11, %v2572_v20, %v2620_v23  ;;  %v3045_v27 = vmul.f32 %v17618_v57, %v17662_v39 }
 0xa28   :  { %v2643_v60 = vsel %vm2595_vm12, %v2571_v2, %v2619_v31  ;;  %v2646_v49 = vsel %vm2598_vm13, %v2574_v9, %v2622_v41  ;;  %v2640_v32 = vmul.f32 0.2, %v17591_v37  ;;  %v2645_v62 = vsel %vm2597_vm14, %v2573_v51, %v2621_v26 }
 0xa29   :  { %3109 = vrot.lane.b32.xlu1 %v3043_v29, %s16428_s8  ;;  %v2650_v12 = vsel %vm2602_vm0, %v17597_v53, %v2626_v35  ;;  %v2625_v13 = vmul.f32 0.2, %v2577_v38  ;;  %vm2616_vm2 = vcmp.gt.f32.partialorder %v17591_v37, 0.0  ;;  %v17687_v33 = vrot.slane %v17535_v0, %v17047_v25 }
 0xa2a   :  { %v2540_v47 = vrot.slane %v2484_v43, %v17047_v25  ;;  %v3028_v52 = vmul.f32 %v17618_v57, %v2644_v59  ;;  %vm2601_vm11 = vcmp.gt.f32.partialorder %v2577_v38, 0.0  ;;  %v3027_v55 = vmul.f32 %v17618_v57, %v2643_v60 }
 0xa2b   :  { %3115 = vrot.lane.b32.xlu0 %v3046_v58, %s16428_s8  ;;  %v3030_v3 = vmul.f32 %v17618_v57, %v2646_v49  ;;  %vm2600_vm12 = vcmp.gt.f32.partialorder %v17604_v15, 0.0  ;;  %v2624_v53 = vmul.f32 0.2, %v17604_v15  ;;  %v3029_v0 = vmul.f32 %v17618_v57, %v2645_v62 }
 0xa2c   :  { %v3034_v8 = vmul.f32 %v17618_v57, %v2650_v12  ;;  %v17700_v14 = vsel %vm2616_vm2, %v17591_v37, %v2640_v32  ;;  %vm2615_vm13 = vcmp.gt.f32.partialorder %v17669_v42, 0.0  ;;  %v2649_v10 = vsel %vm2601_vm11, %v2577_v38, %v2625_v13 }
 0xa2d   :  { %3113 = vrot.lane.b32.xlu1 %v3045_v27, %s16428_s8  ;;  %v2639_v17 = vmul.f32 0.2, %v17669_v42  ;;  %vm2599_vm14 = vcmp.gt.f32.partialorder %v17601_v44, 0.0  ;;  %v2623_v20 = vmul.f32 0.2, %v17601_v44  ;;  %vm2604_vm0 = vcmp.gt.f32.partialorder %v17610_v48, 0.0 }
 0xa2e   :  { %v2628_v2 = vmul.f32 0.2, %v17610_v48  ;;  %v2627_v9 = vmul.f32 0.2, %v17607_v46  ;;  %v2584_v37 = vadd.f32 %v2540_v47, %v17552_v40  ;;  %vm2603_vm2 = vcmp.gt.f32.partialorder %v17607_v46, 0.0 }
 0xa2f   :  { %3079 = vrot.lane.b32.xlu0 %v3028_v52, %s16428_s8  ;;  %v2630_v6 = vmul.f32 0.2, %v17616_v56  ;;  %v2583_v30 = vadd.f32 %v2540_v47, %v17554_v63  ;;  %v17716_v28 = vmul.f32 %v17687_v33, %v17629_v54  ;;  %v2648_v21 = vsel %vm2600_vm12, %v17604_v15, %v2624_v53 }
 0xa30   :  { %vm2606_vm11 = vcmp.gt.f32.partialorder %v17616_v56, 0.0  ;;  %v2629_v45 = vmul.f32 0.2, %v17613_v50  ;;  %v17726_v29 = vmul.f32 %v17687_v33, %v17638_v19  ;;  %v3033_v51 = vmul.f32 %v17618_v57, %v2649_v10 }
 0xa31   :  { %3077 = vrot.lane.b32.xlu1 %v3027_v55, %s16428_s8  ;;  %v2647_v54 = vsel %vm2599_vm14, %v17601_v44, %v2623_v20  ;;  %vm2605_vm10 = vcmp.gt.f32.partialorder %v17613_v50, 0.0  ;;  %v17734_v23 = vmul.f32 %v17687_v33, %v2644_v59  ;;  %v2652_v15 = vsel %vm2604_vm0, %v17610_v48, %v2628_v2 }
 0xa32   :  { %v2651_v19 = vsel %vm2603_vm2, %v17607_v46, %v2627_v9  ;;  %v17742_v31 = vmul.f32 %v17687_v33, %v2643_v60  ;;  %v17745_v41 = vmul.f32 %v17687_v33, %v2646_v49  ;;  %v2654_v44 = vsel %vm2606_vm11, %v17616_v56, %v2630_v6 }
 0xa33   :  { %3083 = vrot.lane.b32.xlu0 %v3030_v3, %s16428_s8  ;;  %v2632_v26 = vmul.f32 0.2, %v2584_v37  ;;  %v2631_v35 = vmul.f32 0.2, %v2583_v30  ;;  %v17749_v38 = vmul.f32 %v17687_v33, %v2645_v62  ;;  %v2653_v43 = vsel %vm2605_vm10, %v17613_v50, %v2629_v45 }
 0xa34   :  { %vm2608_vm12 = vcmp.gt.f32.partialorder %v2584_v37, 0.0  ;;  %vm2607_vm14 = vcmp.gt.f32.partialorder %v2583_v30, 0.0  ;;  %v17754_v46 = vmul.f32 %v17687_v33, %v2648_v21  ;;  %v2663_v48 = vsel %vm2615_vm13, %v17669_v42, %v2639_v17 }
 0xa35   :  { %3081 = vrot.lane.b32.xlu1 %v3029_v0, %s16428_s8  ;;  %v17760_v56 = vmul.f32 %v17687_v33, %v2647_v54  ;;  %v17763_v58 = vmul.f32 %v17687_v33, %v2650_v12  ;;  %v17766_v59 = vmul.f32 %v17687_v33, %v2649_v10  ;;  %v3048_v50 = vmul.f32 %v17618_v57, %v17700_v14 }
 0xa36   :  { %v17772_v27 = vmul.f32 %v17687_v33, %v2652_v15  ;;  %v17775_v60 = vmul.f32 %v17687_v33, %v2651_v19  ;;  %v17778_v42 = vmul.f32 %v17687_v33, %v2654_v44  ;;  %v2656_v49 = vsel %vm2608_vm12, %v2584_v37, %v2632_v26 }
 0xa37   :  { %3091 = vrot.lane.b32.xlu0 %v3034_v8, %s16428_s8  ;;  %v2655_v32 = vsel %vm2607_vm14, %v2583_v30, %v2631_v35  ;;  %v17781_v62 = vmul.f32 %v17687_v33, %v2653_v43  ;;  %v3047_v12 = vmul.f32 %v17618_v57, %v2663_v48  ;;  %v17787_v13 = vmul.f32 %v17687_v33, %v17625_v11 }
 0xa38   :  { %v17791_v47 = vmul.f32 %v17687_v33, %v17631_v1  ;;  %v17795_v52 = vmul.f32 %v17687_v33, %v17646_v24  ;;  %v17799_v55 = vmul.f32 %v17687_v33, %v17648_v22  ;;  %v3032_v3 = vmul.f32 %v17618_v57, %v2648_v21 }
 0xa39   :  { %3089 = vrot.lane.b32.xlu1 %v3033_v51, %s16428_s8  ;;  %v17804_v53 = vmul.f32 %v17687_v33, %v2656_v49  ;;  %v17807_v11 = vmul.f32 %v17687_v33, %v2655_v32  ;;  %v17811_v1 = vmul.f32 %v17687_v33, %v17659_v61  ;;  %v17815_v24 = vmul.f32 %v17687_v33, %v17662_v39 }
 0xa3a   :  { %v3031_v22 = vmul.f32 %v17618_v57, %v2647_v54  ;;  %v17821_v0 = vmul.f32 %v17687_v33, %v17700_v14  ;;  %v17824_v8 = vmul.f32 %v17687_v33, %v2663_v48  ;;  %v3036_v61 = vmul.f32 %v17618_v57, %v2652_v15 }
 0xa3b   :  { %3119 = vrot.lane.b32.xlu0 %v3048_v50, %s16428_s8  ;;  %v3035_v39 = vmul.f32 %v17618_v57, %v2651_v19  ;;  %v3038_v10 = vmul.f32 %v17618_v57, %v2654_v44  ;;  %v3037_v14 = vmul.f32 %v17618_v57, %v2653_v43  ;;  %v3040_v33 = vmul.f32 %v17618_v57, %v2656_v49 }
 0xa3c   :  { %v3039_v17 = vmul.f32 %v17618_v57, %v2655_v32  ;;  %vm20742_vm10 = vcmask 1047559   ;;  %vm20743_vm13 = vcmp.gt.f32.partialorder %v17412_v5, 0.0  ;;  %vm20744_vm0 = vcmask 97280  }
 0xa3d   :  { %3117 = vrot.lane.b32.xlu1 %v3047_v12, %s16428_s8  ;;  %vm20745_vm2 = vcmp.gt.f32.partialorder %v17432_v36, 0.0  ;;  %vm20746_vm11 = vcmask 93184   ;;  %vm20748_vm14 = vmmov %vm20742_vm10 }
 0xa3f   :  { %3087 = vrot.lane.b32.xlu0 %v3032_v3, %s16428_s8 }
 0xa41   :  { %3085 = vrot.lane.b32.xlu1 %v3031_v22, %s16428_s8 }
 0xa43   :  { %3095 = vrot.lane.b32.xlu0 %v3036_v61, %s16428_s8 }
 0xa45   :  { %3093 = vrot.lane.b32.xlu1 %v3035_v39, %s16428_s8 }
 0xa47   :  { %3099 = vrot.lane.b32.xlu0 %v3038_v10, %s16428_s8 }
 0xa49   :  { %3097 = vrot.lane.b32.xlu1 %v3037_v14, %s16428_s8 }
 0xa4b   :  { %3103 = vrot.lane.b32.xlu0 %v3040_v33, %s16428_s8 }
 0xa4d   :  { %3101 = vrot.lane.b32.xlu1 %v3039_v17, %s16428_s8 }
 0xa91   :  { %v3108_v20 = vpop.permute.xlu0 %3107 }
 0xa92   :  { %v3196_v2 = vsel %vm1400_vm15, %v3108_v20, 0.0 }
 0xa93   :  { %v3106_v9 = vpop.permute.xlu1 %3105  ;;  %3197 = vadd.xlane.f32.xlu1 %v3196_v2 }
 0xa94   :  { %v3193_v37 = vsel %vm20647_vm1, %v3106_v9, 0.0 }
 0xa95   :  { %3194 = vadd.xlane.f32.xlu0 %v3193_v37  ;;  %v3076_v6 = vpop.permute.xlu0 %3075 }
 0xa96   :  { %v3148_v30 = vsel %vm1400_vm15, %v3076_v6, 0.0 }
 0xa97   :  { %v3074_v21 = vpop.permute.xlu1 %3073 }
 0xa98   :  { %v3145_v45 = vsel %vm20647_vm1, %v3074_v21, 0.0 }
 0xa99   :  { %3149 = vadd.xlane.f32.xlu0 %v3148_v30  ;;  %3146 = vadd.xlane.f32.xlu1 %v3145_v45  ;;  %v3112_v51 = vpop.permute.xlu0 %3111 }
 0xa9a   :  { %v3202_v57 = vsel %vm1400_vm15, %v3112_v51, 0.0 }
 0xa9b   :  { %v3110_v54 = vpop.permute.xlu1 %3109 }
 0xa9c   :  { %v3199_v15 = vsel %vm20647_vm1, %v3110_v54, 0.0 }
 0xa9d   :  { %3203 = vadd.xlane.f32.xlu1 %v3202_v57  ;;  %3200 = vadd.xlane.f32.xlu0 %v3199_v15  ;;  %v3116_v19 = vpop.permute.xlu0 %3115 }
 0xa9e   :  { %v3208_v44 = vsel %vm1400_vm15, %v3116_v19, 0.0 }
 0xa9f   :  { %v3114_v26 = vpop.permute.xlu1 %3113 }
 0xaa0   :  { %v3205_v35 = vsel %vm20647_vm1, %v3114_v26, 0.0 }
 0xaa1   :  { %3209 = vadd.xlane.f32.xlu1 %v3208_v44  ;;  %3206 = vadd.xlane.f32.xlu0 %v3205_v35  ;;  %v3080_v43 = vpop.permute.xlu0 %3079 }
 0xaa2   :  { %v3154_v48 = vsel %vm1400_vm15, %v3080_v43, 0.0 }
 0xaa3   :  { %v3078_v50 = vpop.permute.xlu1 %3077 }
 0xaa4   :  { %v3151_v49 = vsel %vm20647_vm1, %v3078_v50, 0.0  ;;  %v2696_v50 = vsel %vm1400_vm15, %v17716_v28, 0.0  ;;  %v2705_v28 = vsel %vm20647_vm1, %v17749_v38, 0.0  ;;  %v2726_v38 = vsel %vm1400_vm15, %v17772_v27, 0.0 }
 0xaa5   :  { %3155 = vadd.xlane.f32.xlu1 %v3154_v48  ;;  %3152 = vadd.xlane.f32.xlu0 %v3151_v49  ;;  %v3084_v32 = vpop.permute.xlu0 %3083  ;;  %v2693_v49 = vsel %vm20647_vm1, %v17726_v29, 0.0  ;;  %v2714_v29 = vsel %vm1400_vm15, %v17754_v46, 0.0  ;;  %v2723_v46 = vsel %vm20647_vm1, %v17775_v60, 0.0  ;;  %v2741_v27 = vsel %vm20647_vm1, %v17791_v47, 0.0 }
 0xaa6   :  { %v3160_v12 = vsel %vm1400_vm15, %v3084_v32, 0.0  ;;  %v2702_v32 = vsel %vm1400_vm15, %v17734_v23, 0.0  ;;  %v2711_v23 = vsel %vm20647_vm1, %v17760_v56, 0.0  ;;  %v2732_v56 = vsel %vm1400_vm15, %v17778_v42, 0.0 }
 0xaa7   :  { %v3082_v3 = vpop.permute.xlu1 %3081  ;;  %v2750_v60 = vsel %vm1400_vm15, %v17795_v52, 0.0  ;;  %v2747_v42 = vsel %vm20647_vm1, %v17799_v55, 0.0  ;;  %v2756_v47 = vsel %vm1400_vm15, %v17811_v1, 0.0  ;;  %v2753_v52 = vsel %vm20647_vm1, %v17815_v24, 0.0 }
 0xaa8   :  { %v3157_v22 = vsel %vm20647_vm1, %v3082_v3, 0.0  ;;  %v2708_v3 = vsel %vm1400_vm15, %v17745_v41, 0.0  ;;  %v2717_v41 = vsel %vm20647_vm1, %v17766_v59, 0.0  ;;  %v2744_v59 = vsel %vm1400_vm15, %v17787_v13, 0.0 }
 0xaa9   :  { %3161 = vadd.xlane.f32.xlu1 %v3160_v12  ;;  %3158 = vadd.xlane.f32.xlu0 %v3157_v22  ;;  %v3092_v61 = vpop.permute.xlu0 %3091  ;;  %v2699_v12 = vsel %vm20647_vm1, %v17742_v31, 0.0  ;;  %v2720_v31 = vsel %vm1400_vm15, %v17763_v58, 0.0  ;;  %v2729_v58 = vsel %vm20647_vm1, %v17781_v62, 0.0  ;;  %v2738_v62 = vsel %vm1400_vm15, %v17804_v53, 0.0 }
 0xaaa   :  { %v3172_v39 = vsel %vm1400_vm15, %v3092_v61, 0.0  ;;  %v2735_v13 = vsel %vm20647_vm1, %v17807_v11, 0.0  ;;  %v2762_v55 = vsel %vm1400_vm15, %v17821_v0, 0.0  ;;  %v2759_v53 = vsel %vm20647_vm1, %v17824_v8, 0.0 }
 0xaab   :  { %v3090_v10 = vpop.permute.xlu1 %3089 }
 0xaac   :  { %v3169_v14 = vsel %vm20647_vm1, %v3090_v10, 0.0 }
 0xaad   :  { %3173 = vadd.xlane.f32.xlu1 %v3172_v39  ;;  %3170 = vadd.xlane.f32.xlu0 %v3169_v14  ;;  %v3120_v33 = vpop.permute.xlu0 %3119 }
 0xaae   :  { %v3214_v43 = vsel %vm1400_vm15, %v3120_v33, 0.0 }
 0xaaf   :  { %v3118_v17 = vpop.permute.xlu1 %3117 }
 0xab0   :  { %v3211_v48 = vsel %vm20647_vm1, %v3118_v17, 0.0 }
 0xab1   :  { %v3088_v20 = vpop.permute.xlu0 %3087 }
 0xab2   :  { %v3166_v2 = vsel %vm1400_vm15, %v3088_v20, 0.0 }
 0xab3   :  { %v3086_v9 = vpop.permute.xlu1 %3085  ;;  %3167 = vadd.xlane.f32.xlu1 %v3166_v2 }
 0xab4   :  { %v3163_v37 = vsel %vm20647_vm1, %v3086_v9, 0.0 }
 0xab5   :  { %3164 = vadd.xlane.f32.xlu0 %v3163_v37  ;;  %v3096_v6 = vpop.permute.xlu0 %3095 }
 0xab6   :  { %v3178_v30 = vsel %vm1400_vm15, %v3096_v6, 0.0 }
 0xab7   :  { %v3094_v21 = vpop.permute.xlu1 %3093  ;;  %3179 = vadd.xlane.f32.xlu1 %v3178_v30 }
 0xab8   :  { %v3175_v45 = vsel %vm20647_vm1, %v3094_v21, 0.0 }
 0xab9   :  { %3176 = vadd.xlane.f32.xlu0 %v3175_v45  ;;  %v3100_v51 = vpop.permute.xlu0 %3099 }
 0xaba   :  { %v3184_v57 = vsel %vm1400_vm15, %v3100_v51, 0.0 }
 0xabb   :  { %v3098_v54 = vpop.permute.xlu1 %3097  ;;  %3185 = vadd.xlane.f32.xlu1 %v3184_v57 }
 0xabc   :  { %v3181_v15 = vsel %vm20647_vm1, %v3098_v54, 0.0 }
 0xabd   :  { %3182 = vadd.xlane.f32.xlu0 %v3181_v15  ;;  %v3104_v19 = vpop.permute.xlu0 %3103 }
 0xabe   :  { %v3190_v44 = vsel %vm1400_vm15, %v3104_v19, 0.0  ;;  %vm20741_vm15 = vcmask 1046534  }
 0xabf   :  { %v3102_v26 = vpop.permute.xlu1 %3101  ;;  %3191 = vadd.xlane.f32.xlu1 %v3190_v44  ;;  %vm20747_vm12 = vmmov %vm20741_vm15 }
 0xac0   :  { %v3187_v35 = vsel %vm20647_vm1, %v3102_v26, 0.0 }
 0xac1   :  { %3188 = vadd.xlane.f32.xlu0 %v3187_v35 }
 0xac3   :  { %3215 = vadd.xlane.f32.xlu1 %v3214_v43 }
 0xac5   :  { %3212 = vadd.xlane.f32.xlu0 %v3211_v48 }
 0xac7   :  { %2697 = vadd.xlane.f32.xlu1 %v2696_v50 }
 0xac9   :  { %2694 = vadd.xlane.f32.xlu0 %v2693_v49 }
 0xacb   :  { %2703 = vadd.xlane.f32.xlu1 %v2702_v32 }
 0xacd   :  { %2700 = vadd.xlane.f32.xlu0 %v2699_v12 }
 0xacf   :  { %2709 = vadd.xlane.f32.xlu1 %v2708_v3 }
 0xad1   :  { %2706 = vadd.xlane.f32.xlu0 %v2705_v28 }
 0xad3   :  { %2715 = vadd.xlane.f32.xlu1 %v2714_v29 }
 0xad5   :  { %2712 = vadd.xlane.f32.xlu0 %v2711_v23 }
 0xad7   :  { %2721 = vadd.xlane.f32.xlu1 %v2720_v31 }
 0xad9   :  { %2718 = vadd.xlane.f32.xlu0 %v2717_v41 }
 0xadb   :  { %2727 = vadd.xlane.f32.xlu1 %v2726_v38 }
 0xadd   :  { %2724 = vadd.xlane.f32.xlu0 %v2723_v46 }
 0xadf   :  { %2733 = vadd.xlane.f32.xlu1 %v2732_v56 }
 0xae1   :  { %2730 = vadd.xlane.f32.xlu0 %v2729_v58 }
 0xae3   :  { %2745 = vadd.xlane.f32.xlu1 %v2744_v59 }
 0xae5   :  { %2742 = vadd.xlane.f32.xlu0 %v2741_v27 }
 0xae7   :  { %2751 = vadd.xlane.f32.xlu1 %v2750_v60 }
 0xae9   :  { %2748 = vadd.xlane.f32.xlu0 %v2747_v42 }
 0xaeb   :  { %2739 = vadd.xlane.f32.xlu1 %v2738_v62 }
 0xaed   :  { %2736 = vadd.xlane.f32.xlu0 %v2735_v13 }
 0xaef   :  { %2757 = vadd.xlane.f32.xlu1 %v2756_v47 }
 0xaf1   :  { %2754 = vadd.xlane.f32.xlu0 %v2753_v52 }
 0xaf3   :  { %2763 = vadd.xlane.f32.xlu1 %v2762_v55 }
 0xaf5   :  { %2760 = vadd.xlane.f32.xlu0 %v2759_v53 }
 0xb20   :  { %v17911_v22 = vpop.xlane.xlu1 %3197 }
 0xb21   :  { %v3320_v55 = vrot.slane %v17911_v22, %v17029_v7 }
 0xb22   :  { %v17913_v11 = vpop.xlane.xlu0 %3194 }
 0xb23   :  { %v3316_v52 = vrot.slane %v17913_v11, %v17025_v4 }
 0xb26   :  { %v3150_v61 = vpop.xlane.xlu0 %3149  ;;  %v3147_v39 = vpop.xlane.xlu1 %3146 }
 0xb27   :  { %v3248_v57 = vrot.slane %v3150_v61, %v17029_v7  ;;  %v3244_v54 = vrot.slane %v3147_v39, %v17025_v4 }
 0xb29   :  { %v3249_v48 = vsel %vm1507_vm4, %v3248_v57, %v3244_v54 }
 0xb2a   :  { %v3201_v1 = vpop.xlane.xlu0 %3200  ;;  %v3204_v10 = vpop.xlane.xlu1 %3203 }
 0xb2b   :  { %v3325_v56 = vrot.slane %v3201_v1, %v17025_v4  ;;  %v3329_v58 = vrot.slane %v3204_v10, %v17029_v7 }
 0xb2d   :  { %v3330_v10 = vsel %vm1507_vm4, %v3329_v58, %v3325_v56 }
 0xb2e   :  { %v3207_v14 = vpop.xlane.xlu0 %3206  ;;  %v3210_v33 = vpop.xlane.xlu1 %3209 }
 0xb2f   :  { %v3334_v60 = vrot.slane %v3207_v14, %v17025_v4  ;;  %v3338_v42 = vrot.slane %v3210_v33, %v17029_v7 }
 0xb31   :  { %v3339_v11 = vsel %vm1507_vm4, %v3338_v42, %v3334_v60 }
 0xb32   :  { %v3153_v24 = vpop.xlane.xlu0 %3152  ;;  %v3156_v17 = vpop.xlane.xlu1 %3155 }
 0xb33   :  { %v3253_v8 = vrot.slane %v3153_v24, %v17025_v4  ;;  %v3257_v30 = vrot.slane %v3156_v17, %v17029_v7 }
 0xb35   :  { %v3258_v26 = vsel %vm1507_vm4, %v3257_v30, %v3253_v8 }
 0xb36   :  { %v3162_v20 = vpop.xlane.xlu1 %3161  ;;  %v3159_v2 = vpop.xlane.xlu0 %3158  ;;  %v3349_v12 = vsel %vm1608_vm5, %v3258_v26, %v3249_v48 }
 0xb37   :  { %v3262_v21 = vrot.slane %v3159_v2, %v17025_v4  ;;  %v3266_v45 = vrot.slane %v3162_v20, %v17029_v7  ;;  %v3321_v20 = vsel %vm1507_vm4, %v3320_v55, %v3316_v52 }
 0xb39   :  { %v3267_v35 = vsel %vm1507_vm4, %v3266_v45, %v3262_v21 }
 0xb3a   :  { %v3174_v0 = vpop.xlane.xlu1 %3173  ;;  %v3171_v9 = vpop.xlane.xlu0 %3170  ;;  %v3350_v31 = vsel %vm1610_vm6, %v3267_v35, %v3349_v12 }
 0xb3b   :  { %v3280_v3 = vrot.slane %v3171_v9, %v17025_v4  ;;  %v3284_v28 = vrot.slane %v3174_v0, %v17029_v7 }
 0xb3d   :  { %v3285_v62 = vsel %vm1507_vm4, %v3284_v28, %v3280_v3 }
 0xb40   :  { %v3168_v37 = vpop.xlane.xlu1 %3167 }
 0xb41   :  { %v3275_v19 = vrot.slane %v3168_v37, %v17029_v7 }
 0xb42   :  { %v3165_v6 = vpop.xlane.xlu0 %3164 }
 0xb43   :  { %v3271_v15 = vrot.slane %v3165_v6, %v17025_v4  ;;  %v3356_v6 = vsel %vm1608_vm5, %v3330_v10, %v3321_v20 }
 0xb44   :  { %v3180_v51 = vpop.xlane.xlu1 %3179  ;;  %v3357_v30 = vsel %vm1610_vm6, %v3339_v11, %v3356_v6 }
 0xb45   :  { %v3276_v50 = vsel %vm1507_vm4, %v3275_v19, %v3271_v15  ;;  %v3293_v32 = vrot.slane %v3180_v51, %v17029_v7 }
 0xb46   :  { %v3177_v44 = vpop.xlane.xlu0 %3176  ;;  %v3351_v38 = vsel %vm1612_vm7, %v3276_v50, %v3350_v31 }
 0xb47   :  { %v3289_v49 = vrot.slane %v3177_v44, %v17025_v4  ;;  %v3352_v61 = vsel %vm1614_vm8, %v3285_v62, %v3351_v38 }
 0xb48   :  { %v3186_v43 = vpop.xlane.xlu1 %3185 }
 0xb49   :  { %v3302_v23 = vrot.slane %v3186_v43, %v17029_v7  ;;  %v3294_v59 = vsel %vm1507_vm4, %v3293_v32, %v3289_v49 }
 0xb4a   :  { %v3183_v29 = vpop.xlane.xlu0 %3182  ;;  %v3353_v1 = vsel %vm1616_vm9, %v3294_v59, %v3352_v61 }
 0xb4b   :  { %v3298_v41 = vrot.slane %v3183_v29, %v17025_v4 }
 0xb4c   :  { %v3192_v46 = vpop.xlane.xlu1 %3191 }
 0xb4d   :  { %v3311_v27 = vrot.slane %v3192_v46, %v17029_v7  ;;  %v3303_v13 = vsel %vm1507_vm4, %v3302_v23, %v3298_v41 }
 0xb4e   :  { %v3189_v47 = vpop.xlane.xlu0 %3188  ;;  %v3354_v24 = vsel %vm20741_vm15, %v3303_v13, %v3353_v1  ;;  %vm20749_vm15 = vmmov %vm20743_vm13 }
 0xb4f   :  { %v3307_v53 = vrot.slane %v3189_v47, %v17025_v4 }
 0xb50   :  { %v3216_v39 = vpop.xlane.xlu1 %3215 }
 0xb51   :  { %v3347_v14 = vrot.slane %v3216_v39, %v17029_v7  ;;  %v3312_v33 = vsel %vm1507_vm4, %v3311_v27, %v3307_v53 }
 0xb52   :  { %v3213_v17 = vpop.xlane.xlu0 %3212  ;;  %v3355_v22 = vsel %vm20742_vm10, %v3312_v33, %v3354_v24  ;;  %vm20750_vm10 = vmmov %vm20744_vm0 }
 0xb53   :  { %v3343_v2 = vrot.slane %v3213_v17, %v17025_v4  ;;  %v17961_v0 = vsel %vm20743_vm13, %v3355_v22, -1e+30  ;;  %vm20751_vm13 = vmmov %vm20745_vm2 }
 0xb54   :  { %v3363_v9 = vsel %vm20744_vm0, %v17961_v0, -inf  ;;  %v2698_v37 = vpop.xlane.xlu1 %2697  ;;  %vm20752_vm0 = vmmov %vm20746_vm11 }
 0xb55   :  { %3364 = vmax.xlane.f32.xlu0 %v3363_v9  ;;  %v3348_v8 = vsel %vm1507_vm4, %v3347_v14, %v3343_v2  ;;  %v2796_v38 = vrot.slane %v2698_v37, %v17029_v7 }
 0xb56   :  { %v2695_v21 = vpop.xlane.xlu0 %2694  ;;  %v3358_v45 = vsel %vm1612_vm7, %v3348_v8, %v3357_v30 }
 0xb57   :  { %v17971_v51 = vsel %vm20745_vm2, %v3358_v45, -1e+30  ;;  %v2792_v46 = vrot.slane %v2695_v21, %v17025_v4  ;;  %vm20753_vm2 = vmmov %vm20750_vm10 }
 0xb58   :  { %v3366_v57 = vsel %vm20746_vm11, %v17971_v51, -inf  ;;  %v2704_v54 = vpop.xlane.xlu1 %2703  ;;  %vm20754_vm11 = vmmov %vm20752_vm0 }
 0xb59   :  { %3367 = vmax.xlane.f32.xlu1 %v3366_v57  ;;  %v2805_v28 = vrot.slane %v2704_v54, %v17029_v7  ;;  %v2797_v61 = vsel %vm1507_vm4, %v2796_v38, %v2792_v46 }
 0xb5a   :  { %v2701_v15 = vpop.xlane.xlu0 %2700 }
 0xb5b   :  { %v2801_v29 = vrot.slane %v2701_v15, %v17025_v4 }
 0xb5c   :  { %v2710_v19 = vpop.xlane.xlu1 %2709 }
 0xb5d   :  { %v2814_v23 = vrot.slane %v2710_v19, %v17029_v7  ;;  %v2806_v42 = vsel %vm1507_vm4, %v2805_v28, %v2801_v29 }
 0xb5e   :  { %v2707_v44 = vpop.xlane.xlu0 %2706  ;;  %v2897_v1 = vsel %vm1608_vm5, %v2806_v42, %v2797_v61 }
 0xb5f   :  { %v2810_v31 = vrot.slane %v2707_v44, %v17025_v4 }
 0xb60   :  { %v2716_v26 = vpop.xlane.xlu1 %2715 }
 0xb61   :  { %v2823_v56 = vrot.slane %v2716_v26, %v17029_v7  ;;  %v2815_v47 = vsel %vm1507_vm4, %v2814_v23, %v2810_v31 }
 0xb62   :  { %v2713_v35 = vpop.xlane.xlu0 %2712  ;;  %v2898_v33 = vsel %vm1610_vm6, %v2815_v47, %v2897_v1 }
 0xb63   :  { %v2819_v58 = vrot.slane %v2713_v35, %v17025_v4 }
 0xb64   :  { %v2722_v43 = vpop.xlane.xlu1 %2721 }
 0xb65   :  { %v2832_v59 = vrot.slane %v2722_v43, %v17029_v7  ;;  %v2824_v39 = vsel %vm1507_vm4, %v2823_v56, %v2819_v58 }
 0xb66   :  { %v2719_v48 = vpop.xlane.xlu0 %2718  ;;  %v2899_v17 = vsel %vm1612_vm7, %v2824_v39, %v2898_v33 }
 0xb67   :  { %v2828_v27 = vrot.slane %v2719_v48, %v17025_v4 }
 0xb68   :  { %v2728_v50 = vpop.xlane.xlu1 %2727 }
 0xb69   :  { %v2841_v62 = vrot.slane %v2728_v50, %v17029_v7  ;;  %v2833_v10 = vsel %vm1507_vm4, %v2832_v59, %v2828_v27 }
 0xb6a   :  { %v2725_v49 = vpop.xlane.xlu0 %2724  ;;  %v2900_v2 = vsel %vm1614_vm8, %v2833_v10, %v2899_v17 }
 0xb6b   :  { %v2837_v13 = vrot.slane %v2725_v49, %v17025_v4 }
 0xb6c   :  { %v2734_v32 = vpop.xlane.xlu1 %2733 }
 0xb6d   :  { %v2850_v52 = vrot.slane %v2734_v32, %v17029_v7  ;;  %v2842_v24 = vsel %vm1507_vm4, %v2841_v62, %v2837_v13 }
 0xb6e   :  { %v2731_v12 = vpop.xlane.xlu0 %2730  ;;  %v2901_v6 = vsel %vm1616_vm9, %v2842_v24, %v2900_v2 }
 0xb6f   :  { %v2846_v55 = vrot.slane %v2731_v12, %v17025_v4 }
 0xb70   :  { %v2746_v3 = vpop.xlane.xlu1 %2745 }
 0xb71   :  { %v2851_v22 = vsel %vm1507_vm4, %v2850_v52, %v2846_v55  ;;  %v2868_v19 = vrot.slane %v2746_v3, %v17029_v7 }
 0xb72   :  { %v2743_v41 = vpop.xlane.xlu0 %2742  ;;  %v2902_v45 = vsel %vm20747_vm12, %v2851_v22, %v2901_v6  ;;  %vm20755_vm12 = vmmov %vm20753_vm2 }
 0xb73   :  { %v2864_v44 = vrot.slane %v2743_v41, %v17025_v4 }
 0xb74   :  { %v2752_v60 = vpop.xlane.xlu1 %2751 }
 0xb75   :  { %v2877_v8 = vrot.slane %v2752_v60, %v17029_v7  ;;  %v2869_v3 = vsel %vm1507_vm4, %v2868_v19, %v2864_v44  ;;  %v870_v19 = vld [vmem:[%s20759_s27 + $0x8] sm:$0xff]  ;;  %v871_v44 = vld [vmem:[%s20759_s27 + $0x10] sm:$0xff] }
 0xb76   :  { %v2749_v53 = vpop.xlane.xlu0 %2748 }
 0xb77   :  { %v2873_v30 = vrot.slane %v2749_v53, %v17025_v4 }
 0xb78   :  { %v2740_v14 = vpop.xlane.xlu1 %2739 }
 0xb79   :  { %v2859_v11 = vrot.slane %v2740_v14, %v17029_v7  ;;  %v2878_v50 = vsel %vm1507_vm4, %v2877_v8, %v2873_v30 }
 0xb7a   :  { %v2737_v20 = vpop.xlane.xlu0 %2736  ;;  %v2904_v29 = vsel %vm1608_vm5, %v2878_v50, %v2869_v3 }
 0xb7b   :  { %v2855_v9 = vrot.slane %v2737_v20, %v17025_v4 }
 0xb7c   :  { %v2758_v37 = vpop.xlane.xlu1 %2757 }
 0xb7d   :  { %v2860_v21 = vsel %vm1507_vm4, %v2859_v11, %v2855_v9  ;;  %v2886_v57 = vrot.slane %v2758_v37, %v17029_v7 }
 0xb7e   :  { %v2755_v54 = vpop.xlane.xlu0 %2754  ;;  %v2903_v15 = vsel %vm20748_vm14, %v2860_v21, %v2902_v45  ;;  %vm20756_vm14 = vmmov %vm20752_vm0 }
 0xb7f   :  { %v2882_v26 = vrot.slane %v2755_v54, %v17025_v4  ;;  %v2909_v35 = vsel %vm20749_vm15, %v2903_v15, -1e+30  ;;  %vm20757_vm15 = vmmov %vm20753_vm2  ;;  %v869_v15 = vld [vmem:[%s20759_s27] sm:$0xff] }
 0xb80   :  { %v2911_v43 = vsel %vm20750_vm10, %v2909_v35, -inf  ;;  %v2764_v48 = vpop.xlane.xlu1 %2763  ;;  %vm20758_vm10 = vmmov %vm20753_vm2 }
 0xb81   :  { %2912 = vmax.xlane.f32.xlu0 %v2911_v43  ;;  %v2895_v49 = vrot.slane %v2764_v48, %v17029_v7  ;;  %v2887_v32 = vsel %vm1507_vm4, %v2886_v57, %v2882_v26  ;;  %v872_v43 = vld [vmem:[%s20759_s27 + $0x18] sm:$0xff] }
 0xb82   :  { %v2761_v12 = vpop.xlane.xlu0 %2760  ;;  %v2905_v31 = vsel %vm1610_vm6, %v2887_v32, %v2904_v29  ;;  %v13805_v50 = vpack.c.bf16 %v872_v43, %v871_v44  ;;  %v895_v32 = vld [vmem:[%s20762_s17 + $0x8] sm:$0xff]  ;;  %v878_v29 = vld [vmem:[%s20763_s28] sm:$0xff] }
 0xb83   :  { %v2891_v28 = vrot.slane %v2761_v12, %v17025_v4  ;;  %v896_v12 = vld [vmem:[%s20762_s17 + $0x10] sm:$0xff] }
 0xb85   :  { %v2896_v23 = vsel %vm1507_vm4, %v2895_v49, %v2891_v28  ;;  %v894_v49 = vld [vmem:[%s20762_s17] sm:$0xff]  ;;  %v897_v28 = vld [vmem:[%s20762_s17 + $0x18] sm:$0xff] }
 0xb86   :  { %v2906_v41 = vsel %vm1612_vm7, %v2896_v23, %v2905_v31  ;;  %v13809_v3 = vpack.c.bf16 %v895_v32, %v894_v49  ;;  %v13813_v23 = vpack.c.bf16 %v897_v28, %v896_v12  ;;  %v902_v31 = vld [vmem:[%s20764_s2] sm:$0xff]  ;;  %v11826_v12 = vld [vmem:[#allocation32] ss:$0 sm:$0xff] }
 0xb87   :  { %v2910_v38 = vsel %vm20751_vm13, %v2906_v41, -1e+30  ;;  %vm20760_vm13 = vmmov %vm20753_vm2  ;;  %v903_v41 = vld [vmem:[%s20764_s2 + $0x8] sm:$0xff] }
 0xb88   :  { %v2914_v46 = vsel %vm20752_vm0, %v2910_v38, -inf  ;;  %vm20761_vm0 = vmmov %vm20753_vm2 }
 0xb89   :  { %2915 = vmax.xlane.f32.xlu1 %v2914_v46  ;;  %v18060_v46 = vpack.c.bf16 %v903_v41, %v902_v31 }
 0xbe2   :  { %v3365_v56 = vpop.xlane.xlu0 %3364 }
 0xbe3   :  { %v3369_v58 = vsub.f32 %v17961_v0, %v3365_v56  ;;  %v915_v56 = vld [vmem:[%s20765_s24 + $0x8] sm:$0xff] }
 0xbe5   :  { %v3371_v59 = vmul.f32 1.442695, %v3369_v58 }
 0xbe6   :  { %v3368_v27 = vpop.xlane.xlu1 %3367 }
 0xbe7   :  { %14834 = vpow2.f32 %v3371_v59  ;;  %v3370_v60 = vsub.f32 %v17971_v51, %v3368_v27  ;;  %v879_v59 = vld [vmem:[%s20763_s28 + $0x8] sm:$0xff]  ;;  %v880_v27 = vld [vmem:[%s20763_s28 + $0x10] sm:$0xff] }
 0xbe9   :  { %v3373_v42 = vmul.f32 1.442695, %v3370_v60  ;;  %v881_v60 = vld [vmem:[%s20763_s28 + $0x18] sm:$0xff] }
 0xbeb   :  { %14836 = vpow2.f32 %v3373_v42  ;;  %v882_v42 = vld [vmem:[%s20763_s28 + $0x20] sm:$0xff] }
 0xbf1   :  { %v14835_v62 = vpop.eup %14834 }
 0xbf2   :  { %v3375_v13 = vsel %vm20753_vm2, %v14835_v62, 0.0  ;;  %vm20766_vm2 = vcmask 261120  }
 0xbf3   :  { %3376 = vadd.xlane.f32.xlu0 %v3375_v13  ;;  %v884_v13 = vld [vmem:[%s20763_s28 + $0x30] sm:$0xff] }
 0xbf5   :  { %v14837_v47 = vpop.eup %14836 }
 0xbf6   :  { %v3378_v52 = vsel %vm20754_vm11, %v14837_v47, 0.0  ;;  %vm20767_vm11 = vmmov %vm20766_vm2 }
 0xbf7   :  { %3379 = vadd.xlane.f32.xlu1 %v3378_v52  ;;  %v11824_v52 = vld [vmem:[#allocation27] ss:$0 sm:$0xff] }
 0xc09   :  { %14482 = vrot.lane.b32.xlu0 %v14481_v16, %s16428_s8 }
 0xc0e   :  { %v2913_v0 = vpop.xlane.xlu0 %2912 }
 0xc0f   :  { %v2917_v55 = vsub.f32 %v2909_v35, %v2913_v0  ;;  %v13801_v35 = vpack.c.bf16 %v870_v19, %v869_v15 }
 0xc11   :  { %v2919_v53 = vmul.f32 1.442695, %v2917_v55  ;;  %13802 = vmatprep.subr.bf16.mxu0 %v13801_v35 }
 0xc13   :  { %14838 = vpow2.f32 %v2919_v53 }
 0xc16   :  { %v2916_v51 = vpop.xlane.xlu1 %2915 }
 0xc17   :  { %v2918_v61 = vsub.f32 %v2910_v38, %v2916_v51  ;;  %v914_v38 = vld [vmem:[%s20765_s24] sm:$0xff] }
 0xc18   :  { %v13839_v58 = vpack.c.bf16 %v915_v56, %v914_v38  ;;  %v886_v38 = vld [vmem:[%s20763_s28 + $0x40] sm:$0xff]  ;;  %v904_v56 = vld [vmem:[%s20764_s2 + $0x10] sm:$0xff] }
 0xc19   :  { %v2921_v39 = vmul.f32 1.442695, %v2918_v61 }
 0xc1b   :  { %14840 = vpow2.f32 %v2921_v39 }
 0xc1d   :  { %v14839_v1 = vpop.eup %14838 }
 0xc1e   :  { %v2923_v10 = vsel %vm20755_vm12, %v14839_v1, 0.0  ;;  %vm20768_vm12 = vmmov %vm20766_vm2 }
 0xc1f   :  { %2924 = vadd.xlane.f32.xlu1 %v2923_v10 }
 0xc25   :  { %v14841_v14 = vpop.eup %14840 }
 0xc26   :  { %v2926_v33 = vsel %vm20756_vm14, %v14841_v14, 0.0  ;;  %vm20769_vm14 = vmmov %vm20766_vm2 }
 0xc27   :  { %2927 = vadd.xlane.f32.xlu1 %v2926_v33 }
 0xc80   :  { %v3377_v24 = vpop.xlane.xlu0 %3376 }
 0xc81   :  { %14842 = vrcp.f32 %v3377_v24 }
 0xc84   :  { %v3380_v40 = vpop.xlane.xlu1 %3379  ;;  %v14483_v63 = vpop.permute.xlu0 %14482 }
 0xc85   :  { %14844 = vrcp.f32 %v3380_v40  ;;  %v14485_v16 = vunpack.i.h.bf16 %v14483_v63  ;;  %v14484_v11 = vunpack.i.l.bf16 %v14483_v63 }
 0xc87   :  { %v13795_v17 = vpack.c.bf16 %v14485_v16, %v14484_v11 }
 0xc89   :  { %13797 = vmatprep.subr.msk.bf16.mxu1 %vm17057_vm3, %v13795_v17 }
 0xc8a   :  { %13800 = vmatpush3.bf16.msk.msra.mxu1 %vm17057_vm3, %v13795_v17  ;;  %v866_v17 = vld [vmem:[#allocation33] sm:$0x1] }
 0xc8b   :  { %v14843_v22 = vpop.eup %14842  ;;  %13810 = vmatprep.subr.bf16.mxu1 %v13809_v3 }
 0xc8c   :  { %v3383_v20 = vmul.f32 %v14843_v22, %v14835_v62  ;;  %v883_v62 = vld [vmem:[%s20763_s28 + $0x28] sm:$0xff] }
 0xc8e   :  { %12827 = vmatprep.mubr.msk.f32.mxu1 %vm20757_vm15, %v3383_v20  ;;  %vm20770_vm15 = vmmov %vm20766_vm2 }
 0xc8f   :  { %v14845_v2 = vpop.eup %14844 }
 0xc90   :  { %v3384_v9 = vmul.f32 %v14845_v2, %v14837_v47  ;;  %v885_v47 = vld [vmem:[%s20763_s28 + $0x38] sm:$0xff] }
 0xc92   :  { %12828 = vmatmul.mubr.msk.f32.vlgmr.msra.gmra.mrb[6].mxu1 %vm20758_vm10, %v3384_v9  ;;  %vm20771_vm10 = vmmov %vm20766_vm2 }
 0xc93   :  { %12849 = vmatprep.mubr.msk.f32.mxu1 %vm20766_vm2, %v878_v29  ;;  %13812 = vmatpush3.bf16.msra.mxu1 %v13809_v3 }
 0xc94   :  { %13814 = vmatprep.subr.bf16.mxu1 %v13813_v23 }
 0xc97   :  { %13816 = vmatpush3.bf16.msra.mxu1 %v13813_v23 }
 0xc98   :  { %13840 = vmatprep.subr.bf16.mxu1 %v13839_v58 }
 0xc9a   :  { %12850 = vmatmul.mubr.msk.f32.vlgmr.msra.gmra.mrb[8].mxu1 %vm20767_vm11, %v879_v59 }
 0xc9b   :  { %12852 = vmatprep.mubr.msk.f32.mxu1 %vm20768_vm12, %v880_v27  ;;  %13842 = vmatpush3.bf16.msra.mxu1 %v13839_v58  ;;  %v905_v58 = vld [vmem:[%s20764_s2 + $0x18] sm:$0xff]  ;;  %v887_v27 = vld [vmem:[%s20763_s28 + $0x48] sm:$0x7] }
 0xc9c   :  { %v13821_v59 = vpack.c.bf16 %v905_v58, %v904_v56 }
 0xc9e   :  { %12853 = vmatmul.mubr.msk.f32.gmra.mrb[10].mxu1 %vm20769_vm14, %v881_v60  ;;  %v916_v60 = vld [vmem:[%s20765_s24 + $0x10] sm:$0xff] }
 0xc9f   :  { %12855 = vmatprep.mubr.msk.f32.mxu1 %vm20770_vm15, %v882_v42  ;;  %v917_v42 = vld [vmem:[%s20765_s24 + $0x18] sm:$0xff] }
 0xca2   :  { %12856 = vmatmul.mubr.msk.f32.gmra.mrb[12].mxu1 %vm20771_vm10, %v883_v62  ;;  %v13843_v62 = vpack.c.bf16 %v917_v42, %v916_v60 }
 0xca4   :  { %13844 = vmatprep.subr.bf16.mxu1 %v13843_v62 }
 0xca5   :  { %13846 = vmatpush3.bf16.msra.mxu1 %v13843_v62 }
 0xcac   :  { %v2925_v37 = vpop.xlane.xlu1 %2924 }
 0xcad   :  { %14846 = vrcp.f32 %v2925_v37 }
 0xcb4   :  { %v2928_v6 = vpop.xlane.xlu1 %2927 }
 0xcb5   :  { %14848 = vrcp.f32 %v2928_v6 }
 0xcb7   :  { %v14847_v8 = vpop.eup %14846 }
 0xcb8   :  { %v2931_v30 = vmul.f32 %v14847_v8, %v14839_v1 }
 0xcba   :  { %12820 = vmatprep.mubr.msk.f32.mxu0 %vm20760_vm13, %v2931_v30  ;;  %vm20772_vm13 = vmmov %vm20766_vm2 }
 0xcbb   :  { %12858 = vmatprep.mubr.msk.f32.mxu1 %vm20772_vm13, %v884_v13  ;;  %v906_v13 = vld [vmem:[%s20778_s9] sm:$0xff] }
 0xcbf   :  { %v14849_v21 = vpop.eup %14848 }
 0xcc0   :  { %v2932_v45 = vmul.f32 %v14849_v21, %v14841_v14 }
 0xcc2   :  { %12821 = vmatmul.mubr.msk.f32.vlgmr.msra.gmra.mrb[6].mxu0 %vm20761_vm0, %v2932_v45  ;;  %vm20773_vm0 = vmmov %vm20766_vm2  ;;  %vm20774_vm2 = vcmask 257024  }
 0xcc3   :  { %13804 = vmatpush3.bf16.msra.mxu0 %v13801_v35  ;;  %12859 = vmatmul.mubr.msk.f32.gmra.mrb[14].mxu1 %vm20773_vm0, %v885_v47  ;;  %vm20775_vm11 = vmmov %vm20773_vm0  ;;  %v907_v47 = vld [vmem:[%s20778_s9 + $0x8] sm:$0xff] }
 0xcc4   :  { %13806 = vmatprep.subr.bf16.mxu0 %v13805_v50  ;;  %vm20776_vm12 = vmmov %vm20773_vm0 }
 0xcc5   :  { %vm20777_vm14 = vmmov %vm20774_vm2 }
 0xcc6   :  { %vm20779_vm15 = vmmov %vm20773_vm0 }
 0xcc7   :  { %13808 = vmatpush3.bf16.msra.mxu0 %v13805_v50  ;;  %vm20780_vm10 = vmmov %vm20773_vm0 }
 0xcc8   :  { %13818 = vmatprep.subr.bf16.mxu0 %v18060_v46  ;;  %vm20781_vm13 = vmmov %vm20773_vm0 }
 0xcc9   :  { %12861 = vmatprep.mubr.msk.f32.mxu1 %vm20781_vm13, %v886_v38 }
 0xcca   :  { %12862 = vmatmul.mubr.msk.f32.gmra.mrb[16].mxu1 %vm20773_vm0, %v887_v27 }
 0xd65   :  { %v12829_v57 = vpop.f32.mrb[6].mxu1 }
 0xd66   :  { %3478 = vrot.lane.b32.xlu0 %v12829_v57, %s16425_s12  ;;  %v3465_v54 = vpop.f32.mrb[7].mxu1 }
 0xd67   :  { %3476 = vrot.lane.b32.xlu1 %v3465_v54, %s16425_s12 }
 0xd95   :  { %v12822_v26 = vpop.f32.mrb[6].mxu0 }
 0xd96   :  { %v3008_v48 = vpop.f32.mrb[7].mxu0 }
 0xdd8   :  { %v3479_v0 = vpop.permute.xlu0 %3478 }
 0xdd9   :  { %v3483_v55 = vsel %vm20647_vm1, %v12822_v26, %v3479_v0  ;;  %v3477_v53 = vpop.permute.xlu1 %3476 }
 0xdda   :  { %v3491_v51 = vadd.f32 %v11824_v52, %v3483_v55  ;;  %v3482_v61 = vsel %vm20647_vm1, %v3008_v48, %v3477_v53  ;;  %v11825_v48 = vld [vmem:[#allocation35] ss:$0 sm:$0xff] }
 0xddb   :  { %v3490_v39 = vadd.f32 %v11824_v52, %v3482_v61  ;;  %v18098_v52 = vpop.f32.mrb[8].mxu1 }
 0xddc   :  { %v3493_v1 = vsel %vm20774_vm2, %v3491_v51, 0.0  ;;  %v18100_v0 = vpop.f32.mrb[9].mxu1  ;;  %vm20782_vm2 = vmmov %vm20773_vm0 }
 0xddd   :  { %v3492_v10 = vsel %vm20775_vm11, %v3490_v39, 0.0  ;;  %v18102_v55 = vpop.f32.mrb[10].mxu1  ;;  %vm20783_vm11 = vmmov %vm20773_vm0 }
 0xdde   :  { %v3494_v14 = vadd.f32 %v3493_v1, %v3492_v10  ;;  %v18104_v53 = vpop.f32.mrb[11].mxu1  ;;  %v11827_v10 = vld [vmem:[#allocation36] ss:$0 sm:$0xff] }
 0xde0   :  { %v3495_v33 = vrot.slane %v3494_v14, 4 }
 0xde2   :  { %v3496_v24 = vadd.f32 %v3495_v33, %v3494_v14  ;;  %v908_v33 = vld [vmem:[%s20778_s9 + $0x10] sm:$0xff] }
 0xde4   :  { %v3497_v40 = vrot.slane %v3496_v24, 2 }
 0xde6   :  { %v3498_v63 = vadd.f32 %v3497_v40, %v3496_v24  ;;  %v909_v24 = vld [vmem:[%s20778_s9 + $0x18] sm:$0xff] }
 0xde8   :  { %v3499_v16 = vrot.slane %v3498_v63, 1 }
 0xdea   :  { %v3500_v11 = vadd.f32 %v3499_v16, %v3498_v63 }
 0xdec   :  { %v3501_v22 = vmul.f32 0.083333336, %v3500_v11  ;;  %v13829_v11 = vpack.c.bf16 %v909_v24, %v908_v33 }
 0xdee   :  { %v3502_v20 = vmul.f32 %v3501_v22, %v866_v17 }
 0xdf0   :  { %v3506_v2 = vrot.slane %v3502_v20, %v17047_v25  ;;  %v11841_v20 = vld [vmem:[#allocation45] ss:$0 sm:$0xff] }
 0xdf2   :  { %v3507_v9 = vsub.f32 %v3490_v39, %v3506_v2  ;;  %v3508_v37 = vsub.f32 %v3491_v51, %v3506_v2  ;;  %v18106_v51 = vpop.f32.mrb[12].mxu1  ;;  %v11852_v2 = vld [vmem:[#allocation51] ss:$0 sm:$0xff] }
 0xdf3   :  { %v18108_v61 = vpop.f32.mrb[13].mxu1 }
 0xdf4   :  { %v3509_v6 = vmul.f32 %v3507_v9, %v3507_v9  ;;  %v3510_v8 = vmul.f32 %v3508_v37, %v3508_v37  ;;  %v3529_v50 = vmul.f32 %v11825_v48, %v3507_v9  ;;  %v3530_v49 = vmul.f32 %v11825_v48, %v3508_v37  ;;  %v18110_v39 = vpop.f32.mrb[14].mxu1 }
 0xdf5   :  { %v18112_v1 = vpop.f32.mrb[15].mxu1 }
 0xdf6   :  { %v3511_v30 = vsel %vm20776_vm12, %v3509_v6, 0.0  ;;  %v3512_v21 = vsel %vm20777_vm14, %v3510_v8, 0.0  ;;  %vm20784_vm12 = vmmov %vm20773_vm0  ;;  %v18132_v17 = vpop.f32.mrb[16].mxu1 }
 0xdf7   :  { %v3513_v45 = vadd.f32 %v3512_v21, %v3511_v30  ;;  %vm20785_vm14 = vmmov %vm20773_vm0  ;;  %v18134_v22 = vpop.f32.mrb[17].mxu1 }
 0xdf9   :  { %v3514_v57 = vrot.slane %v3513_v45, 4 }
 0xdfb   :  { %v3515_v54 = vadd.f32 %v3514_v57, %v3513_v45 }
 0xdfd   :  { %v3516_v15 = vrot.slane %v3515_v54, 2 }
 0xdff   :  { %v3517_v19 = vadd.f32 %v3516_v15, %v3515_v54 }
 0xe01   :  { %v3518_v44 = vrot.slane %v3517_v19, 1 }
 0xe03   :  { %v3519_v26 = vadd.f32 %v3518_v44, %v3517_v19  ;;  %v11844_v19 = vld [vmem:[#allocation47] ss:$0 sm:$0xff] }
 0xe05   :  { %v3520_v35 = vmul.f32 0.083333336, %v3519_v26 }
 0xe07   :  { %v3521_v43 = vadd.f32 1e-05, %v3520_v35 }
 0xe09   :  { %14850 = vrsqrt.f32 %v3521_v43 }
 0xe13   :  { %v14851_v32 = vpop.eup %14850 }
 0xe14   :  { %v3531_v3 = vmul.f32 %v14851_v32, %v3529_v50  ;;  %v3532_v28 = vmul.f32 %v14851_v32, %v3530_v49 }
 0xe16   :  { %v3539_v29 = vadd.f32 %v11826_v12, %v3531_v3  ;;  %v3540_v23 = vadd.f32 %v11826_v12, %v3532_v28 }
 0xe18   :  { %v3541_v31 = vmax.f32 %v3539_v29, 0.0  ;;  %v3542_v41 = vmax.f32 %v3540_v23, 0.0 }
 0xe1a   :  { %12838 = vmatprep.mubr.msk.f32.mxu0 %vm20779_vm15, %v3541_v31  ;;  %vm20786_vm15 = vmmov %vm20773_vm0 }
 0xe1b   :  { %12839 = vmatmul.mubr.msk.f32.vlgmr.msra.gmra.mrb[8].mxu0 %vm20780_vm10, %v3542_v41  ;;  %vm20787_vm10 = vmmov %vm20773_vm0 }
 0xe1c   :  { %13820 = vmatpush3.bf16.msra.mxu0 %v18060_v46  ;;  %v13825_v46 = vpack.c.bf16 %v907_v47, %v906_v13 }
 0xe1d   :  { %13822 = vmatprep.subr.bf16.mxu0 %v13821_v59 }
 0xe20   :  { %13824 = vmatpush3.bf16.msra.mxu0 %v13821_v59 }
 0xe21   :  { %13826 = vmatprep.subr.bf16.mxu0 %v13825_v46 }
 0xeee   :  { %v12840_v14 = vpop.f32.mrb[8].mxu0 }
 0xeef   :  { %v3621_v40 = vpop.f32.mrb[9].mxu0  ;;  %v18118_v16 = vadd.f32 %v12840_v14, %v11827_v10 }
 0xef0   :  { %v18116_v63 = vadd.f32 %v11827_v10, %v3621_v40 }
 0xef2   :  { %12872 = vmatprep.mubr.msk.f32.mxu0 %vm20782_vm2, %v18116_v63  ;;  %12901 = vmatprep.mubr.msk.f32.mxu1 %vm20783_vm11, %v18116_v63 }
 0xef3   :  { %12873 = vmatmul.mubr.msk.f32.vlgmr.msra.gmra.mrb[10].mxu0 %vm20784_vm12, %v18118_v16  ;;  %12902 = vmatmul.mubr.msk.f32.vlgmr.msra.gmra.mrb[18].mxu1 %vm20785_vm14, %v18118_v16  ;;  %vm20788_vm14 = vcmask 257024  }
 0xef4   :  { %13828 = vmatpush3.bf16.msra.mxu0 %v13825_v46  ;;  %12883 = vmatprep.mubr.msk.f32.mxu0 %vm20786_vm15, %v18116_v63  ;;  %vm20789_vm15 = vmmov %vm20787_vm10 }
 0xef5   :  { %13830 = vmatprep.subr.bf16.mxu0 %v13829_v11 }
 0xef8   :  { %13832 = vmatpush3.bf16.msra.mxu0 %v13829_v11  ;;  %v18190_v11 = vld [vmem:[#allocation42] ss:$0 sm:$0xff] }
 0xefb   :  { %12884 = vmatmul.mubr.msk.f32.vlgmr.msra.gmra.mrb[12].mxu0 %vm20787_vm10, %v18118_v16  ;;  %vm20790_vm10 = vmmov %vm20788_vm14 }
 0xfc6   :  { %v12874_v9 = vpop.f32.mrb[10].mxu0  ;;  %v12903_v37 = vpop.f32.mrb[18].mxu1 }
 0xfc7   :  { %v18136_v6 = vadd.f32 %v12874_v9, %v11841_v20  ;;  %v18138_v8 = vadd.f32 %v12903_v37, %v11852_v2  ;;  %v3859_v30 = vpop.f32.mrb[11].mxu0  ;;  %v4612_v21 = vpop.f32.mrb[19].mxu1 }
 0xfc8   :  { %v18140_v45 = vadd.f32 %v11841_v20, %v3859_v30  ;;  %v18142_v57 = vadd.f32 %v11852_v2, %v4612_v21 }
 0xfca   :  { %v13833_v54 = vpack.c.bf16 %v18136_v6, %v18140_v45  ;;  %v13855_v15 = vpack.c.bf16 %v18138_v8, %v18142_v57 }
 0xfcc   :  { %13835 = vmatprep.subr.msk.bf16.mxu0 %vm17057_vm3, %v13833_v54  ;;  %13857 = vmatprep.subr.msk.bf16.mxu1 %vm17057_vm3, %v13855_v15 }
 0xfcd   :  { %13838 = vmatpush3.bf16.msk.msra.mxu0 %vm17057_vm3, %v13833_v54  ;;  %13860 = vmatpush3.bf16.msk.msra.mxu1 %vm17057_vm3, %v13855_v15 }
 0xfce   :  { %v12885_v44 = vpop.f32.mrb[12].mxu0 }
 0xfcf   :  { %v3946_v26 = vadd.f32 %v12885_v44, %v11844_v19  ;;  %v3940_v35 = vpop.f32.mrb[13].mxu0 }
 0xfd0   :  { %v3941_v43 = vadd.f32 %v11844_v19, %v3940_v35 }
 0xfd1   :  { %v4006_v48 = vrot.slane %v3946_v26, %v17044_v18 }
 0xfd2   :  { %v3951_v50 = vcombine.high %v3941_v43, %v3941_v43  ;;  %v3958_v49 = vrot.slane %v3941_v43, %v17044_v18 }
 0xfd3   :  { %v4007_v32 = vcombine.high %v4006_v48, %v4006_v48  ;;  %v4014_v12 = vrot.slane %v4006_v48, %v17044_v18 }
 0xfd4   :  { %v3965_v3 = vrot.slane %v3951_v50, %v17044_v18  ;;  %v3966_v28 = vcombine.high %v3958_v49, %v3958_v49  ;;  %v3974_v29 = vrot.slane %v3958_v49, %v17044_v18 }
 0xfd5   :  { %v18162_v23 = vrot.slane %v4007_v32, %v17044_v18  ;;  %v4022_v31 = vcombine.high %v4014_v12, %v4014_v12  ;;  %v4059_v41 = vrot.slane %v4014_v12, %v17047_v25 }
 0xfd6   :  { %v3967_v38 = vcombine.high %v3965_v3, %v3965_v3  ;;  %v3988_v56 = vrot.slane %v3966_v28, %v17044_v18  ;;  %v3996_v58 = vcombine.high %v3974_v29, %v3974_v29  ;;  %v18168_v27 = vrot.slane %v3965_v3, %v17044_v18 }
 0xfd7   :  { %v4100_v59 = vadd.f32 %v4059_v41, %v18140_v45  ;;  %v4063_v60 = vrot.slane %v18162_v23, %v17047_v25  ;;  %v4101_v42 = vadd.f32 %v4059_v41, %v18136_v6  ;;  %v4067_v62 = vrot.slane %v4022_v31, %v17047_v25 }
 0xfd8   :  { %v4027_v13 = vrot.slane %v3974_v29, %v17047_v25  ;;  %v18176_v47 = vrot.slane %v3967_v38, %v17044_v18  ;;  %v3998_v46 = vcombine.high %v3988_v56, %v3988_v56  ;;  %v18179_v10 = vrot.slane %v3988_v56, %v17047_v25 }
 0xfd9   :  { %v18182_v14 = vrot.slane %v3996_v58, %v17047_v25  ;;  %v18186_v33 = vrot.slane %v18168_v27, %v17047_v25  ;;  %vm4125_vm13 = vcmp.gt.f32.partialorder %v4101_v42, 0.0  ;;  %v4149_v20 = vmul.f32 0.2, %v4101_v42 }
 0xfda   :  { %v4084_v24 = vadd.f32 %v4027_v13, %v18140_v45  ;;  %v4085_v40 = vadd.f32 %v4027_v13, %v18136_v6  ;;  %vm4124_vm0 = vcmp.gt.f32.partialorder %v4100_v59, 0.0  ;;  %v4148_v2 = vmul.f32 0.2, %v4100_v59 }
 0xfdb   :  { %v4102_v9 = vadd.f32 %v4063_v60, %v18140_v45  ;;  %v4173_v21 = vsel %vm4125_vm13, %v4101_v42, %v4149_v20  ;;  %v4103_v49 = vadd.f32 %v4063_v60, %v18136_v6  ;;  %v18199_v32 = vrot.slane %v3998_v46, %v17047_v25 }
 0xfdc   :  { %vm4109_vm2 = vcmp.gt.f32.partialorder %v4085_v40, 0.0  ;;  %v4133_v37 = vmul.f32 0.2, %v4085_v40  ;;  %vm4108_vm11 = vcmp.gt.f32.partialorder %v4084_v24, 0.0  ;;  %v4132_v30 = vmul.f32 0.2, %v4084_v24 }
 0xfdd   :  { %v4172_v54 = vsel %vm4124_vm0, %v4100_v59, %v4148_v2  ;;  %vm4126_vm12 = vcmp.gt.f32.partialorder %v4102_v9, 0.0  ;;  %v4150_v15 = vmul.f32 0.2, %v4102_v9  ;;  %v4203_v19 = vmul.f32 %v18190_v11, %v4173_v21  ;;  %vm20791_vm0 = vmmov %vm20789_vm15 }
 0xfde   :  { %v4202_v44 = vmul.f32 %v18190_v11, %v4172_v54  ;;  %v4157_v26 = vsel %vm4109_vm2, %v4085_v40, %v4133_v37  ;;  %v4156_v35 = vsel %vm4108_vm11, %v4084_v24, %v4132_v30  ;;  %v4104_v28 = vadd.f32 %v4067_v62, %v18140_v45 }
 0xfdf   :  { %v4187_v43 = vmul.f32 %v18190_v11, %v4157_v26  ;;  %v4186_v48 = vmul.f32 %v18190_v11, %v4156_v35  ;;  %v4174_v50 = vsel %vm4126_vm12, %v4102_v9, %v4150_v15  ;;  %v4261_v12 = vsel %vm20788_vm14, %v4203_v19, 0.0  ;;  %vm20792_vm14 = vmmov %vm20791_vm0 }
 0xfe0   :  { %v4258_v3 = vsel %vm20789_vm15, %v4202_v44, 0.0  ;;  %4262 = vadd.xlane.f32.xlu0 %v4261_v12  ;;  %v4204_v31 = vmul.f32 %v18190_v11, %v4174_v50  ;;  %vm4127_vm13 = vcmp.gt.f32.partialorder %v4103_v49, 0.0  ;;  %v4151_v41 = vmul.f32 0.2, %v4103_v49 }
 0xfe1   :  { %4259 = vadd.xlane.f32.xlu1 %v4258_v3  ;;  %v4213_v29 = vsel %vm20790_vm10, %v4187_v43, 0.0  ;;  %v4210_v38 = vsel %vm20791_vm0, %v4186_v48, 0.0  ;;  %vm4128_vm2 = vcmp.gt.f32.partialorder %v4104_v28, 0.0  ;;  %v4152_v56 = vmul.f32 0.2, %v4104_v28 }
 0xfe2   :  { %v4105_v58 = vadd.f32 %v4067_v62, %v18136_v6  ;;  %v4175_v59 = vsel %vm4127_vm13, %v4103_v49, %v4151_v41  ;;  %v4088_v60 = vadd.f32 %v18182_v14, %v18140_v45  ;;  %v4086_v42 = vadd.f32 %v18179_v10, %v18140_v45 }
 0xfe3   :  { %v4092_v13 = vadd.f32 %v18186_v33, %v18140_v45  ;;  %v4205_v46 = vmul.f32 %v18190_v11, %v4175_v59  ;;  %v4176_v24 = vsel %vm4128_vm2, %v4104_v28, %v4152_v56  ;;  %v3997_v20 = vcombine.high %v18168_v27, %v18168_v27  ;;  %vm20793_vm2 = vmmov %vm20792_vm14 }
 0xfe4   :  { %vm4129_vm11 = vcmp.gt.f32.partialorder %v4105_v58, 0.0  ;;  %v4153_v40 = vmul.f32 0.2, %v4105_v58  ;;  %v4047_v62 = vrot.slane %v18176_v47, %v17047_v25  ;;  %4211 = vadd.xlane.f32.xlu0 %v4210_v38  ;;  %vm4112_vm12 = vcmp.gt.f32.partialorder %v4088_v60, 0.0 }
 0xfe5   :  { %4214 = vadd.xlane.f32.xlu1 %v4213_v29  ;;  %v4136_v2 = vmul.f32 0.2, %v4088_v60  ;;  %v4264_v9 = vsel %vm20792_vm14, %v4204_v31, 0.0  ;;  %vm4110_vm15 = vcmp.gt.f32.partialorder %v4086_v42, 0.0  ;;  %v4134_v30 = vmul.f32 0.2, %v4086_v42 }
 0xfe6   :  { %v4177_v37 = vsel %vm4129_vm11, %v4105_v58, %v4153_v40  ;;  %v4267_v21 = vsel %vm20790_vm10, %v4205_v46, 0.0  ;;  %v4206_v54 = vmul.f32 %v18190_v11, %v4176_v24  ;;  %v4140_v19 = vmul.f32 0.2, %v4092_v13  ;;  %vm20794_vm11 = vmmov %vm20790_vm10 }
 0xfe7   :  { %v4207_v15 = vmul.f32 %v18190_v11, %v4177_v37  ;;  %v4160_v27 = vsel %vm4112_vm12, %v4088_v60, %v4136_v2  ;;  %vm4116_vm13 = vcmp.gt.f32.partialorder %v4092_v13, 0.0  ;;  %v4087_v44 = vadd.f32 %v18179_v10, %v18136_v6  ;;  %vm20796_vm10 = vmmov %vm20793_vm2 }
 0xfe8   :  { %v4090_v26 = vadd.f32 %v18199_v32, %v18140_v45  ;;  %4268 = vadd.xlane.f32.xlu0 %v4267_v21  ;;  %v4158_v35 = vsel %vm4110_vm15, %v4086_v42, %v4134_v30  ;;  %v4089_v43 = vadd.f32 %v18182_v14, %v18136_v6  ;;  %v4023_v48 = vcombine.high %v18162_v23, %v18162_v23  ;;  %vm20795_vm15 = vmmov %vm20793_vm2 }
 0xfe9   :  { %4265 = vadd.xlane.f32.xlu1 %v4264_v9  ;;  %v4051_v50 = vrot.slane %v3997_v20, %v17047_v25  ;;  %vm4111_vm0 = vcmp.gt.f32.partialorder %v4087_v44, 0.0  ;;  %v4135_v49 = vmul.f32 0.2, %v4087_v44  ;;  %v4270_v12 = vsel %vm20793_vm2, %v4206_v54, 0.0 }
 0xfea   :  { %v4273_v10 = vsel %vm20794_vm11, %v4207_v15, 0.0  ;;  %v4190_v3 = vmul.f32 %v18190_v11, %v4160_v27  ;;  %v4164_v28 = vsel %vm4116_vm13, %v4092_v13, %v4140_v19  ;;  %v4188_v29 = vmul.f32 %v18190_v11, %v4158_v35  ;;  %vm20797_vm13 = vmmov %vm20793_vm2 }
 0xfeb   :  { %v4159_v31 = vsel %vm4111_vm0, %v4087_v44, %v4135_v49  ;;  %v4138_v41 = vmul.f32 0.2, %v4090_v26  ;;  %v4094_v14 = vadd.f32 %v4047_v62, %v18140_v45  ;;  %v3999_v23 = vcombine.high %v18176_v47, %v18176_v47 }
 0xfec   :  { %4274 = vadd.xlane.f32.xlu0 %v4273_v10  ;;  %vm4114_vm12 = vcmp.gt.f32.partialorder %v4090_v26, 0.0  ;;  %v4137_v38 = vmul.f32 0.2, %v4089_v43  ;;  %v4093_v56 = vadd.f32 %v18186_v33, %v18136_v6  ;;  %v4194_v58 = vmul.f32 %v18190_v11, %v4164_v28 }
 0xfed   :  { %4271 = vadd.xlane.f32.xlu1 %v4270_v12  ;;  %vm4113_vm14 = vcmp.gt.f32.partialorder %v4089_v43, 0.0  ;;  %v4071_v59 = vrot.slane %v4023_v48, %v17047_v25  ;;  %v4222_v60 = vsel %vm20795_vm15, %v4190_v3, 0.0  ;;  %v4189_v42 = vmul.f32 %v18190_v11, %v4159_v31  ;;  %vm20798_vm15 = vmmov %vm20796_vm10 }
 0xfee   :  { %v4216_v13 = vsel %vm20796_vm10, %v4188_v29, 0.0  ;;  %v4162_v46 = vsel %vm4114_vm12, %v4090_v26, %v4138_v41  ;;  %v4096_v47 = vadd.f32 %v4051_v50, %v18140_v45  ;;  %v4091_v24 = vadd.f32 %v18199_v32, %v18136_v6  ;;  %vm20799_vm10 = vmmov %vm20794_vm11 }
 0xfef   :  { %v4161_v33 = vsel %vm4113_vm14, %v4089_v43, %v4137_v38  ;;  %v4142_v40 = vmul.f32 0.2, %v4094_v14  ;;  %v4141_v20 = vmul.f32 0.2, %v4093_v56  ;;  %v4055_v2 = vrot.slane %v3999_v23, %v17047_v25 }
 0xff0   :  { %4217 = vadd.xlane.f32.xlu0 %v4216_v13  ;;  %v4234_v9 = vsel %vm20797_vm13, %v4194_v58, 0.0  ;;  %vm4118_vm0 = vcmp.gt.f32.partialorder %v4094_v14, 0.0  ;;  %vm4117_vm2 = vcmp.gt.f32.partialorder %v4093_v56, 0.0  ;;  %v4219_v37 = vsel %vm20794_vm11, %v4189_v42, 0.0  ;;  %vm20801_vm11 = vmmov %vm20799_vm10 }
 0xff1   :  { %4223 = vadd.xlane.f32.xlu1 %v4222_v60  ;;  %v4192_v30 = vmul.f32 %v18190_v11, %v4162_v46  ;;  %v4098_v21 = vadd.f32 %v4055_v2, %v18140_v45  ;;  %v4095_v54 = vadd.f32 %v4047_v62, %v18136_v6  ;;  %v4191_v32 = vmul.f32 %v18190_v11, %v4161_v33 }
 0xff2   :  { %v4144_v15 = vmul.f32 0.2, %v4096_v47  ;;  %v4106_v19 = vadd.f32 %v4071_v59, %v18140_v45  ;;  %v4097_v27 = vadd.f32 %v4051_v50, %v18136_v6  ;;  %v4166_v44 = vsel %vm4118_vm0, %v4094_v14, %v4142_v40 }
 0xff3   :  { %v4165_v26 = vsel %vm4117_vm2, %v4093_v56, %v4141_v20  ;;  %vm4120_vm12 = vcmp.gt.f32.partialorder %v4096_v47, 0.0  ;;  %v4139_v35 = vmul.f32 0.2, %v4091_v24  ;;  %vm4115_vm14 = vcmp.gt.f32.partialorder %v4091_v24, 0.0  ;;  %vm20800_vm2 = vmmov %vm20798_vm15 }
 0xff4   :  { %4220 = vadd.xlane.f32.xlu0 %v4219_v37  ;;  %v4228_v43 = vsel %vm20798_vm15, %v4192_v30, 0.0  ;;  %v4225_v48 = vsel %vm20799_vm10, %v4191_v32, 0.0  ;;  %v4196_v62 = vmul.f32 %v18190_v11, %v4166_v44  ;;  %v4195_v49 = vmul.f32 %v18190_v11, %v4165_v26  ;;  %vm20802_vm15 = vmmov %vm20800_vm2 }
 0xff5   :  { %4235 = vadd.xlane.f32.xlu1 %v4234_v9  ;;  %v4168_v12 = vsel %vm4120_vm12, %v4096_v47, %v4144_v15  ;;  %v4163_v45 = vsel %vm4115_vm14, %v4091_v24, %v4139_v35  ;;  %v4146_v50 = vmul.f32 0.2, %v4098_v21  ;;  %v4143_v10 = vmul.f32 0.2, %v4095_v54 }
 0xff6   :  { %v4099_v3 = vadd.f32 %v4055_v2, %v18136_v6  ;;  %vm4122_vm13 = vcmp.gt.f32.partialorder %v4098_v21, 0.0  ;;  %vm4119_vm0 = vcmp.gt.f32.partialorder %v4095_v54, 0.0  ;;  %v4107_v28 = vadd.f32 %v4071_v59, %v18136_v6 }
 0xff7   :  { %v4240_v29 = vsel %vm20800_vm2, %v4196_v62, 0.0  ;;  %v4237_v31 = vsel %vm20801_vm11, %v4195_v49, 0.0  ;;  %v4198_v41 = vmul.f32 %v18190_v11, %v4168_v12  ;;  %v4193_v14 = vmul.f32 %v18190_v11, %v4163_v45 }
 0xff8   :  { %4226 = vadd.xlane.f32.xlu0 %v4225_v48  ;;  %v4170_v23 = vsel %vm4122_vm13, %v4098_v21, %v4146_v50  ;;  %v4167_v38 = vsel %vm4119_vm0, %v4095_v54, %v4143_v10  ;;  %v4154_v56 = vmul.f32 0.2, %v4106_v19  ;;  %v4145_v58 = vmul.f32 0.2, %v4097_v27  ;;  %vm20803_vm13 = vmmov %vm20802_vm15 }
 0xff9   :  { %4229 = vadd.xlane.f32.xlu1 %v4228_v43  ;;  %vm4130_vm12 = vcmp.gt.f32.partialorder %v4106_v19, 0.0  ;;  %vm4121_vm14 = vcmp.gt.f32.partialorder %v4097_v27, 0.0  ;;  %v4246_v60 = vsel %vm20802_vm15, %v4198_v41, 0.0  ;;  %v4231_v6 = vsel %vm20799_vm10, %v4193_v14, 0.0  ;;  %vm20804_vm0 = vmmov %vm20799_vm10 }
 0xffa   :  { %v4200_v59 = vmul.f32 %v18190_v11, %v4170_v23  ;;  %v4197_v42 = vmul.f32 %v18190_v11, %v4167_v38  ;;  %v4178_v13 = vsel %vm4130_vm12, %v4106_v19, %v4154_v56  ;;  %v4169_v46 = vsel %vm4121_vm14, %v4097_v27, %v4145_v58  ;;  %vm20805_vm15 = vmmov %vm20803_vm13 }
 0xffb   :  { %v4147_v47 = vmul.f32 0.2, %v4099_v3  ;;  %vm4123_vm2 = vcmp.gt.f32.partialorder %v4099_v3, 0.0  ;;  %v4208_v40 = vmul.f32 %v18190_v11, %v4178_v13  ;;  %v4199_v20 = vmul.f32 %v18190_v11, %v4169_v46  ;;  %vm20806_vm10 = vmmov %vm20804_vm0 }
 0xffc   :  { %4238 = vadd.xlane.f32.xlu0 %v4237_v31  ;;  %v4252_v24 = vsel %vm20803_vm13, %v4200_v59, 0.0  ;;  %v4243_v33 = vsel %vm20804_vm0, %v4197_v42, 0.0  ;;  %v4155_v9 = vmul.f32 0.2, %v4107_v28  ;;  %vm4131_vm11 = vcmp.gt.f32.partialorder %v4107_v28, 0.0  ;;  %vm20807_vm12 = vmmov %vm20804_vm0 }
 0xffd   :  { %4241 = vadd.xlane.f32.xlu1 %v4240_v29  ;;  %v4171_v2 = vsel %vm4123_vm2, %v4099_v3, %v4147_v47  ;;  %v4276_v37 = vsel %vm20805_vm15, %v4208_v40, 0.0  ;;  %v4249_v30 = vsel %vm20806_vm10, %v4199_v20, 0.0  ;;  %vm20808_vm14 = vmmov %vm20804_vm0  ;;  %vm20809_vm2 = vcmask 1046534  }
 0xffe   :  { %v4201_v21 = vmul.f32 %v18190_v11, %v4171_v2  ;;  %v4179_v54 = vsel %vm4131_vm11, %v4107_v28, %v4155_v9  ;;  %vm20810_vm13 = vcmask 1047559   ;;  %vm20811_vm0 = vcmp.gt.f32.partialorder %v17412_v5, 0.0 }
 0xfff   :  { %v4209_v15 = vmul.f32 %v18190_v11, %v4179_v54  ;;  %vm20812_vm11 = vcmask 97280   ;;  %vm20813_vm15 = vcmp.gt.f32.partialorder %v17432_v36, 0.0  ;;  %vm20814_vm10 = vcmask 93184  }
0x1000   :  { %4232 = vadd.xlane.f32.xlu0 %v4231_v6  ;;  %v4255_v32 = vsel %vm20807_vm12, %v4201_v21, 0.0  ;;  %vm20815_vm12 = vmmov %vm20812_vm11 }
0x1001   :  { %4247 = vadd.xlane.f32.xlu1 %v4246_v60  ;;  %v4279_v19 = vsel %vm20808_vm14, %v4209_v15, 0.0  ;;  %vm20816_vm14 = vmmov %vm20814_vm10 }
0x1004   :  { %4244 = vadd.xlane.f32.xlu0 %v4243_v33 }
0x1005   :  { %4253 = vadd.xlane.f32.xlu1 %v4252_v24 }
0x1008   :  { %4250 = vadd.xlane.f32.xlu0 %v4249_v30 }
0x1009   :  { %4277 = vadd.xlane.f32.xlu1 %v4276_v37 }
0x100c   :  { %4256 = vadd.xlane.f32.xlu0 %v4255_v32 }
0x1010   :  { %4280 = vadd.xlane.f32.xlu0 %v4279_v19 }
0x106d   :  { %v18282_v27 = vpop.xlane.xlu0 %4262 }
0x106e   :  { %v18284_v44 = vpop.xlane.xlu1 %4259  ;;  %v4385_v19 = vrot.slane %v18282_v27, %v17029_v7 }
0x1071   :  { %v4212_v35 = vpop.xlane.xlu0 %4211 }
0x1072   :  { %v4215_v26 = vpop.xlane.xlu1 %4214  ;;  %v4309_v56 = vrot.slane %v4212_v35, %v17025_v4 }
0x1073   :  { %v4313_v38 = vrot.slane %v4215_v26, %v17029_v7 }
0x1075   :  { %v4269_v48 = vpop.xlane.xlu0 %4268  ;;  %v4314_v47 = vsel %vm1507_vm4, %v4313_v38, %v4309_v56 }
0x1076   :  { %v4266_v43 = vpop.xlane.xlu1 %4265  ;;  %v4394_v35 = vrot.slane %v4269_v48, %v17029_v7 }
0x1077   :  { %v4390_v26 = vrot.slane %v4266_v43, %v17025_v4 }
0x1079   :  { %v4275_v49 = vpop.xlane.xlu0 %4274 }
0x107a   :  { %v4272_v62 = vpop.xlane.xlu1 %4271 }
0x107d   :  { %v4218_v45 = vpop.xlane.xlu0 %4217 }
0x107e   :  { %v4224_v12 = vpop.xlane.xlu1 %4223  ;;  %v4318_v58 = vrot.slane %v4218_v45, %v17025_v4  ;;  %v4399_v45 = vrot.slane %v4272_v62, %v17025_v4  ;;  %v4395_v62 = vsel %vm1507_vm4, %v4394_v35, %v4390_v26 }
0x107f   :  { %v4327_v6 = vrot.slane %v4224_v12, %v17025_v4 }
0x1081   :  { %v4221_v10 = vpop.xlane.xlu0 %4220 }
0x1082   :  { %v4236_v50 = vpop.xlane.xlu1 %4235  ;;  %v4322_v41 = vrot.slane %v4221_v10, %v17029_v7  ;;  %v4403_v10 = vrot.slane %v4275_v49, %v17029_v7 }
0x1083   :  { %v4345_v54 = vrot.slane %v4236_v50, %v17025_v4 }
0x1084   :  { %v4323_v42 = vsel %vm1507_vm4, %v4322_v41, %v4318_v58 }
0x1085   :  { %v4227_v11 = vpop.xlane.xlu0 %4226  ;;  %v4414_v40 = vsel %vm1608_vm5, %v4323_v42, %v4314_v47 }
0x1086   :  { %v4230_v3 = vpop.xlane.xlu1 %4229  ;;  %v4331_v14 = vrot.slane %v4227_v11, %v17029_v7 }
0x1087   :  { %v4336_v13 = vrot.slane %v4230_v3, %v17025_v4 }
0x1088   :  { %v4332_v46 = vsel %vm1507_vm4, %v4331_v14, %v4327_v6  ;;  %v4404_v14 = vsel %vm1507_vm4, %v4403_v10, %v4399_v45 }
0x1089   :  { %v4239_v29 = vpop.xlane.xlu0 %4238  ;;  %v4415_v37 = vsel %vm1610_vm6, %v4332_v46, %v4414_v40 }
0x108a   :  { %v4242_v28 = vpop.xlane.xlu1 %4241  ;;  %v4349_v20 = vrot.slane %v4239_v29, %v17029_v7 }
0x108b   :  { %v4354_v30 = vrot.slane %v4242_v28, %v17025_v4  ;;  %v4381_v28 = vrot.slane %v18284_v44, %v17025_v4 }
0x108c   :  { %v4350_v3 = vsel %vm1507_vm4, %v4349_v20, %v4345_v54 }
0x108d   :  { %v4233_v31 = vpop.xlane.xlu0 %4232  ;;  %v4386_v38 = vsel %vm1507_vm4, %v4385_v19, %v4381_v28  ;;  %v919_v19 = vld [vmem:[#allocation54 + $0x8] sm:$0xff] }
0x108e   :  { %v4248_v23 = vpop.xlane.xlu1 %4247  ;;  %v4340_v60 = vrot.slane %v4233_v31, %v17029_v7 }
0x108f   :  { %v4363_v32 = vrot.slane %v4248_v23, %v17025_v4 }
0x1090   :  { %v4341_v24 = vsel %vm1507_vm4, %v4340_v60, %v4336_v13 }
0x1091   :  { %v4245_v59 = vpop.xlane.xlu0 %4244  ;;  %v4416_v15 = vsel %vm1612_vm7, %v4341_v24, %v4415_v37 }
0x1092   :  { %v4358_v33 = vrot.slane %v4245_v59, %v17029_v7  ;;  %v4254_v2 = vpop.xlane.xlu1 %4253  ;;  %v4417_v48 = vsel %vm1614_vm8, %v4350_v3, %v4416_v15  ;;  %v4421_v59 = vsel %vm1608_vm5, %v4395_v62, %v4386_v38  ;;  %v918_v15 = vld [vmem:[#allocation54] sm:$0xff]  ;;  %v920_v3 = vld [vmem:[#allocation54 + $0x10] sm:$0xff] }
0x1093   :  { %v4372_v27 = vrot.slane %v4254_v2, %v17025_v4  ;;  %v4422_v13 = vsel %vm1610_vm6, %v4404_v14, %v4421_v59  ;;  %v13847_v26 = vpack.c.bf16 %v919_v19, %v918_v15 }
0x1094   :  { %v4359_v12 = vsel %vm1507_vm4, %v4358_v33, %v4354_v30 }
0x1095   :  { %v4251_v9 = vpop.xlane.xlu0 %4250  ;;  %v4418_v31 = vsel %vm1616_vm9, %v4359_v12, %v4417_v48  ;;  %13848 = vmatprep.subr.bf16.mxu0 %v13847_v26 }
0x1096   :  { %v4367_v21 = vrot.slane %v4251_v9, %v17029_v7  ;;  %v4278_v29 = vpop.xlane.xlu1 %4277 }
0x1097   :  { %v4408_v56 = vrot.slane %v4278_v29, %v17025_v4 }
0x1098   :  { %v4368_v50 = vsel %vm1507_vm4, %v4367_v21, %v4363_v32 }
0x1099   :  { %v4257_v11 = vpop.xlane.xlu0 %4256  ;;  %v4419_v41 = vsel %vm20809_vm2, %v4368_v50, %v4418_v31  ;;  %v921_v50 = vld [vmem:[#allocation54 + $0x18] sm:$0xff]  ;;  %vm20817_vm2 = vmmov %vm20812_vm11 }
0x109a   :  { %v4376_v43 = vrot.slane %v4257_v11, %v17029_v7 }
0x109c   :  { %v4377_v49 = vsel %vm1507_vm4, %v4376_v43, %v4372_v27  ;;  %v13851_v27 = vpack.c.bf16 %v921_v50, %v920_v3  ;;  %v11848_v43 = vld [vmem:[#allocation44] ss:$0 sm:$0xff] }
0x109d   :  { %v4281_v23 = vpop.xlane.xlu0 %4280  ;;  %v4420_v44 = vsel %vm20810_vm13, %v4377_v49, %v4419_v41  ;;  %vm20818_vm13 = vmmov %vm20817_vm2  ;;  %v20822_v49 = vmov 0 }
0x109e   :  { %v4412_v58 = vrot.slane %v4281_v23, %v17029_v7  ;;  %v4426_v60 = vsel %vm20811_vm0, %v4420_v44, -1e+30  ;;  %vm20819_vm0 = vcmask 261120  }
0x109f   :  { %v4428_v6 = vsel %vm20812_vm11, %v4426_v60, -inf  ;;  %vm20820_vm11 = vmmov %vm20819_vm0 }
0x10a0   :  { %4429 = vmax.xlane.f32.xlu1 %v4428_v6  ;;  %v4413_v42 = vsel %vm1507_vm4, %v4412_v58, %v4408_v56 }
0x10a1   :  { %v4423_v46 = vsel %vm1612_vm7, %v4413_v42, %v4422_v13 }
0x10a2   :  { %v4427_v47 = vsel %vm20813_vm15, %v4423_v46, -1e+30  ;;  %vm20821_vm15 = vcmask 64512  }
0x10a3   :  { %v4431_v24 = vsel %vm20814_vm10, %v4427_v47, -inf  ;;  %vm18350_vm10 = vmpackc.low %vm20821_vm15, %vm20821_vm15  ;;  %vm20826_vm15 = vcmask 261120  }
0x10a4   :  { %4432 = vmax.xlane.f32.xlu0 %v4431_v24  ;;  %v20823_v49 = vsel %vm18350_vm10, 4294967295, %v20822_v49 }
0x10a5   :  { %20824 = vst [vmem:[#allocation150_spill] sm:$0xff] %v20823_v49 }
0x112d   :  { %v4430_v33 = vpop.xlane.xlu1 %4429 }
0x112e   :  { %v4434_v40 = vsub.f32 %v4426_v60, %v4430_v33 }
0x1130   :  { %v4436_v20 = vmul.f32 1.442695, %v4434_v40 }
0x1131   :  { %v4433_v2 = vpop.xlane.xlu0 %4432 }
0x1132   :  { %14852 = vpow2.f32 %v4436_v20  ;;  %v4435_v9 = vsub.f32 %v4427_v47, %v4433_v2 }
0x1134   :  { %v4438_v37 = vmul.f32 1.442695, %v4435_v9 }
0x1136   :  { %14854 = vpow2.f32 %v4438_v37 }
0x113c   :  { %v14853_v30 = vpop.eup %14852 }
0x113d   :  { %v4440_v21 = vsel %vm20815_vm12, %v14853_v30, 0.0 }
0x113e   :  { %4441 = vadd.xlane.f32.xlu1 %v4440_v21 }
0x1140   :  { %v14855_v54 = vpop.eup %14854 }
0x1141   :  { %v4443_v32 = vsel %vm20816_vm14, %v14855_v54, 0.0 }
0x1142   :  { %4444 = vadd.xlane.f32.xlu0 %v4443_v32 }
0x11cb   :  { %v4442_v35 = vpop.xlane.xlu1 %4441 }
0x11cc   :  { %14856 = vrcp.f32 %v4442_v35 }
0x11cf   :  { %v4445_v12 = vpop.xlane.xlu0 %4444 }
0x11d0   :  { %14858 = vrcp.f32 %v4445_v12 }
0x11d6   :  { %v14857_v45 = vpop.eup %14856 }
0x11d7   :  { %v4448_v10 = vmul.f32 %v14857_v45, %v14853_v30 }
0x11d9   :  { %12890 = vmatprep.mubr.msk.f32.mxu0 %vm20817_vm2, %v4448_v10  ;;  %v18389_v10 = vld [vmem:[#allocation48] ss:$0 sm:$0xff] }
0x11da   :  { %v14859_v11 = vpop.eup %14858 }
0x11db   :  { %v4449_v28 = vmul.f32 %v14859_v11, %v14855_v54 }
0x11dd   :  { %12891 = vmatmul.mubr.msk.f32.vlgmr.msra.gmra.mrb[14].mxu0 %vm20818_vm13, %v4449_v28 }
0x11de   :  { %13850 = vmatpush3.bf16.msra.mxu0 %v13847_v26  ;;  %12912 = vmatprep.mubr.msk.f32.mxu0 %vm20819_vm0, %v18116_v63  ;;  %v11855_v63 = vld [vmem:[#allocation53] ss:$0 sm:$0xff] }
0x11df   :  { %13852 = vmatprep.subr.bf16.mxu0 %v13851_v27 }
0x11e2   :  { %13854 = vmatpush3.bf16.msra.mxu0 %v13851_v27 }
0x11e5   :  { %12913 = vmatmul.mubr.msk.f32.vlgmr.msra.gmra.mrb[16].mxu0 %vm20820_vm11, %v18118_v16  ;;  %vm20825_vm11 = vcmask 257024  }
0x12b0   :  { %v12892_v48 = vpop.f32.mrb[14].mxu0 }
0x12b1   :  { %v4537_v29 = vadd.f32 %v12892_v48, %v11848_v43  ;;  %v4531_v31 = vpop.f32.mrb[15].mxu0 }
0x12b2   :  { %v4532_v62 = vadd.f32 %v11848_v43, %v4531_v31 }
0x12b4   :  { %v18354_v41 = vpack.c.bf16 %v4537_v29, %v4532_v62  ;;  %v18356_v14 = vpack.i.bf16 %v4537_v29, %v4532_v62 }
0x12b6   :  { %13863 = vmatprep.subr.msk.bf16.mxu1 %vm18350_vm10, %v18354_v41 }
0x12b8   :  { %v12914_v16 = vpop.f32.mrb[16].mxu0 }
0x12b9   :  { %v4699_v23 = vadd.f32 %v12914_v16, %v11855_v63  ;;  %v4693_v44 = vpop.f32.mrb[17].mxu0 }
0x12ba   :  { %v4694_v38 = vadd.f32 %v11855_v63, %v4693_v44 }
0x12bb   :  { %v4759_v56 = vrot.slane %v4699_v23, %v17044_v18 }
0x12bc   :  { %v4704_v58 = vcombine.high %v4694_v38, %v4694_v38  ;;  %v4711_v60 = vrot.slane %v4694_v38, %v17044_v18 }
0x12bd   :  { %v4760_v6 = vcombine.high %v4759_v56, %v4759_v56  ;;  %v4767_v59 = vrot.slane %v4759_v56, %v17044_v18 }
0x12be   :  { %v4718_v42 = vrot.slane %v4704_v58, %v17044_v18  ;;  %v4719_v13 = vcombine.high %v4711_v60, %v4711_v60  ;;  %v4727_v46 = vrot.slane %v4711_v60, %v17044_v18 }
0x12bf   :  { %v18367_v47 = vrot.slane %v4760_v6, %v17044_v18  ;;  %v4812_v24 = vrot.slane %v4767_v59, %v17047_v25  ;;  %v4775_v33 = vcombine.high %v4767_v59, %v4767_v59 }
0x12c0   :  { %v4720_v40 = vcombine.high %v4718_v42, %v4718_v42  ;;  %v4741_v20 = vrot.slane %v4719_v13, %v17044_v18  ;;  %v4749_v2 = vcombine.high %v4727_v46, %v4727_v46  ;;  %v18376_v21 = vrot.slane %v4718_v42, %v17044_v18 }
0x12c1   :  { %v4816_v9 = vrot.slane %v18367_v47, %v17047_v25  ;;  %v4853_v37 = vadd.f32 %v4812_v24, %v18142_v57  ;;  %v4854_v30 = vadd.f32 %v4812_v24, %v18138_v8  ;;  %v4780_v54 = vrot.slane %v4727_v46, %v17047_v25 }
0x12c2   :  { %v4820_v32 = vrot.slane %v4775_v33, %v17047_v25  ;;  %v18381_v15 = vrot.slane %v4720_v40, %v17044_v18  ;;  %v4751_v19 = vcombine.high %v4741_v20, %v4741_v20  ;;  %v4784_v26 = vrot.slane %v4741_v20, %v17047_v25 }
0x12c3   :  { %v18385_v35 = vrot.slane %v4749_v2, %v17047_v25  ;;  %v4837_v12 = vadd.f32 %v4780_v54, %v18142_v57  ;;  %v4838_v45 = vadd.f32 %v4780_v54, %v18138_v8  ;;  %vm4878_vm12 = vcmp.gt.f32.partialorder %v4854_v30, 0.0 }
0x12c4   :  { %v4902_v3 = vmul.f32 0.2, %v4854_v30  ;;  %vm4877_vm14 = vcmp.gt.f32.partialorder %v4853_v37, 0.0  ;;  %v4901_v50 = vmul.f32 0.2, %v4853_v37  ;;  %v4856_v11 = vadd.f32 %v4816_v9, %v18138_v8 }
0x12c5   :  { %vm4862_vm2 = vcmp.gt.f32.partialorder %v4838_v45, 0.0  ;;  %v4886_v18 = vmul.f32 0.2, %v4838_v45  ;;  %vm4861_vm13 = vcmp.gt.f32.partialorder %v4837_v12, 0.0  ;;  %v4885_v28 = vmul.f32 0.2, %v4837_v12 }
0x12c6   :  { %v4926_v27 = vsel %vm4878_vm12, %v4854_v30, %v4902_v3  ;;  %v4925_v43 = vsel %vm4877_vm14, %v4853_v37, %v4901_v50  ;;  %vm4880_vm0 = vcmp.gt.f32.partialorder %v4856_v11, 0.0  ;;  %v4904_v48 = vmul.f32 0.2, %v4856_v11  ;;  %vm20827_vm12 = vmmov %vm20825_vm11 }
0x12c7   :  { %v4956_v29 = vmul.f32 %v18389_v10, %v4926_v27  ;;  %v4955_v31 = vmul.f32 %v18389_v10, %v4925_v43  ;;  %v4910_v62 = vsel %vm4862_vm2, %v4838_v45, %v4886_v18  ;;  %v4909_v63 = vsel %vm4861_vm13, %v4837_v12, %v4885_v28  ;;  %vm20828_vm2 = vmmov %vm20826_vm15 }
0x12c8   :  { %v4940_v16 = vmul.f32 %v18389_v10, %v4910_v62  ;;  %v4939_v23 = vmul.f32 %v18389_v10, %v4909_v63  ;;  %v4928_v44 = vsel %vm4880_vm0, %v4856_v11, %v4904_v48  ;;  %v4855_v38 = vadd.f32 %v4816_v9, %v18142_v57 }
0x12c9   :  { %v4796_v56 = vrot.slane %v18376_v21, %v17047_v25  ;;  %v5014_v58 = vsel %vm20825_vm11, %v4956_v29, 0.0  ;;  %v5011_v60 = vsel %vm20826_vm15, %v4955_v31, 0.0  ;;  %v4858_v6 = vadd.f32 %v4820_v32, %v18138_v8 }
0x12ca   :  { %5015 = vadd.xlane.f32.xlu0 %v5014_v58  ;;  %5012 = vadd.xlane.f32.xlu1 %v5011_v60  ;;  %v4966_v59 = vsel %vm20827_vm12, %v4940_v16, 0.0  ;;  %v4958_v42 = vmul.f32 %v18389_v10, %v4928_v44  ;;  %vm4879_vm14 = vcmp.gt.f32.partialorder %v4855_v38, 0.0  ;;  %v4903_v13 = vmul.f32 0.2, %v4855_v38 }
0x12cb   :  { %v4963_v46 = vsel %vm20828_vm2, %v4939_v23, 0.0  ;;  %vm4882_vm13 = vcmp.gt.f32.partialorder %v4858_v6, 0.0  ;;  %v4906_v24 = vmul.f32 0.2, %v4858_v6  ;;  %v4857_v33 = vadd.f32 %v4820_v32, %v18142_v57 }
0x12cc   :  { %v4927_v40 = vsel %vm4879_vm14, %v4855_v38, %v4903_v13  ;;  %v4840_v20 = vadd.f32 %v4784_v26, %v18138_v8  ;;  %v4839_v2 = vadd.f32 %v4784_v26, %v18142_v57  ;;  %v4842_v9 = vadd.f32 %v18385_v35, %v18138_v8  ;;  %vm20829_vm14 = vmmov %vm20828_vm2 }
0x12cd   :  { %v4957_v37 = vmul.f32 %v18389_v10, %v4927_v40  ;;  %v4930_v30 = vsel %vm4882_vm13, %v4858_v6, %v4906_v24  ;;  %vm4881_vm0 = vcmp.gt.f32.partialorder %v4857_v33, 0.0  ;;  %v4905_v54 = vmul.f32 0.2, %v4857_v33  ;;  %vm20830_vm13 = vmmov %vm20827_vm12 }
0x12ce   :  { %v4792_v12 = vrot.slane %v4751_v19, %v17047_v25  ;;  %4967 = vadd.xlane.f32.xlu0 %v4966_v59  ;;  %4964 = vadd.xlane.f32.xlu1 %v4963_v46  ;;  %vm4864_vm11 = vcmp.gt.f32.partialorder %v4840_v20, 0.0  ;;  %v4888_v45 = vmul.f32 0.2, %v4840_v20  ;;  %vm4863_vm15 = vcmp.gt.f32.partialorder %v4839_v2, 0.0 }
0x12cf   :  { %v5020_v32 = vsel %vm20827_vm12, %v4958_v42, 0.0  ;;  %v4960_v3 = vmul.f32 %v18389_v10, %v4930_v30  ;;  %v4929_v26 = vsel %vm4881_vm0, %v4857_v33, %v4905_v54  ;;  %v4887_v50 = vmul.f32 0.2, %v4839_v2 }
0x12d0   :  { %v5017_v11 = vsel %vm20829_vm14, %v4957_v37, 0.0  ;;  %v4959_v18 = vmul.f32 %v18389_v10, %v4929_v26  ;;  %v4912_v28 = vsel %vm4864_vm11, %v4840_v20, %v4888_v45  ;;  %v4890_v27 = vmul.f32 0.2, %v4842_v9  ;;  %vm20831_vm11 = vmmov %vm20829_vm14 }
0x12d1   :  { %v4911_v43 = vsel %vm4863_vm15, %v4839_v2, %v4887_v50  ;;  %vm4866_vm2 = vcmp.gt.f32.partialorder %v4842_v9, 0.0  ;;  %v4841_v19 = vadd.f32 %v18385_v35, %v18142_v57  ;;  %v4846_v48 = vadd.f32 %v4796_v56, %v18138_v8  ;;  %vm20832_vm14 = vmmov %vm20830_vm13 }
0x12d2   :  { %v4750_v29 = vcombine.high %v18376_v21, %v18376_v21  ;;  %v4800_v31 = vrot.slane %v18381_v15, %v17047_v25  ;;  %5021 = vadd.xlane.f32.xlu0 %v5020_v32  ;;  %5018 = vadd.xlane.f32.xlu1 %v5017_v11  ;;  %v4845_v62 = vadd.f32 %v4796_v56, %v18142_v57  ;;  %v5026_v63 = vsel %vm20830_vm13, %v4960_v3, 0.0  ;;  %vm20833_vm13 = vmmov %vm20831_vm11 }
0x12d3   :  { %v4942_v16 = vmul.f32 %v18389_v10, %v4912_v28  ;;  %vm4865_vm0 = vcmp.gt.f32.partialorder %v4841_v19, 0.0  ;;  %v4889_v23 = vmul.f32 0.2, %v4841_v19  ;;  %v5023_v35 = vsel %vm20831_vm11, %v4959_v18, 0.0  ;;  %vm20834_vm11 = vmmov %vm20832_vm14 }
0x12d4   :  { %v4941_v44 = vmul.f32 %v18389_v10, %v4911_v43  ;;  %v4914_v38 = vsel %vm4866_vm2, %v4842_v9, %v4890_v27  ;;  %v4894_v58 = vmul.f32 0.2, %v4846_v48  ;;  %vm4870_vm15 = vcmp.gt.f32.partialorder %v4846_v48, 0.0 }
0x12d5   :  { %v4913_v21 = vsel %vm4865_vm0, %v4841_v19, %v4889_v23  ;;  %v4893_v60 = vmul.f32 0.2, %v4845_v62  ;;  %v4844_v6 = vadd.f32 %v4792_v12, %v18138_v8  ;;  %vm4869_vm12 = vcmp.gt.f32.partialorder %v4845_v62, 0.0 }
0x12d6   :  { %5027 = vadd.xlane.f32.xlu0 %v5026_v63  ;;  %5024 = vadd.xlane.f32.xlu1 %v5023_v35  ;;  %v4843_v56 = vadd.f32 %v4792_v12, %v18142_v57  ;;  %v4804_v59 = vrot.slane %v4750_v29, %v17047_v25  ;;  %v4972_v42 = vsel %vm20832_vm14, %v4942_v16, 0.0  ;;  %v4969_v13 = vsel %vm20833_vm13, %v4941_v44, 0.0 }
0x12d7   :  { %v4944_v46 = vmul.f32 %v18389_v10, %v4914_v38  ;;  %v4943_v24 = vmul.f32 %v18389_v10, %v4913_v21  ;;  %v4918_v33 = vsel %vm4870_vm15, %v4846_v48, %v4894_v58  ;;  %v4917_v40 = vsel %vm4869_vm12, %v4845_v62, %v4893_v60  ;;  %vm20835_vm15 = vmmov %vm20833_vm13 }
0x12d8   :  { %v4892_v20 = vmul.f32 0.2, %v4844_v6  ;;  %v4891_v2 = vmul.f32 0.2, %v4843_v56  ;;  %v4848_v9 = vadd.f32 %v4800_v31, %v18138_v8  ;;  %v4752_v37 = vcombine.high %v18381_v15, %v18381_v15  ;;  %vm20836_vm13 = vmmov %vm20834_vm11 }
0x12d9   :  { %vm4868_vm2 = vcmp.gt.f32.partialorder %v4844_v6, 0.0  ;;  %vm4867_vm0 = vcmp.gt.f32.partialorder %v4843_v56, 0.0  ;;  %v4847_v30 = vadd.f32 %v4800_v31, %v18142_v57  ;;  %v4776_v54 = vcombine.high %v18367_v47, %v18367_v47 }
0x12da   :  { %4973 = vadd.xlane.f32.xlu0 %v4972_v42  ;;  %4970 = vadd.xlane.f32.xlu1 %v4969_v13  ;;  %v4978_v12 = vsel %vm20834_vm11, %v4944_v46, 0.0  ;;  %v4975_v45 = vsel %vm20835_vm15, %v4943_v24, 0.0  ;;  %v4948_v32 = vmul.f32 %v18389_v10, %v4918_v33  ;;  %v4947_v3 = vmul.f32 %v18389_v10, %v4917_v40 }
0x12db   :  { %v4916_v26 = vsel %vm4868_vm2, %v4844_v6, %v4892_v20  ;;  %v4915_v50 = vsel %vm4867_vm0, %v4843_v56, %v4891_v2  ;;  %v4896_v15 = vmul.f32 0.2, %v4848_v9  ;;  %v4850_v11 = vadd.f32 %v4804_v59, %v18138_v8  ;;  %vm20837_vm2 = vmmov %vm20835_vm15 }
0x12dc   :  { %vm4872_vm12 = vcmp.gt.f32.partialorder %v4848_v9, 0.0  ;;  %v4895_v18 = vmul.f32 0.2, %v4847_v30  ;;  %v4849_v28 = vadd.f32 %v4804_v59, %v18142_v57  ;;  %v4808_v47 = vrot.slane %v4752_v37, %v17047_v25  ;;  %vm20838_vm15 = vmmov %vm20836_vm13 }
0x12dd   :  { %vm4871_vm14 = vcmp.gt.f32.partialorder %v4847_v30, 0.0  ;;  %v4824_v27 = vrot.slane %v4776_v54, %v17047_v25  ;;  %v4990_v43 = vsel %vm20836_vm13, %v4948_v32, 0.0  ;;  %v4946_v19 = vmul.f32 %v18389_v10, %v4916_v26  ;;  %vm20839_vm13 = vmmov %vm20837_vm2 }
0x12de   :  { %4979 = vadd.xlane.f32.xlu0 %v4978_v12  ;;  %4976 = vadd.xlane.f32.xlu1 %v4975_v45  ;;  %v4945_v48 = vmul.f32 %v18389_v10, %v4915_v50  ;;  %v4987_v29 = vsel %vm20837_vm2, %v4947_v3, 0.0  ;;  %v4920_v31 = vsel %vm4872_vm12, %v4848_v9, %v4896_v15  ;;  %vm4874_vm0 = vcmp.gt.f32.partialorder %v4850_v11, 0.0  ;;  %vm20840_vm2 = vmmov %vm20838_vm15 }
0x12df   :  { %v4898_v62 = vmul.f32 0.2, %v4850_v11  ;;  %v4919_v63 = vsel %vm4871_vm14, %v4847_v30, %v4895_v18  ;;  %v4897_v16 = vmul.f32 0.2, %v4849_v28  ;;  %v4852_v23 = vadd.f32 %v4808_v47, %v18138_v8 }
0x12e0   :  { %v4851_v35 = vadd.f32 %v4808_v47, %v18142_v57  ;;  %vm4873_vm11 = vcmp.gt.f32.partialorder %v4849_v28, 0.0  ;;  %v4984_v25 = vsel %vm20838_vm15, %v4946_v19, 0.0  ;;  %v4981_v44 = vsel %vm20839_vm13, %v4945_v48, 0.0  ;;  %vm20841_vm15 = vmmov %vm20839_vm13 }
0x12e1   :  { %v4950_v38 = vmul.f32 %v18389_v10, %v4920_v31  ;;  %v4949_v58 = vmul.f32 %v18389_v10, %v4919_v63  ;;  %v4922_v21 = vsel %vm4874_vm0, %v4850_v11, %v4898_v62  ;;  %v4860_v60 = vadd.f32 %v4824_v27, %v18138_v8  ;;  %vm20842_vm13 = vmmov %vm20840_vm2 }
0x12e2   :  { %4991 = vadd.xlane.f32.xlu0 %v4990_v43  ;;  %4988 = vadd.xlane.f32.xlu1 %v4987_v29  ;;  %v4921_v6 = vsel %vm4873_vm11, %v4849_v28, %v4897_v16  ;;  %v4900_v56 = vmul.f32 0.2, %v4852_v23  ;;  %v4899_v59 = vmul.f32 0.2, %v4851_v35  ;;  %v4859_v42 = vadd.f32 %v4824_v27, %v18142_v57  ;;  %vm20843_vm1 = vmmov %vm20841_vm15 }
0x12e3   :  { %vm4876_vm12 = vcmp.gt.f32.partialorder %v4852_v23, 0.0  ;;  %vm4875_vm14 = vcmp.gt.f32.partialorder %v4851_v35, 0.0  ;;  %v4996_v13 = vsel %vm20840_vm2, %v4950_v38, 0.0  ;;  %v4993_v46 = vsel %vm20841_vm15, %v4949_v58, 0.0 }
0x12e4   :  { %v4952_v24 = vmul.f32 %v18389_v10, %v4922_v21  ;;  %v4951_v33 = vmul.f32 %v18389_v10, %v4921_v6  ;;  %v4924_v8 = vsel %vm4876_vm12, %v4852_v23, %v4900_v56  ;;  %v4923_v40 = vsel %vm4875_vm14, %v4851_v35, %v4899_v59  ;;  %vm20844_vm12 = vmmov %vm20843_vm1 }
0x12e5   :  { %v4908_v20 = vmul.f32 0.2, %v4860_v60  ;;  %v4907_v2 = vmul.f32 0.2, %v4859_v42  ;;  %vm4884_vm0 = vcmp.gt.f32.partialorder %v4860_v60, 0.0  ;;  %vm4883_vm11 = vcmp.gt.f32.partialorder %v4859_v42, 0.0  ;;  %vm20845_vm14 = vmmov %vm20840_vm2 }
0x12e6   :  { %4985 = vadd.xlane.f32.xlu0 %v4984_v25  ;;  %4982 = vadd.xlane.f32.xlu1 %v4981_v44  ;;  %v5002_v57 = vsel %vm20842_vm13, %v4952_v24, 0.0  ;;  %v4999_v9 = vsel %vm20843_vm1, %v4951_v33, 0.0  ;;  %v4954_v37 = vmul.f32 %v18389_v10, %v4924_v8  ;;  %v4953_v30 = vmul.f32 %v18389_v10, %v4923_v40 }
0x12e7   :  { %v4932_v54 = vsel %vm4884_vm0, %v4860_v60, %v4908_v20  ;;  %v4931_v12 = vsel %vm4883_vm11, %v4859_v42, %v4907_v2  ;;  %vm20846_vm15 = vcmask 1046534   ;;  %vm20847_vm0 = vcmask 1047559  }
0x12e8   :  { %v5008_v45 = vsel %vm20840_vm2, %v4954_v37, 0.0  ;;  %v5005_v32 = vsel %vm20844_vm12, %v4953_v30, 0.0  ;;  %v4962_v3 = vmul.f32 %v18389_v10, %v4932_v54  ;;  %v4961_v26 = vmul.f32 %v18389_v10, %v4931_v12 }
0x12e9   :  { %vm20850_vm11 = vcmp.gt.f32.partialorder %v17432_v36, 0.0  ;;  %vm20851_vm13 = vcmask 93184   ;;  %vm20856_vm2 = vcmask 64512  }
0x12ea   :  { %4997 = vadd.xlane.f32.xlu0 %v4996_v13  ;;  %4994 = vadd.xlane.f32.xlu1 %v4993_v46  ;;  %v5032_v50 = vsel %vm20845_vm14, %v4962_v3, 0.0  ;;  %v5029_v15 = vsel %vm20843_vm1, %v4961_v26, 0.0  ;;  %vm20857_vm12 = vmmov %vm20856_vm2 }
0x12eb   :  { %vm20858_vm14 = vmmov %vm20856_vm2 }
0x12ec   :  { %vm20859_vm1 = vmmov %vm20856_vm2 }
0x12ee   :  { %5003 = vadd.xlane.f32.xlu0 %v5002_v57  ;;  %5000 = vadd.xlane.f32.xlu1 %v4999_v9 }
0x12f2   :  { %5009 = vadd.xlane.f32.xlu0 %v5008_v45  ;;  %5006 = vadd.xlane.f32.xlu1 %v5005_v32 }
0x12f6   :  { %5033 = vadd.xlane.f32.xlu0 %v5032_v50  ;;  %5030 = vadd.xlane.f32.xlu1 %v5029_v15 }
0x1357   :  { %v18475_v11 = vpop.xlane.xlu0 %5015  ;;  %v18477_v18 = vpop.xlane.xlu1 %5012 }
0x1358   :  { %v5138_v32 = vrot.slane %v18475_v11, %v17029_v7 }
0x135b   :  { %v4968_v28 = vpop.xlane.xlu0 %4967  ;;  %v4965_v47 = vpop.xlane.xlu1 %4964 }
0x135c   :  { %v5066_v21 = vrot.slane %v4968_v28, %v17029_v7  ;;  %v5062_v60 = vrot.slane %v4965_v47, %v17025_v4 }
0x135e   :  { %v5067_v24 = vsel %vm1507_vm4, %v5066_v21, %v5062_v60 }
0x135f   :  { %v5022_v27 = vpop.xlane.xlu0 %5021  ;;  %v5019_v43 = vpop.xlane.xlu1 %5018 }
0x1360   :  { %v5147_v3 = vrot.slane %v5022_v27, %v17029_v7  ;;  %v5143_v26 = vrot.slane %v5019_v43, %v17025_v4 }
0x1363   :  { %v5028_v19 = vpop.xlane.xlu0 %5027  ;;  %v5025_v48 = vpop.xlane.xlu1 %5024 }
0x1364   :  { %v5156_v15 = vrot.slane %v5028_v19, %v17029_v7  ;;  %v5152_v28 = vrot.slane %v5025_v48, %v17025_v4  ;;  %v5148_v19 = vsel %vm1507_vm4, %v5147_v3, %v5143_v26 }
0x1367   :  { %v4974_v29 = vpop.xlane.xlu0 %4973  ;;  %v4971_v10 = vpop.xlane.xlu1 %4970 }
0x1368   :  { %v5075_v25 = vrot.slane %v4974_v29, %v17029_v7  ;;  %v5071_v44 = vrot.slane %v4971_v10, %v17025_v4 }
0x136a   :  { %v5076_v13 = vsel %vm1507_vm4, %v5075_v25, %v5071_v44 }
0x136b   :  { %v4980_v31 = vpop.xlane.xlu0 %4979  ;;  %v4977_v62 = vpop.xlane.xlu1 %4976  ;;  %v5167_v20 = vsel %vm1608_vm5, %v5076_v13, %v5067_v24 }
0x136c   :  { %v5084_v38 = vrot.slane %v4980_v31, %v17029_v7  ;;  %v5080_v58 = vrot.slane %v4977_v62, %v17025_v4  ;;  %v5134_v62 = vrot.slane %v18477_v18, %v17025_v4 }
0x136e   :  { %v5085_v46 = vsel %vm1507_vm4, %v5084_v38, %v5080_v58  ;;  %v5139_v44 = vsel %vm1507_vm4, %v5138_v32, %v5134_v62 }
0x136f   :  { %v4992_v63 = vpop.xlane.xlu0 %4991  ;;  %v4989_v16 = vpop.xlane.xlu1 %4988  ;;  %v5168_v30 = vsel %vm1610_vm6, %v5085_v46, %v5167_v20 }
0x1370   :  { %v5102_v2 = vrot.slane %v4992_v63, %v17029_v7  ;;  %v5098_v57 = vrot.slane %v4989_v16, %v17025_v4 }
0x1372   :  { %v5103_v47 = vsel %vm1507_vm4, %v5102_v2, %v5098_v57 }
0x1373   :  { %v4986_v23 = vpop.xlane.xlu0 %4985  ;;  %v4983_v35 = vpop.xlane.xlu1 %4982 }
0x1374   :  { %v5093_v6 = vrot.slane %v4986_v23, %v17029_v7  ;;  %v5089_v56 = vrot.slane %v4983_v35, %v17025_v4  ;;  %v5157_v23 = vsel %vm1507_vm4, %v5156_v15, %v5152_v28 }
0x1376   :  { %v5094_v33 = vsel %vm1507_vm4, %v5093_v6, %v5089_v56  ;;  %v5174_v6 = vsel %vm1608_vm5, %v5148_v19, %v5139_v44  ;;  %vm20853_vm5 = vmmov %vm20851_vm13 }
0x1377   :  { %v4998_v59 = vpop.xlane.xlu0 %4997  ;;  %v4995_v42 = vpop.xlane.xlu1 %4994  ;;  %v5169_v45 = vsel %vm1612_vm7, %v5094_v33, %v5168_v30 }
0x1378   :  { %v5111_v8 = vrot.slane %v4998_v59, %v17029_v7  ;;  %v5107_v40 = vrot.slane %v4995_v42, %v17025_v4  ;;  %v5170_v43 = vsel %vm1614_vm8, %v5103_v47, %v5169_v45  ;;  %vm20848_vm8 = vcmp.gt.f32.partialorder %v17412_v5, 0.0 }
0x1379   :  { %v5175_v59 = vsel %vm1610_vm6, %v5157_v23, %v5174_v6 }
0x137a   :  { %v5112_v50 = vsel %vm1507_vm4, %v5111_v8, %v5107_v40 }
0x137b   :  { %v5004_v9 = vpop.xlane.xlu0 %5003  ;;  %v5001_v37 = vpop.xlane.xlu1 %5000  ;;  %v5171_v63 = vsel %vm1616_vm9, %v5112_v50, %v5170_v43  ;;  %vm20849_vm9 = vcmask 97280  }
0x137c   :  { %v5120_v54 = vrot.slane %v5004_v9, %v17029_v7  ;;  %v5116_v12 = vrot.slane %v5001_v37, %v17025_v4 }
0x137e   :  { %v5121_v29 = vsel %vm1507_vm4, %v5120_v54, %v5116_v12  ;;  %v11830_v54 = vld [vmem:[#allocation41] ss:$0 sm:$0xff] }
0x137f   :  { %v5010_v10 = vpop.xlane.xlu0 %5009  ;;  %v5007_v31 = vpop.xlane.xlu1 %5006  ;;  %v5172_v16 = vsel %vm20846_vm15, %v5121_v29, %v5171_v63  ;;  %v18537_v32 = vadd.f32 %v11830_v54, %v18100_v0  ;;  %v18546_v3 = vadd.f32 %v18098_v52, %v11830_v54  ;;  %v18549_v26 = vadd.f32 %v11830_v54, %v18104_v53  ;;  %vm20860_vm15 = vmmov %vm20859_vm1 }
0x1380   :  { %v5129_v11 = vrot.slane %v5010_v10, %v17029_v7  ;;  %v5125_v27 = vrot.slane %v5007_v31, %v17025_v4  ;;  %v18556_v0 = vadd.f32 %v18102_v55, %v11830_v54  ;;  %v18566_v52 = vadd.f32 %v18106_v51, %v11830_v54 }
0x1381   :  { %v18569_v53 = vadd.f32 %v11830_v54, %v18112_v1  ;;  %v18576_v55 = vadd.f32 %v18110_v39, %v11830_v54  ;;  %v18586_v51 = vadd.f32 %v18132_v17, %v11830_v54  ;;  %v11859_v1 = vld [vmem:[#allocation50] ss:$0 sm:$0xff] }
0x1382   :  { %v5130_v48 = vsel %vm1507_vm4, %v5129_v11, %v5125_v27 }
0x1383   :  { %v5034_v35 = vpop.xlane.xlu0 %5033  ;;  %v5031_v25 = vpop.xlane.xlu1 %5030  ;;  %v5173_v18 = vsel %vm20847_vm0, %v5130_v48, %v5172_v16  ;;  %vm20861_vm0 = vmmov %vm20859_vm1  ;;  %20865 = vst [vmem:[#allocation151_spill] sm:$0xff] %v18586_v51 }
0x1384   :  { %v5165_v38 = vrot.slane %v5034_v35, %v17029_v7  ;;  %v5161_v58 = vrot.slane %v5031_v25, %v17025_v4  ;;  %v5179_v21 = vsel %vm20848_vm8, %v5173_v18, -1e+30  ;;  %vm20862_vm8 = vmmov %vm20861_vm0 }
0x1385   :  { %v5181_v60 = vsel %vm20849_vm9, %v5179_v21, -inf }
0x1386   :  { %5182 = vmax.xlane.f32.xlu1 %v5181_v60  ;;  %v5166_v56 = vsel %vm1507_vm4, %v5165_v38, %v5161_v58  ;;  %vm20852_vm4 = vmmov %vm20849_vm9 }
0x1387   :  { %v5176_v42 = vsel %vm1612_vm7, %v5166_v56, %v5175_v59  ;;  %vm20854_vm6 = vmmov %vm20852_vm4 }
0x1388   :  { %v5180_v13 = vsel %vm20850_vm11, %v5176_v42, -1e+30  ;;  %vm20855_vm7 = vmmov %vm20852_vm4 }
0x1389   :  { %v5184_v7 = vsel %vm20851_vm13, %v5180_v13, -inf  ;;  %vm20863_vm9 = vmmov %vm20861_vm0 }
0x138a   :  { %5185 = vmax.xlane.f32.xlu0 %v5184_v7  ;;  %vm20864_vm11 = vmmov %vm20861_vm0 }
0x138b   :  { %vm20866_vm13 = vmmov %vm20861_vm0 }
0x1413   :  { %v5183_v4 = vpop.xlane.xlu1 %5182 }
0x1414   :  { %v5187_v5 = vsub.f32 %v5179_v21, %v5183_v4 }
0x1416   :  { %v5189_v46 = vmul.f32 1.442695, %v5187_v5 }
0x1417   :  { %v5186_v24 = vpop.xlane.xlu0 %5185 }
0x1418   :  { %14860 = vpow2.f32 %v5189_v46  ;;  %v5188_v33 = vsub.f32 %v5180_v13, %v5186_v24 }
0x141a   :  { %v5191_v8 = vmul.f32 1.442695, %v5188_v33 }
0x141c   :  { %14862 = vpow2.f32 %v5191_v8 }
0x1422   :  { %v14861_v40 = vpop.eup %14860 }
0x1423   :  { %v5193_v20 = vsel %vm20852_vm4, %v14861_v40, 0.0 }
0x1424   :  { %5194 = vadd.xlane.f32.xlu1 %v5193_v20 }
0x1426   :  { %v14863_v2 = vpop.eup %14862 }
0x1427   :  { %v5196_v57 = vsel %vm20853_vm5, %v14863_v2, 0.0  ;;  %vm20867_vm5 = vmmov %vm20852_vm4 }
0x1428   :  { %5197 = vadd.xlane.f32.xlu0 %v5196_v57 }
0x14b1   :  { %v5195_v36 = vpop.xlane.xlu1 %5194 }
0x14b2   :  { %14864 = vrcp.f32 %v5195_v36 }
0x14b5   :  { %v5198_v9 = vpop.xlane.xlu0 %5197 }
0x14b6   :  { %14866 = vrcp.f32 %v5198_v9 }
0x14bc   :  { %v14865_v37 = vpop.eup %14864 }
0x14bd   :  { %v5201_v30 = vmul.f32 %v14865_v37, %v14861_v40 }
0x14bf   :  { %12919 = vmatprep.mubr.msk.f32.mxu1 %vm20854_vm6, %v5201_v30  ;;  %vm20868_vm6 = vmmov %vm20852_vm4 }
0x14c0   :  { %v14867_v12 = vpop.eup %14866 }
0x14c1   :  { %v5202_v45 = vmul.f32 %v14867_v12, %v14863_v2 }
0x14c3   :  { %12920 = vmatmul.mubr.msk.f32.vlgmr.msra.gmra.mrb[20].mxu1 %vm20855_vm7, %v5202_v45  ;;  %vm20869_vm7 = vmmov %vm20852_vm4 }
0x14c4   :  { %13866 = vmatpush3.bf16.xpose.msk.msra.mxu1 %vm18350_vm10, %v18354_v41  ;;  %12926 = vmatprep.mubr.msk.f32.mxu1 %vm20856_vm2, %v18537_v32  ;;  %v18559_v41 = vadd.f32 %v11830_v54, %v18108_v61  ;;  %v18579_v61 = vadd.f32 %v11830_v54, %v18134_v22  ;;  %vm20870_vm2 = vmmov %vm20852_vm4 }
0x14cb   :  { %12927 = vmatmul.mubr.msk.f32.vlgmr.msra.gmra.mrb[22].mxu1 %vm20857_vm12, %v18546_v3  ;;  %vm20871_vm12 = vmmov %vm20870_vm2 }
0x14cc   :  { %12929 = vmatprep.mubr.msk.f32.mxu1 %vm20858_vm14, %v18549_v26  ;;  %vm20872_vm14 = vmmov %vm20870_vm2 }
0x14cf   :  { %12930 = vmatmul.mubr.msk.f32.gmra.mrb[24].mxu1 %vm20859_vm1, %v18556_v0  ;;  %vm20873_vm1 = vmmov %vm20870_vm2 }
0x14d0   :  { %12932 = vmatprep.mubr.msk.f32.mxu1 %vm20860_vm15, %v18559_v41  ;;  %vm5481_vm15 = vcmask 92160  }
0x14d3   :  { %12933 = vmatmul.mubr.msk.f32.gmra.mrb[26].mxu1 %vm20861_vm0, %v18566_v52  ;;  %vm20874_vm0 = vmmov %vm20873_vm1 }
0x14d4   :  { %12935 = vmatprep.mubr.msk.f32.mxu1 %vm20862_vm8, %v18569_v53  ;;  %vm20875_vm8 = vmmov %vm20874_vm0 }
0x14d7   :  { %12936 = vmatmul.mubr.msk.f32.gmra.mrb[28].mxu1 %vm20863_vm9, %v18576_v55  ;;  %vm20876_vm9 = vmmov %vm20874_vm0 }
0x14d8   :  { %12938 = vmatprep.mubr.msk.f32.mxu1 %vm20864_vm11, %v18579_v61  ;;  %vm20877_vm11 = vmmov %vm20874_vm0 }
0x14db   :  { %12939 = vmatmul.mubr.msk.f32.gmra.mrb[30].mxu1 %vm20866_vm13, %v18586_v51  ;;  %vm20878_vm13 = vmmov %vm20874_vm0 }
0x1596   :  { %v12921_v50 = vpop.f32.mrb[20].mxu1 }
0x1597   :  { %v5290_v15 = vadd.f32 %v12921_v50, %v11859_v1  ;;  %v5284_v39 = vpop.f32.mrb[21].mxu1 }
0x1598   :  { %v5285_v28 = vadd.f32 %v11859_v1, %v5284_v39 }
0x159a   :  { %v13867_v47 = vpack.c.bf16 %v5290_v15, %v5285_v28  ;;  %v18590_v22 = vpack.i.bf16 %v5290_v15, %v5285_v28 }
0x159c   :  { %13869 = vmatprep.subr.msk.bf16.mxu0 %vm17057_vm3, %v13867_v47 }
0x159d   :  { %13872 = vmatpush3.bf16.msk.msra.mxu0 %vm17057_vm3, %v13867_v47 }
0x159e   :  { %v12928_v29 = vpop.f32.mrb[22].mxu1 }
0x159f   :  { %v5445_v17 = vmul.f32 0.17677669, %v12928_v29  ;;  %v5395_v10 = vpop.f32.mrb[23].mxu1 }
0x15a0   :  { %v5444_v31 = vmul.f32 0.17677669, %v5395_v10 }
0x15a1   :  { %v5457_v62 = vsel %vm20852_vm4, %v5445_v17, -inf  ;;  %vm20879_vm4 = vmmov %vm20874_vm0 }
0x15a2   :  { %5458 = vmax.xlane.f32.xlu0 %v5457_v62  ;;  %v12931_v11 = vpop.f32.mrb[24].mxu1  ;;  %v5454_v27 = vsel %vm20867_vm5, %v5444_v31, -inf  ;;  %vm20880_vm5 = vmmov %vm20874_vm0 }
0x15a3   :  { %v5447_v43 = vmul.f32 0.17677669, %v12931_v11  ;;  %5455 = vmax.xlane.f32.xlu1 %v5454_v27  ;;  %v5405_v63 = vpop.f32.mrb[25].mxu1 }
0x15a4   :  { %v5446_v19 = vmul.f32 0.17677669, %v5405_v63 }
0x15a5   :  { %v5463_v48 = vsel %vm20868_vm6, %v5447_v43, -inf  ;;  %vm20881_vm6 = vmmov %vm20874_vm0 }
0x15a6   :  { %5464 = vmax.xlane.f32.xlu0 %v5463_v48  ;;  %v12934_v16 = vpop.f32.mrb[26].mxu1  ;;  %v5460_v23 = vsel %vm20869_vm7, %v5446_v19, -inf  ;;  %vm20882_vm7 = vmmov %vm20874_vm0 }
0x15a7   :  { %v5449_v35 = vmul.f32 0.17677669, %v12934_v16  ;;  %5461 = vmax.xlane.f32.xlu1 %v5460_v23  ;;  %v5415_v25 = vpop.f32.mrb[27].mxu1 }
0x15a8   :  { %v5448_v18 = vmul.f32 0.17677669, %v5415_v25 }
0x15a9   :  { %v5469_v44 = vsel %vm20870_vm2, %v5449_v35, -inf  ;;  %vm20883_vm2 = vmmov %vm20874_vm0 }
0x15aa   :  { %5470 = vmax.xlane.f32.xlu0 %v5469_v44  ;;  %v12937_v38 = vpop.f32.mrb[28].mxu1  ;;  %v5466_v58 = vsel %vm20871_vm12, %v5448_v18, -inf  ;;  %vm20884_vm12 = vmmov %vm20874_vm0 }
0x15ab   :  { %v5451_v21 = vmul.f32 0.17677669, %v12937_v38  ;;  %5467 = vmax.xlane.f32.xlu1 %v5466_v58  ;;  %v5425_v60 = vpop.f32.mrb[29].mxu1 }
0x15ac   :  { %v5450_v6 = vmul.f32 0.17677669, %v5425_v60 }
0x15ad   :  { %v5475_v56 = vsel %vm20872_vm14, %v5451_v21, -inf  ;;  %vm20885_vm14 = vmmov %vm20874_vm0 }
0x15ae   :  { %5476 = vmax.xlane.f32.xlu0 %v5475_v56  ;;  %v12940_v59 = vpop.f32.mrb[30].mxu1  ;;  %v5472_v42 = vsel %vm20873_vm1, %v5450_v6, -inf  ;;  %vm20886_vm1 = vmmov %vm20874_vm0 }
0x15af   :  { %v5453_v13 = vmul.f32 0.17677669, %v12940_v59  ;;  %5473 = vmax.xlane.f32.xlu1 %v5472_v42  ;;  %v5435_v7 = vpop.f32.mrb[31].mxu1 }
0x15b0   :  { %v5452_v4 = vmul.f32 0.17677669, %v5435_v7 }
0x15b1   :  { %v5482_v5 = vsel %vm5481_vm15, %v5453_v13, -inf }
0x15b2   :  { %5483 = vmax.xlane.f32.xlu0 %v5482_v5  ;;  %v5478_v46 = vsel %vm20874_vm0, %v5452_v4, -inf }
0x15b3   :  { %5479 = vmax.xlane.f32.xlu1 %v5478_v46 }
0x15c4   :  { %14487 = vrot.lane.b32.xlu1 %v18356_v14, %s16429_s10 }
0x15c8   :  { %5723 = vrot.lane.b32.xlu0 %v18537_v32, %s16429_s10  ;;  %5725 = vrot.lane.b32.xlu1 %v18546_v3, %s16429_s10 }
0x15cc   :  { %5727 = vrot.lane.b32.xlu1 %v18549_v26, %s16429_s10 }
0x162f   :  { %v5459_v24 = vpop.xlane.xlu0 %5458 }
0x1630   :  { %v5486_v33 = vsub.f32 %v5445_v17, %v5459_v24  ;;  %v5456_v8 = vpop.xlane.xlu1 %5455 }
0x1631   :  { %v5485_v40 = vsub.f32 %v5444_v31, %v5456_v8 }
0x1632   :  { %v5497_v20 = vmul.f32 1.442695, %v5486_v33 }
0x1633   :  { %v5495_v2 = vmul.f32 1.442695, %v5485_v40  ;;  %v5465_v57 = vpop.xlane.xlu0 %5464 }
0x1634   :  { %14868 = vpow2.f32 %v5497_v20  ;;  %v5488_v36 = vsub.f32 %v5447_v43, %v5465_v57  ;;  %v5462_v9 = vpop.xlane.xlu1 %5461 }
0x1635   :  { %14870 = vpow2.f32 %v5495_v2  ;;  %v5487_v37 = vsub.f32 %v5446_v19, %v5462_v9 }
0x1636   :  { %v5501_v30 = vmul.f32 1.442695, %v5488_v36 }
0x1637   :  { %v5499_v54 = vmul.f32 1.442695, %v5487_v37  ;;  %v5471_v12 = vpop.xlane.xlu0 %5470 }
0x1638   :  { %14872 = vpow2.f32 %v5501_v30  ;;  %v5490_v45 = vsub.f32 %v5449_v35, %v5471_v12  ;;  %v5468_v1 = vpop.xlane.xlu1 %5467 }
0x1639   :  { %14874 = vpow2.f32 %v5499_v54  ;;  %v5489_v50 = vsub.f32 %v5448_v18, %v5468_v1 }
0x163a   :  { %v5505_v15 = vmul.f32 1.442695, %v5490_v45 }
0x163b   :  { %v5503_v39 = vmul.f32 1.442695, %v5489_v50  ;;  %v5477_v28 = vpop.xlane.xlu0 %5476 }
0x163c   :  { %14876 = vpow2.f32 %v5505_v15  ;;  %v5492_v47 = vsub.f32 %v5451_v21, %v5477_v28  ;;  %v5474_v29 = vpop.xlane.xlu1 %5473 }
0x163d   :  { %14878 = vpow2.f32 %v5503_v39  ;;  %v5491_v17 = vsub.f32 %v5450_v6, %v5474_v29 }
0x163e   :  { %v18614_v10 = vpop.eup %14868  ;;  %v5509_v31 = vmul.f32 1.442695, %v5492_v47 }
0x163f   :  { %v18616_v62 = vpop.eup %14870  ;;  %v5507_v11 = vmul.f32 1.442695, %v5491_v17  ;;  %v5484_v27 = vpop.xlane.xlu0 %5483  ;;  %v5518_v43 = vsel %vm20875_vm8, %v18614_v10, 0.0  ;;  %vm20887_vm8 = vmmov %vm20874_vm0 }
0x1640   :  { %14880 = vpow2.f32 %v5509_v31  ;;  %v5494_v63 = vsub.f32 %v5453_v13, %v5484_v27  ;;  %5519 = vadd.xlane.f32.xlu0 %v5518_v43  ;;  %v5480_v19 = vpop.xlane.xlu1 %5479  ;;  %v5515_v48 = vsel %vm20876_vm9, %v18616_v62, 0.0  ;;  %vm20888_vm9 = vmmov %vm20874_vm0 }
0x1641   :  { %14882 = vpow2.f32 %v5507_v11  ;;  %v5493_v16 = vsub.f32 %v5452_v4, %v5480_v19  ;;  %5516 = vadd.xlane.f32.xlu1 %v5515_v48 }
0x1642   :  { %v18622_v23 = vpop.eup %14872  ;;  %v5513_v35 = vmul.f32 1.442695, %v5494_v63 }
0x1643   :  { %v18624_v25 = vpop.eup %14874  ;;  %v5511_v18 = vmul.f32 1.442695, %v5493_v16  ;;  %v5524_v44 = vsel %vm20877_vm11, %v18622_v23, 0.0  ;;  %v18719_v20 = vpop.permute.xlu0 %5723  ;;  %vm20889_vm11 = vmmov %vm20874_vm0 }
0x1644   :  { %14884 = vpow2.f32 %v5513_v35  ;;  %5525 = vadd.xlane.f32.xlu0 %v5524_v44  ;;  %v14488_v38 = vpop.permute.xlu1 %14487  ;;  %v5521_v58 = vsel %vm20878_vm13, %v18624_v25, 0.0  ;;  %vm20890_vm13 = vmmov %vm20874_vm0 }
0x1645   :  { %14886 = vpow2.f32 %v5511_v18  ;;  %v14490_v21 = vunpack.i.h.bf16 %v14488_v38  ;;  %v14489_v60 = vunpack.i.l.bf16 %v14488_v38  ;;  %5522 = vadd.xlane.f32.xlu1 %v5521_v58 }
0x1646   :  { %v18630_v6 = vpop.eup %14876 }
0x1647   :  { %v18632_v56 = vpop.eup %14878  ;;  %v18634_v59 = vpack.c.bf16 %v14490_v21, %v14489_v60  ;;  %v5530_v42 = vsel %vm20879_vm4, %v18630_v6, 0.0  ;;  %vm20891_vm4 = vmmov %vm20874_vm0 }
0x1648   :  { %5531 = vadd.xlane.f32.xlu0 %v5530_v42  ;;  %v5527_v13 = vsel %vm20880_vm5, %v18632_v56, 0.0  ;;  %vm20892_vm5 = vmmov %vm20874_vm0 }
0x1649   :  { %5528 = vadd.xlane.f32.xlu1 %v5527_v13  ;;  %13875 = vmatprep.subr.msk.bf16.mxu0 %vm18350_vm10, %v18634_v59 }
0x164a   :  { %v18643_v7 = vpop.eup %14880 }
0x164b   :  { %v18645_v4 = vpop.eup %14882  ;;  %v5536_v5 = vsel %vm20881_vm6, %v18643_v7, 0.0  ;;  %vm20893_vm6 = vcmask 64512  }
0x164c   :  { %5537 = vadd.xlane.f32.xlu0 %v5536_v5  ;;  %v5533_v46 = vsel %vm20882_vm7, %v18645_v4, 0.0  ;;  %vm20894_vm7 = vmmov %vm20893_vm6 }
0x164d   :  { %5534 = vadd.xlane.f32.xlu1 %v5533_v46 }
0x164e   :  { %v18651_v24 = vpop.eup %14884 }
0x164f   :  { %v18653_v33 = vpop.eup %14886  ;;  %v5542_v8 = vsel %vm5481_vm15, %v18651_v24, 0.0 }
0x1650   :  { %5543 = vadd.xlane.f32.xlu0 %v5542_v8  ;;  %v5539_v40 = vsel %vm20883_vm2, %v18653_v33, 0.0  ;;  %vm20895_vm2 = vmmov %vm20893_vm6 }
0x1651   :  { %5540 = vadd.xlane.f32.xlu1 %v5539_v40 }
0x1662   :  { %5731 = vrot.lane.b32.xlu1 %v18559_v41, %s16429_s10 }
0x1666   :  { %5729 = vrot.lane.b32.xlu0 %v18556_v0, %s16429_s10  ;;  %14492 = vrot.lane.b32.xlu1 %v18356_v14, %s16428_s8 }
0x166a   :  { %5733 = vrot.lane.b32.xlu0 %v18566_v52, %s16429_s10  ;;  %5737 = vrot.lane.b32.xlu1 %v18576_v55, %s16429_s10 }
0x166e   :  { %5735 = vrot.lane.b32.xlu0 %v18569_v53, %s16429_s10  ;;  %5741 = vrot.lane.b32.xlu1 %v18586_v51, %s16429_s10 }
0x1672   :  { %5739 = vrot.lane.b32.xlu0 %v18579_v61, %s16429_s10  ;;  %6211 = vrot.lane.b32.xlu1 %v18546_v3, %s16428_s8 }
0x1676   :  { %6209 = vrot.lane.b32.xlu0 %v18537_v32, %s16428_s8  ;;  %6215 = vrot.lane.b32.xlu1 %v18556_v0, %s16428_s8 }
0x167a   :  { %6213 = vrot.lane.b32.xlu0 %v18549_v26, %s16428_s8  ;;  %6219 = vrot.lane.b32.xlu1 %v18566_v52, %s16428_s8 }
0x167e   :  { %6217 = vrot.lane.b32.xlu0 %v18559_v41, %s16428_s8  ;;  %6221 = vrot.lane.b32.xlu1 %v18569_v53, %s16428_s8 }
0x1682   :  { %14497 = vrot.lane.b32.xlu0 %v18356_v14, %s16430_s30  ;;  %6225 = vrot.lane.b32.xlu1 %v18579_v61, %s16428_s8  ;;  %v18717_v14 = vpop.permute.xlu1 %5725 }
0x1686   :  { %6223 = vrot.lane.b32.xlu0 %v18576_v55, %s16428_s8  ;;  %6694 = vrot.lane.b32.xlu1 %v18537_v32, %s16430_s30  ;;  %v18721_v2 = vpop.permute.xlu1 %5727 }
0x168a   :  { %6227 = vrot.lane.b32.xlu0 %v18586_v51, %s16428_s8  ;;  %6698 = vrot.lane.b32.xlu1 %v18549_v26, %s16430_s30 }
0x168e   :  { %6696 = vrot.lane.b32.xlu0 %v18546_v3, %s16430_s30  ;;  %6702 = vrot.lane.b32.xlu1 %v18559_v41, %s16430_s30 }
0x1692   :  { %6700 = vrot.lane.b32.xlu0 %v18556_v0, %s16430_s30  ;;  %6706 = vrot.lane.b32.xlu1 %v18569_v53, %s16430_s30 }
0x1696   :  { %6704 = vrot.lane.b32.xlu0 %v18566_v52, %s16430_s30  ;;  %6710 = vrot.lane.b32.xlu1 %v18579_v61, %s16430_s30 }
0x169a   :  { %6708 = vrot.lane.b32.xlu0 %v18576_v55, %s16430_s30 }
0x169e   :  { %6712 = vrot.lane.b32.xlu0 %v18586_v51, %s16430_s30 }
0x16cd   :  { %v5520_v57 = vpop.xlane.xlu0 %5519 }
0x16ce   :  { %14888 = vrcp.f32 %v5520_v57  ;;  %v5517_v36 = vpop.xlane.xlu1 %5516 }
0x16cf   :  { %14890 = vrcp.f32 %v5517_v36 }
0x16d1   :  { %v5526_v9 = vpop.xlane.xlu0 %5525 }
0x16d2   :  { %14892 = vrcp.f32 %v5526_v9  ;;  %v5523_v37 = vpop.xlane.xlu1 %5522 }
0x16d3   :  { %14894 = vrcp.f32 %v5523_v37 }
0x16d5   :  { %v5532_v30 = vpop.xlane.xlu0 %5531 }
0x16d6   :  { %14896 = vrcp.f32 %v5532_v30  ;;  %v5529_v54 = vpop.xlane.xlu1 %5528 }
0x16d7   :  { %14898 = vrcp.f32 %v5529_v54 }
0x16d8   :  { %v14889_v12 = vpop.eup %14888 }
0x16d9   :  { %v14891_v45 = vpop.eup %14890  ;;  %v5538_v1 = vpop.xlane.xlu0 %5537  ;;  %v5556_v39 = vmul.f32 %v14889_v12, %v18614_v10 }
0x16da   :  { %14900 = vrcp.f32 %v5538_v1  ;;  %v5535_v50 = vpop.xlane.xlu1 %5534  ;;  %v5555_v15 = vmul.f32 %v14891_v45, %v18616_v62 }
0x16db   :  { %14902 = vrcp.f32 %v5535_v50 }
0x16dc   :  { %v14893_v28 = vpop.eup %14892  ;;  %12945 = vmatprep.mubr.msk.f32.mxu0 %vm20884_vm12, %v5555_v15  ;;  %vm20896_vm12 = vmmov %vm20895_vm2 }
0x16dd   :  { %v14895_v47 = vpop.eup %14894  ;;  %v5544_v29 = vpop.xlane.xlu0 %5543  ;;  %12946 = vmatmul.mubr.msk.f32.vlgmr.msra.gmra.mrb[18].mxu0 %vm20885_vm14, %v5556_v39  ;;  %v5558_v62 = vmul.f32 %v14893_v28, %v18622_v23  ;;  %vm20897_vm14 = vmmov %vm20895_vm2 }
0x16de   :  { %14904 = vrcp.f32 %v5544_v29  ;;  %13878 = vmatpush3.bf16.xpose.msk.msra.mxu0 %vm18350_vm10, %v18634_v59  ;;  %v5541_v17 = vpop.xlane.xlu1 %5540  ;;  %v5557_v31 = vmul.f32 %v14895_v47, %v18624_v25 }
0x16df   :  { %14906 = vrcp.f32 %v5541_v17 }
0x16e0   :  { %v14897_v11 = vpop.eup %14896  ;;  %12948 = vmatprep.mubr.msk.f32.mxu0 %vm20886_vm1, %v5557_v31  ;;  %vm20898_vm1 = vmmov %vm20895_vm2 }
0x16e1   :  { %v14899_v10 = vpop.eup %14898  ;;  %v5730_v27 = vpop.permute.xlu0 %5729  ;;  %12949 = vmatmul.mubr.msk.f32.gmra.mrb[20].mxu0 %vm20874_vm0, %v5558_v62  ;;  %v5560_v19 = vmul.f32 %v14897_v11, %v18630_v6  ;;  %vm20899_vm0 = vmmov %vm20898_vm1 }
0x16e2   :  { %v5732_v43 = vpop.permute.xlu1 %5731  ;;  %v5559_v63 = vmul.f32 %v14899_v10, %v18632_v56 }
0x16e4   :  { %v14901_v48 = vpop.eup %14900  ;;  %12951 = vmatprep.mubr.msk.f32.mxu0 %vm20887_vm8, %v5559_v63  ;;  %vm20900_vm8 = vmmov %vm20899_vm0 }
0x16e5   :  { %v14903_v16 = vpop.eup %14902  ;;  %v5734_v35 = vpop.permute.xlu0 %5733  ;;  %12952 = vmatmul.mubr.msk.f32.gmra.mrb[22].mxu0 %vm20888_vm9, %v5560_v19  ;;  %v5562_v38 = vmul.f32 %v14901_v48, %v18643_v7  ;;  %vm20901_vm9 = vmmov %vm20899_vm0 }
0x16e6   :  { %v14493_v23 = vpop.permute.xlu1 %14492  ;;  %v5561_v25 = vmul.f32 %v14903_v16, %v18645_v4 }
0x16e7   :  { %v14495_v18 = vunpack.i.h.bf16 %v14493_v23  ;;  %v14494_v44 = vunpack.i.l.bf16 %v14493_v23 }
0x16e8   :  { %v14905_v58 = vpop.eup %14904  ;;  %12954 = vmatprep.mubr.msk.f32.mxu0 %vm20889_vm11, %v5561_v25  ;;  %vm20902_vm11 = vmmov %vm20899_vm0 }
0x16e9   :  { %v14907_v21 = vpop.eup %14906  ;;  %v13885_v60 = vpack.c.bf16 %v14495_v18, %v14494_v44  ;;  %v5736_v6 = vpop.permute.xlu0 %5735  ;;  %12955 = vmatmul.mubr.msk.f32.gmra.mrb[24].mxu0 %vm20890_vm13, %v5562_v38  ;;  %v5564_v42 = vmul.f32 %v14905_v58, %v18651_v24  ;;  %vm20903_vm13 = vmmov %vm20899_vm0 }
0x16ea   :  { %v5738_v56 = vpop.permute.xlu1 %5737  ;;  %v5563_v59 = vmul.f32 %v14907_v21, %v18653_v33 }
0x16eb   :  { %13887 = vmatprep.subr.msk.bf16.mxu0 %vm18350_vm10, %v13885_v60 }
0x16ec   :  { %12957 = vmatprep.mubr.msk.f32.mxu0 %vm20891_vm4, %v5563_v59  ;;  %vm20904_vm4 = vmmov %vm20899_vm0 }
0x16ed   :  { %v5740_v13 = vpop.permute.xlu0 %5739  ;;  %12958 = vmatmul.mubr.msk.f32.gmra.mrb[26].mxu0 %vm20892_vm5, %v5564_v42  ;;  %vm20905_vm5 = vmmov %vm20899_vm0 }
0x16ee   :  { %12964 = vmatprep.mubr.msk.f32.mxu0 %vm20893_vm6, %v18719_v20  ;;  %v5742_v7 = vpop.permute.xlu1 %5741  ;;  %vm20906_vm6 = vmmov %vm20899_vm0 }
0x16f1   :  { %v6210_v4 = vpop.permute.xlu0 %6209  ;;  %12965 = vmatmul.mubr.msk.f32.vlgmr.msra.gmra.mrb[28].mxu0 %vm20894_vm7, %v18717_v14  ;;  %vm20907_vm7 = vmmov %vm20899_vm0 }
0x16f2   :  { %13890 = vmatpush3.bf16.xpose.msk.msra.mxu0 %vm18350_vm10, %v13885_v60  ;;  %v6212_v5 = vpop.permute.xlu1 %6211  ;;  %12967 = vmatprep.mubr.msk.f32.mxu0 %vm20895_vm2, %v18721_v2  ;;  %vm20908_vm2 = vmmov %vm20899_vm0 }
0x16f5   :  { %v6214_v46 = vpop.permute.xlu0 %6213  ;;  %12968 = vmatmul.mubr.msk.f32.gmra.mrb[30].mxu0 %vm20896_vm12, %v5730_v27  ;;  %vm20909_vm12 = vmmov %vm20899_vm0 }
0x16f6   :  { %v6216_v24 = vpop.permute.xlu1 %6215  ;;  %12970 = vmatprep.mubr.msk.f32.mxu0 %vm20897_vm14, %v5732_v43  ;;  %vm20910_vm14 = vmmov %vm20899_vm0 }
0x16f9   :  { %v6218_v33 = vpop.permute.xlu0 %6217  ;;  %12971 = vmatmul.mubr.msk.f32.gmra.mrb[32].mxu0 %vm20898_vm1, %v5734_v35  ;;  %vm20911_vm1 = vmmov %vm20899_vm0 }
0x16fa   :  { %12973 = vmatprep.mubr.msk.f32.mxu0 %vm20899_vm0, %v5736_v6  ;;  %v6220_v8 = vpop.permute.xlu1 %6219 }
0x16fd   :  { %v14498_v40 = vpop.permute.xlu0 %14497  ;;  %12974 = vmatmul.mubr.msk.f32.gmra.mrb[34].mxu0 %vm20900_vm8, %v5738_v56  ;;  %vm20912_vm8 = vmmov %vm20899_vm0 }
0x16fe   :  { %v14500_v14 = vunpack.i.h.bf16 %v14498_v40  ;;  %v14499_v20 = vunpack.i.l.bf16 %v14498_v40  ;;  %12976 = vmatprep.mubr.msk.f32.mxu0 %vm20901_vm9, %v5740_v13  ;;  %v6222_v57 = vpop.permute.xlu1 %6221  ;;  %vm20913_vm9 = vmmov %vm20899_vm0 }
0x1700   :  { %v13897_v2 = vpack.c.bf16 %v14500_v14, %v14499_v20 }
0x1701   :  { %12977 = vmatmul.mubr.msk.f32.gmra.mrb[36].mxu0 %vm20902_vm11, %v5742_v7  ;;  %v6224_v36 = vpop.permute.xlu0 %6223  ;;  %vm20914_vm11 = vmmov %vm20899_vm0 }
0x1702   :  { %13002 = vmatprep.mubr.msk.f32.mxu0 %vm20903_vm13, %v6210_v4  ;;  %13899 = vmatprep.subr.msk.bf16.mxu0 %vm18350_vm10, %v13897_v2  ;;  %v6226_v9 = vpop.permute.xlu1 %6225  ;;  %vm20915_vm13 = vmmov %vm20899_vm0 }
0x1705   :  { %13003 = vmatmul.mubr.msk.f32.vlgmr.msra.gmra.mrb[38].mxu0 %vm20904_vm4, %v6212_v5  ;;  %v6228_v37 = vpop.permute.xlu0 %6227  ;;  %vm20916_vm4 = vmmov %vm20899_vm0 }
0x1706   :  { %13902 = vmatpush3.bf16.xpose.msk.msra.mxu0 %vm18350_vm10, %v13897_v2  ;;  %13005 = vmatprep.mubr.msk.f32.mxu0 %vm20905_vm5, %v6214_v46  ;;  %v6695_v30 = vpop.permute.xlu1 %6694  ;;  %vm20917_vm5 = vmmov %vm20899_vm0 }
0x1709   :  { %13006 = vmatmul.mubr.msk.f32.gmra.mrb[40].mxu0 %vm20906_vm6, %v6216_v24  ;;  %v6697_v54 = vpop.permute.xlu0 %6696  ;;  %vm20918_vm6 = vmmov %vm20899_vm0 }
0x170a   :  { %13008 = vmatprep.mubr.msk.f32.mxu0 %vm20907_vm7, %v6218_v33  ;;  %v6699_v12 = vpop.permute.xlu1 %6698  ;;  %vm20919_vm7 = vmmov %vm20899_vm0 }
0x170d   :  { %13009 = vmatmul.mubr.msk.f32.gmra.mrb[42].mxu0 %vm20908_vm2, %v6220_v8  ;;  %v6701_v45 = vpop.permute.xlu0 %6700  ;;  %vm20920_vm2 = vmmov %vm20899_vm0 }
0x170e   :  { %13011 = vmatprep.mubr.msk.f32.mxu0 %vm20909_vm12, %v6222_v57  ;;  %v6703_v1 = vpop.permute.xlu1 %6702  ;;  %vm20921_vm12 = vmmov %vm20899_vm0 }
0x1711   :  { %13012 = vmatmul.mubr.msk.f32.gmra.mrb[44].mxu0 %vm20910_vm14, %v6224_v36  ;;  %v6705_v50 = vpop.permute.xlu0 %6704  ;;  %vm20924_vm14 = vcmask 97280  }
0x1712   :  { %13014 = vmatprep.mubr.msk.f32.mxu0 %vm20911_vm1, %v6226_v9  ;;  %v6707_v15 = vpop.permute.xlu1 %6706  ;;  %vm20925_vm1 = vmmov %vm20924_vm14 }
0x1715   :  { %13015 = vmatmul.mubr.msk.f32.gmra.mrb[46].mxu0 %vm20899_vm0, %v6228_v37  ;;  %v6709_v39 = vpop.permute.xlu0 %6708  ;;  %vm20926_vm0 = vmmov %vm20925_vm1 }
0x1716   :  { %13040 = vmatprep.mubr.msk.f32.mxu0 %vm20912_vm8, %v6695_v30  ;;  %v6711_v28 = vpop.permute.xlu1 %6710  ;;  %vm20927_vm8 = vmmov %vm20926_vm0 }
0x1719   :  { %13041 = vmatmul.mubr.msk.f32.vlgmr.msra.gmra.mrb[48].mxu0 %vm20913_vm9, %v6697_v54  ;;  %v6713_v47 = vpop.permute.xlu0 %6712  ;;  %vm20928_vm9 = vmmov %vm20926_vm0 }
0x171a   :  { %13043 = vmatprep.mubr.msk.f32.mxu0 %vm20914_vm11, %v6699_v12  ;;  %vm20929_vm11 = vmmov %vm20926_vm0 }
0x171d   :  { %13044 = vmatmul.mubr.msk.f32.gmra.mrb[50].mxu0 %vm20915_vm13, %v6701_v45  ;;  %vm20930_vm13 = vmmov %vm20926_vm0 }
0x171e   :  { %13046 = vmatprep.mubr.msk.f32.mxu0 %vm20916_vm4, %v6703_v1  ;;  %vm20931_vm4 = vmmov %vm20926_vm0 }
0x1721   :  { %13047 = vmatmul.mubr.msk.f32.gmra.mrb[52].mxu0 %vm20917_vm5, %v6705_v50  ;;  %vm20932_vm5 = vmmov %vm20926_vm0 }
0x1722   :  { %13049 = vmatprep.mubr.msk.f32.mxu0 %vm20918_vm6, %v6707_v15  ;;  %vm20933_vm6 = vmmov %vm20926_vm0 }
0x1725   :  { %13050 = vmatmul.mubr.msk.f32.gmra.mrb[54].mxu0 %vm20919_vm7, %v6709_v39  ;;  %vm20934_vm7 = vmmov %vm20926_vm0 }
0x1726   :  { %13052 = vmatprep.mubr.msk.f32.mxu0 %vm20920_vm2, %v6711_v28  ;;  %vm20935_vm2 = vmmov %vm20926_vm0 }
0x1729   :  { %13053 = vmatmul.mubr.msk.f32.gmra.mrb[56].mxu0 %vm20921_vm12, %v6713_v47  ;;  %vm20936_vm12 = vmmov %vm20926_vm0 }
0x17b0   :  { %v18787_v29 = vpop.f32.mrb[18].mxu0 }
0x17b1   :  { %v18789_v17 = vpop.f32.mrb[19].mxu0 }
0x17b4   :  { %v18791_v31 = vpop.f32.mrb[20].mxu0 }
0x17b5   :  { %v18793_v62 = vpop.f32.mrb[21].mxu0 }
0x17b8   :  { %v18795_v11 = vpop.f32.mrb[22].mxu0 }
0x17b9   :  { %v18797_v10 = vpop.f32.mrb[23].mxu0 }
0x17bc   :  { %v18799_v27 = vpop.f32.mrb[24].mxu0 }
0x17bd   :  { %v18801_v43 = vpop.f32.mrb[25].mxu0 }
0x17c0   :  { %v18803_v63 = vpop.f32.mrb[26].mxu0 }
0x17c1   :  { %20922 = vst [vmem:[#allocation152_spill] sm:$0xff] %v18803_v63  ;;  %v18805_v19 = vpop.f32.mrb[27].mxu0 }
0x17c2   :  { %20923 = vst [vmem:[#allocation153_spill] sm:$0xff] %v18805_v19 }
0x17c4   :  { %v12966_v48 = vpop.f32.mrb[28].mxu0 }
0x17c5   :  { %v18807_v16 = vmul.f32 0.17677669, %v12966_v48  ;;  %v5837_v35 = vpop.f32.mrb[29].mxu0 }
0x17c6   :  { %v18809_v23 = vmul.f32 0.17677669, %v5837_v35 }
0x17c7   :  { %v5899_v25 = vsel %vm20924_vm14, %v18807_v16, -inf  ;;  %vm20937_vm14 = vmmov %vm20926_vm0 }
0x17c8   :  { %5900 = vmax.xlane.f32.xlu0 %v5899_v25  ;;  %v12969_v18 = vpop.f32.mrb[30].mxu0  ;;  %v5896_v44 = vsel %vm20925_vm1, %v18809_v23, -inf  ;;  %vm20938_vm1 = vmmov %vm20926_vm0 }
0x17c9   :  { %v18815_v38 = vmul.f32 0.17677669, %v12969_v18  ;;  %5897 = vmax.xlane.f32.xlu1 %v5896_v44  ;;  %v5847_v58 = vpop.f32.mrb[31].mxu0 }
0x17ca   :  { %v18817_v21 = vmul.f32 0.17677669, %v5847_v58 }
0x17cb   :  { %v5905_v60 = vsel %vm20926_vm0, %v18815_v38, -inf }
0x17cc   :  { %v12972_v6 = vpop.f32.mrb[32].mxu0  ;;  %v5902_v56 = vsel %vm20927_vm8, %v18817_v21, -inf  ;;  %vm20939_vm8 = vmmov %vm20926_vm0 }
0x17cd   :  { %v18823_v59 = vmul.f32 0.17677669, %v12972_v6  ;;  %5906 = vmax.xlane.f32.xlu1 %v5905_v60  ;;  %5903 = vmax.xlane.f32.xlu0 %v5902_v56  ;;  %v5857_v42 = vpop.f32.mrb[33].mxu0 }
0x17ce   :  { %v18825_v13 = vmul.f32 0.17677669, %v5857_v42 }
0x17cf   :  { %v5911_v7 = vsel %vm20928_vm9, %v18823_v59, -inf  ;;  %vm20940_vm9 = vmmov %vm20926_vm0 }
0x17d0   :  { %v12975_v4 = vpop.f32.mrb[34].mxu0  ;;  %v5908_v5 = vsel %vm20929_vm11, %v18825_v13, -inf  ;;  %vm20941_vm11 = vmmov %vm20926_vm0 }
0x17d1   :  { %v18831_v46 = vmul.f32 0.17677669, %v12975_v4  ;;  %5912 = vmax.xlane.f32.xlu1 %v5911_v7  ;;  %5909 = vmax.xlane.f32.xlu0 %v5908_v5  ;;  %v5867_v24 = vpop.f32.mrb[35].mxu0 }
0x17d2   :  { %v18833_v33 = vmul.f32 0.17677669, %v5867_v24 }
0x17d3   :  { %v5917_v8 = vsel %vm20930_vm13, %v18831_v46, -inf  ;;  %vm20942_vm13 = vmmov %vm20926_vm0 }
0x17d4   :  { %v12978_v40 = vpop.f32.mrb[36].mxu0  ;;  %v5914_v14 = vsel %vm20931_vm4, %v18833_v33, -inf  ;;  %vm20943_vm4 = vmmov %vm20926_vm0 }
0x17d5   :  { %v18839_v20 = vmul.f32 0.17677669, %v12978_v40  ;;  %5918 = vmax.xlane.f32.xlu1 %v5917_v8  ;;  %5915 = vmax.xlane.f32.xlu0 %v5914_v14  ;;  %v5877_v2 = vpop.f32.mrb[37].mxu0 }
0x17d6   :  { %v18841_v57 = vmul.f32 0.17677669, %v5877_v2 }
0x17d7   :  { %v5923_v36 = vsel %vm5481_vm15, %v18839_v20, -inf }
0x17d8   :  { %v13004_v9 = vpop.f32.mrb[38].mxu0  ;;  %v5920_v37 = vsel %vm20932_vm5, %v18841_v57, -inf  ;;  %vm20944_vm5 = vmmov %vm20926_vm0 }
0x17d9   :  { %v18847_v30 = vmul.f32 0.17677669, %v13004_v9  ;;  %5924 = vmax.xlane.f32.xlu1 %v5923_v36  ;;  %v6323_v54 = vpop.f32.mrb[39].mxu0  ;;  %5921 = vmax.xlane.f32.xlu0 %v5920_v37 }
0x17da   :  { %v18849_v12 = vmul.f32 0.17677669, %v6323_v54 }
0x17db   :  { %v6385_v45 = vsel %vm20933_vm6, %v18847_v30, -inf  ;;  %vm20945_vm6 = vmmov %vm20926_vm0 }
0x17dc   :  { %v13007_v1 = vpop.f32.mrb[40].mxu0  ;;  %v6382_v50 = vsel %vm20934_vm7, %v18849_v12, -inf  ;;  %vm20946_vm7 = vmmov %vm20926_vm0 }
0x17dd   :  { %v18855_v15 = vmul.f32 0.17677669, %v13007_v1  ;;  %6386 = vmax.xlane.f32.xlu1 %v6385_v45  ;;  %v6333_v39 = vpop.f32.mrb[41].mxu0  ;;  %6383 = vmax.xlane.f32.xlu0 %v6382_v50 }
0x17de   :  { %v18857_v28 = vmul.f32 0.17677669, %v6333_v39 }
0x17df   :  { %v6391_v47 = vsel %vm20935_vm2, %v18855_v15, -inf  ;;  %vm20947_vm2 = vmmov %vm20926_vm0 }
0x17e0   :  { %v13010_v48 = vpop.f32.mrb[42].mxu0  ;;  %v6388_v35 = vsel %vm20936_vm12, %v18857_v28, -inf  ;;  %vm20948_vm12 = vmmov %vm20926_vm0 }
0x17e1   :  { %v18863_v25 = vmul.f32 0.17677669, %v13010_v48  ;;  %6392 = vmax.xlane.f32.xlu1 %v6391_v47  ;;  %v6343_v18 = vpop.f32.mrb[43].mxu0  ;;  %6389 = vmax.xlane.f32.xlu0 %v6388_v35 }
0x17e2   :  { %v18865_v44 = vmul.f32 0.17677669, %v6343_v18 }
0x17e3   :  { %v6397_v58 = vsel %vm20937_vm14, %v18863_v25, -inf  ;;  %vm20949_vm14 = vmmov %vm20926_vm0 }
0x17e4   :  { %v13013_v60 = vpop.f32.mrb[44].mxu0  ;;  %v6394_v6 = vsel %vm20938_vm1, %v18865_v44, -inf  ;;  %vm20950_vm1 = vmmov %vm20926_vm0 }
0x17e5   :  { %v18871_v56 = vmul.f32 0.17677669, %v13013_v60  ;;  %6398 = vmax.xlane.f32.xlu1 %v6397_v58  ;;  %v6353_v42 = vpop.f32.mrb[45].mxu0  ;;  %6395 = vmax.xlane.f32.xlu0 %v6394_v6 }
0x17e6   :  { %v18873_v7 = vmul.f32 0.17677669, %v6353_v42 }
0x17e7   :  { %v6403_v4 = vsel %vm20926_vm0, %v18871_v56, -inf }
0x17e8   :  { %v13016_v5 = vpop.f32.mrb[46].mxu0  ;;  %v6400_v24 = vsel %vm20939_vm8, %v18873_v7, -inf  ;;  %vm20951_vm8 = vmmov %vm20926_vm0 }
0x17e9   :  { %v18879_v8 = vmul.f32 0.17677669, %v13016_v5  ;;  %6404 = vmax.xlane.f32.xlu1 %v6403_v4  ;;  %v6363_v40 = vpop.f32.mrb[47].mxu0  ;;  %6401 = vmax.xlane.f32.xlu0 %v6400_v24 }
0x17ea   :  { %v18881_v14 = vmul.f32 0.17677669, %v6363_v40 }
0x17eb   :  { %v6409_v2 = vsel %vm5481_vm15, %v18879_v8, -inf }
0x17ec   :  { %v13042_v36 = vpop.f32.mrb[48].mxu0  ;;  %v6406_v9 = vsel %vm20940_vm9, %v18881_v14, -inf  ;;  %vm20952_vm9 = vmmov %vm20926_vm0 }
0x17ed   :  { %v18887_v37 = vmul.f32 0.17677669, %v13042_v36  ;;  %6410 = vmax.xlane.f32.xlu1 %v6409_v2  ;;  %v6808_v54 = vpop.f32.mrb[49].mxu0  ;;  %6407 = vmax.xlane.f32.xlu0 %v6406_v9 }
0x17ee   :  { %v18889_v45 = vmul.f32 0.17677669, %v6808_v54 }
0x17ef   :  { %v6870_v1 = vsel %vm20941_vm11, %v18887_v37, -inf  ;;  %vm20953_vm11 = vmmov %vm20926_vm0 }
0x17f0   :  { %v13045_v50 = vpop.f32.mrb[50].mxu0  ;;  %v6867_v39 = vsel %vm20942_vm13, %v18889_v45, -inf  ;;  %vm20954_vm13 = vmmov %vm20926_vm0 }
0x17f1   :  { %v18895_v47 = vmul.f32 0.17677669, %v13045_v50  ;;  %6871 = vmax.xlane.f32.xlu1 %v6870_v1  ;;  %v6818_v48 = vpop.f32.mrb[51].mxu0  ;;  %6868 = vmax.xlane.f32.xlu0 %v6867_v39 }
0x17f2   :  { %v18913_v54 = vmul.f32 0.17677669, %v6818_v48 }
0x17f3   :  { %v6876_v35 = vsel %vm20943_vm4, %v18895_v47, -inf  ;;  %vm20955_vm4 = vmmov %vm20926_vm0 }
0x17f4   :  { %v13048_v18 = vpop.f32.mrb[52].mxu0  ;;  %v6873_v50 = vsel %vm20946_vm7, %v18913_v54, -inf  ;;  %vm20958_vm7 = vmmov %vm20926_vm0 }
0x17f5   :  { %v18899_v58 = vmul.f32 0.17677669, %v13048_v18  ;;  %6877 = vmax.xlane.f32.xlu1 %v6876_v35  ;;  %v6828_v60 = vpop.f32.mrb[53].mxu0 }
0x17f6   :  { %v18915_v1 = vmul.f32 0.17677669, %v6828_v60 }
0x17f7   :  { %v6882_v6 = vsel %vm20944_vm5, %v18899_v58, -inf  ;;  %vm20956_vm5 = vmmov %vm20926_vm0 }
0x17f8   :  { %v13051_v42 = vpop.f32.mrb[54].mxu0  ;;  %v6879_v35 = vsel %vm20947_vm2, %v18915_v1, -inf  ;;  %vm20959_vm2 = vmmov %vm20926_vm0 }
0x17f9   :  { %v18903_v4 = vmul.f32 0.17677669, %v13051_v42  ;;  %6883 = vmax.xlane.f32.xlu1 %v6882_v6  ;;  %v6838_v5 = vpop.f32.mrb[55].mxu0 }
0x17fa   :  { %v18919_v39 = vmul.f32 0.17677669, %v6838_v5 }
0x17fb   :  { %v6888_v24 = vsel %vm20945_vm6, %v18903_v4, -inf  ;;  %vm20957_vm6 = vmmov %vm20926_vm0 }
0x17fc   :  { %v13054_v40 = vpop.f32.mrb[56].mxu0  ;;  %v6885_v6 = vsel %vm20948_vm12, %v18919_v39, -inf  ;;  %vm20960_vm12 = vmmov %vm20926_vm0 }
0x17fd   :  { %v18907_v2 = vmul.f32 0.17677669, %v13054_v40  ;;  %6889 = vmax.xlane.f32.xlu1 %v6888_v24  ;;  %v6848_v36 = vpop.f32.mrb[57].mxu0 }
0x17fe   :  { %v18923_v18 = vmul.f32 0.17677669, %v6848_v36 }
0x17ff   :  { %v6894_v9 = vsel %vm5481_vm15, %v18907_v2, -inf }
0x1800   :  { %v6891_v48 = vsel %vm20949_vm14, %v18923_v18, -inf  ;;  %vm20961_vm14 = vmmov %vm20926_vm0 }
0x1801   :  { %6895 = vmax.xlane.f32.xlu1 %v6894_v9 }
0x1807   :  { %14502 = vrot.lane.b32.xlu0 %v18590_v22, %s16429_s10 }
0x1826   :  { %6874 = vmax.xlane.f32.xlu0 %v6873_v50 }
0x182a   :  { %6880 = vmax.xlane.f32.xlu0 %v6879_v35 }
0x182e   :  { %6886 = vmax.xlane.f32.xlu0 %v6885_v6 }
0x1832   :  { %6892 = vmax.xlane.f32.xlu0 %v6891_v48 }
0x1855   :  { %v5901_v60 = vpop.xlane.xlu0 %5900 }
0x1856   :  { %v5927_v42 = vsub.f32 %v18807_v16, %v5901_v60  ;;  %v5898_v24 = vpop.xlane.xlu1 %5897 }
0x1857   :  { %v5926_v5 = vsub.f32 %v18809_v23, %v5898_v24 }
0x1858   :  { %v5938_v40 = vmul.f32 1.442695, %v5927_v42 }
0x1859   :  { %v5936_v9 = vmul.f32 1.442695, %v5926_v5 }
0x185a   :  { %14908 = vpow2.f32 %v5938_v40  ;;  %v5907_v50 = vpop.xlane.xlu1 %5906  ;;  %v5904_v36 = vpop.xlane.xlu0 %5903 }
0x185b   :  { %14910 = vpow2.f32 %v5936_v9  ;;  %v5929_v35 = vsub.f32 %v18815_v38, %v5907_v50  ;;  %v5928_v6 = vsub.f32 %v18817_v21, %v5904_v36 }
0x185d   :  { %v5942_v49 = vmul.f32 1.442695, %v5929_v35  ;;  %v5940_v63 = vmul.f32 1.442695, %v5928_v6 }
0x185e   :  { %v5913_v19 = vpop.xlane.xlu1 %5912  ;;  %v5910_v48 = vpop.xlane.xlu0 %5909 }
0x185f   :  { %14912 = vpow2.f32 %v5942_v49  ;;  %v5931_v16 = vsub.f32 %v18823_v59, %v5913_v19  ;;  %v5930_v60 = vsub.f32 %v18825_v13, %v5910_v48 }
0x1860   :  { %14914 = vpow2.f32 %v5940_v63 }
0x1861   :  { %v5946_v23 = vmul.f32 1.442695, %v5931_v16  ;;  %v5944_v42 = vmul.f32 1.442695, %v5930_v60 }
0x1862   :  { %v5919_v24 = vpop.xlane.xlu1 %5918  ;;  %v5916_v5 = vpop.xlane.xlu0 %5915 }
0x1863   :  { %14916 = vpow2.f32 %v5946_v23  ;;  %v5933_v40 = vsub.f32 %v18831_v46, %v5919_v24  ;;  %v5932_v38 = vsub.f32 %v18833_v33, %v5916_v5 }
0x1864   :  { %v18937_v21 = vpop.eup %14908  ;;  %14918 = vpow2.f32 %v5944_v42 }
0x1865   :  { %v18939_v9 = vpop.eup %14910  ;;  %v5950_v49 = vmul.f32 1.442695, %v5933_v40  ;;  %v5948_v50 = vmul.f32 1.442695, %v5932_v38  ;;  %v5959_v19 = vsel %vm20950_vm1, %v18937_v21, 0.0  ;;  %vm20962_vm1 = vmmov %vm20926_vm0 }
0x1866   :  { %v5925_v63 = vpop.xlane.xlu1 %5924  ;;  %5960 = vadd.xlane.f32.xlu1 %v5959_v19  ;;  %v5922_v59 = vpop.xlane.xlu0 %5921  ;;  %v5956_v13 = vsel %vm20926_vm0, %v18939_v9, 0.0 }
0x1867   :  { %14920 = vpow2.f32 %v5950_v49  ;;  %v5935_v46 = vsub.f32 %v18839_v20, %v5925_v63  ;;  %v5934_v33 = vsub.f32 %v18841_v57, %v5922_v59  ;;  %5957 = vadd.xlane.f32.xlu0 %v5956_v13 }
0x1868   :  { %14922 = vpow2.f32 %v5948_v50 }
0x1869   :  { %v18947_v36 = vpop.eup %14912  ;;  %v5954_v35 = vmul.f32 1.442695, %v5935_v46  ;;  %v5952_v6 = vmul.f32 1.442695, %v5934_v33 }
0x186a   :  { %v18949_v48 = vpop.eup %14914  ;;  %v6387_v16 = vpop.xlane.xlu1 %6386  ;;  %v5965_v23 = vsel %vm20951_vm8, %v18947_v36, 0.0  ;;  %vm20963_vm8 = vmmov %vm20926_vm0 }
0x186b   :  { %v6384_v60 = vpop.xlane.xlu0 %6383  ;;  %14924 = vpow2.f32 %v5954_v35  ;;  %v6413_v42 = vsub.f32 %v18847_v30, %v6387_v16  ;;  %5966 = vadd.xlane.f32.xlu1 %v5965_v23  ;;  %v5962_v57 = vsel %vm20952_vm9, %v18949_v48, 0.0  ;;  %vm20964_vm9 = vmmov %vm20926_vm0 }
0x186c   :  { %v6412_v20 = vsub.f32 %v18849_v12, %v6384_v60  ;;  %14926 = vpow2.f32 %v5952_v6  ;;  %5963 = vadd.xlane.f32.xlu0 %v5962_v57 }
0x186d   :  { %v18957_v24 = vpop.eup %14916  ;;  %v6424_v5 = vmul.f32 1.442695, %v6413_v42 }
0x186e   :  { %v6422_v40 = vmul.f32 1.442695, %v6412_v20  ;;  %v18959_v38 = vpop.eup %14918  ;;  %v6393_v49 = vpop.xlane.xlu1 %6392  ;;  %v5971_v19 = vsel %vm20953_vm11, %v18957_v24, 0.0  ;;  %vm20965_vm11 = vmmov %vm20926_vm0 }
0x186f   :  { %v6390_v50 = vpop.xlane.xlu0 %6389  ;;  %14928 = vpow2.f32 %v6424_v5  ;;  %v6415_v30 = vsub.f32 %v18855_v15, %v6393_v49  ;;  %5972 = vadd.xlane.f32.xlu1 %v5971_v19  ;;  %v5968_v63 = vsel %vm20954_vm13, %v18959_v38, 0.0  ;;  %vm20966_vm13 = vmmov %vm20926_vm0 }
0x1870   :  { %v6414_v12 = vsub.f32 %v18857_v28, %v6390_v50  ;;  %14930 = vpow2.f32 %v6422_v40  ;;  %5969 = vadd.xlane.f32.xlu0 %v5968_v63 }
0x1871   :  { %v18967_v59 = vpop.eup %14920  ;;  %v6428_v13 = vmul.f32 1.442695, %v6415_v30 }
0x1872   :  { %v6426_v46 = vmul.f32 1.442695, %v6414_v12  ;;  %v18969_v33 = vpop.eup %14922  ;;  %v6399_v35 = vpop.xlane.xlu1 %6398  ;;  %v5977_v16 = vsel %vm20955_vm4, %v18967_v59, 0.0  ;;  %vm20967_vm4 = vmmov %vm20926_vm0 }
0x1873   :  { %v6396_v6 = vpop.xlane.xlu0 %6395  ;;  %14932 = vpow2.f32 %v6428_v13  ;;  %v6417_v15 = vsub.f32 %v18863_v25, %v6399_v35  ;;  %5978 = vadd.xlane.f32.xlu1 %v5977_v16  ;;  %v5974_v28 = vsel %vm20956_vm5, %v18969_v33, 0.0  ;;  %vm20968_vm5 = vmmov %vm20926_vm0 }
0x1874   :  { %5975 = vadd.xlane.f32.xlu0 %v5974_v28  ;;  %14934 = vpow2.f32 %v6426_v46  ;;  %v6416_v42 = vsub.f32 %v18865_v44, %v6396_v6 }
0x1875   :  { %v18976_v60 = vpop.eup %14924  ;;  %v6432_v23 = vmul.f32 1.442695, %v6417_v15 }
0x1876   :  { %v18979_v20 = vpop.eup %14926  ;;  %v6405_v57 = vpop.xlane.xlu1 %6404  ;;  %v5983_v40 = vsel %vm5481_vm15, %v18976_v60, 0.0  ;;  %v6430_v50 = vmul.f32 1.442695, %v6416_v42 }
0x1877   :  { %v6402_v5 = vpop.xlane.xlu0 %6401  ;;  %5984 = vadd.xlane.f32.xlu1 %v5983_v40  ;;  %v5980_v25 = vsel %vm20957_vm6, %v18979_v20, 0.0  ;;  %14936 = vpow2.f32 %v6432_v23  ;;  %v6419_v19 = vsub.f32 %v18871_v56, %v6405_v57  ;;  %vm20969_vm6 = vmmov %vm20926_vm0 }
0x1878   :  { %5981 = vadd.xlane.f32.xlu0 %v5980_v25  ;;  %14938 = vpow2.f32 %v6430_v50  ;;  %v6418_v56 = vsub.f32 %v18873_v7, %v6402_v5 }
0x1879   :  { %v18985_v49 = vpop.eup %14928  ;;  %v6436_v6 = vmul.f32 1.442695, %v6419_v19 }
0x187a   :  { %v18988_v30 = vpop.eup %14930  ;;  %v6445_v12 = vsel %vm20958_vm7, %v18985_v49, 0.0  ;;  %v6411_v46 = vpop.xlane.xlu1 %6410  ;;  %vm20970_vm7 = vmmov %vm20926_vm0 }
0x187b   :  { %v6408_v44 = vpop.xlane.xlu0 %6407  ;;  %6446 = vadd.xlane.f32.xlu1 %v6445_v12  ;;  %v6442_v13 = vsel %vm20959_vm2, %v18988_v30, 0.0  ;;  %v6421_v42 = vsub.f32 %v18879_v8, %v6411_v46  ;;  %vm20971_vm2 = vmmov %vm20926_vm0 }
0x187c   :  { %v6420_v63 = vsub.f32 %v18881_v14, %v6408_v44  ;;  %6443 = vadd.xlane.f32.xlu0 %v6442_v13  ;;  %v6434_v14 = vmul.f32 1.442695, %v6418_v56 }
0x187d   :  { %v18995_v35 = vpop.eup %14932  ;;  %v6440_v19 = vmul.f32 1.442695, %v6421_v42 }
0x187e   :  { %v6438_v16 = vmul.f32 1.442695, %v6420_v63  ;;  %v6451_v28 = vsel %vm20960_vm12, %v18995_v35, 0.0  ;;  %v19000_v23 = vpop.eup %14934  ;;  %v6872_v57 = vpop.xlane.xlu1 %6871  ;;  %vm20972_vm12 = vmmov %vm20926_vm0 }
0x187f   :  { %v6869_v15 = vpop.xlane.xlu0 %6868  ;;  %6452 = vadd.xlane.f32.xlu1 %v6451_v28  ;;  %v6448_v25 = vsel %vm20961_vm14, %v19000_v23, 0.0  ;;  %v6898_v44 = vsub.f32 %v18887_v37, %v6872_v57  ;;  %vm20973_vm14 = vmmov %vm20926_vm0 }
0x1880   :  { %14940 = vpow2.f32 %v6438_v16  ;;  %v6897_v46 = vsub.f32 %v18889_v45, %v6869_v15 }
0x1881   :  { %14942 = vpow2.f32 %v6436_v6  ;;  %v19005_v50 = vpop.eup %14936  ;;  %v6909_v8 = vmul.f32 1.442695, %v6898_v44 }
0x1882   :  { %14944 = vpow2.f32 %v6434_v14  ;;  %v6457_v63 = vsel %vm20962_vm1, %v19005_v50, 0.0  ;;  %v19010_v13 = vpop.eup %14938  ;;  %v6907_v28 = vmul.f32 1.442695, %v6897_v46  ;;  %vm20975_vm1 = vmmov %vm20926_vm0 }
0x1883   :  { %v14503_v40 = vpop.permute.xlu0 %14502  ;;  %6449 = vadd.xlane.f32.xlu1 %v6448_v25  ;;  %14946 = vpow2.f32 %v6440_v19  ;;  %v6454_v37 = vsel %vm20926_vm0, %v19010_v13, 0.0  ;;  %v6878_v19 = vpop.xlane.xlu1 %6877 }
0x1884   :  { %v14505_v7 = vunpack.i.h.bf16 %v14503_v40  ;;  %v14504_v5 = vunpack.i.l.bf16 %v14503_v40  ;;  %14948 = vpow2.f32 %v6909_v8 }
0x1885   :  { %14950 = vpow2.f32 %v6907_v28 }
0x1886   :  { %v13879_v12 = vpack.c.bf16 %v14505_v7, %v14504_v5 }
0x1887   :  { %6458 = vadd.xlane.f32.xlu1 %v6457_v63  ;;  %v6884_v44 = vpop.xlane.xlu1 %6883 }
0x1888   :  { %13881 = vmatprep.subr.msk.bf16.mxu1 %vm17057_vm3, %v13879_v12 }
0x1889   :  { %13884 = vmatpush3.bf16.msk.msra.mxu1 %vm17057_vm3, %v13879_v12  ;;  %v6902_v12 = vsub.f32 %v18899_v58, %v6884_v44 }
0x188a   :  { %v19017_v6 = vpop.eup %14940 }
0x188b   :  { %v19021_v56 = vpop.eup %14942  ;;  %6455 = vadd.xlane.f32.xlu1 %v6454_v37  ;;  %v6466_v16 = vsel %vm20963_vm8, %v19017_v6, 0.0  ;;  %v6917_v46 = vmul.f32 1.442695, %v6902_v12  ;;  %vm20976_vm8 = vmmov %vm20926_vm0 }
0x188c   :  { %6467 = vadd.xlane.f32.xlu0 %v6466_v16  ;;  %v6463_v14 = vsel %vm20964_vm9, %v19021_v56, 0.0  ;;  %v19027_v42 = vpop.eup %14944  ;;  %vm20977_vm9 = vmmov %vm20926_vm0 }
0x188d   :  { %v6460_v45 = vsel %vm20965_vm11, %v19027_v42, 0.0  ;;  %v19031_v15 = vpop.eup %14946  ;;  %vm20978_vm11 = vmmov %vm20926_vm0 }
0x188e   :  { %v6469_v57 = vsel %vm5481_vm15, %v19031_v15, 0.0  ;;  %v19035_v40 = vpop.eup %14948 }
0x188f   :  { %6464 = vadd.xlane.f32.xlu1 %v6463_v14  ;;  %v6930_v25 = vsel %vm20966_vm13, %v19035_v40, 0.0  ;;  %v19039_v7 = vpop.eup %14950  ;;  %vm20979_vm13 = vmmov %vm20926_vm0 }
0x1890   :  { %v6927_v5 = vsel %vm20967_vm4, %v19039_v7, 0.0  ;;  %vm20980_vm4 = vmmov %vm20926_vm0 }
0x1893   :  { %6461 = vadd.xlane.f32.xlu1 %v6460_v45 }
0x1897   :  { %6470 = vadd.xlane.f32.xlu1 %v6469_v57  ;;  %v6900_v57 = vsub.f32 %v18895_v47, %v6878_v19 }
0x1899   :  { %v6913_v51 = vmul.f32 1.442695, %v6900_v57 }
0x189b   :  { %6931 = vadd.xlane.f32.xlu1 %v6930_v25  ;;  %v6890_v25 = vpop.xlane.xlu1 %6889 }
0x189c   :  { %v6904_v58 = vsub.f32 %v18903_v4, %v6890_v25 }
0x189f   :  { %6928 = vadd.xlane.f32.xlu1 %v6927_v5 }
0x18b0   :  { %14507 = vrot.lane.b32.xlu1 %v18590_v22, %s16428_s8 }
0x18b3   :  { %v6875_v63 = vpop.xlane.xlu0 %6874 }
0x18b4   :  { %v6899_v8 = vsub.f32 %v18913_v54, %v6875_v63 }
0x18b6   :  { %v6911_v37 = vmul.f32 1.442695, %v6899_v8  ;;  %v6896_v8 = vpop.xlane.xlu1 %6895 }
0x18b7   :  { %v6881_v16 = vpop.xlane.xlu0 %6880  ;;  %v6906_v4 = vsub.f32 %v18907_v2, %v6896_v8 }
0x18b8   :  { %14952 = vpow2.f32 %v6911_v37  ;;  %v6901_v28 = vsub.f32 %v18915_v1, %v6881_v16  ;;  %v6921_v1 = vmul.f32 1.442695, %v6904_v58 }
0x18b9   :  { %14954 = vpow2.f32 %v6917_v46  ;;  %v6925_v16 = vmul.f32 1.442695, %v6906_v4 }
0x18ba   :  { %v6915_v14 = vmul.f32 1.442695, %v6901_v28 }
0x18bb   :  { %v6887_v45 = vpop.xlane.xlu0 %6886 }
0x18bc   :  { %14956 = vpow2.f32 %v6915_v14 }
0x18bd   :  { %14958 = vpow2.f32 %v6913_v51 }
0x18be   :  { %14960 = vpow2.f32 %v6921_v1 }
0x18bf   :  { %v6893_v44 = vpop.xlane.xlu0 %6892 }
0x18c0   :  { %v6905_v63 = vsub.f32 %v18923_v18, %v6893_v44  ;;  %v6903_v44 = vsub.f32 %v18919_v39, %v6887_v45 }
0x18c2   :  { %v19049_v5 = vpop.eup %14952  ;;  %v6923_v46 = vmul.f32 1.442695, %v6905_v63 }
0x18c3   :  { %v6933_v54 = vsel %vm20968_vm5, %v19049_v5, 0.0  ;;  %v19054_v12 = vpop.eup %14954  ;;  %vm20981_vm5 = vmmov %vm20926_vm0 }
0x18c4   :  { %6934 = vadd.xlane.f32.xlu0 %v6933_v54  ;;  %v6942_v47 = vsel %vm20969_vm6, %v19054_v12, 0.0  ;;  %14962 = vpow2.f32 %v6923_v46  ;;  %v6919_v54 = vmul.f32 1.442695, %v6903_v44  ;;  %vm20982_vm6 = vmmov %vm20926_vm0 }
0x18c5   :  { %14964 = vpow2.f32 %v6925_v16 }
0x18c6   :  { %v19059_v19 = vpop.eup %14956  ;;  %14966 = vpow2.f32 %v6919_v54 }
0x18c7   :  { %v6939_v37 = vsel %vm20970_vm7, %v19059_v19, 0.0  ;;  %v19064_v51 = vpop.eup %14958  ;;  %vm20983_vm7 = vmmov %vm20926_vm0 }
0x18c8   :  { %6943 = vadd.xlane.f32.xlu0 %v6942_v47  ;;  %v6936_v18 = vsel %vm20971_vm2, %v19064_v51, 0.0  ;;  %v19068_v28 = vpop.eup %14960  ;;  %vm20984_vm2 = vmmov %vm20926_vm0 }
0x18c9   :  { %v6948_v14 = vsel %vm20972_vm12, %v19068_v28, 0.0  ;;  %vm20985_vm12 = vmmov %vm20926_vm0 }
0x18cc   :  { %6940 = vadd.xlane.f32.xlu0 %v6939_v37 }
0x18ce   :  { %v19072_v2 = vpop.eup %14962 }
0x18cf   :  { %v6951_v57 = vsel %vm20973_vm14, %v19072_v2, 0.0  ;;  %v19076_v25 = vpop.eup %14964  ;;  %vm20986_vm14 = vmmov %vm20926_vm0 }
0x18d0   :  { %v6954_v58 = vsel %vm5481_vm15, %v19076_v25, 0.0  ;;  %v19083_v46 = vpop.eup %14966  ;;  %vm20974_vm15 = vmmov %vm20926_vm0 }
0x18d1   :  { %v6945_v39 = vsel %vm20974_vm15, %v19083_v46, 0.0  ;;  %vm20987_vm15 = vmmov %vm20926_vm0 }
0x18d4   :  { %6937 = vadd.xlane.f32.xlu1 %v6936_v18 }
0x18d8   :  { %6949 = vadd.xlane.f32.xlu1 %v6948_v14 }
0x18dc   :  { %6952 = vadd.xlane.f32.xlu1 %v6951_v57 }
0x18e0   :  { %6955 = vadd.xlane.f32.xlu1 %v6954_v58 }
0x18e2   :  { %14512 = vrot.lane.b32.xlu0 %v18590_v22, %s16430_s30 }
0x18f3   :  { %v5961_v1 = vpop.xlane.xlu1 %5960 }
0x18f4   :  { %14968 = vrcp.f32 %v5961_v1  ;;  %v5958_v63 = vpop.xlane.xlu0 %5957 }
0x18f5   :  { %14970 = vrcp.f32 %v5958_v63 }
0x18f8   :  { %v5967_v8 = vpop.xlane.xlu1 %5966 }
0x18f9   :  { %14972 = vrcp.f32 %v5967_v8  ;;  %v5964_v47 = vpop.xlane.xlu0 %5963 }
0x18fa   :  { %14974 = vrcp.f32 %v5964_v47 }
0x18fc   :  { %v5973_v4 = vpop.xlane.xlu1 %5972 }
0x18fd   :  { %14976 = vrcp.f32 %v5973_v4  ;;  %v5970_v37 = vpop.xlane.xlu0 %5969 }
0x18fe   :  { %v14969_v16 = vpop.eup %14968  ;;  %14978 = vrcp.f32 %v5970_v37 }
0x18ff   :  { %v14971_v22 = vpop.eup %14970  ;;  %v5997_v14 = vmul.f32 %v14969_v16, %v18937_v21 }
0x1900   :  { %v5979_v18 = vpop.xlane.xlu1 %5978  ;;  %v5996_v45 = vmul.f32 %v14971_v22, %v18939_v9 }
0x1901   :  { %14980 = vrcp.f32 %v5979_v18  ;;  %v5976_v57 = vpop.xlane.xlu0 %5975  ;;  %6946 = vadd.xlane.f32.xlu0 %v6945_v39 }
0x1902   :  { %14982 = vrcp.f32 %v5976_v57  ;;  %12983 = vmatprep.mubr.msk.f32.mxu1 %vm20975_vm1, %v5996_v45  ;;  %vm20988_vm1 = vmmov %vm20926_vm0 }
0x1903   :  { %v14973_v58 = vpop.eup %14972  ;;  %12984 = vmatmul.mubr.msk.f32.vlgmr.msra.gmra.mrb[32].mxu1 %vm20926_vm0, %v5997_v14 }
0x1904   :  { %v14975_v44 = vpop.eup %14974  ;;  %v5985_v54 = vpop.xlane.xlu1 %5984  ;;  %v5999_v1 = vmul.f32 %v14973_v58, %v18947_v36 }
0x1905   :  { %14984 = vrcp.f32 %v5985_v54  ;;  %v5982_v63 = vpop.xlane.xlu0 %5981  ;;  %v5998_v8 = vmul.f32 %v14975_v44, %v18949_v48 }
0x1906   :  { %14986 = vrcp.f32 %v5982_v63 }
0x1907   :  { %v14977_v9 = vpop.eup %14976  ;;  %12986 = vmatprep.mubr.msk.f32.mxu1 %vm20976_vm8, %v5998_v8  ;;  %vm20989_vm8 = vmmov %vm20926_vm0 }
0x1908   :  { %v14979_v21 = vpop.eup %14978  ;;  %12987 = vmatmul.mubr.msk.f32.gmra.mrb[34].mxu1 %vm20977_vm9, %v5999_v1  ;;  %v6447_v47 = vpop.xlane.xlu1 %6446  ;;  %v6001_v4 = vmul.f32 %v14977_v9, %v18957_v24  ;;  %vm20990_vm9 = vmmov %vm20926_vm0 }
0x1909   :  { %v6444_v37 = vpop.xlane.xlu0 %6443  ;;  %v6000_v16 = vmul.f32 %v14979_v21, %v18959_v38 }
0x190a   :  { %14988 = vrcp.f32 %v6444_v37 }
0x190b   :  { %v14981_v22 = vpop.eup %14980  ;;  %12989 = vmatprep.mubr.msk.f32.mxu1 %vm20978_vm11, %v6000_v16  ;;  %14990 = vrcp.f32 %v6447_v47  ;;  %vm20991_vm11 = vmmov %vm20926_vm0 }
0x190c   :  { %v14983_v36 = vpop.eup %14982  ;;  %12990 = vmatmul.mubr.msk.f32.gmra.mrb[36].mxu1 %vm20979_vm13, %v6001_v4  ;;  %v6453_v48 = vpop.xlane.xlu1 %6452  ;;  %v6003_v18 = vmul.f32 %v14981_v22, %v18967_v59  ;;  %vm20992_vm13 = vmmov %vm20926_vm0 }
0x190d   :  { %v6002_v39 = vmul.f32 %v14983_v36, %v18969_v33 }
0x190f   :  { %v14985_v45 = vpop.eup %14984  ;;  %12992 = vmatprep.mubr.msk.f32.mxu1 %vm20980_vm4, %v6002_v39  ;;  %vm20993_vm4 = vmmov %vm20926_vm0 }
0x1910   :  { %v14987_v14 = vpop.eup %14986  ;;  %12993 = vmatmul.mubr.msk.f32.gmra.mrb[38].mxu1 %vm20981_vm5, %v6003_v18  ;;  %v6450_v24 = vpop.xlane.xlu1 %6449  ;;  %v6005_v38 = vmul.f32 %v14985_v45, %v18976_v60  ;;  %vm20994_vm5 = vmmov %vm20926_vm0 }
0x1911   :  { %v6004_v57 = vmul.f32 %v14987_v14, %v18979_v20  ;;  %14992 = vrcp.f32 %v6450_v24 }
0x1912   :  { %14994 = vrcp.f32 %v6453_v48 }
0x1913   :  { %12995 = vmatprep.mubr.msk.f32.mxu1 %vm20982_vm6, %v6004_v57  ;;  %vm20995_vm6 = vmmov %vm20926_vm0 }
0x1914   :  { %v14989_v58 = vpop.eup %14988  ;;  %12996 = vmatmul.mubr.msk.f32.gmra.mrb[40].mxu1 %vm20983_vm7, %v6005_v38  ;;  %v6459_v44 = vpop.xlane.xlu1 %6458  ;;  %vm20996_vm7 = vmmov %vm20926_vm0 }
0x1915   :  { %v6482_v59 = vmul.f32 %v14989_v58, %v18988_v30  ;;  %v14991_v37 = vpop.eup %14990 }
0x1916   :  { %v6483_v47 = vmul.f32 %v14991_v37, %v18985_v49 }
0x1917   :  { %13021 = vmatprep.mubr.msk.f32.mxu1 %vm20984_vm2, %v6482_v59  ;;  %vm20997_vm2 = vmmov %vm20926_vm0 }
0x1918   :  { %v6456_v33 = vpop.xlane.xlu1 %6455 }
0x1919   :  { %14996 = vrcp.f32 %v6456_v33  ;;  %v6468_v30 = vpop.xlane.xlu0 %6467 }
0x191a   :  { %14998 = vrcp.f32 %v6459_v44 }
0x191b   :  { %v14993_v16 = vpop.eup %14992 }
0x191c   :  { %v6465_v54 = vpop.xlane.xlu1 %6464  ;;  %v14995_v22 = vpop.eup %14994  ;;  %v6484_v36 = vmul.f32 %v14993_v16, %v19000_v23 }
0x191d   :  { %v6485_v18 = vmul.f32 %v14995_v22, %v18995_v35 }
0x1920   :  { %v6462_v1 = vpop.xlane.xlu1 %6461 }
0x1921   :  { %15000 = vrcp.f32 %v6462_v1 }
0x1922   :  { %15002 = vrcp.f32 %v6465_v54 }
0x1923   :  { %15004 = vrcp.f32 %v6468_v30  ;;  %v14997_v48 = vpop.eup %14996 }
0x1924   :  { %v6471_v63 = vpop.xlane.xlu1 %6470  ;;  %v14999_v39 = vpop.eup %14998  ;;  %v6486_v45 = vmul.f32 %v14997_v48, %v19010_v13 }
0x1925   :  { %15006 = vrcp.f32 %v6471_v63  ;;  %v6487_v49 = vmul.f32 %v14999_v39, %v19005_v50 }
0x1928   :  { %v6932_v8 = vpop.xlane.xlu1 %6931 }
0x192b   :  { %v15001_v14 = vpop.eup %15000 }
0x192c   :  { %v6929_v60 = vpop.xlane.xlu1 %6928  ;;  %v15003_v23 = vpop.eup %15002  ;;  %v6488_v24 = vmul.f32 %v15001_v14, %v19027_v42 }
0x192d   :  { %15008 = vrcp.f32 %v6929_v60  ;;  %v15005_v38 = vpop.eup %15004  ;;  %v6489_v35 = vmul.f32 %v15003_v23, %v19021_v56 }
0x192e   :  { %v6490_v13 = vmul.f32 %v15005_v38, %v19017_v6  ;;  %15010 = vrcp.f32 %v6932_v8 }
0x192f   :  { %v15007_v57 = vpop.eup %15006 }
0x1930   :  { %v14508_v20 = vpop.permute.xlu1 %14507  ;;  %v6491_v50 = vmul.f32 %v15007_v57, %v19031_v15 }
0x1931   :  { %v14510_v9 = vunpack.i.h.bf16 %v14508_v20  ;;  %v14509_v21 = vunpack.i.l.bf16 %v14508_v20 }
0x1933   :  { %v13891_v4 = vpack.c.bf16 %v14510_v9, %v14509_v21 }
0x1935   :  { %13893 = vmatprep.subr.msk.bf16.mxu1 %vm17057_vm3, %v13891_v4 }
0x1936   :  { %13896 = vmatpush3.bf16.msk.msra.mxu1 %vm17057_vm3, %v13891_v4 }
0x1937   :  { %v15009_v58 = vpop.eup %15008 }
0x1938   :  { %v6967_v44 = vmul.f32 %v15009_v58, %v19039_v7  ;;  %v15011_v63 = vpop.eup %15010 }
0x1939   :  { %13022 = vmatmul.mubr.msk.f32.vlgmr.msra.gmra.mrb[42].mxu1 %vm20985_vm12, %v6483_v47  ;;  %v6968_v15 = vmul.f32 %v15011_v63, %v19035_v40  ;;  %vm20999_vm12 = vmmov %vm20926_vm0  ;;  %v892_v63 = vld [vmem:[%s21003_s7 + $0x18] sm:$0xff] }
0x193a   :  { %13024 = vmatprep.mubr.msk.f32.mxu1 %vm20986_vm14, %v6484_v36  ;;  %vm21000_vm14 = vmmov %vm20926_vm0 }
0x193d   :  { %13025 = vmatmul.mubr.msk.f32.gmra.mrb[44].mxu1 %vm20987_vm15, %v6485_v18  ;;  %vm21001_vm15 = vmmov %vm20926_vm0 }
0x193e   :  { %13027 = vmatprep.mubr.msk.f32.mxu1 %vm20988_vm1, %v6486_v45  ;;  %vm21002_vm1 = vmmov %vm20926_vm0 }
0x1941   :  { %13028 = vmatmul.mubr.msk.f32.gmra.mrb[46].mxu1 %vm20926_vm0, %v6487_v49 }
0x1942   :  { %13030 = vmatprep.mubr.msk.f32.mxu1 %vm20989_vm8, %v6488_v24  ;;  %vm7199_vm8 = vcmask 195584  }
0x1945   :  { %13031 = vmatmul.mubr.msk.f32.gmra.mrb[48].mxu1 %vm20990_vm9, %v6489_v35 }
0x1946   :  { %13033 = vmatprep.mubr.msk.f32.mxu1 %vm20991_vm11, %v6490_v13  ;;  %vm21006_vm11 = vcmask 130048  }
0x1949   :  { %13034 = vmatmul.mubr.msk.f32.gmra.mrb[50].mxu1 %vm20992_vm13, %v6491_v50  ;;  %vm21007_vm13 = vmmov %vm21006_vm11 }
0x194a   :  { %13059 = vmatprep.mubr.msk.f32.mxu1 %vm20993_vm4, %v6967_v44  ;;  %vm21008_vm4 = vcmask 261120  }
0x1951   :  { %v6935_v42 = vpop.xlane.xlu0 %6934 }
0x1952   :  { %15012 = vrcp.f32 %v6935_v42 }
0x1955   :  { %v6944_v59 = vpop.xlane.xlu0 %6943 }
0x1959   :  { %v6941_v56 = vpop.xlane.xlu0 %6940 }
0x195a   :  { %15014 = vrcp.f32 %v6941_v56 }
0x195c   :  { %v15013_v20 = vpop.eup %15012 }
0x195d   :  { %v14513_v33 = vpop.permute.xlu0 %14512  ;;  %v6969_v7 = vmul.f32 %v15013_v20, %v19049_v5 }
0x195e   :  { %v14515_v6 = vunpack.i.h.bf16 %v14513_v33  ;;  %v14514_v54 = vunpack.i.l.bf16 %v14513_v33  ;;  %v889_v33 = vld [vmem:[%s21003_s7] sm:$0xff] }
0x1960   :  { %v13903_v1 = vpack.c.bf16 %v14515_v6, %v14514_v54  ;;  %v890_v6 = vld [vmem:[%s21003_s7 + $0x8] sm:$0xff] }
0x1961   :  { %v6938_v60 = vpop.xlane.xlu1 %6937  ;;  %v13909_v54 = vpack.c.bf16 %v890_v6, %v889_v33 }
0x1962   :  { %15016 = vrcp.f32 %v6938_v60  ;;  %13905 = vmatprep.subr.msk.bf16.mxu1 %vm17057_vm3, %v13903_v1 }
0x1963   :  { %13908 = vmatpush3.bf16.msk.msra.mxu1 %vm17057_vm3, %v13903_v1  ;;  %15018 = vrcp.f32 %v6944_v59  ;;  %vm20998_vm3 = vmmov %vm20926_vm0  ;;  %v891_v1 = vld [vmem:[%s21003_s7 + $0x10] sm:$0xff]  ;;  %13910 = vmatprep.subr.bf16.mxu0 %v13909_v54  ;;  %vm21004_vm0 = vcmask 64512  }
0x1964   :  { %v15015_v8 = vpop.eup %15014  ;;  %v13913_v60 = vpack.c.bf16 %v892_v63, %v891_v1  ;;  %13912 = vmatpush3.bf16.msra.mxu0 %v13909_v54  ;;  %vm21005_vm9 = vmmov %vm21004_vm0 }
0x1965   :  { %v6971_v37 = vmul.f32 %v15015_v8, %v19059_v19  ;;  %v6950_v40 = vpop.xlane.xlu1 %6949 }
0x1966   :  { %13060 = vmatmul.mubr.msk.f32.vlgmr.msra.gmra.mrb[52].mxu1 %vm20994_vm5, %v6968_v15  ;;  %15020 = vrcp.f32 %v6950_v40  ;;  %13914 = vmatprep.subr.bf16.mxu0 %v13913_v60  ;;  %vm21009_vm5 = vmmov %vm21008_vm4 }
0x1967   :  { %13062 = vmatprep.mubr.msk.f32.mxu1 %vm20995_vm6, %v6969_v7  ;;  %vm21010_vm6 = vmmov %vm21004_vm0 }
0x1968   :  { %13916 = vmatpush3.bf16.msra.mxu0 %v13913_v60  ;;  %v5716_v60 = vadd.f32 %v18791_v31, %v18556_v0 }
0x1969   :  { %v6953_v5 = vpop.xlane.xlu1 %6952 }
0x196a   :  { %15022 = vrcp.f32 %v6953_v5 }
0x196c   :  { %v15017_v9 = vpop.eup %15016 }
0x196d   :  { %v6970_v21 = vmul.f32 %v15017_v9, %v19064_v51  ;;  %v15019_v4 = vpop.eup %15018  ;;  %v6956_v16 = vpop.xlane.xlu1 %6955 }
0x196e   :  { %v6972_v34 = vmul.f32 %v15019_v4, %v19054_v12 }
0x196f   :  { %13063 = vmatmul.mubr.msk.f32.gmra.mrb[54].mxu1 %vm20996_vm7, %v6970_v21  ;;  %vm21011_vm7 = vmmov %vm21006_vm11 }
0x1970   :  { %13065 = vmatprep.mubr.msk.f32.mxu1 %vm20997_vm2, %v6971_v37  ;;  %v15021_v51 = vpop.eup %15020  ;;  %vm21012_vm2 = vmmov %vm21008_vm4 }
0x1971   :  { %v6974_v36 = vmul.f32 %v15021_v51, %v19068_v28 }
0x1973   :  { %13066 = vmatmul.mubr.msk.f32.gmra.mrb[56].mxu1 %vm20998_vm3, %v6972_v34  ;;  %vm21013_vm3 = vmmov %vm21004_vm0 }
0x1974   :  { %v15023_v47 = vpop.eup %15022 }
0x1975   :  { %v6975_v12 = vmul.f32 %v15023_v47, %v19072_v2 }
0x198e   :  { %v6947_v30 = vpop.xlane.xlu0 %6946 }
0x198f   :  { %15024 = vrcp.f32 %v6947_v30 }
0x1990   :  { %15026 = vrcp.f32 %v6956_v16 }
0x1999   :  { %v15025_v22 = vpop.eup %15024 }
0x199a   :  { %v6973_v19 = vmul.f32 %v15025_v22, %v19083_v46  ;;  %v15027_v48 = vpop.eup %15026 }
0x199b   :  { %v6976_v18 = vmul.f32 %v15027_v48, %v19076_v25 }
0x199c   :  { %13068 = vmatprep.mubr.msk.f32.mxu1 %vm20999_vm12, %v6973_v19  ;;  %vm21014_vm12 = vmmov %vm21011_vm7 }
0x199d   :  { %13069 = vmatmul.mubr.msk.f32.gmra.mrb[58].mxu1 %vm21000_vm14, %v6974_v36  ;;  %vm21015_vm14 = vmmov %vm21004_vm0 }
0x199e   :  { %13071 = vmatprep.mubr.msk.f32.mxu1 %vm21001_vm15, %v6975_v12  ;;  %vm21016_vm15 = vmmov %vm21012_vm2 }
0x19a1   :  { %13072 = vmatmul.mubr.msk.f32.gmra.mrb[60].mxu1 %vm21002_vm1, %v6976_v18  ;;  %vm21017_vm1 = vmmov %vm21011_vm7 }
0x19d6   :  { %v12985_v39 = vpop.f32.mrb[32].mxu1 }
0x19d7   :  { %6171 = vrot.lane.b32.xlu0 %v12985_v39, %s16395_s21  ;;  %v6110_v45 = vpop.f32.mrb[33].mxu1 }
0x19d8   :  { %6169 = vrot.lane.b32.xlu1 %v6110_v45, %s16395_s21 }
0x19db   :  { %v12988_v28 = vpop.f32.mrb[34].mxu1 }
0x19dc   :  { %v6120_v46 = vpop.f32.mrb[35].mxu1  ;;  %6175 = vrot.lane.b32.xlu1 %v12988_v28, %s16395_s21 }
0x19df   :  { %v12991_v14 = vpop.f32.mrb[36].mxu1 }
0x19e0   :  { %v6130_v2 = vpop.f32.mrb[37].mxu1  ;;  %6173 = vrot.lane.b32.xlu1 %v6120_v46, %s16395_s21 }
0x19e1   :  { %6177 = vrot.lane.b32.xlu0 %v6130_v2, %s16395_s21 }
0x19e3   :  { %v12994_v49 = vpop.f32.mrb[38].mxu1 }
0x19e4   :  { %v6140_v25 = vpop.f32.mrb[39].mxu1  ;;  %6179 = vrot.lane.b32.xlu1 %v12991_v14, %s16395_s21  ;;  %v5713_v14 = vadd.f32 %v18789_v17, %v18537_v32 }
0x19e7   :  { %v12997_v23 = vpop.f32.mrb[40].mxu1 }
0x19e8   :  { %v6150_v24 = vpop.f32.mrb[41].mxu1 }
0x1a0c   :  { %v13023_v38 = vpop.f32.mrb[42].mxu1 }
0x1a0d   :  { %6656 = vrot.lane.b32.xlu1 %v13023_v38, %s16425_s12  ;;  %v6595_v35 = vpop.f32.mrb[43].mxu1 }
0x1a10   :  { %v13026_v57 = vpop.f32.mrb[44].mxu1 }
0x1a11   :  { %6654 = vrot.lane.b32.xlu1 %v6595_v35, %s16425_s12  ;;  %v6605_v13 = vpop.f32.mrb[45].mxu1 }
0x1a12   :  { %6658 = vrot.lane.b32.xlu0 %v6605_v13, %s16425_s12 }
0x1a14   :  { %v13029_v58 = vpop.f32.mrb[46].mxu1 }
0x1a15   :  { %6660 = vrot.lane.b32.xlu1 %v13026_v57, %s16425_s12  ;;  %v6615_v50 = vpop.f32.mrb[47].mxu1 }
0x1a16   :  { %6662 = vrot.lane.b32.xlu0 %v6615_v50, %s16425_s12 }
0x1a18   :  { %v13032_v44 = vpop.f32.mrb[48].mxu1 }
0x1a19   :  { %v6625_v42 = vpop.f32.mrb[49].mxu1 }
0x1a1a   :  { %6181 = vrot.lane.b32.xlu0 %v6140_v25, %s16395_s21 }
0x1a1c   :  { %v13035_v59 = vpop.f32.mrb[50].mxu1 }
0x1a1d   :  { %v6635_v56 = vpop.f32.mrb[51].mxu1 }
0x1a39   :  { %v13061_v20 = vpop.f32.mrb[52].mxu1 }
0x1a3a   :  { %7141 = vrot.lane.b32.xlu1 %v13061_v20, %s16431_s11  ;;  %v7080_v15 = vpop.f32.mrb[53].mxu1 }
0x1a3e   :  { %7139 = vrot.lane.b32.xlu1 %v7080_v15, %s16431_s11 }
0x1a42   :  { %6664 = vrot.lane.b32.xlu1 %v13029_v58, %s16425_s12  ;;  %v13064_v7 = vpop.f32.mrb[54].mxu1 }
0x1a43   :  { %v7090_v8 = vpop.f32.mrb[55].mxu1 }
0x1a44   :  { %7143 = vrot.lane.b32.xlu0 %v7090_v8, %s16431_s11 }
0x1a46   :  { %6183 = vrot.lane.b32.xlu1 %v12994_v49, %s16395_s21  ;;  %v13067_v9 = vpop.f32.mrb[56].mxu1  ;;  %v5714_v49 = vadd.f32 %v18787_v29, %v18546_v3 }
0x1a47   :  { %v7100_v21 = vpop.f32.mrb[57].mxu1 }
0x1a48   :  { %6666 = vrot.lane.b32.xlu0 %v6625_v42, %s16425_s12 }
0x1a49   :  { %v6172_v22 = vpop.permute.xlu0 %6171 }
0x1a4a   :  { %7145 = vrot.lane.b32.xlu1 %v13064_v7, %s16431_s11  ;;  %v6170_v5 = vpop.permute.xlu1 %6169  ;;  %v6200_v28 = vadd.f32 %v6172_v22, %v18546_v3  ;;  %v5717_v7 = vadd.f32 %v18797_v10, %v18559_v41 }
0x1a4b   :  { %v6199_v45 = vadd.f32 %v6170_v5, %v18537_v32 }
0x1a4c   :  { %7147 = vrot.lane.b32.xlu0 %v7100_v21, %s16431_s11  ;;  %v7180_v35 = vsel %vm21005_vm9, %v5714_v49, %v6200_v28  ;;  %vm21019_vm9 = vmmov %vm21013_vm3  ;;  %v5720_v28 = vadd.f32 %v18799_v27, %v18576_v55 }
0x1a4e   :  { %6668 = vrot.lane.b32.xlu1 %v13032_v44, %s16425_s12  ;;  %v6176_v30 = vpop.permute.xlu1 %6175  ;;  %v5715_v44 = vadd.f32 %v18793_v62, %v18549_v26 }
0x1a4f   :  { %v6202_v54 = vadd.f32 %v6176_v30, %v18556_v0 }
0x1a50   :  { %6185 = vrot.lane.b32.xlu0 %v6150_v24, %s16395_s21  ;;  %v7179_v24 = vsel %vm21004_vm0, %v5713_v14, %v6199_v45  ;;  %vm21018_vm0 = vmmov %vm21012_vm2 }
0x1a51   :  { %v7182_v8 = vsel %vm21013_vm3, %v5716_v60, %v6202_v54 }
0x1a52   :  { %7149 = vrot.lane.b32.xlu1 %v13067_v9, %s16431_s11  ;;  %v6174_v16 = vpop.permute.xlu1 %6173 }
0x1a53   :  { %v6178_v19 = vpop.permute.xlu0 %6177  ;;  %v6201_v17 = vadd.f32 %v6174_v16, %v18549_v26 }
0x1a54   :  { %v6203_v20 = vadd.f32 %v6178_v19, %v18559_v41 }
0x1a56   :  { %6187 = vrot.lane.b32.xlu1 %v12997_v23, %s16395_s21  ;;  %v6180_v51 = vpop.permute.xlu1 %6179 }
0x1a57   :  { %v6204_v5 = vadd.f32 %v6180_v51, %v18566_v52 }
0x1a70   :  { %v13070_v4 = vpop.f32.mrb[58].mxu1 }
0x1a71   :  { %7153 = vrot.lane.b32.xlu1 %v13070_v4, %s16431_s11  ;;  %v7110_v37 = vpop.f32.mrb[59].mxu1 }
0x1a72   :  { %7151 = vrot.lane.b32.xlu0 %v7110_v37, %s16431_s11  ;;  %v7183_v37 = vsel %vm21015_vm14, %v5717_v7, %v6203_v20 }
0x1a74   :  { %v13073_v34 = vpop.f32.mrb[60].mxu1 }
0x1a75   :  { %6672 = vrot.lane.b32.xlu1 %v13035_v59, %s16425_s12  ;;  %v7120_v40 = vpop.f32.mrb[61].mxu1  ;;  %v7181_v59 = vsel %vm21010_vm6, %v5715_v44, %v6201_v17  ;;  %vm21024_vm6 = vmmov %vm21017_vm1  ;;  %v21029_v17 = vld [vmem:[#allocation153_spill] sm:$0xff]  ;;  %v21031_v44 = vld [vmem:[#allocation152_spill] sm:$0xff] }
0x1a76   :  { %6670 = vrot.lane.b32.xlu0 %v6635_v56, %s16425_s12 }
0x1a79   :  { %7157 = vrot.lane.b32.xlu1 %v13073_v34, %s16431_s11 }
0x1a7a   :  { %7155 = vrot.lane.b32.xlu0 %v7120_v40, %s16431_s11 }
0x1a7f   :  { %v6657_v47 = vpop.permute.xlu1 %6656 }
0x1a80   :  { %v6685_v2 = vadd.f32 %v6657_v47, %v18546_v3 }
0x1a82   :  { %v7190_v58 = vsel %vm21007_vm13, %v7180_v35, %v6685_v2  ;;  %vm21021_vm13 = vmmov %vm21018_vm0 }
0x1a83   :  { %v6655_v36 = vpop.permute.xlu1 %6654 }
0x1a84   :  { %v6659_v48 = vpop.permute.xlu0 %6658  ;;  %v6684_v46 = vadd.f32 %v6655_v36, %v18537_v32 }
0x1a86   :  { %v7189_v13 = vsel %vm21006_vm11, %v7179_v24, %v6684_v46  ;;  %vm21020_vm11 = vmmov %vm21017_vm1 }
0x1a87   :  { %v6661_v12 = vpop.permute.xlu1 %6660 }
0x1a88   :  { %v6663_v18 = vpop.permute.xlu0 %6662  ;;  %v6687_v63 = vadd.f32 %v6661_v12, %v18556_v0 }
0x1a8a   :  { %v7192_v4 = vsel %vm21014_vm12, %v7182_v8, %v6687_v63  ;;  %v955_v8 = vld [vmem:[#allocation72 + $0x8] sm:$0xff] }
0x1a8c   :  { %v6182_v57 = vpop.permute.xlu0 %6181 }
0x1a8d   :  { %v6205_v12 = vadd.f32 %v6182_v57, %v18569_v53 }
0x1aac   :  { %v7142_v39 = vpop.permute.xlu1 %7141 }
0x1aad   :  { %v7170_v25 = vadd.f32 %v7142_v39, %v18546_v3  ;;  %v6686_v3 = vadd.f32 %v6659_v48, %v18549_v26  ;;  %v5719_v39 = vadd.f32 %v18801_v43, %v18569_v53 }
0x1aaf   :  { %v19209_v29 = vsel %vm7199_vm8, %v7190_v58, %v7170_v25  ;;  %v7191_v6 = vsel %vm21011_vm7, %v7181_v59, %v6686_v3  ;;  %vm21025_vm7 = vmmov %vm21017_vm1  ;;  %v5721_v58 = vadd.f32 %v21029_v17, %v18579_v61 }
0x1ab0   :  { %v7140_v23 = vpop.permute.xlu1 %7139 }
0x1ab1   :  { %v7169_v38 = vadd.f32 %v7140_v23, %v18537_v32 }
0x1ab3   :  { %v19205_v50 = vsel %vm7199_vm8, %v7189_v13, %v7169_v38 }
0x1ab4   :  { %13082 = vmatprep.mubr.msk.f32.mxu0 %vm21008_vm4, %v19205_v50  ;;  %v6665_v32 = vpop.permute.xlu1 %6664  ;;  %vm21022_vm4 = vmmov %vm21013_vm3 }
0x1ab5   :  { %13083 = vmatmul.mubr.msk.f32.vlgmr.msra.gmra.mrb[58].mxu0 %vm21009_vm5, %v19209_v29  ;;  %v6689_v30 = vadd.f32 %v6665_v32, %v18566_v52  ;;  %v7185_v2 = vsel %vm21022_vm4, %v5719_v39, %v6205_v12  ;;  %vm21023_vm5 = vmmov %vm21013_vm3 }
0x1ab6   :  { %v7144_v42 = vpop.permute.xlu0 %7143  ;;  %vm21027_vm3 = vmmov %vm21018_vm0 }
0x1ab7   :  { %v7171_v56 = vadd.f32 %v7144_v42, %v18549_v26  ;;  %v6688_v26 = vadd.f32 %v6663_v18, %v18559_v41  ;;  %vm21032_vm12 = vmmov %vm21022_vm4 }
0x1ab8   :  { %v6184_v33 = vpop.permute.xlu1 %6183  ;;  %vm21033_vm14 = vmmov %vm21022_vm4 }
0x1ab9   :  { %v19222_v1 = vsel %vm7199_vm8, %v7191_v6, %v7171_v56  ;;  %v7193_v10 = vsel %vm21017_vm1, %v7183_v37, %v6688_v26  ;;  %v6206_v18 = vadd.f32 %v6184_v33, %v18576_v55  ;;  %v949_v26 = vld [vmem:[%s21030_s0] sm:$0xff]  ;;  %vm21038_vm4 = vmmov %vm21018_vm0 }
0x1aba   :  { %13085 = vmatprep.mubr.msk.f32.mxu0 %vm21012_vm2, %v19222_v1  ;;  %v6667_v62 = vpop.permute.xlu0 %6666  ;;  %vm21026_vm2 = vmmov %vm21018_vm0 }
0x1abb   :  { %v7186_v25 = vsel %vm21023_vm5, %v5720_v28, %v6206_v18  ;;  %v961_v18 = vld [vmem:[#allocation74 + $0x10] sm:$0xff]  ;;  %vm21039_vm5 = vmmov %vm21018_vm0 }
0x1abc   :  { %v7146_v15 = vpop.permute.xlu1 %7145 }
0x1abd   :  { %v7172_v9 = vadd.f32 %v7146_v15, %v18556_v0  ;;  %v954_v15 = vld [vmem:[#allocation72] sm:$0xff] }
0x1abe   :  { %v7148_v21 = vpop.permute.xlu0 %7147 }
0x1abf   :  { %v7173_v34 = vadd.f32 %v7148_v21, %v18559_v41  ;;  %v19239_v31 = vsel %vm7199_vm8, %v7192_v4, %v7172_v9  ;;  %v5718_v41 = vadd.f32 %v18795_v11, %v18566_v52  ;;  %v6690_v11 = vadd.f32 %v6667_v62, %v18569_v53  ;;  %v951_v9 = vld [vmem:[%s21030_s0 + $0x10] sm:$0xff]  ;;  %v952_v21 = vld [vmem:[%s21030_s0 + $0x18] sm:$0xff] }
0x1ac0   :  { %v6669_v40 = vpop.permute.xlu1 %6668  ;;  %13086 = vmatmul.mubr.msk.f32.gmra.mrb[60].mxu0 %vm21016_vm15, %v19239_v31  ;;  %vm21034_vm15 = vmmov %vm21017_vm1  ;;  %v13925_v4 = vpack.c.bf16 %v955_v8, %v954_v15  ;;  %v13921_v37 = vpack.c.bf16 %v952_v21, %v951_v9 }
0x1ac1   :  { %v19246_v0 = vsel %vm7199_vm8, %v7193_v10, %v7173_v34  ;;  %v7184_v47 = vsel %vm21019_vm9, %v5718_v41, %v6204_v5  ;;  %v7195_v23 = vsel %vm21024_vm6, %v7185_v2, %v6690_v11  ;;  %vm21035_vm9 = vmmov %vm21018_vm0  ;;  %v956_v34 = vld [vmem:[#allocation72 + $0x10] sm:$0xff]  ;;  %v959_v5 = vld [vmem:[#allocation74] sm:$0xff] }
0x1ac2   :  { %13088 = vmatprep.mubr.msk.f32.mxu0 %vm21018_vm0, %v19246_v0  ;;  %v7194_v19 = vsel %vm21020_vm11, %v7184_v47, %v6689_v30  ;;  %v6186_v48 = vpop.permute.xlu0 %6185  ;;  %13926 = vmatprep.subr.bf16.mxu0 %v13925_v4  ;;  %v960_v30 = vld [vmem:[#allocation74 + $0x8] sm:$0xff]  ;;  %v962_v11 = vld [vmem:[#allocation74 + $0x18] sm:$0xff]  ;;  %vm21036_vm11 = vmmov %vm21018_vm0 }
0x1ac3   :  { %v6207_v35 = vadd.f32 %v6186_v48, %v18579_v61  ;;  %13928 = vmatpush3.bf16.msra.mxu0 %v13925_v4  ;;  %v13933_v41 = vpack.c.bf16 %v960_v30, %v959_v5  ;;  %vm21040_vm6 = vmmov %vm21018_vm0 }
0x1ac4   :  { %v7150_v16 = vpop.permute.xlu1 %7149 }
0x1ac5   :  { %v7174_v22 = vadd.f32 %v7150_v16, %v18566_v52  ;;  %v6691_v52 = vadd.f32 %v6669_v40, %v18576_v55  ;;  %v7187_v33 = vsel %vm21032_vm12, %v5721_v58, %v6207_v35  ;;  %v957_v40 = vld [vmem:[#allocation72 + $0x18] sm:$0xff]  ;;  %vm21044_vm12 = vmmov %vm21018_vm0 }
0x1ac6   :  { %v13929_v10 = vpack.c.bf16 %v957_v40, %v956_v34  ;;  %v11955_v16 = vld [vmem:[#allocation39] ss:$0 sm:$0xff] }
0x1ac7   :  { %v19257_v51 = vsel %vm7199_vm8, %v7194_v19, %v7174_v22  ;;  %v7196_v38 = vsel %vm21025_vm7, %v7186_v25, %v6691_v52  ;;  %vm21041_vm7 = vmmov %vm21018_vm0 }
0x1ac8   :  { %13089 = vmatmul.mubr.msk.f32.gmra.mrb[62].mxu0 %vm21021_vm13, %v19257_v51  ;;  %v6188_v36 = vpop.permute.xlu1 %6187  ;;  %13930 = vmatprep.subr.bf16.mxu0 %v13929_v10  ;;  %vm21037_vm13 = vmmov %vm21018_vm0 }
0x1ac9   :  { %13932 = vmatpush3.bf16.msra.mxu0 %v13929_v10 }
0x1ae3   :  { %v7154_v45 = vpop.permute.xlu1 %7153 }
0x1ae4   :  { %v7176_v46 = vadd.f32 %v7154_v45, %v18576_v55  ;;  %v7152_v14 = vpop.permute.xlu0 %7151  ;;  %v13937_v45 = vpack.c.bf16 %v962_v11, %v961_v18 }
0x1ae5   :  { %v7175_v49 = vadd.f32 %v7152_v14, %v18569_v53  ;;  %v21028_v53 = vld [vmem:[#allocation151_spill] sm:$0xff] }
0x1ae6   :  { %v19281_v55 = vsel %vm7199_vm8, %v7196_v38, %v7176_v46  ;;  %v6208_v57 = vadd.f32 %v6188_v36, %v21028_v53  ;;  %v5722_v42 = vadd.f32 %v21031_v44, %v21028_v53 }
0x1ae7   :  { %v6673_v24 = vpop.permute.xlu1 %6672  ;;  %v19275_v43 = vsel %vm7199_vm8, %v7195_v23, %v7175_v49 }
0x1ae8   :  { %13091 = vmatprep.mubr.msk.f32.mxu0 %vm21026_vm2, %v19275_v43  ;;  %v6671_v27 = vpop.permute.xlu0 %6670  ;;  %v6693_v3 = vadd.f32 %v6673_v24, %v21028_v53  ;;  %v7188_v54 = vsel %vm21033_vm14, %v5722_v42, %v6208_v57  ;;  %vm21042_vm2 = vmmov %vm21018_vm0 }
0x1ae9   :  { %13092 = vmatmul.mubr.msk.f32.gmra.mrb[64].mxu0 %vm21027_vm3, %v19281_v55  ;;  %v6692_v13 = vadd.f32 %v6671_v27, %v18579_v61  ;;  %vm21043_vm3 = vmmov %vm21018_vm0 }
0x1aea   :  { %v7198_v60 = vsel %vm21017_vm1, %v7188_v54, %v6693_v3  ;;  %vm21045_vm14 = vmmov %vm21018_vm0 }
0x1aeb   :  { %v7158_v32 = vpop.permute.xlu1 %7157  ;;  %v7197_v63 = vsel %vm21034_vm15, %v7187_v33, %v6692_v13  ;;  %vm21046_vm15 = vmmov %vm21018_vm0 }
0x1aec   :  { %v7178_v59 = vadd.f32 %v7158_v32, %v21028_v53  ;;  %v7156_v56 = vpop.permute.xlu0 %7155  ;;  %vm21047_vm1 = vmmov %vm21018_vm0 }
0x1aed   :  { %v7177_v6 = vadd.f32 %v7156_v56, %v18579_v61  ;;  %v950_v61 = vld [vmem:[%s21030_s0 + $0x8] sm:$0xff] }
0x1aee   :  { %v19305_v20 = vsel %vm7199_vm8, %v7198_v60, %v7178_v59  ;;  %v13917_v7 = vpack.c.bf16 %v950_v61, %v949_v26 }
0x1aef   :  { %v19299_v62 = vsel %vm7199_vm8, %v7197_v63, %v7177_v6  ;;  %v11977_v63 = vld [vmem:[%s21052_s6] ss:$0 sm:$0xff] }
0x1af0   :  { %13094 = vmatprep.mubr.msk.f32.mxu0 %vm21018_vm0, %v19299_v62  ;;  %13918 = vmatprep.subr.bf16.mxu1 %v13917_v7 }
0x1af1   :  { %13095 = vmatmul.mubr.msk.f32.gmra.mrb[66].mxu0 %vm21035_vm9, %v19305_v20  ;;  %13920 = vmatpush3.bf16.msra.mxu1 %v13917_v7  ;;  %vm21048_vm9 = vmmov %vm21018_vm0 }
0x1af2   :  { %13922 = vmatprep.subr.bf16.mxu1 %v13921_v37 }
0x1af5   :  { %13924 = vmatpush3.bf16.msra.mxu1 %v13921_v37 }
0x1af6   :  { %13934 = vmatprep.subr.bf16.mxu1 %v13933_v41 }
0x1b88   :  { %v13084_v47 = vpop.f32.mrb[58].mxu0 }
0x1b89   :  { %v7318_v22 = vadd.f32 %v13084_v47, %v11955_v16  ;;  %v7312_v19 = vpop.f32.mrb[59].mxu0 }
0x1b8a   :  { %v7313_v36 = vadd.f32 %v11955_v16, %v7312_v19 }
0x1b8b   :  { %v7362_v48 = vmax.f32 %v7318_v22, 0.0 }
0x1b8c   :  { %v7361_v12 = vmax.f32 %v7313_v36, 0.0 }
0x1b8d   :  { %v7372_v52 = vadd.f32 %v7362_v48, %v19209_v29 }
0x1b8e   :  { %v7371_v39 = vadd.f32 %v7361_v12, %v19205_v50 }
0x1b90   :  { %13105 = vmatprep.mubr.msk.f32.mxu1 %vm21036_vm11, %v7371_v39  ;;  %13128 = vmatprep.mubr.msk.f32.mxu0 %vm21037_vm13, %v7371_v39  ;;  %vm21049_vm11 = vmmov %vm21018_vm0 }
0x1b91   :  { %13106 = vmatmul.mubr.msk.f32.vlgmr.msra.gmra.mrb[62].mxu1 %vm21038_vm4, %v7372_v52  ;;  %13129 = vmatmul.mubr.msk.f32.vlgmr.msra.gmra.mrb[68].mxu0 %vm21039_vm5, %v7372_v52  ;;  %vm21050_vm13 = vmmov %vm21018_vm0 }
0x1b92   :  { %13936 = vmatpush3.bf16.msra.mxu1 %v13933_v41  ;;  %vm21051_vm4 = vmmov %vm21018_vm0 }
0x1b93   :  { %v13087_v28 = vpop.f32.mrb[60].mxu0  ;;  %13938 = vmatprep.subr.bf16.mxu1 %v13937_v45  ;;  %vm21053_vm5 = vmmov %vm21018_vm0 }
0x1b94   :  { %v7328_v46 = vadd.f32 %v13087_v28, %v11955_v16  ;;  %v7322_v14 = vpop.f32.mrb[61].mxu0 }
0x1b95   :  { %v7323_v2 = vadd.f32 %v11955_v16, %v7322_v14 }
0x1b96   :  { %v7364_v49 = vmax.f32 %v7328_v46, 0.0  ;;  %13940 = vmatpush3.bf16.msra.mxu1 %v13937_v45 }
0x1b97   :  { %v7363_v50 = vmax.f32 %v7323_v2, 0.0 }
0x1b98   :  { %v7374_v25 = vadd.f32 %v7364_v49, %v19239_v31 }
0x1b99   :  { %v7373_v29 = vadd.f32 %v7363_v50, %v19222_v1 }
0x1b9b   :  { %v13090_v23 = vpop.f32.mrb[62].mxu0  ;;  %13108 = vmatprep.mubr.msk.f32.mxu1 %vm21040_vm6, %v7373_v29  ;;  %13131 = vmatprep.mubr.msk.f32.mxu0 %vm21041_vm7, %v7373_v29  ;;  %vm21054_vm6 = vmmov %vm21018_vm0 }
0x1b9c   :  { %v7338_v24 = vadd.f32 %v13090_v23, %v11955_v16  ;;  %v7332_v38 = vpop.f32.mrb[63].mxu0  ;;  %13109 = vmatmul.mubr.msk.f32.gmra.mrb[64].mxu1 %vm21042_vm2, %v7374_v25  ;;  %13132 = vmatmul.mubr.msk.f32.gmra.mrb[70].mxu0 %vm21043_vm3, %v7374_v25  ;;  %vm21055_vm7 = vmmov %vm21018_vm0 }
0x1b9d   :  { %v7333_v27 = vadd.f32 %v11955_v16, %v7332_v38  ;;  %vm21056_vm2 = vmmov %vm21018_vm0 }
0x1b9e   :  { %v7366_v35 = vmax.f32 %v7338_v24, 0.0  ;;  %vm21057_vm3 = vmmov %vm21018_vm0 }
0x1b9f   :  { %v7365_v53 = vmax.f32 %v7333_v27, 0.0 }
0x1ba0   :  { %v7376_v1 = vadd.f32 %v7366_v35, %v19257_v51 }
0x1ba1   :  { %v7375_v57 = vadd.f32 %v7365_v53, %v19246_v0 }
0x1ba3   :  { %13111 = vmatprep.mubr.msk.f32.mxu1 %vm21044_vm12, %v7375_v57  ;;  %13134 = vmatprep.mubr.msk.f32.mxu0 %vm21045_vm14, %v7375_v57  ;;  %vm21058_vm12 = vmmov %vm21018_vm0 }
0x1ba4   :  { %13112 = vmatmul.mubr.msk.f32.gmra.mrb[66].mxu1 %vm21046_vm15, %v7376_v1  ;;  %13135 = vmatmul.mubr.msk.f32.gmra.mrb[72].mxu0 %vm21047_vm1, %v7376_v1  ;;  %vm21059_vm14 = vmmov %vm21018_vm0 }
0x1ba5   :  { %vm21060_vm15 = vmmov %vm21018_vm0 }
0x1ba6   :  { %vm21061_vm1 = vmmov %vm21018_vm0 }
0x1bbc   :  { %v13093_v31 = vpop.f32.mrb[64].mxu0 }
0x1bbd   :  { %v7348_v13 = vadd.f32 %v13093_v31, %v11955_v16  ;;  %v7342_v17 = vpop.f32.mrb[65].mxu0 }
0x1bbe   :  { %v7343_v58 = vadd.f32 %v11955_v16, %v7342_v17 }
0x1bbf   :  { %v7368_v3 = vmax.f32 %v7348_v13, 0.0 }
0x1bc0   :  { %v7367_v32 = vmax.f32 %v7343_v58, 0.0  ;;  %v11988_v58 = vld [vmem:[%s21067_s19] ss:$0 sm:$0xff] }
0x1bc1   :  { %v7378_v0 = vadd.f32 %v7368_v3, %v19281_v55  ;;  %v11966_v55 = vld [vmem:[#allocation71] ss:$0 sm:$0xff] }
0x1bc2   :  { %v7377_v44 = vadd.f32 %v7367_v32, %v19275_v43 }
0x1bc4   :  { %v13096_v42 = vpop.f32.mrb[66].mxu0  ;;  %13114 = vmatprep.mubr.msk.f32.mxu1 %vm21018_vm0, %v7377_v44  ;;  %13137 = vmatprep.mubr.msk.f32.mxu0 %vm21048_vm9, %v7377_v44  ;;  %vm21062_vm9 = vmmov %vm21018_vm0 }
0x1bc5   :  { %v7358_v51 = vadd.f32 %v13096_v42, %v11955_v16  ;;  %v7352_v59 = vpop.f32.mrb[67].mxu0  ;;  %13115 = vmatmul.mubr.msk.f32.gmra.mrb[68].mxu1 %vm21049_vm11, %v7378_v0  ;;  %13138 = vmatmul.mubr.msk.f32.gmra.mrb[74].mxu0 %vm21050_vm13, %v7378_v0  ;;  %vm21063_vm11 = vmmov %vm21018_vm0 }
0x1bc6   :  { %v7353_v56 = vadd.f32 %v11955_v16, %v7352_v59  ;;  %vm21064_vm13 = vmmov %vm21018_vm0 }
0x1bc7   :  { %v7370_v33 = vmax.f32 %v7358_v51, 0.0 }
0x1bc8   :  { %v7369_v6 = vmax.f32 %v7353_v56, 0.0 }
0x1bc9   :  { %v7380_v43 = vadd.f32 %v7370_v33, %v19305_v20 }
0x1bca   :  { %v7379_v54 = vadd.f32 %v7369_v6, %v19299_v62 }
0x1bcc   :  { %13117 = vmatprep.mubr.msk.f32.mxu1 %vm21051_vm4, %v7379_v54  ;;  %13140 = vmatprep.mubr.msk.f32.mxu0 %vm21053_vm5, %v7379_v54  ;;  %vm21065_vm4 = vcmask 64512  }
0x1bcd   :  { %13118 = vmatmul.mubr.msk.f32.gmra.mrb[70].mxu1 %vm21054_vm6, %v7380_v43  ;;  %13141 = vmatmul.mubr.msk.f32.gmra.mrb[76].mxu0 %vm21055_vm7, %v7380_v43  ;;  %vm21069_vm5 = vmmov %vm21065_vm4 }
0x1bce   :  { %13151 = vmatprep.mubr.msk.f32.mxu1 %vm21056_vm2, %v7371_v39  ;;  %vm21070_vm6 = vmmov %vm21065_vm4 }
0x1bcf   :  { %vm21071_vm7 = vmmov %vm21065_vm4 }
0x1bd0   :  { %vm21072_vm2 = vmmov %vm21065_vm4 }
0x1bd1   :  { %13152 = vmatmul.mubr.msk.f32.vlgmr.msra.gmra.mrb[72].mxu1 %vm21057_vm3, %v7372_v52  ;;  %vm8101_vm3 = vcmask 1042432  }
0x1bd2   :  { %13154 = vmatprep.mubr.msk.f32.mxu1 %vm21058_vm12, %v7373_v29  ;;  %vm21073_vm12 = vmmov %vm21072_vm2 }
0x1bd5   :  { %13155 = vmatmul.mubr.msk.f32.gmra.mrb[74].mxu1 %vm21059_vm14, %v7374_v25  ;;  %vm21074_vm14 = vmmov %vm21072_vm2 }
0x1bd6   :  { %13157 = vmatprep.mubr.msk.f32.mxu1 %vm21060_vm15, %v7375_v57  ;;  %vm21075_vm15 = vmmov 1  }
0x1bd9   :  { %13158 = vmatmul.mubr.msk.f32.gmra.mrb[76].mxu1 %vm21061_vm1, %v7376_v1  ;;  %vm19430_vm1 = vmpackc.low %vm8101_vm3, %vm21075_vm15 }
0x1bda   :  { %13160 = vmatprep.mubr.msk.f32.mxu1 %vm21018_vm0, %v7377_v44  ;;  %vm21078_vm0 = vmmov %vm21072_vm2 }
0x1bdb   :  { %vm21085_vm3 = vmmov %vm21078_vm0 }
0x1bdc   :  { %vm21088_vm15 = vmmov %vm21078_vm0 }
0x1bdd   :  { %13161 = vmatmul.mubr.msk.f32.gmra.mrb[78].mxu1 %vm21062_vm9, %v7378_v0  ;;  %vm21079_vm9 = vmmov %vm21078_vm0 }
0x1bde   :  { %13163 = vmatprep.mubr.msk.f32.mxu1 %vm21063_vm11, %v7379_v54  ;;  %vm21080_vm11 = vmmov %vm21078_vm0 }
0x1be1   :  { %13164 = vmatmul.mubr.msk.f32.gmra.mrb[80].mxu1 %vm21064_vm13, %v7380_v43  ;;  %vm7959_vm13 = vcmask 613376  }
0x1c64   :  { %v13107_v62 = vpop.f32.mrb[62].mxu1  ;;  %v13130_v60 = vpop.f32.mrb[68].mxu0 }
0x1c65   :  { %v19354_v20 = vadd.f32 %v13107_v62, %v11966_v55  ;;  %v7610_v26 = vadd.f32 %v13130_v60, %v11977_v63  ;;  %v7483_v61 = vpop.f32.mrb[63].mxu1  ;;  %v7604_v15 = vpop.f32.mrb[69].mxu0 }
0x1c66   :  { %v19356_v7 = vadd.f32 %v11966_v55, %v7483_v61  ;;  %v7605_v8 = vadd.f32 %v11977_v63, %v7604_v15 }
0x1c68   :  { %13186 = vmatprep.mubr.msk.f32.mxu0 %vm21065_vm4, %v19356_v7  ;;  %v19360_v9 = vpack.i.bf16 %v7610_v26, %v7605_v8  ;;  %v13941_v21 = vpack.c.bf16 %v7610_v26, %v7605_v8  ;;  %vm7987_vm4 = vcmask 608256  }
0x1c6a   :  { %14517 = vrot.lane.b32.xlu0 %v19360_v9, %s16429_s10  ;;  %13943 = vmatprep.subr.msk.bf16.mxu0 %vm18350_vm10, %v13941_v21 }
0x1c6b   :  { %13946 = vmatpush3.bf16.xpose.msk.msra.mxu0 %vm18350_vm10, %v13941_v21 }
0x1c6f   :  { %v13110_v37 = vpop.f32.mrb[64].mxu1  ;;  %v13133_v34 = vpop.f32.mrb[70].mxu0 }
0x1c70   :  { %v19368_v40 = vadd.f32 %v13110_v37, %v11966_v55  ;;  %v7620_v10 = vadd.f32 %v13133_v34, %v11977_v63  ;;  %v7493_v5 = vpop.f32.mrb[65].mxu1  ;;  %v7614_v30 = vpop.f32.mrb[71].mxu0 }
0x1c71   :  { %v19370_v41 = vadd.f32 %v11966_v55, %v7493_v5  ;;  %v7615_v16 = vadd.f32 %v11977_v63, %v7614_v30 }
0x1c73   :  { %v13947_v47 = vpack.c.bf16 %v7620_v10, %v7615_v16  ;;  %v19372_v22 = vpack.i.bf16 %v7620_v10, %v7615_v16 }
0x1c75   :  { %13949 = vmatprep.subr.msk.bf16.mxu0 %vm18350_vm10, %v13947_v47 }
0x1c76   :  { %13952 = vmatpush3.bf16.xpose.msk.msra.mxu0 %vm18350_vm10, %v13947_v47 }
0x1c77   :  { %v13113_v19 = vpop.f32.mrb[66].mxu1  ;;  %v13136_v36 = vpop.f32.mrb[72].mxu0 }
0x1c78   :  { %v19378_v48 = vadd.f32 %v13113_v19, %v11966_v55  ;;  %v7630_v12 = vadd.f32 %v13136_v36, %v11977_v63  ;;  %v7503_v18 = vpop.f32.mrb[67].mxu1  ;;  %v7624_v11 = vpop.f32.mrb[73].mxu0 }
0x1c79   :  { %v19380_v39 = vadd.f32 %v11966_v55, %v7503_v18  ;;  %v7625_v52 = vadd.f32 %v11977_v63, %v7624_v11 }
0x1c7b   :  { %v13953_v45 = vpack.c.bf16 %v7630_v12, %v7625_v52  ;;  %v19382_v28 = vpack.i.bf16 %v7630_v12, %v7625_v52 }
0x1c7d   :  { %13955 = vmatprep.subr.msk.bf16.mxu0 %vm18350_vm10, %v13953_v45 }
0x1c7e   :  { %13958 = vmatpush3.bf16.xpose.msk.msra.mxu0 %vm18350_vm10, %v13953_v45 }
0x1c98   :  { %v13116_v46 = vpop.f32.mrb[68].mxu1  ;;  %v13139_v14 = vpop.f32.mrb[74].mxu0 }
0x1c99   :  { %v19388_v2 = vadd.f32 %v13116_v46, %v11966_v55  ;;  %v7640_v49 = vadd.f32 %v13139_v14, %v11977_v63  ;;  %v7513_v50 = vpop.f32.mrb[69].mxu1  ;;  %v7634_v29 = vpop.f32.mrb[75].mxu0 }
0x1c9a   :  { %v19390_v25 = vadd.f32 %v11966_v55, %v7513_v50  ;;  %v7635_v23 = vadd.f32 %v11977_v63, %v7634_v29 }
0x1c9c   :  { %v13959_v24 = vpack.c.bf16 %v7640_v49, %v7635_v23  ;;  %v19392_v38 = vpack.i.bf16 %v7640_v49, %v7635_v23 }
0x1c9e   :  { %13961 = vmatprep.subr.msk.bf16.mxu0 %vm18350_vm10, %v13959_v24 }
0x1c9f   :  { %13964 = vmatpush3.bf16.xpose.msk.msra.mxu0 %vm18350_vm10, %v13959_v24 }
0x1ca0   :  { %v13119_v27 = vpop.f32.mrb[70].mxu1  ;;  %v13142_v35 = vpop.f32.mrb[76].mxu0 }
0x1ca1   :  { %v19398_v53 = vadd.f32 %v13119_v27, %v11966_v55  ;;  %v7650_v57 = vadd.f32 %v13142_v35, %v11977_v63  ;;  %v7523_v1 = vpop.f32.mrb[71].mxu1  ;;  %v7644_v31 = vpop.f32.mrb[77].mxu0 }
0x1ca2   :  { %v19400_v13 = vadd.f32 %v11966_v55, %v7523_v1  ;;  %v7645_v17 = vadd.f32 %v11977_v63, %v7644_v31 }
0x1ca3   :  { %21068 = vst [vmem:[#allocation151_spill] sm:$0xff] %v19398_v53 }
0x1ca4   :  { %v13153_v3 = vpop.f32.mrb[72].mxu1  ;;  %v13965_v32 = vpack.c.bf16 %v7650_v57, %v7645_v17  ;;  %v19403_v44 = vpack.i.bf16 %v7650_v57, %v7645_v17 }
0x1ca5   :  { %v7731_v0 = vadd.f32 %v13153_v3, %v11988_v58  ;;  %v7725_v42 = vpop.f32.mrb[73].mxu1 }
0x1ca6   :  { %v7726_v51 = vadd.f32 %v11988_v58, %v7725_v42  ;;  %13967 = vmatprep.subr.msk.bf16.mxu0 %vm18350_vm10, %v13965_v32 }
0x1ca7   :  { %13970 = vmatpush3.bf16.xpose.msk.msra.mxu0 %vm18350_vm10, %v13965_v32 }
0x1ca8   :  { %v13156_v59 = vpop.f32.mrb[74].mxu1  ;;  %v13971_v56 = vpack.c.bf16 %v7731_v0, %v7726_v51  ;;  %v19409_v33 = vpack.i.bf16 %v7731_v0, %v7726_v51 }
0x1ca9   :  { %v7741_v6 = vadd.f32 %v13156_v59, %v11988_v58  ;;  %v7735_v54 = vpop.f32.mrb[75].mxu1 }
0x1caa   :  { %v7736_v43 = vadd.f32 %v11988_v58, %v7735_v54  ;;  %13972 = vmatprep.subr.bf16.mxu1 %v13971_v56 }
0x1cab   :  { %13974 = vmatpush3.bf16.msra.mxu1 %v13971_v56 }
0x1cac   :  { %v13159_v55 = vpop.f32.mrb[76].mxu1  ;;  %v13975_v63 = vpack.c.bf16 %v7741_v6, %v7736_v43  ;;  %v19411_v62 = vpack.i.bf16 %v7741_v6, %v7736_v43 }
0x1cad   :  { %v7751_v60 = vadd.f32 %v13159_v55, %v11988_v58  ;;  %v7745_v26 = vpop.f32.mrb[77].mxu1 }
0x1cae   :  { %v7746_v61 = vadd.f32 %v11988_v58, %v7745_v26  ;;  %13187 = vmatmul.mubr.msk.f32.vlgmr.msra.gmra.mrb[78].mxu0 %vm21069_vm5, %v19354_v20  ;;  %13976 = vmatprep.subr.bf16.mxu1 %v13975_v63  ;;  %vm21081_vm5 = vmmov %vm21078_vm0 }
0x1caf   :  { %13189 = vmatprep.mubr.msk.f32.mxu0 %vm21070_vm6, %v19370_v41  ;;  %13978 = vmatpush3.bf16.msra.mxu1 %v13975_v63  ;;  %vm21082_vm6 = vmmov %vm21078_vm0 }
0x1cb0   :  { %v13162_v15 = vpop.f32.mrb[78].mxu1  ;;  %v13979_v8 = vpack.c.bf16 %v7751_v60, %v7746_v61  ;;  %v19417_v21 = vpack.i.bf16 %v7751_v60, %v7746_v61 }
0x1cb1   :  { %v7761_v37 = vadd.f32 %v13162_v15, %v11988_v58  ;;  %v7755_v34 = vpop.f32.mrb[79].mxu1 }
0x1cb2   :  { %v7756_v10 = vadd.f32 %v11988_v58, %v7755_v34  ;;  %13190 = vmatmul.mubr.msk.f32.gmra.mrb[80].mxu0 %vm21071_vm7, %v19368_v40  ;;  %13980 = vmatprep.subr.bf16.mxu1 %v13979_v8  ;;  %vm21083_vm7 = vmmov %vm21078_vm0 }
0x1cb3   :  { %13192 = vmatprep.mubr.msk.f32.mxu0 %vm21072_vm2, %v19380_v39  ;;  %13982 = vmatpush3.bf16.msra.mxu1 %v13979_v8  ;;  %vm21084_vm2 = vmmov %vm21078_vm0 }
0x1cb4   :  { %v13165_v5 = vpop.f32.mrb[80].mxu1  ;;  %v13983_v30 = vpack.c.bf16 %v7761_v37, %v7756_v10  ;;  %v19423_v16 = vpack.i.bf16 %v7761_v37, %v7756_v10 }
0x1cb5   :  { %v7771_v47 = vadd.f32 %v13165_v5, %v11988_v58  ;;  %v7765_v19 = vpop.f32.mrb[81].mxu1 }
0x1cb6   :  { %v7766_v36 = vadd.f32 %v11988_v58, %v7765_v19  ;;  %13193 = vmatmul.mubr.msk.f32.gmra.mrb[82].mxu0 %vm21073_vm12, %v19378_v48  ;;  %13984 = vmatprep.subr.bf16.mxu1 %v13983_v30  ;;  %vm21086_vm12 = vmmov %vm21078_vm0 }
0x1cb7   :  { %13195 = vmatprep.mubr.msk.f32.mxu0 %vm21074_vm14, %v19390_v25  ;;  %13986 = vmatpush3.bf16.msra.mxu1 %v13983_v30  ;;  %vm21087_vm14 = vmmov %vm21078_vm0 }
0x1cb8   :  { %v13987_v18 = vpack.c.bf16 %v7771_v47, %v7766_v36  ;;  %v19434_v11 = vpack.i.bf16 %v7771_v47, %v7766_v36 }
0x1cba   :  { %13196 = vmatmul.mubr.msk.f32.gmra.mrb[84].mxu0 %vm21078_vm0, %v19388_v2  ;;  %13989 = vmatprep.subr.msk.bf16.mxu1 %vm19430_vm1, %v13987_v18 }
0x1cbb   :  { %13198 = vmatprep.mubr.msk.f32.mxu0 %vm21079_vm9, %v19400_v13  ;;  %13992 = vmatpush3.bf16.msk.msra.mxu1 %vm19430_vm1, %v13987_v18  ;;  %vm21089_vm9 = vmmov %vm21078_vm0 }
0x1cbe   :  { %13199 = vmatmul.mubr.msk.f32.gmra.mrb[86].mxu0 %vm21080_vm11, %v19398_v53  ;;  %vm21095_vm11 = vmmov %vm21078_vm0 }
0x1cdc   :  { %v14518_v52 = vpop.permute.xlu0 %14517 }
0x1cdd   :  { %v14520_v45 = vunpack.i.h.bf16 %v14518_v52  ;;  %v14519_v46 = vunpack.i.l.bf16 %v14518_v52 }
0x1cdf   :  { %v19446_v14 = vpack.c.bf16 %v14520_v45, %v14519_v46 }
0x1ce1   :  { %13995 = vmatprep.subr.msk.bf16.mxu1 %vm18350_vm10, %v19446_v14 }
0x1d81   :  { %v13188_v49 = vpop.f32.mrb[78].mxu0 }
0x1d82   :  { %v7950_v50 = vmul.f32 0.17677669, %v13188_v49  ;;  %v7900_v29 = vpop.f32.mrb[79].mxu0 }
0x1d83   :  { %v7949_v23 = vmul.f32 0.17677669, %v7900_v29 }
0x1d84   :  { %v7963_v24 = vsel %vm7959_vm13, %v7950_v50, -inf }
0x1d85   :  { %7964 = vmax.xlane.f32.xlu1 %v7963_v24  ;;  %v13191_v27 = vpop.f32.mrb[80].mxu0  ;;  %v7960_v35 = vsel %vm7959_vm13, %v7949_v23, -inf }
0x1d86   :  { %v7952_v57 = vmul.f32 0.17677669, %v13191_v27  ;;  %7961 = vmax.xlane.f32.xlu0 %v7960_v35  ;;  %v7910_v1 = vpop.f32.mrb[81].mxu0 }
0x1d87   :  { %v7951_v17 = vmul.f32 0.17677669, %v7910_v1 }
0x1d88   :  { %v7969_v31 = vsel %vm7959_vm13, %v7952_v57, -inf }
0x1d89   :  { %v13194_v58 = vpop.f32.mrb[82].mxu0  ;;  %v7966_v59 = vsel %vm7959_vm13, %v7951_v17, -inf }
0x1d8a   :  { %v7954_v3 = vmul.f32 0.17677669, %v13194_v58  ;;  %7970 = vmax.xlane.f32.xlu0 %v7969_v31  ;;  %v7920_v32 = vpop.f32.mrb[83].mxu0 }
0x1d8b   :  { %v7953_v42 = vmul.f32 0.17677669, %v7920_v32 }
0x1d8c   :  { %v7975_v0 = vsel %vm7959_vm13, %v7954_v3, -inf }
0x1d8d   :  { %7976 = vmax.xlane.f32.xlu1 %v7975_v0  ;;  %v13197_v51 = vpop.f32.mrb[84].mxu0  ;;  %v7972_v63 = vsel %vm7959_vm13, %v7953_v42, -inf }
0x1d8e   :  { %v7956_v56 = vmul.f32 0.17677669, %v13197_v51  ;;  %7967 = vmax.xlane.f32.xlu0 %v7966_v59  ;;  %v7930_v6 = vpop.f32.mrb[85].mxu0 }
0x1d8f   :  { %v7955_v43 = vmul.f32 0.17677669, %v7930_v6 }
0x1d90   :  { %v7981_v54 = vsel %vm7959_vm13, %v7956_v56, -inf }
0x1d91   :  { %7982 = vmax.xlane.f32.xlu1 %v7981_v54  ;;  %v13200_v55 = vpop.f32.mrb[86].mxu0  ;;  %v7978_v8 = vsel %vm7959_vm13, %v7955_v43, -inf }
0x1d92   :  { %v7958_v60 = vmul.f32 0.17677669, %v13200_v55  ;;  %7973 = vmax.xlane.f32.xlu0 %v7972_v63  ;;  %v7940_v26 = vpop.f32.mrb[87].mxu0 }
0x1d93   :  { %v19459_v15 = vmul.f32 0.17677669, %v7940_v26 }
0x1d94   :  { %v7988_v61 = vsel %vm7987_vm4, %v7958_v60, -inf }
0x1d95   :  { %7989 = vmax.xlane.f32.xlu1 %v7988_v61  ;;  %v7984_v37 = vsel %vm7959_vm13, %v19459_v15, -inf }
0x1d96   :  { %7979 = vmax.xlane.f32.xlu0 %v7978_v8 }
0x1d9a   :  { %7985 = vmax.xlane.f32.xlu0 %v7984_v37 }
0x1da6   :  { %14522 = vrot.lane.b32.xlu1 %v19372_v22, %s16429_s10 }
0x1db0   :  { %14527 = vrot.lane.b32.xlu0 %v19382_v28, %s16429_s10 }
0x1e12   :  { %v7965_v34 = vpop.xlane.xlu1 %7964 }
0x1e13   :  { %v7992_v10 = vsub.f32 %v7950_v50, %v7965_v34  ;;  %v7962_v5 = vpop.xlane.xlu0 %7961 }
0x1e14   :  { %v7991_v30 = vsub.f32 %v7949_v23, %v7962_v5 }
0x1e15   :  { %v8003_v47 = vmul.f32 1.442695, %v7992_v10 }
0x1e16   :  { %v8001_v19 = vmul.f32 1.442695, %v7991_v30 }
0x1e17   :  { %15028 = vpow2.f32 %v8003_v47  ;;  %v7971_v36 = vpop.xlane.xlu0 %7970 }
0x1e18   :  { %15030 = vpow2.f32 %v8001_v19  ;;  %v7994_v18 = vsub.f32 %v7952_v57, %v7971_v36 }
0x1e1a   :  { %v8007_v52 = vmul.f32 1.442695, %v7994_v18  ;;  %v7977_v45 = vpop.xlane.xlu1 %7976 }
0x1e1b   :  { %v7996_v46 = vsub.f32 %v7954_v3, %v7977_v45  ;;  %v7968_v49 = vpop.xlane.xlu0 %7967 }
0x1e1c   :  { %15032 = vpow2.f32 %v8007_v52  ;;  %v7993_v29 = vsub.f32 %v7951_v17, %v7968_v49 }
0x1e1d   :  { %v8011_v24 = vmul.f32 1.442695, %v7996_v46 }
0x1e1e   :  { %v8005_v27 = vmul.f32 1.442695, %v7993_v29  ;;  %v7983_v35 = vpop.xlane.xlu1 %7982 }
0x1e1f   :  { %15034 = vpow2.f32 %v8011_v24  ;;  %v7998_v1 = vsub.f32 %v7956_v56, %v7983_v35  ;;  %v7974_v50 = vpop.xlane.xlu0 %7973 }
0x1e20   :  { %15036 = vpow2.f32 %v8005_v27  ;;  %v7995_v23 = vsub.f32 %v7953_v42, %v7974_v50 }
0x1e21   :  { %v19468_v31 = vpop.eup %15028  ;;  %v8015_v32 = vmul.f32 1.442695, %v7998_v1 }
0x1e22   :  { %v19470_v58 = vpop.eup %15030  ;;  %v8009_v57 = vmul.f32 1.442695, %v7995_v23  ;;  %v8024_v3 = vsel %vm7959_vm13, %v19468_v31, 0.0  ;;  %v7990_v0 = vpop.xlane.xlu1 %7989 }
0x1e23   :  { %v7980_v51 = vpop.xlane.xlu0 %7979  ;;  %8025 = vadd.xlane.f32.xlu1 %v8024_v3  ;;  %v8021_v17 = vsel %vm7959_vm13, %v19470_v58, 0.0  ;;  %v8000_v42 = vsub.f32 %v7958_v60, %v7990_v0 }
0x1e24   :  { %15038 = vpow2.f32 %v8009_v57  ;;  %v7997_v59 = vsub.f32 %v7955_v43, %v7980_v51  ;;  %8022 = vadd.xlane.f32.xlu0 %v8021_v17 }
0x1e25   :  { %15040 = vpow2.f32 %v8015_v32  ;;  %v8019_v26 = vmul.f32 1.442695, %v8000_v42 }
0x1e26   :  { %v19476_v56 = vpop.eup %15032  ;;  %v8013_v6 = vmul.f32 1.442695, %v7997_v59  ;;  %v14523_v45 = vpop.permute.xlu1 %14522 }
0x1e27   :  { %v8030_v54 = vsel %vm7959_vm13, %v19476_v56, 0.0  ;;  %v7986_v19 = vpop.xlane.xlu0 %7985  ;;  %v14525_v23 = vunpack.i.h.bf16 %v14523_v45  ;;  %v14524_v32 = vunpack.i.l.bf16 %v14523_v45 }
0x1e28   :  { %8031 = vadd.xlane.f32.xlu1 %v8030_v54  ;;  %15042 = vpow2.f32 %v8013_v6  ;;  %v7999_v36 = vsub.f32 %v19459_v15, %v7986_v19 }
0x1e29   :  { %v19480_v55 = vpop.eup %15034  ;;  %15044 = vpow2.f32 %v8019_v26  ;;  %v13999_v51 = vpack.c.bf16 %v14525_v23, %v14524_v32 }
0x1e2a   :  { %v19482_v63 = vpop.eup %15036  ;;  %v8036_v61 = vsel %vm7959_vm13, %v19480_v55, 0.0  ;;  %v8017_v18 = vmul.f32 1.442695, %v7999_v36 }
0x1e2b   :  { %v8027_v43 = vsel %vm7959_vm13, %v19482_v63, 0.0  ;;  %v14528_v46 = vpop.permute.xlu0 %14527 }
0x1e2c   :  { %8037 = vadd.xlane.f32.xlu1 %v8036_v61  ;;  %8028 = vadd.xlane.f32.xlu0 %v8027_v43  ;;  %15046 = vpow2.f32 %v8017_v18  ;;  %v14530_v6 = vunpack.i.h.bf16 %v14528_v46 }
0x1e2e   :  { %v19488_v60 = vpop.eup %15038 }
0x1e2f   :  { %v8033_v8 = vsel %vm7959_vm13, %v19488_v60, 0.0  ;;  %v19492_v37 = vpop.eup %15040 }
0x1e30   :  { %8034 = vadd.xlane.f32.xlu1 %v8033_v8  ;;  %v8042_v34 = vsel %vm7959_vm13, %v19492_v37, 0.0 }
0x1e32   :  { %v19496_v10 = vpop.eup %15042 }
0x1e33   :  { %v8039_v5 = vsel %vm7959_vm13, %v19496_v10, 0.0  ;;  %v19500_v30 = vpop.eup %15044 }
0x1e34   :  { %8043 = vadd.xlane.f32.xlu1 %v8042_v34  ;;  %v8048_v47 = vsel %vm7987_vm4, %v19500_v30, 0.0 }
0x1e36   :  { %v19515_v52 = vpop.eup %15046 }
0x1e37   :  { %v8045_v15 = vsel %vm7959_vm13, %v19515_v52, 0.0 }
0x1e38   :  { %8040 = vadd.xlane.f32.xlu1 %v8039_v5 }
0x1e3c   :  { %8049 = vadd.xlane.f32.xlu1 %v8048_v47 }
0x1e42   :  { %14537 = vrot.lane.b32.xlu0 %v19403_v44, %s16429_s10 }
0x1e4d   :  { %14532 = vrot.lane.b32.xlu1 %v19392_v38, %s16429_s10 }
0x1e51   :  { %8234 = vrot.lane.b32.xlu1 %v19370_v41, %s16429_s10 }
0x1e55   :  { %8238 = vrot.lane.b32.xlu1 %v19380_v39, %s16429_s10 }
0x1e59   :  { %8242 = vrot.lane.b32.xlu1 %v19390_v25, %s16429_s10 }
0x1e5d   :  { %8246 = vrot.lane.b32.xlu1 %v19400_v13, %s16429_s10 }
0x1e61   :  { %14547 = vrot.lane.b32.xlu1 %v19411_v62, %s16429_s10  ;;  %8046 = vadd.xlane.f32.xlu0 %v8045_v15 }
0x1e65   :  { %14552 = vrot.lane.b32.xlu1 %v19417_v21, %s16429_s10 }
0x1e77   :  { %8230 = vrot.lane.b32.xlu0 %v19356_v7, %s16429_s10 }
0x1e7b   :  { %8232 = vrot.lane.b32.xlu0 %v19354_v20, %s16429_s10 }
0x1e7f   :  { %8236 = vrot.lane.b32.xlu0 %v19368_v40, %s16429_s10 }
0x1e83   :  { %8240 = vrot.lane.b32.xlu0 %v19378_v48, %s16429_s10 }
0x1e87   :  { %8244 = vrot.lane.b32.xlu0 %v19388_v2, %s16429_s10 }
0x1e8b   :  { %8248 = vrot.lane.b32.xlu0 %v19398_v53, %s16429_s10 }
0x1e8f   :  { %14542 = vrot.lane.b32.xlu0 %v19409_v33, %s16429_s10 }
0x1e93   :  { %14557 = vrot.lane.b32.xlu0 %v19423_v16, %s16429_s10 }
0x1eb0   :  { %v8026_v49 = vpop.xlane.xlu1 %8025 }
0x1eb1   :  { %15048 = vrcp.f32 %v8026_v49  ;;  %v8023_v29 = vpop.xlane.xlu0 %8022 }
0x1eb2   :  { %15050 = vrcp.f32 %v8023_v29 }
0x1eb5   :  { %v8032_v24 = vpop.xlane.xlu1 %8031 }
0x1eb6   :  { %15052 = vrcp.f32 %v8032_v24 }
0x1eb9   :  { %v8038_v27 = vpop.xlane.xlu1 %8037  ;;  %v8029_v35 = vpop.xlane.xlu0 %8028 }
0x1eba   :  { %15054 = vrcp.f32 %v8029_v35 }
0x1ebb   :  { %v15049_v1 = vpop.eup %15048  ;;  %15056 = vrcp.f32 %v8038_v27 }
0x1ebc   :  { %v15051_v50 = vpop.eup %15050  ;;  %v8062_v0 = vmul.f32 %v15049_v1, %v19468_v31 }
0x1ebd   :  { %v8035_v57 = vpop.xlane.xlu1 %8034  ;;  %v8061_v3 = vmul.f32 %v15051_v50, %v19470_v58  ;;  %v14529_v58 = vunpack.i.l.bf16 %v14528_v46  ;;  %v14538_v15 = vpop.permute.xlu0 %14537 }
0x1ebe   :  { %15058 = vrcp.f32 %v8035_v57  ;;  %v14539_v46 = vunpack.i.l.bf16 %v14538_v15 }
0x1ebf   :  { %13221 = vmatprep.mubr.msk.f32.mxu1 %vm7959_vm13, %v8061_v3 }
0x1ec0   :  { %13222 = vmatmul.mubr.msk.f32.vlgmr.msra.gmra.mrb[82].mxu1 %vm7959_vm13, %v8062_v0  ;;  %v15053_v59 = vpop.eup %15052 }
0x1ec1   :  { %13998 = vmatpush3.bf16.xpose.msk.msra.mxu1 %vm18350_vm10, %v19446_v14  ;;  %v8044_v17 = vpop.xlane.xlu1 %8043  ;;  %v8064_v61 = vmul.f32 %v15053_v59, %v19476_v56  ;;  %v14005_v14 = vpack.c.bf16 %v14530_v6, %v14529_v58 }
0x1ec2   :  { %14001 = vmatprep.subr.msk.bf16.mxu1 %vm18350_vm10, %v13999_v51  ;;  %15060 = vrcp.f32 %v8044_v17 }
0x1ec4   :  { %v15055_v42 = vpop.eup %15054 }
0x1ec5   :  { %v8041_v31 = vpop.xlane.xlu1 %8040  ;;  %v8063_v54 = vmul.f32 %v15055_v42, %v19482_v63  ;;  %v15057_v26 = vpop.eup %15056 }
0x1ec6   :  { %15062 = vrcp.f32 %v8041_v31  ;;  %v8066_v63 = vmul.f32 %v15057_v26, %v19480_v55  ;;  %v14540_v55 = vunpack.i.h.bf16 %v14538_v15 }
0x1ec7   :  { %13224 = vmatprep.mubr.msk.f32.mxu1 %vm7959_vm13, %v8063_v54 }
0x1ec8   :  { %v15059_v43 = vpop.eup %15058  ;;  %13225 = vmatmul.mubr.msk.f32.gmra.mrb[84].mxu1 %vm7959_vm13, %v8064_v61  ;;  %v14017_v49 = vpack.c.bf16 %v14540_v55, %v14539_v46 }
0x1ec9   :  { %v8050_v8 = vpop.xlane.xlu1 %8049  ;;  %v8065_v34 = vmul.f32 %v15059_v43, %v19488_v60  ;;  %14004 = vmatpush3.bf16.xpose.msk.msra.mxu1 %vm18350_vm10, %v13999_v51 }
0x1eca   :  { %14007 = vmatprep.subr.msk.bf16.mxu1 %vm18350_vm10, %v14005_v14  ;;  %15064 = vrcp.f32 %v8050_v8 }
0x1ecb   :  { %13227 = vmatprep.mubr.msk.f32.mxu1 %vm7959_vm13, %v8065_v34 }
0x1ecc   :  { %13228 = vmatmul.mubr.msk.f32.gmra.mrb[86].mxu1 %vm7959_vm13, %v8066_v63  ;;  %v15061_v19 = vpop.eup %15060 }
0x1ecd   :  { %v14533_v56 = vpop.permute.xlu1 %14532  ;;  %v8068_v45 = vmul.f32 %v15061_v19, %v19492_v37 }
0x1ece   :  { %v14535_v5 = vunpack.i.h.bf16 %v14533_v56  ;;  %v14534_v47 = vunpack.i.l.bf16 %v14533_v56 }
0x1ed0   :  { %v15063_v36 = vpop.eup %15062  ;;  %v14011_v18 = vpack.c.bf16 %v14535_v5, %v14534_v47 }
0x1ed1   :  { %v8067_v60 = vmul.f32 %v15063_v36, %v19496_v10  ;;  %14010 = vmatpush3.bf16.xpose.msk.msra.mxu1 %vm18350_vm10, %v14005_v14  ;;  %v8235_v37 = vpop.permute.xlu1 %8234 }
0x1ed2   :  { %14013 = vmatprep.subr.msk.bf16.mxu1 %vm18350_vm10, %v14011_v18 }
0x1ed3   :  { %13230 = vmatprep.mubr.msk.f32.mxu1 %vm7959_vm13, %v8067_v60 }
0x1ed4   :  { %13231 = vmatmul.mubr.msk.f32.gmra.mrb[88].mxu1 %vm7959_vm13, %v8068_v45  ;;  %v15065_v35 = vpop.eup %15064 }
0x1ed5   :  { %v8239_v24 = vpop.permute.xlu1 %8238  ;;  %v8070_v57 = vmul.f32 %v15065_v35, %v19500_v30 }
0x1ed9   :  { %14016 = vmatpush3.bf16.xpose.msk.msra.mxu1 %vm18350_vm10, %v14011_v18  ;;  %v8243_v50 = vpop.permute.xlu1 %8242 }
0x1eda   :  { %14019 = vmatprep.subr.msk.bf16.mxu1 %vm18350_vm10, %v14017_v49 }
0x1edd   :  { %v8247_v0 = vpop.permute.xlu1 %8246 }
0x1ee1   :  { %14022 = vmatpush3.bf16.xpose.msk.msra.mxu1 %vm18350_vm10, %v14017_v49  ;;  %v14548_v17 = vpop.permute.xlu1 %14547 }
0x1ee2   :  { %v14549_v42 = vunpack.i.l.bf16 %v14548_v17 }
0x1ee5   :  { %v14553_v31 = vpop.permute.xlu1 %14552 }
0x1ee6   :  { %v14555_v26 = vunpack.i.h.bf16 %v14553_v31  ;;  %v14554_v61 = vunpack.i.l.bf16 %v14553_v31 }
0x1ee8   :  { %v14031_v63 = vpack.c.bf16 %v14555_v26, %v14554_v61 }
0x1eee   :  { %v8047_v10 = vpop.xlane.xlu0 %8046 }
0x1eef   :  { %15066 = vrcp.f32 %v8047_v10 }
0x1ef2   :  { %v8231_v29 = vpop.permute.xlu0 %8230 }
0x1ef6   :  { %v8233_v27 = vpop.permute.xlu0 %8232 }
0x1ef9   :  { %v15067_v1 = vpop.eup %15066 }
0x1efa   :  { %v8237_v23 = vpop.permute.xlu0 %8236  ;;  %v8069_v32 = vmul.f32 %v15067_v1, %v19515_v52  ;;  %v14550_v52 = vunpack.i.h.bf16 %v14548_v17 }
0x1efc   :  { %13233 = vmatprep.mubr.msk.f32.mxu1 %vm7959_vm13, %v8069_v32  ;;  %v14027_v43 = vpack.c.bf16 %v14550_v52, %v14549_v42 }
0x1efd   :  { %13234 = vmatmul.mubr.msk.f32.gmra.mrb[90].mxu1 %vm7959_vm13, %v8070_v57 }
0x1efe   :  { %13256 = vmatprep.mubr.msk.f32.mxu1 %vm21081_vm5, %v8231_v29  ;;  %v8241_v3 = vpop.permute.xlu0 %8240  ;;  %vm21096_vm5 = vmmov %vm21078_vm0 }
0x1f01   :  { %13257 = vmatmul.mubr.msk.f32.vlgmr.msra.gmra.mrb[92].mxu1 %vm21082_vm6, %v8233_v27  ;;  %vm21097_vm6 = vmmov %vm21078_vm0 }
0x1f02   :  { %v8245_v51 = vpop.permute.xlu0 %8244  ;;  %13259 = vmatprep.mubr.msk.f32.mxu1 %vm21083_vm7, %v8235_v37  ;;  %vm21098_vm7 = vmmov %vm21078_vm0 }
0x1f05   :  { %13260 = vmatmul.mubr.msk.f32.gmra.mrb[94].mxu1 %vm21084_vm2, %v8237_v23  ;;  %vm21099_vm2 = vmmov %vm21078_vm0 }
0x1f06   :  { %v8249_v59 = vpop.permute.xlu0 %8248  ;;  %13262 = vmatprep.mubr.msk.f32.mxu1 %vm21085_vm3, %v8239_v24  ;;  %vm21100_vm3 = vmmov %vm21078_vm0 }
0x1f09   :  { %13263 = vmatmul.mubr.msk.f32.gmra.mrb[96].mxu1 %vm21086_vm12, %v8241_v3  ;;  %vm21101_vm12 = vmmov %vm21078_vm0 }
0x1f0a   :  { %v14543_v30 = vpop.permute.xlu0 %14542  ;;  %13265 = vmatprep.mubr.msk.f32.mxu1 %vm21087_vm14, %v8243_v50  ;;  %vm21102_vm14 = vmmov %vm21078_vm0 }
0x1f0b   :  { %v14545_v6 = vunpack.i.h.bf16 %v14543_v30  ;;  %v14544_v58 = vunpack.i.l.bf16 %v14543_v30 }
0x1f0d   :  { %13266 = vmatmul.mubr.msk.f32.gmra.mrb[98].mxu1 %vm21088_vm15, %v8245_v51  ;;  %v14023_v54 = vpack.c.bf16 %v14545_v6, %v14544_v58  ;;  %vm21103_vm15 = vmmov %vm21078_vm0 }
0x1f0e   :  { %13268 = vmatprep.mubr.msk.f32.mxu1 %vm21078_vm0, %v8247_v0  ;;  %v14558_v14 = vpop.permute.xlu0 %14557 }
0x1f0f   :  { %14024 = vmatprep.subr.bf16.mxu0 %v14023_v54  ;;  %v14560_v8 = vunpack.i.h.bf16 %v14558_v14  ;;  %v14559_v34 = vunpack.i.l.bf16 %v14558_v14 }
0x1f10   :  { %14026 = vmatpush3.bf16.msra.mxu0 %v14023_v54 }
0x1f11   :  { %13269 = vmatmul.mubr.msk.f32.gmra.mrb[100].mxu1 %vm21089_vm9, %v8249_v59  ;;  %14028 = vmatprep.subr.bf16.mxu0 %v14027_v43  ;;  %v14035_v56 = vpack.c.bf16 %v14560_v8, %v14559_v34  ;;  %vm21104_vm9 = vmmov %vm21078_vm0 }
0x1f14   :  { %14030 = vmatpush3.bf16.msra.mxu0 %v14027_v43 }
0x1f15   :  { %14032 = vmatprep.subr.bf16.mxu0 %v14031_v63 }
0x1f18   :  { %14034 = vmatpush3.bf16.msra.mxu0 %v14031_v63 }
0x1f19   :  { %14036 = vmatprep.subr.bf16.mxu0 %v14035_v56 }
0x1f1c   :  { %14038 = vmatpush3.bf16.msra.mxu0 %v14035_v56 }
0x1f93   :  { %v19590_v5 = vpop.f32.mrb[82].mxu1 }
0x1f94   :  { %v19592_v47 = vpop.f32.mrb[83].mxu1 }
0x1f9b   :  { %v19594_v19 = vpop.f32.mrb[84].mxu1 }
0x1f9c   :  { %v19596_v36 = vpop.f32.mrb[85].mxu1 }
0x1f9f   :  { %v19598_v18 = vpop.f32.mrb[86].mxu1 }
0x1fa0   :  { %21090 = vst [vmem:[#allocation153_spill] sm:$0xff] %v19598_v18  ;;  %v19600_v60 = vpop.f32.mrb[87].mxu1 }
0x1fa7   :  { %v19602_v15 = vpop.f32.mrb[88].mxu1 }
0x1fa8   :  { %21091 = vst [vmem:[#allocation152_spill] sm:$0xff] %v19602_v15  ;;  %v19604_v45 = vpop.f32.mrb[89].mxu1 }
0x1fa9   :  { %21092 = vst [vmem:[#allocation154_spill] sm:$0xff] %v19604_v45 }
0x1fd0   :  { %v19606_v55 = vpop.f32.mrb[90].mxu1 }
0x1fd1   :  { %21093 = vst [vmem:[#allocation155_spill] sm:$0xff] %v19606_v55  ;;  %v19608_v46 = vpop.f32.mrb[91].mxu1 }
0x1fd2   :  { %21094 = vst [vmem:[#allocation156_spill] sm:$0xff] %v19608_v46 }
0x1fd4   :  { %v13258_v49 = vpop.f32.mrb[92].mxu1 }
0x1fd5   :  { %v8426_v37 = vmul.f32 0.17677669, %v13258_v49  ;;  %v8376_v10 = vpop.f32.mrb[93].mxu1 }
0x1fd6   :  { %v8425_v29 = vmul.f32 0.17677669, %v8376_v10 }
0x1fd7   :  { %v8438_v24 = vsel %vm7959_vm13, %v8426_v37, -inf }
0x1fd8   :  { %8439 = vmax.xlane.f32.xlu0 %v8438_v24  ;;  %v13261_v27 = vpop.f32.mrb[94].mxu1  ;;  %v8435_v35 = vsel %vm7959_vm13, %v8425_v29, -inf }
0x1fd9   :  { %v8428_v1 = vmul.f32 0.17677669, %v13261_v27  ;;  %8436 = vmax.xlane.f32.xlu1 %v8435_v35  ;;  %v8386_v50 = vpop.f32.mrb[95].mxu1 }
0x1fda   :  { %v8427_v23 = vmul.f32 0.17677669, %v8386_v50 }
0x1fdb   :  { %v8444_v32 = vsel %vm7959_vm13, %v8428_v1, -inf }
0x1fdc   :  { %8445 = vmax.xlane.f32.xlu0 %v8444_v32  ;;  %v13264_v57 = vpop.f32.mrb[96].mxu1  ;;  %v8441_v51 = vsel %vm7959_vm13, %v8427_v23, -inf }
0x1fdd   :  { %v8396_v3 = vpop.f32.mrb[97].mxu1  ;;  %v19613_v0 = vmul.f32 0.17677669, %v13264_v57 }
0x1fde   :  { %v19630_v26 = vmul.f32 0.17677669, %v8396_v3 }
0x1fdf   :  { %v8450_v52 = vsel %vm7959_vm13, %v19613_v0, -inf }
0x1fe0   :  { %8442 = vmax.xlane.f32.xlu0 %v8441_v51  ;;  %v13267_v17 = vpop.f32.mrb[98].mxu1  ;;  %v8447_v43 = vsel %vm7959_vm13, %v19630_v26, -inf }
0x1fe1   :  { %v8406_v59 = vpop.f32.mrb[99].mxu1  ;;  %v19616_v30 = vmul.f32 0.17677669, %v13267_v17 }
0x1fe2   :  { %v19632_v61 = vmul.f32 0.17677669, %v8406_v59 }
0x1fe3   :  { %v8456_v31 = vsel %vm7959_vm13, %v19616_v30, -inf }
0x1fe4   :  { %8451 = vmax.xlane.f32.xlu0 %v8450_v52  ;;  %v13270_v42 = vpop.f32.mrb[100].mxu1  ;;  %v8453_v8 = vsel %vm7959_vm13, %v19632_v61, -inf }
0x1fe5   :  { %v8416_v6 = vpop.f32.mrb[101].mxu1  ;;  %v19620_v58 = vmul.f32 0.17677669, %v13270_v42 }
0x1fe6   :  { %v19636_v14 = vmul.f32 0.17677669, %v8416_v6 }
0x1fe7   :  { %v8462_v54 = vsel %vm7987_vm4, %v19620_v58, -inf }
0x1fe8   :  { %8457 = vmax.xlane.f32.xlu0 %v8456_v31  ;;  %v8459_v34 = vsel %vm7959_vm13, %v19636_v14, -inf }
0x1fea   :  { %14562 = vrot.lane.b32.xlu1 %v19434_v11, %s16429_s10 }
0x1fec   :  { %8463 = vmax.xlane.f32.xlu0 %v8462_v54 }
0x2002   :  { %14567 = vrot.lane.b32.xlu0 %v19360_v9, %s16428_s8 }
0x200e   :  { %8448 = vmax.xlane.f32.xlu1 %v8447_v43 }
0x2012   :  { %8454 = vmax.xlane.f32.xlu1 %v8453_v8 }
0x2016   :  { %8460 = vmax.xlane.f32.xlu1 %v8459_v34 }
0x2065   :  { %v8440_v63 = vpop.xlane.xlu0 %8439 }
0x2066   :  { %v8466_v56 = vsub.f32 %v8426_v37, %v8440_v63  ;;  %v8437_v49 = vpop.xlane.xlu1 %8436 }
0x2067   :  { %v8465_v10 = vsub.f32 %v8425_v29, %v8437_v49 }
0x2068   :  { %v8477_v24 = vmul.f32 1.442695, %v8466_v56 }
0x2069   :  { %v8475_v27 = vmul.f32 1.442695, %v8465_v10  ;;  %v8446_v35 = vpop.xlane.xlu0 %8445 }
0x206a   :  { %15068 = vpow2.f32 %v8477_v24  ;;  %v8468_v50 = vsub.f32 %v8428_v1, %v8446_v35  ;;  %v14563_v32 = vpop.permute.xlu1 %14562 }
0x206b   :  { %v14565_v57 = vunpack.i.h.bf16 %v14563_v32  ;;  %v14564_v3 = vunpack.i.l.bf16 %v14563_v32  ;;  %15070 = vpow2.f32 %v8475_v27 }
0x206c   :  { %v8481_v51 = vmul.f32 1.442695, %v8468_v50 }
0x206d   :  { %v14039_v17 = vpack.c.bf16 %v14565_v57, %v14564_v3  ;;  %v8443_v59 = vpop.xlane.xlu0 %8442 }
0x206e   :  { %v8467_v52 = vsub.f32 %v8427_v23, %v8443_v59  ;;  %15072 = vpow2.f32 %v8481_v51 }
0x206f   :  { %14041 = vmatprep.subr.msk.bf16.mxu0 %vm19430_vm1, %v14039_v17 }
0x2070   :  { %v8479_v37 = vmul.f32 1.442695, %v8467_v52  ;;  %14044 = vmatpush3.bf16.msk.msra.mxu0 %vm19430_vm1, %v14039_v17 }
0x2071   :  { %v8452_v29 = vpop.xlane.xlu0 %8451 }
0x2072   :  { %15074 = vpow2.f32 %v8479_v37  ;;  %v8470_v50 = vsub.f32 %v19613_v0, %v8452_v29 }
0x2074   :  { %v19646_v42 = vpop.eup %15068  ;;  %v8485_v57 = vmul.f32 1.442695, %v8470_v50 }
0x2075   :  { %v8458_v1 = vpop.xlane.xlu0 %8457  ;;  %v8498_v6 = vsel %vm7959_vm13, %v19646_v42, 0.0  ;;  %v19650_v31 = vpop.eup %15070 }
0x2076   :  { %8499 = vadd.xlane.f32.xlu1 %v8498_v6  ;;  %v8495_v54 = vsel %vm7959_vm13, %v19650_v31, 0.0  ;;  %v8472_v17 = vsub.f32 %v19616_v30, %v8458_v1 }
0x2078   :  { %v19654_v43 = vpop.eup %15072  ;;  %v8489_v37 = vmul.f32 1.442695, %v8472_v17 }
0x2079   :  { %v8464_v23 = vpop.xlane.xlu0 %8463  ;;  %v8504_v56 = vsel %vm7959_vm13, %v19654_v43, 0.0 }
0x207a   :  { %8496 = vadd.xlane.f32.xlu1 %v8495_v54  ;;  %v8474_v27 = vsub.f32 %v19620_v58, %v8464_v23 }
0x207c   :  { %v19656_v8 = vpop.eup %15074  ;;  %v8493_v35 = vmul.f32 1.442695, %v8474_v27 }
0x207d   :  { %v14568_v34 = vpop.permute.xlu0 %14567  ;;  %v8501_v63 = vsel %vm7959_vm13, %v19656_v8, 0.0 }
0x207e   :  { %v14570_v49 = vunpack.i.h.bf16 %v14568_v34  ;;  %v14569_v10 = vunpack.i.l.bf16 %v14568_v34  ;;  %8502 = vadd.xlane.f32.xlu0 %v8501_v63  ;;  %8505 = vadd.xlane.f32.xlu1 %v8504_v56  ;;  %15076 = vpow2.f32 %v8493_v35 }
0x207f   :  { %15078 = vpow2.f32 %v8485_v57 }
0x2080   :  { %v19662_v24 = vpack.c.bf16 %v14570_v49, %v14569_v10 }
0x2082   :  { %14047 = vmatprep.subr.msk.bf16.mxu0 %vm18350_vm10, %v19662_v24 }
0x2088   :  { %v19679_v52 = vpop.eup %15076 }
0x2089   :  { %v8522_v0 = vsel %vm7987_vm4, %v19679_v52, 0.0  ;;  %v19685_v23 = vpop.eup %15078 }
0x208a   :  { %v8510_v1 = vsel %vm7959_vm13, %v19685_v23, 0.0 }
0x208f   :  { %14577 = vrot.lane.b32.xlu1 %v19382_v28, %s16428_s8 }
0x2093   :  { %14582 = vrot.lane.b32.xlu1 %v19392_v38, %s16428_s8 }
0x2094   :  { %14572 = vrot.lane.b32.xlu0 %v19372_v22, %s16428_s8 }
0x2097   :  { %14587 = vrot.lane.b32.xlu1 %v19403_v44, %s16428_s8 }
0x209b   :  { %v8449_v32 = vpop.xlane.xlu1 %8448 }
0x209c   :  { %v8469_v3 = vsub.f32 %v19630_v26, %v8449_v32 }
0x209e   :  { %v8483_v59 = vmul.f32 1.442695, %v8469_v3 }
0x209f   :  { %v8455_v51 = vpop.xlane.xlu1 %8454 }
0x20a0   :  { %15080 = vpow2.f32 %v8483_v59  ;;  %v8471_v6 = vsub.f32 %v19632_v61, %v8455_v51 }
0x20a1   :  { %15082 = vpow2.f32 %v8489_v37 }
0x20a2   :  { %v8487_v29 = vmul.f32 1.442695, %v8471_v6 }
0x20a3   :  { %v8461_v58 = vpop.xlane.xlu1 %8460 }
0x20a4   :  { %v8473_v26 = vsub.f32 %v19636_v14, %v8461_v58  ;;  %15084 = vpow2.f32 %v8487_v29 }
0x20a6   :  { %v8491_v30 = vmul.f32 1.442695, %v8473_v26 }
0x20a8   :  { %15086 = vpow2.f32 %v8491_v30 }
0x20aa   :  { %v19689_v54 = vpop.eup %15080 }
0x20ab   :  { %v8507_v61 = vsel %vm7959_vm13, %v19689_v54, 0.0  ;;  %v19693_v34 = vpop.eup %15082 }
0x20ac   :  { %v8516_v14 = vsel %vm7959_vm13, %v19693_v34, 0.0 }
0x20ae   :  { %v19697_v63 = vpop.eup %15084 }
0x20af   :  { %v8513_v56 = vsel %vm7959_vm13, %v19697_v63, 0.0 }
0x20b2   :  { %v19701_v49 = vpop.eup %15086 }
0x20b3   :  { %8523 = vadd.xlane.f32.xlu0 %v8522_v0  ;;  %v8519_v10 = vsel %vm7959_vm13, %v19701_v49, 0.0 }
0x20bb   :  { %8511 = vadd.xlane.f32.xlu1 %v8510_v1 }
0x20bf   :  { %8508 = vadd.xlane.f32.xlu1 %v8507_v61 }
0x20c3   :  { %8517 = vadd.xlane.f32.xlu1 %v8516_v14 }
0x20c7   :  { %8514 = vadd.xlane.f32.xlu1 %v8513_v56 }
0x20c9   :  { %8782 = vrot.lane.b32.xlu0 %v19354_v20, %s16428_s8 }
0x20cb   :  { %8520 = vadd.xlane.f32.xlu1 %v8519_v10 }
0x20cd   :  { %8796 = vrot.lane.b32.xlu0 %v19400_v13, %s16428_s8 }
0x20d1   :  { %14592 = vrot.lane.b32.xlu0 %v19409_v33, %s16428_s8 }
0x20d5   :  { %14602 = vrot.lane.b32.xlu0 %v19417_v21, %s16428_s8 }
0x20d9   :  { %14612 = vrot.lane.b32.xlu0 %v19434_v11, %s16428_s8 }
0x20dc   :  { %8780 = vrot.lane.b32.xlu1 %v19356_v7, %s16428_s8 }
0x20dd   :  { %14617 = vrot.lane.b32.xlu0 %v19360_v9, %s16430_s30 }
0x20e0   :  { %8784 = vrot.lane.b32.xlu1 %v19370_v41, %s16428_s8 }
0x20e4   :  { %8786 = vrot.lane.b32.xlu1 %v19368_v40, %s16428_s8 }
0x20e8   :  { %8788 = vrot.lane.b32.xlu1 %v19380_v39, %s16428_s8 }
0x20ec   :  { %8790 = vrot.lane.b32.xlu1 %v19378_v48, %s16428_s8 }
0x20f0   :  { %8792 = vrot.lane.b32.xlu1 %v19390_v25, %s16428_s8 }
0x20f4   :  { %8794 = vrot.lane.b32.xlu1 %v19388_v2, %s16428_s8 }
0x20f8   :  { %8798 = vrot.lane.b32.xlu1 %v19398_v53, %s16428_s8 }
0x20fc   :  { %14597 = vrot.lane.b32.xlu1 %v19411_v62, %s16428_s8 }
0x2103   :  { %v8500_v9 = vpop.xlane.xlu1 %8499 }
0x2104   :  { %15088 = vrcp.f32 %v8500_v9 }
0x2107   :  { %v8497_v27 = vpop.xlane.xlu1 %8496 }
0x2108   :  { %15090 = vrcp.f32 %v8497_v27 }
0x210b   :  { %v8503_v35 = vpop.xlane.xlu0 %8502  ;;  %v8506_v50 = vpop.xlane.xlu1 %8505 }
0x210c   :  { %15092 = vrcp.f32 %v8503_v35 }
0x210d   :  { %15094 = vrcp.f32 %v8506_v50 }
0x210e   :  { %v15089_v57 = vpop.eup %15088 }
0x210f   :  { %v14573_v32 = vpop.permute.xlu0 %14572  ;;  %v8536_v37 = vmul.f32 %v15089_v57, %v19646_v42  ;;  %v14578_v29 = vpop.permute.xlu1 %14577 }
0x2110   :  { %v14575_v51 = vunpack.i.h.bf16 %v14573_v32  ;;  %v14574_v17 = vunpack.i.l.bf16 %v14573_v32  ;;  %v14580_v42 = vunpack.i.h.bf16 %v14578_v29  ;;  %v14579_v30 = vunpack.i.l.bf16 %v14578_v29 }
0x2112   :  { %v15091_v3 = vpop.eup %15090  ;;  %v14051_v58 = vpack.c.bf16 %v14575_v51, %v14574_v17  ;;  %v14057_v1 = vpack.c.bf16 %v14580_v42, %v14579_v30 }
0x2113   :  { %v8535_v59 = vmul.f32 %v15091_v3, %v19650_v31  ;;  %v14583_v61 = vpop.permute.xlu1 %14582 }
0x2115   :  { %13291 = vmatprep.mubr.msk.f32.mxu0 %vm7959_vm13, %v8535_v59 }
0x2116   :  { %v15093_v6 = vpop.eup %15092  ;;  %13292 = vmatmul.mubr.msk.f32.vlgmr.msra.gmra.mrb[88].mxu0 %vm7959_vm13, %v8536_v37 }
0x2117   :  { %v15095_v0 = vpop.eup %15094  ;;  %14050 = vmatpush3.bf16.xpose.msk.msra.mxu0 %vm18350_vm10, %v19662_v24  ;;  %v8537_v26 = vmul.f32 %v15093_v6, %v19656_v8  ;;  %v14585_v8 = vunpack.i.h.bf16 %v14583_v61  ;;  %v14584_v24 = vunpack.i.l.bf16 %v14583_v61  ;;  %v14588_v56 = vpop.permute.xlu1 %14587 }
0x2118   :  { %14053 = vmatprep.subr.msk.bf16.mxu0 %vm18350_vm10, %v14051_v58  ;;  %v8538_v31 = vmul.f32 %v15095_v0, %v19654_v43  ;;  %v14590_v43 = vunpack.i.h.bf16 %v14588_v56  ;;  %v14589_v10 = vunpack.i.l.bf16 %v14588_v56 }
0x2119   :  { %13294 = vmatprep.mubr.msk.f32.mxu0 %vm7959_vm13, %v8537_v26  ;;  %v14063_v14 = vpack.c.bf16 %v14585_v8, %v14584_v24 }
0x211a   :  { %13295 = vmatmul.mubr.msk.f32.gmra.mrb[90].mxu0 %vm7959_vm13, %v8538_v31  ;;  %v14069_v9 = vpack.c.bf16 %v14590_v43, %v14589_v10 }
0x211f   :  { %14056 = vmatpush3.bf16.xpose.msk.msra.mxu0 %vm18350_vm10, %v14051_v58 }
0x2120   :  { %14059 = vmatprep.subr.msk.bf16.mxu0 %vm18350_vm10, %v14057_v1 }
0x2127   :  { %14062 = vmatpush3.bf16.xpose.msk.msra.mxu0 %vm18350_vm10, %v14057_v1 }
0x2128   :  { %14065 = vmatprep.subr.msk.bf16.mxu0 %vm18350_vm10, %v14063_v14 }
0x212f   :  { %14068 = vmatpush3.bf16.xpose.msk.msra.mxu0 %vm18350_vm10, %v14063_v14 }
0x2130   :  { %14071 = vmatprep.subr.msk.bf16.mxu0 %vm18350_vm10, %v14069_v9 }
0x2137   :  { %14074 = vmatpush3.bf16.xpose.msk.msra.mxu0 %vm18350_vm10, %v14069_v9 }
0x2140   :  { %v8524_v27 = vpop.xlane.xlu0 %8523 }
0x2144   :  { %v8783_v35 = vpop.permute.xlu0 %8782 }
0x2148   :  { %v8797_v50 = vpop.permute.xlu0 %8796  ;;  %v8512_v32 = vpop.xlane.xlu1 %8511 }
0x2149   :  { %15096 = vrcp.f32 %v8512_v32 }
0x214c   :  { %v14593_v57 = vpop.permute.xlu0 %14592  ;;  %v8509_v3 = vpop.xlane.xlu1 %8508 }
0x214d   :  { %v14595_v51 = vunpack.i.h.bf16 %v14593_v57  ;;  %v14594_v17 = vunpack.i.l.bf16 %v14593_v57  ;;  %15098 = vrcp.f32 %v8509_v3 }
0x214f   :  { %v14075_v59 = vpack.c.bf16 %v14595_v51, %v14594_v17 }
0x2150   :  { %v8518_v37 = vpop.xlane.xlu1 %8517  ;;  %v14603_v9 = vpop.permute.xlu0 %14602 }
0x2151   :  { %14076 = vmatprep.subr.bf16.mxu1 %v14075_v59  ;;  %15100 = vrcp.f32 %v8518_v37  ;;  %v14604_v32 = vunpack.i.l.bf16 %v14603_v9 }
0x2152   :  { %14078 = vmatpush3.bf16.msra.mxu1 %v14075_v59 }
0x2153   :  { %v15097_v58 = vpop.eup %15096 }
0x2154   :  { %v8515_v6 = vpop.xlane.xlu1 %8514  ;;  %v8540_v31 = vmul.f32 %v15097_v58, %v19685_v23 }
0x2155   :  { %15102 = vrcp.f32 %v8515_v6 }
0x2156   :  { %15104 = vrcp.f32 %v8524_v27 }
0x2157   :  { %v15099_v0 = vpop.eup %15098 }
0x2158   :  { %v8521_v29 = vpop.xlane.xlu1 %8520  ;;  %v8539_v26 = vmul.f32 %v15099_v0, %v19689_v54 }
0x2159   :  { %15106 = vrcp.f32 %v8521_v29 }
0x215a   :  { %13297 = vmatprep.mubr.msk.f32.mxu0 %vm7959_vm13, %v8539_v26 }
0x215b   :  { %13298 = vmatmul.mubr.msk.f32.gmra.mrb[92].mxu0 %vm7959_vm13, %v8540_v31  ;;  %v15101_v30 = vpop.eup %15100 }
0x215c   :  { %v8781_v42 = vpop.permute.xlu1 %8780  ;;  %v8542_v24 = vmul.f32 %v15101_v30, %v19693_v34 }
0x215f   :  { %v15103_v1 = vpop.eup %15102 }
0x2160   :  { %v8785_v61 = vpop.permute.xlu1 %8784  ;;  %v8541_v8 = vmul.f32 %v15103_v1, %v19697_v63  ;;  %v15105_v14 = vpop.eup %15104 }
0x2161   :  { %v8544_v43 = vmul.f32 %v15105_v14, %v19679_v52 }
0x2162   :  { %13300 = vmatprep.mubr.msk.f32.mxu0 %vm7959_vm13, %v8541_v8 }
0x2163   :  { %v15107_v56 = vpop.eup %15106  ;;  %13301 = vmatmul.mubr.msk.f32.gmra.mrb[94].mxu0 %vm7959_vm13, %v8542_v24 }
0x2164   :  { %v8787_v54 = vpop.permute.xlu1 %8786  ;;  %v8543_v23 = vmul.f32 %v15107_v56, %v19701_v49 }
0x2166   :  { %13303 = vmatprep.mubr.msk.f32.mxu0 %vm7959_vm13, %v8543_v23 }
0x2167   :  { %13304 = vmatmul.mubr.msk.f32.gmra.mrb[96].mxu0 %vm7959_vm13, %v8544_v43 }
0x2168   :  { %13326 = vmatprep.mubr.msk.f32.mxu0 %vm21095_vm11, %v8781_v42  ;;  %v8789_v63 = vpop.permute.xlu1 %8788  ;;  %vm21105_vm11 = vmmov %vm21078_vm0 }
0x216b   :  { %13327 = vmatmul.mubr.msk.f32.vlgmr.msra.gmra.mrb[98].mxu0 %vm21096_vm5, %v8783_v35  ;;  %v14605_v35 = vunpack.i.h.bf16 %v14603_v9  ;;  %vm21106_vm5 = vmmov %vm21078_vm0 }
0x216c   :  { %v8791_v34 = vpop.permute.xlu1 %8790  ;;  %13329 = vmatprep.mubr.msk.f32.mxu0 %vm21097_vm6, %v8785_v61  ;;  %vm21107_vm6 = vmmov %vm21078_vm0 }
0x216d   :  { %v14083_v17 = vpack.c.bf16 %v14605_v35, %v14604_v32 }
0x216f   :  { %13330 = vmatmul.mubr.msk.f32.gmra.mrb[100].mxu0 %vm21098_vm7, %v8787_v54  ;;  %vm21108_vm7 = vmmov %vm21078_vm0 }
0x2170   :  { %v8793_v10 = vpop.permute.xlu1 %8792  ;;  %13332 = vmatprep.mubr.msk.f32.mxu0 %vm21099_vm2, %v8789_v63  ;;  %vm21109_vm2 = vmmov %vm21078_vm0 }
0x2173   :  { %13333 = vmatmul.mubr.msk.f32.gmra.mrb[102].mxu0 %vm21100_vm3, %v8791_v34  ;;  %vm21110_vm3 = vmmov %vm21078_vm0 }
0x2174   :  { %v8795_v52 = vpop.permute.xlu1 %8794  ;;  %13335 = vmatprep.mubr.msk.f32.mxu0 %vm21101_vm12, %v8793_v10  ;;  %vm21111_vm12 = vmmov %vm21078_vm0 }
0x2177   :  { %13336 = vmatmul.mubr.msk.f32.gmra.mrb[104].mxu0 %vm21102_vm14, %v8795_v52  ;;  %vm21112_vm14 = vmmov %vm21078_vm0 }
0x2178   :  { %v8799_v49 = vpop.permute.xlu1 %8798  ;;  %13338 = vmatprep.mubr.msk.f32.mxu0 %vm21103_vm15, %v8797_v50  ;;  %vm21113_vm15 = vmmov %vm21078_vm0 }
0x217b   :  { %13339 = vmatmul.mubr.msk.f32.gmra.mrb[106].mxu0 %vm21078_vm0, %v8799_v49 }
0x217c   :  { %v14598_v27 = vpop.permute.xlu1 %14597 }
0x217d   :  { %v14600_v57 = vunpack.i.h.bf16 %v14598_v27  ;;  %v14599_v3 = vunpack.i.l.bf16 %v14598_v27 }
0x217f   :  { %v14079_v51 = vpack.c.bf16 %v14600_v57, %v14599_v3 }
0x2181   :  { %14080 = vmatprep.subr.bf16.mxu1 %v14079_v51 }
0x2182   :  { %14082 = vmatpush3.bf16.msra.mxu1 %v14079_v51 }
0x2183   :  { %14084 = vmatprep.subr.bf16.mxu1 %v14083_v17 }
0x2186   :  { %14086 = vmatpush3.bf16.msra.mxu1 %v14083_v17 }
0x21e9   :  { %v19784_v59 = vpop.f32.mrb[88].mxu0 }
0x21ea   :  { %v19786_v37 = vpop.f32.mrb[89].mxu0 }
0x21ed   :  { %v19788_v6 = vpop.f32.mrb[90].mxu0 }
0x21ee   :  { %v19790_v50 = vpop.f32.mrb[91].mxu0 }
0x222e   :  { %v19792_v58 = vpop.f32.mrb[92].mxu0 }
0x222f   :  { %v19794_v0 = vpop.f32.mrb[93].mxu0 }
0x2236   :  { %v19796_v29 = vpop.f32.mrb[94].mxu0 }
0x2237   :  { %v19798_v26 = vpop.f32.mrb[95].mxu0 }
0x223a   :  { %v19800_v31 = vpop.f32.mrb[96].mxu0 }
0x223b   :  { %v19802_v42 = vpop.f32.mrb[97].mxu0 }
0x223e   :  { %v13328_v30 = vpop.f32.mrb[98].mxu0 }
0x223f   :  { %v8976_v1 = vmul.f32 0.17677669, %v13328_v30  ;;  %v8926_v61 = vpop.f32.mrb[99].mxu0 }
0x2240   :  { %v8975_v8 = vmul.f32 0.17677669, %v8926_v61 }
0x2241   :  { %v8988_v24 = vsel %vm7959_vm13, %v8976_v1, -inf }
0x2242   :  { %8989 = vmax.xlane.f32.xlu1 %v8988_v24  ;;  %v13331_v14 = vpop.f32.mrb[100].mxu0  ;;  %v8985_v56 = vsel %vm7959_vm13, %v8975_v8, -inf }
0x2243   :  { %v8978_v54 = vmul.f32 0.17677669, %v13331_v14  ;;  %8986 = vmax.xlane.f32.xlu0 %v8985_v56  ;;  %v8936_v23 = vpop.f32.mrb[101].mxu0 }
0x2244   :  { %v8977_v63 = vmul.f32 0.17677669, %v8936_v23 }
0x2245   :  { %v8994_v43 = vsel %vm7959_vm13, %v8978_v54, -inf }
0x2246   :  { %v13334_v34 = vpop.f32.mrb[102].mxu0  ;;  %v8991_v9 = vsel %vm7959_vm13, %v8977_v63, -inf }
0x2247   :  { %8995 = vmax.xlane.f32.xlu0 %v8994_v43  ;;  %v8946_v10 = vpop.f32.mrb[103].mxu0  ;;  %v19807_v52 = vmul.f32 0.17677669, %v13334_v34 }
0x2248   :  { %v19824_v61 = vmul.f32 0.17677669, %v8946_v10 }
0x2249   :  { %v9000_v57 = vsel %vm7959_vm13, %v19807_v52, -inf }
0x224a   :  { %v13337_v49 = vpop.f32.mrb[104].mxu0  ;;  %v8997_v14 = vsel %vm7959_vm13, %v19824_v61, -inf }
0x224b   :  { %8992 = vmax.xlane.f32.xlu0 %v8991_v9  ;;  %v8956_v27 = vpop.f32.mrb[105].mxu0  ;;  %v19810_v35 = vmul.f32 0.17677669, %v13337_v49 }
0x224c   :  { %v19826_v24 = vmul.f32 0.17677669, %v8956_v27 }
0x224d   :  { %v9006_v17 = vsel %vm7959_vm13, %v19810_v35, -inf }
0x224e   :  { %v13340_v32 = vpop.f32.mrb[106].mxu0  ;;  %v9003_v23 = vsel %vm7959_vm13, %v19826_v24, -inf }
0x224f   :  { %9001 = vmax.xlane.f32.xlu0 %v9000_v57  ;;  %v8966_v3 = vpop.f32.mrb[107].mxu0  ;;  %v19814_v51 = vmul.f32 0.17677669, %v13340_v32 }
0x2250   :  { %v19830_v56 = vmul.f32 0.17677669, %v8966_v3 }
0x2251   :  { %v9012_v30 = vsel %vm7987_vm4, %v19814_v51, -inf }
0x2252   :  { %v9009_v43 = vsel %vm7959_vm13, %v19830_v56, -inf }
0x2253   :  { %14607 = vrot.lane.b32.xlu1 %v19423_v16, %s16428_s8  ;;  %9007 = vmax.xlane.f32.xlu0 %v9006_v17 }
0x2257   :  { %9013 = vmax.xlane.f32.xlu0 %v9012_v30 }
0x226d   :  { %14627 = vrot.lane.b32.xlu0 %v19382_v28, %s16430_s30  ;;  %v14613_v28 = vpop.permute.xlu0 %14612 }
0x226e   :  { %v14615_v57 = vunpack.i.h.bf16 %v14613_v28  ;;  %v14614_v30 = vunpack.i.l.bf16 %v14613_v28 }
0x2271   :  { %v14618_v34 = vpop.permute.xlu0 %14617 }
0x2272   :  { %v14620_v45 = vunpack.i.h.bf16 %v14618_v34  ;;  %v14619_v18 = vunpack.i.l.bf16 %v14618_v34 }
0x2277   :  { %8998 = vmax.xlane.f32.xlu1 %v8997_v14 }
0x227b   :  { %9004 = vmax.xlane.f32.xlu1 %v9003_v23 }
0x227f   :  { %9010 = vmax.xlane.f32.xlu1 %v9009_v43 }
0x2290   :  { %14622 = vrot.lane.b32.xlu1 %v19372_v22, %s16430_s30  ;;  %v14091_v22 = vpack.c.bf16 %v14615_v57, %v14614_v30 }
0x22cf   :  { %v8990_v10 = vpop.xlane.xlu1 %8989 }
0x22d0   :  { %v9016_v49 = vsub.f32 %v8976_v1, %v8990_v10  ;;  %v8987_v9 = vpop.xlane.xlu0 %8986  ;;  %v19840_v10 = vpack.c.bf16 %v14620_v45, %v14619_v18 }
0x22d1   :  { %v9015_v27 = vsub.f32 %v8975_v8, %v8987_v9 }
0x22d2   :  { %v9027_v32 = vmul.f32 1.442695, %v9016_v49 }
0x22d3   :  { %v9025_v3 = vmul.f32 1.442695, %v9015_v27  ;;  %v14608_v17 = vpop.permute.xlu1 %14607 }
0x22d4   :  { %15108 = vpow2.f32 %v9027_v32  ;;  %v14610_v14 = vunpack.i.h.bf16 %v14608_v17  ;;  %v14609_v23 = vunpack.i.l.bf16 %v14608_v17  ;;  %v8996_v55 = vpop.xlane.xlu0 %8995 }
0x22d5   :  { %v9018_v46 = vsub.f32 %v8978_v54, %v8996_v55  ;;  %15110 = vpow2.f32 %v9025_v3 }
0x22d6   :  { %v14087_v43 = vpack.c.bf16 %v14610_v14, %v14609_v23 }
0x22d7   :  { %v9031_v15 = vmul.f32 1.442695, %v9018_v46 }
0x22d8   :  { %14088 = vmatprep.subr.bf16.mxu1 %v14087_v43  ;;  %v8993_v1 = vpop.xlane.xlu0 %8992 }
0x22d9   :  { %15112 = vpow2.f32 %v9031_v15  ;;  %v9017_v8 = vsub.f32 %v8977_v63, %v8993_v1  ;;  %14090 = vmatpush3.bf16.msra.mxu1 %v14087_v43 }
0x22da   :  { %14093 = vmatprep.subr.msk.bf16.mxu1 %vm19430_vm1, %v14091_v22 }
0x22db   :  { %v9029_v28 = vmul.f32 1.442695, %v9017_v8 }
0x22dc   :  { %v9002_v49 = vpop.xlane.xlu0 %9001 }
0x22dd   :  { %15114 = vpow2.f32 %v9029_v28  ;;  %v9020_v55 = vsub.f32 %v19807_v52, %v9002_v49  ;;  %14096 = vmatpush3.bf16.msk.msra.mxu1 %vm19430_vm1, %v14091_v22 }
0x22de   :  { %v19845_v46 = vpop.eup %15108  ;;  %14099 = vmatprep.subr.msk.bf16.mxu1 %vm18350_vm10, %v19840_v10 }
0x22df   :  { %v9035_v15 = vmul.f32 1.442695, %v9020_v55  ;;  %v9048_v54 = vsel %vm7959_vm13, %v19845_v46, 0.0  ;;  %v19852_v63 = vpop.eup %15110 }
0x22e0   :  { %9049 = vadd.xlane.f32.xlu1 %v9048_v54  ;;  %v9045_v45 = vsel %vm7959_vm13, %v19852_v63, 0.0  ;;  %v9008_v57 = vpop.xlane.xlu0 %9007 }
0x22e1   :  { %15116 = vpow2.f32 %v9035_v15  ;;  %v9022_v3 = vsub.f32 %v19810_v35, %v9008_v57 }
0x22e3   :  { %v19854_v18 = vpop.eup %15112  ;;  %v9039_v14 = vmul.f32 1.442695, %v9022_v3 }
0x22e4   :  { %9046 = vadd.xlane.f32.xlu1 %v9045_v45  ;;  %v9054_v52 = vsel %vm7959_vm13, %v19854_v18, 0.0  ;;  %v9014_v43 = vpop.xlane.xlu0 %9013 }
0x22e5   :  { %9055 = vadd.xlane.f32.xlu0 %v9054_v52  ;;  %v9024_v8 = vsub.f32 %v19814_v51, %v9014_v43 }
0x22e7   :  { %v19860_v34 = vpop.eup %15114  ;;  %v9043_v55 = vmul.f32 1.442695, %v9024_v8 }
0x22e8   :  { %v9051_v9 = vsel %vm7959_vm13, %v19860_v34, 0.0  ;;  %v14628_v3 = vpop.permute.xlu0 %14627 }
0x22e9   :  { %9052 = vadd.xlane.f32.xlu1 %v9051_v9 }
0x22eb   :  { %v19864_v27 = vpop.eup %15116 }
0x22ec   :  { %v9060_v32 = vsel %vm7959_vm13, %v19864_v27, 0.0 }
0x22ed   :  { %9061 = vadd.xlane.f32.xlu1 %v9060_v32 }
0x22fb   :  { %14637 = vrot.lane.b32.xlu0 %v19403_v44, %s16430_s30 }
0x2304   :  { %v8999_v17 = vpop.xlane.xlu1 %8998 }
0x2305   :  { %v9019_v30 = vsub.f32 %v19824_v61, %v8999_v17 }
0x2307   :  { %v9033_v23 = vmul.f32 1.442695, %v9019_v30 }
0x2308   :  { %v9005_v22 = vpop.xlane.xlu1 %9004 }
0x2309   :  { %15118 = vpow2.f32 %v9033_v23  ;;  %v9021_v1 = vsub.f32 %v19826_v24, %v9005_v22 }
0x230a   :  { %15120 = vpow2.f32 %v9039_v14 }
0x230b   :  { %v9037_v28 = vmul.f32 1.442695, %v9021_v1 }
0x230c   :  { %v9011_v49 = vpop.xlane.xlu1 %9010 }
0x230d   :  { %v9023_v44 = vsub.f32 %v19830_v56, %v9011_v49  ;;  %15122 = vpow2.f32 %v9037_v28 }
0x230f   :  { %v9041_v35 = vmul.f32 1.442695, %v9023_v44 }
0x2311   :  { %15124 = vpow2.f32 %v9041_v35  ;;  %v14630_v35 = vunpack.i.h.bf16 %v14628_v3 }
0x2312   :  { %15126 = vpow2.f32 %v9043_v55 }
0x2313   :  { %v19875_v15 = vpop.eup %15118 }
0x2314   :  { %v9057_v61 = vsel %vm7959_vm13, %v19875_v15, 0.0  ;;  %v19879_v54 = vpop.eup %15120 }
0x2315   :  { %9058 = vadd.xlane.f32.xlu1 %v9057_v61  ;;  %v9066_v51 = vsel %vm7959_vm13, %v19879_v54, 0.0 }
0x2317   :  { %v19883_v24 = vpop.eup %15122 }
0x2318   :  { %v9063_v45 = vsel %vm7959_vm13, %v19883_v24, 0.0 }
0x2319   :  { %9067 = vadd.xlane.f32.xlu1 %v9066_v51 }
0x231b   :  { %v19885_v56 = vpop.eup %15124 }
0x231c   :  { %v9069_v52 = vsel %vm7959_vm13, %v19885_v56, 0.0  ;;  %v19891_v9 = vpop.eup %15126 }
0x231d   :  { %9064 = vadd.xlane.f32.xlu1 %v9063_v45  ;;  %9070 = vadd.xlane.f32.xlu0 %v9069_v52  ;;  %v9072_v32 = vsel %vm7987_vm4, %v19891_v9, 0.0 }
0x2321   :  { %9073 = vadd.xlane.f32.xlu1 %v9072_v32 }
0x2332   :  { %14632 = vrot.lane.b32.xlu1 %v19392_v38, %s16430_s30  ;;  %v14623_v38 = vpop.permute.xlu1 %14622 }
0x2333   :  { %9321 = vrot.lane.b32.xlu0 %v19356_v7, %s16430_s30  ;;  %v14625_v22 = vunpack.i.h.bf16 %v14623_v38  ;;  %v14624_v1 = vunpack.i.l.bf16 %v14623_v38 }
0x2335   :  { %v14103_v49 = vpack.c.bf16 %v14625_v22, %v14624_v1 }
0x2336   :  { %9327 = vrot.lane.b32.xlu1 %v19368_v40, %s16430_s30 }
0x2337   :  { %9323 = vrot.lane.b32.xlu0 %v19354_v20, %s16430_s30 }
0x233a   :  { %9331 = vrot.lane.b32.xlu1 %v19378_v48, %s16430_s30 }
0x233b   :  { %9325 = vrot.lane.b32.xlu0 %v19370_v41, %s16430_s30 }
0x233e   :  { %9335 = vrot.lane.b32.xlu1 %v19388_v2, %s16430_s30 }
0x233f   :  { %9329 = vrot.lane.b32.xlu0 %v19380_v39, %s16430_s30 }
0x2342   :  { %9339 = vrot.lane.b32.xlu1 %v19398_v53, %s16430_s30 }
0x2343   :  { %9333 = vrot.lane.b32.xlu0 %v19390_v25, %s16430_s30 }
0x2346   :  { %14642 = vrot.lane.b32.xlu1 %v19409_v33, %s16430_s30 }
0x2347   :  { %9337 = vrot.lane.b32.xlu0 %v19400_v13, %s16430_s30 }
0x236d   :  { %v9050_v57 = vpop.xlane.xlu1 %9049 }
0x236e   :  { %15128 = vrcp.f32 %v9050_v57 }
0x2371   :  { %v9047_v17 = vpop.xlane.xlu1 %9046 }
0x2372   :  { %15130 = vrcp.f32 %v9047_v17  ;;  %v9056_v30 = vpop.xlane.xlu0 %9055 }
0x2373   :  { %15132 = vrcp.f32 %v9056_v30 }
0x2376   :  { %v9053_v14 = vpop.xlane.xlu1 %9052 }
0x2377   :  { %15134 = vrcp.f32 %v9053_v14 }
0x2378   :  { %v15129_v23 = vpop.eup %15128 }
0x2379   :  { %v9086_v33 = vmul.f32 %v15129_v23, %v19845_v46  ;;  %v14629_v46 = vunpack.i.l.bf16 %v14628_v3 }
0x237b   :  { %v14109_v61 = vpack.c.bf16 %v14630_v35, %v14629_v46 }
0x237c   :  { %v15131_v43 = vpop.eup %15130 }
0x237d   :  { %v9085_v8 = vmul.f32 %v15131_v43, %v19852_v63  ;;  %v15133_v28 = vpop.eup %15132 }
0x237e   :  { %v9088_v63 = vmul.f32 %v15133_v28, %v19854_v18  ;;  %v14638_v18 = vpop.permute.xlu0 %14637 }
0x237f   :  { %13361 = vmatprep.mubr.msk.f32.mxu1 %vm7959_vm13, %v9085_v8  ;;  %v14640_v14 = vunpack.i.h.bf16 %v14638_v18  ;;  %v14639_v23 = vunpack.i.l.bf16 %v14638_v18 }
0x2380   :  { %13362 = vmatmul.mubr.msk.f32.vlgmr.msra.gmra.mrb[102].mxu1 %vm7959_vm13, %v9086_v33 }
0x2381   :  { %v15135_v44 = vpop.eup %15134  ;;  %14102 = vmatpush3.bf16.xpose.msk.msra.mxu1 %vm18350_vm10, %v19840_v10  ;;  %v9062_v10 = vpop.xlane.xlu1 %9061 }
0x2382   :  { %14105 = vmatprep.subr.msk.bf16.mxu1 %vm18350_vm10, %v14103_v49  ;;  %v9087_v55 = vmul.f32 %v15135_v44, %v19860_v34  ;;  %15136 = vrcp.f32 %v9062_v10 }
0x2384   :  { %13364 = vmatprep.mubr.msk.f32.mxu1 %vm7959_vm13, %v9087_v55  ;;  %v14121_v55 = vpack.c.bf16 %v14640_v14, %v14639_v23 }
0x2385   :  { %13365 = vmatmul.mubr.msk.f32.gmra.mrb[104].mxu1 %vm7959_vm13, %v9088_v63 }
0x2389   :  { %14108 = vmatpush3.bf16.xpose.msk.msra.mxu1 %vm18350_vm10, %v14103_v49 }
0x238a   :  { %14111 = vmatprep.subr.msk.bf16.mxu1 %vm18350_vm10, %v14109_v61 }
0x238c   :  { %v15137_v32 = vpop.eup %15136 }
0x238d   :  { %v9090_v17 = vmul.f32 %v15137_v32, %v19864_v27 }
0x2391   :  { %14114 = vmatpush3.bf16.xpose.msk.msra.mxu1 %vm18350_vm10, %v14109_v61 }
0x23a2   :  { %v9059_v34 = vpop.xlane.xlu1 %9058 }
0x23a3   :  { %15138 = vrcp.f32 %v9059_v34 }
0x23a6   :  { %v9068_v51 = vpop.xlane.xlu1 %9067 }
0x23a7   :  { %15140 = vrcp.f32 %v9068_v51 }
0x23aa   :  { %v9071_v45 = vpop.xlane.xlu0 %9070  ;;  %v9065_v52 = vpop.xlane.xlu1 %9064 }
0x23ab   :  { %15142 = vrcp.f32 %v9071_v45 }
0x23ac   :  { %15144 = vrcp.f32 %v9065_v52 }
0x23ad   :  { %v15139_v38 = vpop.eup %15138 }
0x23ae   :  { %v9074_v57 = vpop.xlane.xlu1 %9073  ;;  %v9089_v3 = vmul.f32 %v15139_v38, %v19875_v15  ;;  %v9322_v33 = vpop.permute.xlu0 %9321 }
0x23af   :  { %15146 = vrcp.f32 %v9074_v57 }
0x23b0   :  { %13367 = vmatprep.mubr.msk.f32.mxu1 %vm7959_vm13, %v9089_v3 }
0x23b1   :  { %13368 = vmatmul.mubr.msk.f32.gmra.mrb[106].mxu1 %vm7959_vm13, %v9090_v17  ;;  %v15141_v1 = vpop.eup %15140 }
0x23b2   :  { %v14633_v30 = vpop.permute.xlu1 %14632  ;;  %v9092_v15 = vmul.f32 %v15141_v1, %v19879_v54  ;;  %v9324_v10 = vpop.permute.xlu0 %9323 }
0x23b3   :  { %v14635_v43 = vunpack.i.h.bf16 %v14633_v30  ;;  %v14634_v22 = vunpack.i.l.bf16 %v14633_v30 }
0x23b5   :  { %v15143_v8 = vpop.eup %15142  ;;  %v14115_v28 = vpack.c.bf16 %v14635_v43, %v14634_v22 }
0x23b6   :  { %v15145_v49 = vpop.eup %15144  ;;  %v9328_v44 = vpop.permute.xlu1 %9327  ;;  %v9093_v35 = vmul.f32 %v15143_v8, %v19885_v56 }
0x23b7   :  { %14117 = vmatprep.subr.msk.bf16.mxu1 %vm18350_vm10, %v14115_v28  ;;  %v9091_v27 = vmul.f32 %v15145_v49, %v19883_v24  ;;  %v9326_v54 = vpop.permute.xlu0 %9325 }
0x23b8   :  { %14120 = vmatpush3.bf16.xpose.msk.msra.mxu1 %vm18350_vm10, %v14115_v28 }
0x23b9   :  { %v15147_v63 = vpop.eup %15146  ;;  %13370 = vmatprep.mubr.msk.f32.mxu1 %vm7959_vm13, %v9091_v27  ;;  %14123 = vmatprep.subr.msk.bf16.mxu1 %vm18350_vm10, %v14121_v55 }
0x23ba   :  { %13371 = vmatmul.mubr.msk.f32.gmra.mrb[108].mxu1 %vm7959_vm13, %v9092_v15  ;;  %v9332_v46 = vpop.permute.xlu1 %9331  ;;  %v9094_v61 = vmul.f32 %v15147_v63, %v19891_v9 }
0x23bb   :  { %13373 = vmatprep.mubr.msk.f32.mxu1 %vm7959_vm13, %v9093_v35  ;;  %v9330_v56 = vpop.permute.xlu0 %9329 }
0x23be   :  { %13374 = vmatmul.mubr.msk.f32.gmra.mrb[110].mxu1 %vm7959_vm13, %v9094_v61  ;;  %v9336_v24 = vpop.permute.xlu1 %9335 }
0x23bf   :  { %13396 = vmatprep.mubr.msk.f32.mxu1 %vm21104_vm9, %v9322_v33  ;;  %v9334_v52 = vpop.permute.xlu0 %9333  ;;  %vm21116_vm9 = vcmask 130048  }
0x23c0   :  { %14126 = vmatpush3.bf16.xpose.msk.msra.mxu1 %vm18350_vm10, %v14121_v55 }
0x23c2   :  { %v9340_v34 = vpop.permute.xlu1 %9339 }
0x23c3   :  { %v9338_v32 = vpop.permute.xlu0 %9337 }
0x23c6   :  { %v14643_v18 = vpop.permute.xlu1 %14642 }
0x23c7   :  { %v14645_v51 = vunpack.i.h.bf16 %v14643_v18  ;;  %v14644_v45 = vunpack.i.l.bf16 %v14643_v18  ;;  %13397 = vmatmul.mubr.msk.f32.vlgmr.msra.gmra.mrb[112].mxu1 %vm21105_vm11, %v9324_v10  ;;  %vm21117_vm11 = vmmov %vm21116_vm9 }
0x23c8   :  { %13399 = vmatprep.mubr.msk.f32.mxu1 %vm21106_vm5, %v9326_v54  ;;  %vm21118_vm5 = vcmask 261120  }
0x23c9   :  { %v14127_v9 = vpack.c.bf16 %v14645_v51, %v14644_v45 }
0x23cb   :  { %13400 = vmatmul.mubr.msk.f32.gmra.mrb[114].mxu1 %vm21107_vm6, %v9328_v44  ;;  %14128 = vmatprep.subr.bf16.mxu0 %v14127_v9  ;;  %vm21119_vm6 = vmmov %vm21118_vm5 }
0x23cc   :  { %13402 = vmatprep.mubr.msk.f32.mxu1 %vm21108_vm7, %v9330_v56  ;;  %14130 = vmatpush3.bf16.msra.mxu0 %v14127_v9  ;;  %vm21120_vm7 = vmmov %vm21078_vm0 }
0x23cf   :  { %13403 = vmatmul.mubr.msk.f32.gmra.mrb[116].mxu1 %vm21109_vm2, %v9332_v46  ;;  %vm21121_vm2 = vmmov %vm21078_vm0 }
0x23d0   :  { %13405 = vmatprep.mubr.msk.f32.mxu1 %vm21110_vm3, %v9334_v52  ;;  %vm21122_vm3 = vmmov %vm21116_vm9 }
0x23d3   :  { %13406 = vmatmul.mubr.msk.f32.gmra.mrb[118].mxu1 %vm21111_vm12, %v9336_v24  ;;  %vm21123_vm12 = vmmov %vm21122_vm3 }
0x23d4   :  { %13408 = vmatprep.mubr.msk.f32.mxu1 %vm21112_vm14, %v9338_v32  ;;  %vm21124_vm14 = vmmov %vm21118_vm5 }
0x23d7   :  { %13409 = vmatmul.mubr.msk.f32.gmra.mrb[120].mxu1 %vm21113_vm15, %v9340_v34  ;;  %vm21125_vm15 = vmmov %vm21118_vm5 }
0x2453   :  { %v19968_v38 = vpop.f32.mrb[102].mxu1 }
0x2454   :  { %v19970_v57 = vpop.f32.mrb[103].mxu1 }
0x2458   :  { %v19972_v3 = vpop.f32.mrb[104].mxu1 }
0x2459   :  { %v19974_v17 = vpop.f32.mrb[105].mxu1 }
0x2484   :  { %v19976_v30 = vpop.f32.mrb[106].mxu1 }
0x2485   :  { %v19978_v14 = vpop.f32.mrb[107].mxu1 }
0x248d   :  { %v19980_v23 = vpop.f32.mrb[108].mxu1 }
0x248e   :  { %v19982_v43 = vpop.f32.mrb[109].mxu1 }
0x2491   :  { %v19984_v22 = vpop.f32.mrb[110].mxu1 }
0x2492   :  { %v19986_v1 = vpop.f32.mrb[111].mxu1 }
0x249a   :  { %v13398_v8 = vpop.f32.mrb[112].mxu1 }
0x249b   :  { %v9517_v33 = vmul.f32 0.17677669, %v13398_v8  ;;  %v9467_v28 = vpop.f32.mrb[113].mxu1 }
0x249c   :  { %v9516_v49 = vmul.f32 0.17677669, %v9467_v28 }
0x249d   :  { %v9529_v44 = vsel %vm7959_vm13, %v9517_v33, -inf }
0x249e   :  { %9530 = vmax.xlane.f32.xlu1 %v9529_v44  ;;  %v13401_v55 = vpop.f32.mrb[114].mxu1  ;;  %v9526_v27 = vsel %vm7959_vm13, %v9516_v49, -inf }
0x249f   :  { %v9519_v15 = vmul.f32 0.17677669, %v13401_v55  ;;  %9527 = vmax.xlane.f32.xlu0 %v9526_v27  ;;  %v9477_v63 = vpop.f32.mrb[115].mxu1 }
0x24a0   :  { %v9518_v46 = vmul.f32 0.17677669, %v9477_v63 }
0x24a1   :  { %v9535_v35 = vsel %vm7959_vm13, %v9519_v15, -inf }
0x24a2   :  { %v13404_v61 = vpop.f32.mrb[116].mxu1  ;;  %v9532_v18 = vsel %vm7959_vm13, %v9518_v46, -inf }
0x24a3   :  { %9536 = vmax.xlane.f32.xlu0 %v9535_v35  ;;  %v9487_v10 = vpop.f32.mrb[117].mxu1  ;;  %v9521_v54 = vmul.f32 0.17677669, %v13404_v61 }
0x24a4   :  { %v9520_v24 = vmul.f32 0.17677669, %v9487_v10 }
0x24a5   :  { %v9541_v32 = vsel %vm7959_vm13, %v9521_v54, -inf }
0x24a6   :  { %v13407_v34 = vpop.f32.mrb[118].mxu1  ;;  %v9538_v56 = vsel %vm7959_vm13, %v9520_v24, -inf }
0x24a7   :  { %9533 = vmax.xlane.f32.xlu0 %v9532_v18  ;;  %9539 = vmax.xlane.f32.xlu1 %v9538_v56  ;;  %v9497_v51 = vpop.f32.mrb[119].mxu1  ;;  %v19995_v9 = vmul.f32 0.17677669, %v13407_v34 }
0x24a8   :  { %v19993_v45 = vmul.f32 0.17677669, %v9497_v51 }
0x24a9   :  { %v9547_v27 = vsel %vm7959_vm13, %v19995_v9, -inf }
0x24aa   :  { %v13410_v52 = vpop.f32.mrb[120].mxu1  ;;  %v9544_v8 = vsel %vm7959_vm13, %v19993_v45, -inf }
0x24ab   :  { %9542 = vmax.xlane.f32.xlu0 %v9541_v32  ;;  %9545 = vmax.xlane.f32.xlu1 %v9544_v8  ;;  %v9507_v28 = vpop.f32.mrb[121].mxu1  ;;  %v20002_v55 = vmul.f32 0.17677669, %v13410_v52 }
0x24ac   :  { %v20000_v44 = vmul.f32 0.17677669, %v9507_v28 }
0x24ad   :  { %v9553_v35 = vsel %vm7987_vm4, %v20002_v55, -inf }
0x24ae   :  { %v9550_v63 = vsel %vm7959_vm13, %v20000_v44, -inf }
0x24af   :  { %9548 = vmax.xlane.f32.xlu0 %v9547_v27  ;;  %9551 = vmax.xlane.f32.xlu1 %v9550_v63 }
0x24b3   :  { %9554 = vmax.xlane.f32.xlu0 %v9553_v35 }
0x24c0   :  { %14652 = vrot.lane.b32.xlu1 %v19417_v21, %s16430_s30 }
0x24c9   :  { %14647 = vrot.lane.b32.xlu0 %v19411_v62, %s16430_s30 }
0x252b   :  { %v9531_v61 = vpop.xlane.xlu1 %9530 }
0x252c   :  { %v9557_v10 = vsub.f32 %v9517_v33, %v9531_v61  ;;  %v9528_v34 = vpop.xlane.xlu0 %9527 }
0x252d   :  { %v9556_v18 = vsub.f32 %v9516_v49, %v9528_v34 }
0x252e   :  { %v9568_v56 = vmul.f32 1.442695, %v9557_v10 }
0x252f   :  { %v9566_v51 = vmul.f32 1.442695, %v9556_v18 }
0x2530   :  { %15148 = vpow2.f32 %v9568_v56  ;;  %v9537_v52 = vpop.xlane.xlu0 %9536 }
0x2531   :  { %15150 = vpow2.f32 %v9566_v51  ;;  %v9559_v32 = vsub.f32 %v9519_v15, %v9537_v52 }
0x2533   :  { %v9572_v8 = vmul.f32 1.442695, %v9559_v32 }
0x2534   :  { %v9534_v28 = vpop.xlane.xlu0 %9533  ;;  %v9540_v27 = vpop.xlane.xlu1 %9539 }
0x2535   :  { %15152 = vpow2.f32 %v9572_v8  ;;  %v9558_v63 = vsub.f32 %v9518_v46, %v9534_v28  ;;  %v9560_v35 = vsub.f32 %v9520_v24, %v9540_v27 }
0x2537   :  { %v9570_v21 = vmul.f32 1.442695, %v9558_v63  ;;  %v9574_v4 = vmul.f32 1.442695, %v9560_v35 }
0x2538   :  { %v9543_v53 = vpop.xlane.xlu0 %9542  ;;  %v9546_v62 = vpop.xlane.xlu1 %9545 }
0x2539   :  { %15154 = vpow2.f32 %v9570_v21  ;;  %v9561_v33 = vsub.f32 %v9521_v54, %v9543_v53 }
0x253a   :  { %v20014_v61 = vpop.eup %15148  ;;  %15156 = vpow2.f32 %v9574_v4 }
0x253b   :  { %v20016_v49 = vpop.eup %15150  ;;  %v9576_v10 = vmul.f32 1.442695, %v9561_v33  ;;  %v9589_v15 = vsel %vm7959_vm13, %v20014_v61, 0.0 }
0x253c   :  { %v9549_v34 = vpop.xlane.xlu0 %9548  ;;  %9590 = vadd.xlane.f32.xlu0 %v9589_v15  ;;  %v9552_v18 = vpop.xlane.xlu1 %9551  ;;  %v9586_v46 = vsel %vm7959_vm13, %v20016_v49, 0.0 }
0x253d   :  { %15158 = vpow2.f32 %v9576_v10  ;;  %9587 = vadd.xlane.f32.xlu1 %v9586_v46  ;;  %v9562_v46 = vsub.f32 %v19993_v45, %v9546_v62 }
0x253f   :  { %v20022_v24 = vpop.eup %15152 }
0x2540   :  { %v9555_v53 = vpop.xlane.xlu0 %9554  ;;  %v9595_v4 = vsel %vm7959_vm13, %v20022_v24, 0.0  ;;  %v14653_v54 = vpop.permute.xlu1 %14652 }
0x2541   :  { %9596 = vadd.xlane.f32.xlu0 %v9595_v4  ;;  %v14655_v52 = vunpack.i.h.bf16 %v14653_v54  ;;  %v14654_v28 = vunpack.i.l.bf16 %v14653_v54  ;;  %v9563_v4 = vsub.f32 %v19995_v9, %v9549_v34  ;;  %v9578_v54 = vmul.f32 1.442695, %v9562_v46 }
0x2543   :  { %v20026_v56 = vpop.eup %15154  ;;  %v14135_v15 = vpack.c.bf16 %v14655_v52, %v14654_v28  ;;  %15160 = vpow2.f32 %v9578_v54  ;;  %v9565_v28 = vsub.f32 %v20002_v55, %v9555_v53 }
0x2544   :  { %v20028_v51 = vpop.eup %15156  ;;  %v14648_v32 = vpop.permute.xlu0 %14647  ;;  %v9592_v8 = vsel %vm7959_vm13, %v20026_v56, 0.0 }
0x2545   :  { %v14650_v27 = vunpack.i.h.bf16 %v14648_v32  ;;  %v14649_v63 = vunpack.i.l.bf16 %v14648_v32  ;;  %9593 = vadd.xlane.f32.xlu0 %v9592_v8  ;;  %v9598_v35 = vsel %vm7959_vm13, %v20028_v51, 0.0  ;;  %v9564_v32 = vsub.f32 %v20000_v44, %v9552_v18 }
0x2546   :  { %9599 = vadd.xlane.f32.xlu1 %v9598_v35  ;;  %v9580_v8 = vmul.f32 1.442695, %v9563_v4 }
0x2547   :  { %v20034_v21 = vpop.eup %15158  ;;  %v14131_v33 = vpack.c.bf16 %v14650_v27, %v14649_v63  ;;  %v9582_v52 = vmul.f32 1.442695, %v9564_v32  ;;  %v9584_v27 = vmul.f32 1.442695, %v9565_v28 }
0x2548   :  { %v9601_v10 = vsel %vm7959_vm13, %v20034_v21, 0.0  ;;  %15162 = vpow2.f32 %v9580_v8 }
0x2549   :  { %9602 = vadd.xlane.f32.xlu0 %v9601_v10  ;;  %14132 = vmatprep.subr.bf16.mxu0 %v14131_v33  ;;  %15164 = vpow2.f32 %v9582_v52 }
0x254a   :  { %14134 = vmatpush3.bf16.msra.mxu0 %v14131_v33  ;;  %15166 = vpow2.f32 %v9584_v27 }
0x254b   :  { %14136 = vmatprep.subr.bf16.mxu0 %v14135_v15 }
0x254e   :  { %14138 = vmatpush3.bf16.msra.mxu0 %v14135_v15 }
0x2557   :  { %14657 = vrot.lane.b32.xlu1 %v19423_v16, %s16430_s30  ;;  %v20046_v16 = vpop.eup %15160 }
0x2558   :  { %v20048_v63 = vpop.eup %15162 }
0x2559   :  { %v20052_v45 = vpop.eup %15164  ;;  %v9607_v9 = vsel %vm7959_vm13, %v20048_v63, 0.0 }
0x255a   :  { %v9610_v44 = vsel %vm7959_vm13, %v20052_v45, 0.0  ;;  %v20058_v55 = vpop.eup %15166 }
0x255b   :  { %v9613_v62 = vsel %vm7987_vm4, %v20058_v55, 0.0  ;;  %vm21115_vm4 = vmmov %vm21078_vm0 }
0x255f   :  { %14662 = vrot.lane.b32.xlu0 %v19434_v11, %s16430_s30  ;;  %v9604_v11 = vsel %vm7959_vm13, %v20046_v16, 0.0 }
0x257b   :  { %9605 = vadd.xlane.f32.xlu1 %v9604_v11 }
0x257e   :  { %9608 = vadd.xlane.f32.xlu0 %v9607_v9 }
0x257f   :  { %9611 = vadd.xlane.f32.xlu1 %v9610_v44 }
0x2583   :  { %9614 = vadd.xlane.f32.xlu1 %v9613_v62 }
0x2594   :  { %8742 = vrot.lane.b32.xlu1 %v19784_v59, %s16395_s21  ;;  %8740 = vrot.lane.b32.xlu0 %v19786_v37, %s16395_s21 }
0x2598   :  { %9281 = vrot.lane.b32.xlu1 %v19970_v57, %s16425_s12  ;;  %9283 = vrot.lane.b32.xlu0 %v19968_v38, %s16425_s12 }
0x259c   :  { %8744 = vrot.lane.b32.xlu1 %v19790_v50, %s16395_s21  ;;  %8746 = vrot.lane.b32.xlu0 %v19788_v6, %s16395_s21 }
0x25a0   :  { %9285 = vrot.lane.b32.xlu1 %v19974_v17, %s16425_s12  ;;  %9287 = vrot.lane.b32.xlu0 %v19972_v3, %s16425_s12 }
0x25a4   :  { %8748 = vrot.lane.b32.xlu1 %v19794_v0, %s16395_s21  ;;  %8750 = vrot.lane.b32.xlu0 %v19792_v58, %s16395_s21 }
0x25a8   :  { %9289 = vrot.lane.b32.xlu1 %v19978_v14, %s16425_s12  ;;  %9291 = vrot.lane.b32.xlu0 %v19976_v30, %s16425_s12 }
0x25c9   :  { %v9591_v59 = vpop.xlane.xlu0 %9590 }
0x25ca   :  { %v9588_v37 = vpop.xlane.xlu1 %9587 }
0x25cb   :  { %15168 = vrcp.f32 %v9588_v37  ;;  %v944_v37 = vld [vmem:[#allocation69] sm:$0xff] }
0x25cc   :  { %15170 = vrcp.f32 %v9591_v59 }
0x25ce   :  { %v9597_v6 = vpop.xlane.xlu0 %9596 }
0x25d2   :  { %v9594_v50 = vpop.xlane.xlu0 %9593 }
0x25d3   :  { %v9600_v38 = vpop.xlane.xlu1 %9599  ;;  %15172 = vrcp.f32 %v9594_v50  ;;  %v946_v50 = vld [vmem:[#allocation69 + $0x10] sm:$0xff] }
0x25d4   :  { %15174 = vrcp.f32 %v9597_v6  ;;  %v945_v6 = vld [vmem:[#allocation69 + $0x8] sm:$0xff] }
0x25d5   :  { %v15169_v57 = vpop.eup %15168  ;;  %15176 = vrcp.f32 %v9600_v38  ;;  %v947_v38 = vld [vmem:[#allocation69 + $0x18] sm:$0xff] }
0x25d6   :  { %v9603_v3 = vpop.xlane.xlu0 %9602  ;;  %v9626_v0 = vmul.f32 %v15169_v57, %v20016_v49  ;;  %v15171_v33 = vpop.eup %15170  ;;  %v14153_v57 = vpack.c.bf16 %v947_v38, %v946_v50  ;;  %v8222_v50 = vadd.f32 %v19596_v36, %v19370_v41 }
0x25d7   :  { %v14658_v17 = vpop.permute.xlu1 %14657  ;;  %15178 = vrcp.f32 %v9603_v3  ;;  %v9627_v10 = vmul.f32 %v15171_v33, %v20014_v61 }
0x25d8   :  { %v14660_v58 = vunpack.i.h.bf16 %v14658_v17  ;;  %v14659_v34 = vunpack.i.l.bf16 %v14658_v17  ;;  %13431 = vmatprep.mubr.msk.f32.mxu0 %vm7959_vm13, %v9626_v0 }
0x25da   :  { %v14139_v30 = vpack.c.bf16 %v14660_v58, %v14659_v34  ;;  %v14663_v14 = vpop.permute.xlu0 %14662  ;;  %v929_v58 = vld [vmem:[%s21114_s15] sm:$0xff]  ;;  %v931_v34 = vld [vmem:[%s21114_s15 + $0x10] sm:$0xff] }
0x25db   :  { %v14665_v18 = vunpack.i.h.bf16 %v14663_v14  ;;  %v14664_v53 = vunpack.i.l.bf16 %v14663_v14  ;;  %v932_v14 = vld [vmem:[%s21114_s15 + $0x18] sm:$0xff] }
0x25dc   :  { %14140 = vmatprep.subr.bf16.mxu0 %v14139_v30 }
0x25dd   :  { %v14143_v35 = vpack.c.bf16 %v14665_v18, %v14664_v53  ;;  %14142 = vmatpush3.bf16.msra.mxu0 %v14139_v30  ;;  %v15173_v49 = vpop.eup %15172  ;;  %v14161_v18 = vpack.c.bf16 %v932_v14, %v931_v34 }
0x25de   :  { %v15175_v15 = vpop.eup %15174  ;;  %v9628_v46 = vmul.f32 %v15173_v49, %v20026_v56 }
0x25df   :  { %14145 = vmatprep.subr.msk.bf16.mxu0 %vm19430_vm1, %v14143_v35  ;;  %v15177_v4 = vpop.eup %15176  ;;  %v9629_v54 = vmul.f32 %v15175_v15, %v20022_v24 }
0x25e0   :  { %v9630_v8 = vmul.f32 %v15177_v4, %v20028_v51 }
0x25e1   :  { %14148 = vmatpush3.bf16.msk.msra.mxu0 %vm19430_vm1, %v14143_v35  ;;  %v15179_v32 = vpop.eup %15178 }
0x25e2   :  { %v9631_v52 = vmul.f32 %v15179_v32, %v20034_v21 }
0x25e4   :  { %13432 = vmatmul.mubr.msk.f32.vlgmr.msra.gmra.mrb[108].mxu0 %vm7959_vm13, %v9627_v10 }
0x25e5   :  { %13434 = vmatprep.mubr.msk.f32.mxu0 %vm7959_vm13, %v9628_v46 }
0x25e8   :  { %13435 = vmatmul.mubr.msk.f32.gmra.mrb[110].mxu0 %vm7959_vm13, %v9629_v54 }
0x25e9   :  { %13437 = vmatprep.mubr.msk.f32.mxu0 %vm7959_vm13, %v9630_v8 }
0x25ec   :  { %13438 = vmatmul.mubr.msk.f32.gmra.mrb[112].mxu0 %vm7959_vm13, %v9631_v52 }
0x2608   :  { %v9606_v61 = vpop.xlane.xlu1 %9605 }
0x2609   :  { %15180 = vrcp.f32 %v9606_v61  ;;  %v8221_v61 = vadd.f32 %v19590_v5, %v19354_v20 }
0x260b   :  { %v9609_v56 = vpop.xlane.xlu0 %9608 }
0x260c   :  { %15182 = vrcp.f32 %v9609_v56  ;;  %v9612_v28 = vpop.xlane.xlu1 %9611 }
0x260d   :  { %15184 = vrcp.f32 %v9612_v28  ;;  %v8220_v28 = vadd.f32 %v19592_v47, %v19356_v7 }
0x260f   :  { %v8741_v53 = vpop.permute.xlu0 %8740 }
0x2610   :  { %v9615_v27 = vpop.xlane.xlu1 %9614 }
0x2611   :  { %15186 = vrcp.f32 %v9615_v27 }
0x2613   :  { %v15181_v24 = vpop.eup %15180  ;;  %v9284_v33 = vpop.permute.xlu0 %9283 }
0x2614   :  { %v9632_v11 = vmul.f32 %v15181_v24, %v20046_v16  ;;  %v14149_v16 = vpack.c.bf16 %v945_v6, %v944_v37  ;;  %v8743_v35 = vpop.permute.xlu1 %8742  ;;  %v9312_v27 = vadd.f32 %v9284_v33, %v19354_v20 }
0x2615   :  { %v8771_v8 = vadd.f32 %v8743_v35, %v19354_v20 }
0x2616   :  { %v15183_v51 = vpop.eup %15182  ;;  %13440 = vmatprep.mubr.msk.f32.mxu0 %vm7959_vm13, %v9632_v11  ;;  %14150 = vmatprep.subr.bf16.mxu0 %v14149_v16 }
0x2617   :  { %v15185_v9 = vpop.eup %15184  ;;  %v9633_v44 = vmul.f32 %v15183_v51, %v20048_v63  ;;  %14152 = vmatpush3.bf16.msra.mxu0 %v14149_v16  ;;  %v8747_v10 = vpop.permute.xlu0 %8746  ;;  %v9863_v11 = vsel %vm21115_vm4, %v8221_v61, %v8771_v8  ;;  %vm21127_vm4 = vmmov %vm21078_vm0  ;;  %v21131_v8 = vld [vmem:[#allocation154_spill] sm:$0xff] }
0x2618   :  { %v9634_v21 = vmul.f32 %v15185_v9, %v20052_v45  ;;  %14154 = vmatprep.subr.bf16.mxu0 %v14153_v57  ;;  %v9282_v49 = vpop.permute.xlu1 %9281  ;;  %v9873_v5 = vsel %vm21117_vm11, %v9863_v11, %v9312_v27  ;;  %vm21129_vm11 = vmmov %vm21122_vm3 }
0x2619   :  { %13441 = vmatmul.mubr.msk.f32.gmra.mrb[114].mxu0 %vm7959_vm13, %v9633_v44  ;;  %v9311_v56 = vadd.f32 %v9282_v49, %v19356_v7 }
0x261a   :  { %13443 = vmatprep.mubr.msk.f32.mxu0 %vm7959_vm13, %v9634_v21 }
0x261b   :  { %v15187_v62 = vpop.eup %15186  ;;  %14156 = vmatpush3.bf16.msra.mxu0 %v14153_v57  ;;  %v9288_v46 = vpop.permute.xlu0 %9287 }
0x261c   :  { %v9635_v59 = vmul.f32 %v15187_v62, %v20058_v55  ;;  %v8745_v15 = vpop.permute.xlu1 %8744  ;;  %v9314_v38 = vadd.f32 %v9288_v46, %v19368_v40 }
0x261d   :  { %v8772_v6 = vadd.f32 %v8745_v15, %v19370_v41 }
0x261e   :  { %13444 = vmatmul.mubr.msk.f32.gmra.mrb[116].mxu0 %vm7959_vm13, %v9635_v59 }
0x2620   :  { %v9286_v4 = vpop.permute.xlu1 %9285 }
0x2621   :  { %v9313_v16 = vadd.f32 %v9286_v4, %v19370_v41 }
0x2624   :  { %v8749_v54 = vpop.permute.xlu1 %8748 }
0x2628   :  { %v9290_v52 = vpop.permute.xlu1 %9289 }
0x2629   :  { %v9315_v34 = vadd.f32 %v9290_v52, %v19380_v39  ;;  %v8226_v52 = vadd.f32 %v21131_v8, %v19390_v25 }
0x26b7   :  { %v13433_v63 = vpop.f32.mrb[108].mxu0 }
0x26b8   :  { %9824 = vrot.lane.b32.xlu0 %v13433_v63, %s16431_s11  ;;  %v9763_v45 = vpop.f32.mrb[109].mxu0  ;;  %v8223_v63 = vadd.f32 %v19594_v19, %v19368_v40 }
0x26b9   :  { %9822 = vrot.lane.b32.xlu1 %v9763_v45, %s16431_s11 }
0x26bb   :  { %v13436_v3 = vpop.f32.mrb[110].mxu0 }
0x26bc   :  { %8754 = vrot.lane.b32.xlu0 %v19796_v29, %s16395_s21  ;;  %v9773_v55 = vpop.f32.mrb[111].mxu0 }
0x26bd   :  { %8752 = vrot.lane.b32.xlu1 %v19798_v26, %s16395_s21 }
0x26bf   :  { %v13439_v0 = vpop.f32.mrb[112].mxu0 }
0x26c0   :  { %9828 = vrot.lane.b32.xlu0 %v13436_v3, %s16431_s11  ;;  %v9783_v17 = vpop.f32.mrb[113].mxu0 }
0x26c1   :  { %9826 = vrot.lane.b32.xlu1 %v9773_v55, %s16431_s11  ;;  %v9864_v55 = vsel %vm21120_vm7, %v8222_v50, %v8772_v6  ;;  %vm21133_vm7 = vmmov %vm21078_vm0 }
0x26c4   :  { %9295 = vrot.lane.b32.xlu0 %v19980_v23, %s16425_s12  ;;  %v930_v23 = vld [vmem:[%s21114_s15 + $0x8] sm:$0xff] }
0x26c5   :  { %9293 = vrot.lane.b32.xlu1 %v19982_v43, %s16425_s12  ;;  %v16432_v43 = vmov 0.0|0.0   ;;  %v14158_v30 = vpack.c.bf16 %v930_v23, %v929_v58  ;;  %v8774_v23 = vadd.f32 %v8749_v54, %v19380_v39 }
0x26c6   :  { %14157 = vmatprep.subr.bf16.mxu1 %v16432_v43 }
0x26c7   :  { %14159 = vmatpush3.bf16.msra.mxu1 %v14158_v30  ;;  %v8224_v30 = vadd.f32 %v19600_v60, %v19380_v39 }
0x26c8   :  { %9832 = vrot.lane.b32.xlu0 %v13439_v0, %s16431_s11  ;;  %14160 = vmatprep.subr.bf16.mxu1 %v16432_v43 }
0x26c9   :  { %9830 = vrot.lane.b32.xlu1 %v9783_v17, %s16431_s11  ;;  %v9866_v33 = vsel %vm21127_vm4, %v8224_v30, %v8774_v23  ;;  %vm21141_vm4 = vmmov %vm21078_vm0  ;;  %v16434_v30 = vmov 0.0  }
0x26cb   :  { %14162 = vmatpush3.bf16.msra.mxu1 %v14161_v18 }
0x26cc   :  { %8758 = vrot.lane.b32.xlu0 %v19800_v31, %s16395_s21 }
0x26cd   :  { %8756 = vrot.lane.b32.xlu1 %v19802_v42, %s16395_s21 }
0x26ec   :  { %v13442_v29 = vpop.f32.mrb[114].mxu0 }
0x26ed   :  { %9836 = vrot.lane.b32.xlu0 %v13442_v29, %s16431_s11  ;;  %v9793_v26 = vpop.f32.mrb[115].mxu0  ;;  %v9874_v29 = vsel %vm21122_vm3, %v9864_v55, %v9313_v16  ;;  %v21139_v16 = vld [vmem:[#allocation156_spill] sm:$0xff] }
0x26ee   :  { %9834 = vrot.lane.b32.xlu1 %v9793_v26, %s16431_s11  ;;  %v8228_v50 = vadd.f32 %v21139_v16, %v19400_v13 }
0x26f1   :  { %v13445_v31 = vpop.f32.mrb[116].mxu0  ;;  %9299 = vrot.lane.b32.xlu0 %v19984_v22, %s16425_s12  ;;  %v8751_v22 = vpop.permute.xlu0 %8750 }
0x26f2   :  { %v9803_v42 = vpop.f32.mrb[117].mxu0  ;;  %9297 = vrot.lane.b32.xlu1 %v19986_v1, %s16425_s12  ;;  %v8770_v1 = vadd.f32 %v8741_v53, %v19356_v7 }
0x26f4   :  { %v9862_v44 = vsel %vm21078_vm0, %v8220_v28, %v8770_v1 }
0x26f5   :  { %9840 = vrot.lane.b32.xlu0 %v13445_v31, %s16431_s11  ;;  %v9292_v32 = vpop.permute.xlu0 %9291  ;;  %v9872_v62 = vsel %vm21116_vm9, %v9862_v44, %v9311_v56  ;;  %v21126_v31 = vld [vmem:[#allocation153_spill] sm:$0xff]  ;;  %vm21128_vm9 = vmmov %vm21122_vm3  ;;  %v21132_v56 = vld [vmem:[#allocation152_spill] sm:$0xff] }
0x26f6   :  { %9838 = vrot.lane.b32.xlu1 %v9803_v42, %s16431_s11  ;;  %v9316_v14 = vadd.f32 %v9292_v32, %v19378_v48  ;;  %v8225_v42 = vadd.f32 %v21126_v31, %v19378_v48  ;;  %v9876_v15 = vsel %vm21128_vm9, %v9866_v33, %v9315_v34  ;;  %v8227_v28 = vadd.f32 %v21132_v56, %v19388_v2  ;;  %vm21142_vm9 = vmmov %vm21122_vm3  ;;  %v939_v34 = vld [vmem:[#allocation66] sm:$0xff]  ;;  %v922_v31 = vld [vmem:[#allocation56] sm:$0x1] }
0x26f7   :  { %v941_v33 = vld [vmem:[#allocation66 + $0x10] sm:$0xff] }
0x272a   :  { %v9825_v24 = vpop.permute.xlu0 %9824 }
0x272b   :  { %v9853_v51 = vadd.f32 %v9825_v24, %v19354_v20  ;;  %v9823_v9 = vpop.permute.xlu1 %9822 }
0x272c   :  { %v9852_v21 = vadd.f32 %v9823_v9, %v19356_v7  ;;  %v8773_v7 = vadd.f32 %v8747_v10, %v19368_v40 }
0x272d   :  { %v20160_v47 = vsel %vm7199_vm8, %v9873_v5, %v9853_v51 }
0x272e   :  { %v8755_v59 = vpop.permute.xlu0 %8754  ;;  %v20157_v37 = vsel %vm7199_vm8, %v9872_v62, %v9852_v21  ;;  %v9865_v17 = vsel %vm21121_vm2, %v8223_v63, %v8773_v7  ;;  %vm21134_vm2 = vmmov %vm21078_vm0  ;;  %v21140_v63 = vld [vmem:[#allocation155_spill] sm:$0xff] }
0x272f   :  { %13454 = vmatprep.mubr.msk.f32.mxu0 %vm21118_vm5, %v20157_v37  ;;  %v8753_v20 = vpop.permute.xlu1 %8752  ;;  %v9875_v26 = vsel %vm21123_vm12, %v9865_v17, %v9314_v38  ;;  %v8777_v54 = vadd.f32 %v8755_v59, %v19388_v2  ;;  %vm21135_vm12 = vmmov %vm21122_vm3 }
0x2730   :  { %13455 = vmatmul.mubr.msk.f32.vlgmr.msra.gmra.mrb[118].mxu0 %vm21119_vm6, %v20160_v47  ;;  %vm21130_vm6 = vmmov %vm21118_vm5 }
0x2731   :  { %v9869_v9 = vsel %vm21134_vm2, %v8227_v28, %v8777_v54  ;;  %vm21145_vm2 = vmmov %vm21118_vm5 }
0x2732   :  { %v9829_v57 = vpop.permute.xlu0 %9828 }
0x2733   :  { %v9855_v45 = vadd.f32 %v9829_v57, %v19368_v40  ;;  %v9827_v3 = vpop.permute.xlu1 %9826 }
0x2734   :  { %v9854_v0 = vadd.f32 %v9827_v3, %v19370_v41  ;;  %v8775_v41 = vadd.f32 %v8751_v22, %v19378_v48  ;;  %v8776_v22 = vadd.f32 %v8753_v20, %v19390_v25 }
0x2735   :  { %v20186_v40 = vsel %vm7199_vm8, %v9875_v26, %v9855_v45 }
0x2736   :  { %v9296_v36 = vpop.permute.xlu0 %9295  ;;  %v20181_v58 = vsel %vm7199_vm8, %v9874_v29, %v9854_v0  ;;  %v9867_v10 = vsel %vm21078_vm0, %v8225_v42, %v8775_v41  ;;  %v9868_v11 = vsel %vm21133_vm7, %v8226_v52, %v8776_v22  ;;  %v934_v41 = vld [vmem:[#allocation63] sm:$0xff]  ;;  %vm16433_vm7 = vmmov 0   ;;  %v936_v42 = vld [vmem:[#allocation63 + $0x10] sm:$0xff] }
0x2737   :  { %13457 = vmatprep.mubr.msk.f32.mxu0 %vm21124_vm14, %v20181_v58  ;;  %v9294_v19 = vpop.permute.xlu1 %9293  ;;  %v9877_v46 = vsel %vm21129_vm11, %v9867_v10, %v9316_v14  ;;  %v9318_v1 = vadd.f32 %v9296_v36, %v19388_v2  ;;  %vm21136_vm14 = vmmov %vm21118_vm5  ;;  %13477 = vmatprep.mubr.msk.f32.mxu1 %vm16433_vm7, %v16434_v30 }
0x2738   :  { %13458 = vmatmul.mubr.msk.f32.gmra.mrb[120].mxu0 %vm21125_vm15, %v20186_v40  ;;  %v9317_v32 = vadd.f32 %v9294_v19, %v19390_v25  ;;  %vm21137_vm15 = vmmov %vm21118_vm5  ;;  %13478 = vmatmul.mubr.msk.f32.vlgmr.msra.gmra.mrb[122].mxu1 %vm21145_vm2, %v922_v31 }
0x2739   :  { %v9879_v21 = vsel %vm21135_vm12, %v9869_v9, %v9318_v1  ;;  %vm21143_vm11 = vmmov %vm21122_vm3 }
0x273a   :  { %v9833_v18 = vpop.permute.xlu0 %9832  ;;  %v9878_v44 = vsel %vm21122_vm3, %v9868_v11, %v9317_v32  ;;  %vm21146_vm3 = vmmov %vm21145_vm2 }
0x273b   :  { %v9857_v53 = vadd.f32 %v9833_v18, %v19378_v48  ;;  %v9831_v35 = vpop.permute.xlu1 %9830  ;;  %v940_v18 = vld [vmem:[#allocation66 + $0x8] sm:$0xff]  ;;  %vm21147_vm12 = vmmov %vm21145_vm2 }
0x273c   :  { %v9856_v49 = vadd.f32 %v9831_v35, %v19380_v39  ;;  %v937_v35 = vld [vmem:[#allocation63 + $0x18] sm:$0xff] }
0x273d   :  { %v20210_v4 = vsel %vm7199_vm8, %v9877_v46, %v9857_v53  ;;  %v14171_v53 = vpack.c.bf16 %v940_v18, %v939_v34  ;;  %v14167_v10 = vpack.c.bf16 %v937_v35, %v936_v42  ;;  %v12123_v46 = vld [vmem:[#allocation68] ss:$0 sm:$0xff] }
0x273e   :  { %v20205_v60 = vsel %vm7199_vm8, %v9876_v15, %v9856_v49  ;;  %v8759_v48 = vpop.permute.xlu0 %8758  ;;  %v942_v49 = vld [vmem:[#allocation66 + $0x18] sm:$0xff] }
0x273f   :  { %13460 = vmatprep.mubr.msk.f32.mxu0 %vm21118_vm5, %v20205_v60  ;;  %v8757_v39 = vpop.permute.xlu1 %8756  ;;  %v14175_v15 = vpack.c.bf16 %v942_v49, %v941_v33  ;;  %14172 = vmatprep.subr.bf16.mxu0 %v14171_v53 }
0x2740   :  { %13461 = vmatmul.mubr.msk.f32.gmra.mrb[122].mxu0 %vm21130_vm6, %v20210_v4  ;;  %v8778_v20 = vadd.f32 %v8757_v39, %v19400_v13  ;;  %vm21144_vm6 = vmmov %vm21118_vm5 }
0x2741   :  { %14174 = vmatpush3.bf16.msra.mxu0 %v14171_v53 }
0x2742   :  { %v9870_v0 = vsel %vm21141_vm4, %v8228_v50, %v8778_v20  ;;  %14176 = vmatprep.subr.bf16.mxu0 %v14175_v15  ;;  %vm21150_vm4 = vmmov %vm21145_vm2 }
0x2745   :  { %14178 = vmatpush3.bf16.msra.mxu0 %v14175_v15 }
0x2746   :  { %14199 = vmatprep.subr.bf16.mxu0 %v16432_v43 }
0x275f   :  { %v9837_v61 = vpop.permute.xlu0 %9836 }
0x2760   :  { %v9859_v27 = vadd.f32 %v9837_v61, %v19388_v2  ;;  %v9835_v24 = vpop.permute.xlu1 %9834 }
0x2761   :  { %v9858_v51 = vadd.f32 %v9835_v24, %v19390_v25  ;;  %v21138_v25 = vld [vmem:[#allocation151_spill] sm:$0xff] }
0x2762   :  { %v20234_v2 = vsel %vm7199_vm8, %v9879_v21, %v9859_v27  ;;  %v8779_v6 = vadd.f32 %v8759_v48, %v21138_v25  ;;  %v8229_v45 = vadd.f32 %v21140_v63, %v21138_v25 }
0x2763   :  { %v9300_v62 = vpop.permute.xlu0 %9299  ;;  %v20229_v5 = vsel %vm7199_vm8, %v9878_v44, %v9858_v51 }
0x2764   :  { %13463 = vmatprep.mubr.msk.f32.mxu0 %vm21136_vm14, %v20229_v5  ;;  %v9298_v59 = vpop.permute.xlu1 %9297  ;;  %v9320_v38 = vadd.f32 %v9300_v62, %v21138_v25  ;;  %v9871_v29 = vsel %vm21078_vm0, %v8229_v45, %v8779_v6  ;;  %vm21148_vm14 = vmmov %vm21145_vm2 }
0x2765   :  { %13464 = vmatmul.mubr.msk.f32.gmra.mrb[124].mxu0 %vm21137_vm15, %v20234_v2  ;;  %v9319_v7 = vadd.f32 %v9298_v59, %v19400_v13  ;;  %vm21149_vm15 = vmmov %vm21145_vm2 }
0x2766   :  { %v9881_v36 = vsel %vm21143_vm11, %v9871_v29, %v9320_v38  ;;  %vm21151_vm0 = vmmov %vm21145_vm2  ;;  %v20303_v29 = vld [vmem:[#allocation62] ss:$0 sm:$0xff] }
0x2767   :  { %v9841_v57 = vpop.permute.xlu0 %9840  ;;  %v9880_v26 = vsel %vm21142_vm9, %v9870_v0, %v9319_v7  ;;  %vm21152_vm9 = vmmov %vm21151_vm0 }
0x2768   :  { %v9861_v3 = vadd.f32 %v9841_v57, %v21138_v25  ;;  %v9839_v55 = vpop.permute.xlu1 %9838  ;;  %vm21153_vm11 = vmmov %vm21151_vm0 }
0x2769   :  { %v9860_v17 = vadd.f32 %v9839_v55, %v19400_v13  ;;  %v935_v13 = vld [vmem:[#allocation63 + $0x8] sm:$0xff]  ;;  %vm21156_vm2 = vmmov %vm21151_vm0 }
0x276a   :  { %v20258_v23 = vsel %vm7199_vm8, %v9881_v36, %v9861_v3  ;;  %v14163_v14 = vpack.c.bf16 %v935_v13, %v934_v41 }
0x276b   :  { %v20253_v19 = vsel %vm7199_vm8, %v9880_v26, %v9860_v17  ;;  %v20305_v26 = vld [vmem:[#allocation65] ss:$0 sm:$0xff] }
0x276c   :  { %13466 = vmatprep.mubr.msk.f32.mxu0 %vm21118_vm5, %v20253_v19  ;;  %14164 = vmatprep.subr.bf16.mxu1 %v14163_v14  ;;  %vm21154_vm5 = vmmov %vm21151_vm0 }
0x276d   :  { %13467 = vmatmul.mubr.msk.f32.gmra.mrb[126].mxu0 %vm21144_vm6, %v20258_v23  ;;  %14166 = vmatpush3.bf16.msra.mxu1 %v14163_v14  ;;  %vm21155_vm6 = vmmov %vm21151_vm0 }
0x276e   :  { %14168 = vmatprep.subr.bf16.mxu1 %v14167_v10 }
0x2771   :  { %14170 = vmatpush3.bf16.msra.mxu1 %v14167_v10 }
0x2772   :  { %14179 = vmatprep.subr.bf16.mxu1 %v16432_v43 }
0x2803   :  { %v13456_v48 = vpop.f32.mrb[118].mxu0 }
0x2804   :  { %v10000_v39 = vadd.f32 %v13456_v48, %v12123_v46  ;;  %v9994_v22 = vpop.f32.mrb[119].mxu0 }
0x2805   :  { %v9995_v54 = vadd.f32 %v12123_v46, %v9994_v22 }
0x2806   :  { %v10044_v32 = vmax.f32 %v10000_v39, 0.0 }
0x2807   :  { %v10043_v8 = vmax.f32 %v9995_v54, 0.0 }
0x2808   :  { %v10054_v1 = vadd.f32 %v10044_v32, %v20160_v47 }
0x2809   :  { %v10053_v52 = vadd.f32 %v10043_v8, %v20157_v37 }
0x280b   :  { %v13459_v61 = vpop.f32.mrb[120].mxu0  ;;  %13488 = vmatprep.mubr.msk.f32.mxu1 %vm21146_vm3, %v10053_v52  ;;  %13511 = vmatprep.mubr.msk.f32.mxu0 %vm21147_vm12, %v10053_v52  ;;  %vm21157_vm3 = vmmov %vm21151_vm0 }
0x280c   :  { %v10010_v56 = vadd.f32 %v13459_v61, %v12123_v46  ;;  %v10004_v28 = vpop.f32.mrb[121].mxu0  ;;  %13489 = vmatmul.mubr.msk.f32.vlgmr.msra.gmra.mrb[124].mxu1 %vm21148_vm14, %v10054_v1  ;;  %13512 = vmatmul.mubr.msk.f32.vlgmr.msra.gmra.mrb[128].mxu0 %vm21149_vm15, %v10054_v1  ;;  %vm21158_vm12 = vmmov %vm21151_vm0 }
0x280d   :  { %v10005_v27 = vadd.f32 %v12123_v46, %v10004_v28  ;;  %vm21159_vm14 = vmmov %vm21151_vm0 }
0x280e   :  { %v10046_v24 = vmax.f32 %v10010_v56, 0.0  ;;  %vm21160_vm15 = vmmov %vm21151_vm0 }
0x280f   :  { %v10045_v11 = vmax.f32 %v10005_v27, 0.0 }
0x2810   :  { %v10056_v37 = vadd.f32 %v10046_v24, %v20186_v40 }
0x2811   :  { %v10055_v51 = vadd.f32 %v10045_v11, %v20181_v58 }
0x2813   :  { %v13462_v9 = vpop.f32.mrb[122].mxu0  ;;  %13491 = vmatprep.mubr.msk.f32.mxu1 %vm21150_vm4, %v10055_v51  ;;  %13514 = vmatprep.mubr.msk.f32.mxu0 %vm21151_vm0, %v10055_v51  ;;  %vm21161_vm4 = vmmov %vm21151_vm0 }
0x2814   :  { %v10020_v47 = vadd.f32 %v13462_v9, %v12123_v46  ;;  %v10014_v44 = vpop.f32.mrb[123].mxu0  ;;  %13492 = vmatmul.mubr.msk.f32.gmra.mrb[126].mxu1 %vm21152_vm9, %v10056_v37  ;;  %13515 = vmatmul.mubr.msk.f32.gmra.mrb[130].mxu0 %vm21153_vm11, %v10056_v37  ;;  %vm21162_vm9 = vmmov %vm21151_vm0 }
0x2815   :  { %v10015_v21 = vadd.f32 %v12123_v46, %v10014_v44  ;;  %vm21163_vm11 = vmmov %vm21151_vm0 }
0x2816   :  { %v10048_v62 = vmax.f32 %v10020_v47, 0.0 }
0x2817   :  { %v10047_v59 = vmax.f32 %v10015_v21, 0.0 }
0x2818   :  { %v10058_v58 = vadd.f32 %v10048_v62, %v20210_v4 }
0x2819   :  { %v10057_v20 = vadd.f32 %v10047_v59, %v20205_v60 }
0x281b   :  { %13494 = vmatprep.mubr.msk.f32.mxu1 %vm21154_vm5, %v10057_v20  ;;  %13517 = vmatprep.mubr.msk.f32.mxu0 %vm21155_vm6, %v10057_v20  ;;  %vm21164_vm5 = vmmov %vm21151_vm0  ;;  %vm21166_vm6 = vcmask 64512  }
0x281c   :  { %13495 = vmatmul.mubr.msk.f32.gmra.mrb[128].mxu1 %vm21156_vm2, %v10058_v58  ;;  %13518 = vmatmul.mubr.msk.f32.gmra.mrb[132].mxu0 %vm21157_vm3, %v10058_v58  ;;  %vm10512_vm2 = vcmask 606208   ;;  %vm21167_vm3 = vmmov %vm21166_vm6 }
0x2838   :  { %v13465_v40 = vpop.f32.mrb[124].mxu0 }
0x2839   :  { %v10030_v25 = vadd.f32 %v13465_v40, %v12123_v46  ;;  %v10024_v6 = vpop.f32.mrb[125].mxu0 }
0x283a   :  { %v10025_v7 = vadd.f32 %v12123_v46, %v10024_v6 }
0x283b   :  { %v10050_v16 = vmax.f32 %v10030_v25, 0.0 }
0x283c   :  { %v10049_v50 = vmax.f32 %v10025_v7, 0.0 }
0x283d   :  { %v10060_v60 = vadd.f32 %v10050_v16, %v20234_v2  ;;  %v20301_v2 = vpop.f32.mrb[122].mxu1 }
0x283e   :  { %v10059_v38 = vadd.f32 %v10049_v50, %v20229_v5  ;;  %v13479_v17 = vpop.f32.mrb[123].mxu1 }
0x2840   :  { %v13468_v57 = vpop.f32.mrb[126].mxu0  ;;  %13497 = vmatprep.mubr.msk.f32.mxu1 %vm21158_vm12, %v10059_v38  ;;  %13520 = vmatprep.mubr.msk.f32.mxu0 %vm21159_vm14, %v10059_v38  ;;  %vm21168_vm12 = vmmov %vm21167_vm3 }
0x2841   :  { %v10040_v4 = vadd.f32 %v13468_v57, %v12123_v46  ;;  %v10034_v63 = vpop.f32.mrb[127].mxu0  ;;  %13498 = vmatmul.mubr.msk.f32.gmra.mrb[130].mxu1 %vm21160_vm15, %v10060_v60  ;;  %13521 = vmatmul.mubr.msk.f32.gmra.mrb[134].mxu0 %vm21161_vm4, %v10060_v60  ;;  %vm21169_vm14 = vmmov %vm21167_vm3 }
0x2842   :  { %v10035_v45 = vadd.f32 %v12123_v46, %v10034_v63  ;;  %vm21177_vm15 = vmmov %vm21151_vm0 }
0x2843   :  { %v10052_v3 = vmax.f32 %v10040_v4, 0.0 }
0x2844   :  { %v10051_v55 = vmax.f32 %v10035_v45, 0.0 }
0x2845   :  { %v10062_v5 = vadd.f32 %v10052_v3, %v20258_v23 }
0x2846   :  { %v10061_v0 = vadd.f32 %v10051_v55, %v20253_v19 }
0x2848   :  { %13500 = vmatprep.mubr.msk.f32.mxu1 %vm21151_vm0, %v10061_v0  ;;  %13523 = vmatprep.mubr.msk.f32.mxu0 %vm21162_vm9, %v10061_v0 }
0x2849   :  { %13501 = vmatmul.mubr.msk.f32.gmra.mrb[132].mxu1 %vm21163_vm11, %v10062_v5  ;;  %13524 = vmatmul.mubr.msk.f32.gmra.mrb[136].mxu0 %vm21164_vm5, %v10062_v5 }
0x284a   :  { %13546 = vmatprep.mubr.msk.f32.mxu1 %vm16433_vm7, %v16434_v30  ;;  %13569 = vmatprep.mubr.msk.f32.mxu0 %vm16433_vm7, %v16434_v30 }
0x28df   :  { %v13490_v36 = vpop.f32.mrb[124].mxu1  ;;  %v13513_v19 = vpop.f32.mrb[128].mxu0 }
0x28e0   :  { %v10244_v23 = vadd.f32 %v13490_v36, %v20303_v29  ;;  %v10365_v41 = vadd.f32 %v13513_v19, %v20305_v26  ;;  %v10238_v13 = vpop.f32.mrb[125].mxu1  ;;  %v10359_v34 = vpop.f32.mrb[129].mxu0 }
0x28e1   :  { %v10239_v14 = vadd.f32 %v20303_v29, %v10238_v13  ;;  %v10360_v18 = vadd.f32 %v20305_v26, %v10359_v34 }
0x28e3   :  { %v14180_v31 = vpack.c.bf16 %v10244_v23, %v10239_v14  ;;  %v14200_v42 = vpack.c.bf16 %v10365_v41, %v10360_v18  ;;  %v20311_v53 = vpack.i.bf16 %v10244_v23, %v10239_v14  ;;  %v20313_v35 = vpack.i.bf16 %v10365_v41, %v10360_v18  ;;  %v928_v41 = vld [vmem:[#allocation60] sm:$0x1] }
0x28e5   :  { %14182 = vmatpush3.bf16.xpose.msk.msra.mxu1 %vm18350_vm10, %v14180_v31  ;;  %14201 = vmatpush3.bf16.msra.mxu0 %v14200_v42 }
0x28e6   :  { %14183 = vmatprep.subr.bf16.mxu1 %v16432_v43  ;;  %14202 = vmatprep.subr.bf16.mxu0 %v16432_v43 }
0x28e7   :  { %v13493_v49 = vpop.f32.mrb[126].mxu1  ;;  %v13516_v10 = vpop.f32.mrb[130].mxu0 }
0x28e8   :  { %v10254_v15 = vadd.f32 %v13493_v49, %v20303_v29  ;;  %v10375_v46 = vadd.f32 %v13516_v10, %v20305_v26  ;;  %v10248_v48 = vpop.f32.mrb[127].mxu1  ;;  %v10369_v39 = vpop.f32.mrb[131].mxu0 }
0x28e9   :  { %v10249_v22 = vadd.f32 %v20303_v29, %v10248_v48  ;;  %v10370_v54 = vadd.f32 %v20305_v26, %v10369_v39 }
0x28eb   :  { %v14184_v32 = vpack.c.bf16 %v10254_v15, %v10249_v22  ;;  %v14203_v8 = vpack.c.bf16 %v10375_v46, %v10370_v54  ;;  %v20323_v52 = vpack.i.bf16 %v10254_v15, %v10249_v22  ;;  %v20325_v1 = vpack.i.bf16 %v10375_v46, %v10370_v54 }
0x28ed   :  { %14186 = vmatpush3.bf16.xpose.msk.msra.mxu1 %vm18350_vm10, %v14184_v32  ;;  %14204 = vmatpush3.bf16.msra.mxu0 %v14203_v8 }
0x28ee   :  { %14187 = vmatprep.subr.bf16.mxu1 %v16432_v43  ;;  %14205 = vmatprep.subr.bf16.mxu0 %v16432_v43 }
0x28ef   :  { %v13496_v61 = vpop.f32.mrb[128].mxu1  ;;  %v13519_v56 = vpop.f32.mrb[132].mxu0 }
0x28f0   :  { %v10264_v28 = vadd.f32 %v13496_v61, %v20303_v29  ;;  %v10385_v27 = vadd.f32 %v13519_v56, %v20305_v26  ;;  %v10258_v24 = vpop.f32.mrb[129].mxu1  ;;  %v10379_v11 = vpop.f32.mrb[133].mxu0 }
0x28f1   :  { %v10259_v51 = vadd.f32 %v20303_v29, %v10258_v24  ;;  %v10380_v37 = vadd.f32 %v20305_v26, %v10379_v11 }
0x28f3   :  { %v14188_v9 = vpack.c.bf16 %v10264_v28, %v10259_v51  ;;  %v14206_v47 = vpack.c.bf16 %v10385_v27, %v10380_v37  ;;  %v20335_v44 = vpack.i.bf16 %v10264_v28, %v10259_v51  ;;  %v20337_v21 = vpack.i.bf16 %v10385_v27, %v10380_v37 }
0x28f5   :  { %14190 = vmatpush3.bf16.xpose.msk.msra.mxu1 %vm18350_vm10, %v14188_v9  ;;  %14207 = vmatpush3.bf16.msra.mxu0 %v14206_v47 }
0x28f6   :  { %14191 = vmatprep.subr.bf16.mxu1 %v16432_v43  ;;  %14208 = vmatprep.subr.bf16.mxu0 %v16432_v43 }
0x2914   :  { %v13499_v62 = vpop.f32.mrb[130].mxu1  ;;  %v13522_v59 = vpop.f32.mrb[134].mxu0 }
0x2915   :  { %v10274_v20 = vadd.f32 %v13499_v62, %v20303_v29  ;;  %v10395_v58 = vadd.f32 %v13522_v59, %v20305_v26  ;;  %v10268_v40 = vpop.f32.mrb[131].mxu1  ;;  %v10389_v25 = vpop.f32.mrb[135].mxu0 }
0x2916   :  { %v10269_v6 = vadd.f32 %v20303_v29, %v10268_v40  ;;  %v10390_v7 = vadd.f32 %v20305_v26, %v10389_v25 }
0x2918   :  { %v14192_v16 = vpack.c.bf16 %v10274_v20, %v10269_v6  ;;  %v14209_v50 = vpack.c.bf16 %v10395_v58, %v10390_v7  ;;  %v20347_v38 = vpack.i.bf16 %v10274_v20, %v10269_v6  ;;  %v20349_v60 = vpack.i.bf16 %v10395_v58, %v10390_v7 }
0x291a   :  { %14194 = vmatpush3.bf16.xpose.msk.msra.mxu1 %vm18350_vm10, %v14192_v16  ;;  %14210 = vmatpush3.bf16.msra.mxu0 %v14209_v50 }
0x291b   :  { %14195 = vmatprep.subr.bf16.mxu1 %v16432_v43  ;;  %14211 = vmatprep.subr.bf16.mxu0 %v16432_v43 }
0x291c   :  { %v13502_v57 = vpop.f32.mrb[132].mxu1  ;;  %v13525_v4 = vpop.f32.mrb[136].mxu0 }
0x291d   :  { %v10284_v63 = vadd.f32 %v13502_v57, %v20303_v29  ;;  %v10405_v45 = vadd.f32 %v13525_v4, %v20305_v26  ;;  %v10278_v3 = vpop.f32.mrb[133].mxu1  ;;  %v10399_v55 = vpop.f32.mrb[137].mxu0 }
0x291e   :  { %v10279_v0 = vadd.f32 %v20303_v29, %v10278_v3  ;;  %v10400_v5 = vadd.f32 %v20305_v26, %v10399_v55  ;;  %v20370_v29 = vadd.f32 %v20301_v2, %v928_v41 }
0x2920   :  { %v14196_v17 = vpack.c.bf16 %v10284_v63, %v10279_v0  ;;  %v14212_v36 = vpack.c.bf16 %v10405_v45, %v10400_v5  ;;  %v20359_v19 = vpack.i.bf16 %v10284_v63, %v10279_v0  ;;  %v20361_v23 = vpack.i.bf16 %v10405_v45, %v10400_v5 }
0x2922   :  { %14198 = vmatpush3.bf16.xpose.msk.msra.mxu1 %vm18350_vm10, %v14196_v17  ;;  %14214 = vmatpush3.bf16.msk.msra.mxu0 %vm19430_vm1, %v14212_v36 }
0x2923   :  { %14215 = vmatprep.subr.bf16.mxu0 %v16432_v43  ;;  %14235 = vmatprep.subr.bf16.mxu1 %v16432_v43 }
0x2929   :  { %13547 = vmatmul.mubr.msk.f32.vlgmr.msra.gmra.mrb[134].mxu1 %vm21166_vm6, %v20370_v29 }
0x292a   :  { %13615 = vmatprep.mubr.msk.f32.mxu1 %vm16433_vm7, %v16434_v30 }
0x29fc   :  { %v10507_v26 = vpop.f32.mrb[134].mxu1 }
0x29fd   :  { %v10511_v13 = vmul.f32 0.17677669, %v10507_v26  ;;  %v13548_v34 = vpop.f32.mrb[135].mxu1 }
0x29ff   :  { %v10513_v14 = vsel %vm10512_vm2, %v10511_v13, -inf }
0x2a00   :  { %10514 = vmax.xlane.f32.xlu1 %v10513_v14 }
0x2a11   :  { %14672 = vrot.lane.b32.xlu1 %v20323_v52, %s16429_s10 }
0x2a15   :  { %14677 = vrot.lane.b32.xlu1 %v20335_v44, %s16429_s10 }
0x2a19   :  { %14687 = vrot.lane.b32.xlu1 %v20359_v19, %s16429_s10 }
0x2a8d   :  { %v10515_v2 = vpop.xlane.xlu1 %10514 }
0x2a8e   :  { %v10516_v18 = vsub.f32 %v10511_v13, %v10515_v2 }
0x2a90   :  { %v10517_v31 = vmul.f32 1.442695, %v10516_v18 }
0x2a91   :  { %v14673_v61 = vpop.permute.xlu1 %14672 }
0x2a92   :  { %15188 = vpow2.f32 %v10517_v31  ;;  %v14675_v28 = vunpack.i.h.bf16 %v14673_v61  ;;  %v14674_v27 = vunpack.i.l.bf16 %v14673_v61 }
0x2a94   :  { %v14220_v37 = vpack.c.bf16 %v14675_v28, %v14674_v27 }
0x2a95   :  { %v14678_v9 = vpop.permute.xlu1 %14677 }
0x2a96   :  { %v14680_v47 = vunpack.i.h.bf16 %v14678_v9  ;;  %v14679_v62 = vunpack.i.l.bf16 %v14678_v9 }
0x2a98   :  { %v14224_v59 = vpack.c.bf16 %v14680_v47, %v14679_v62 }
0x2a99   :  { %v14688_v25 = vpop.permute.xlu1 %14687 }
0x2a9a   :  { %v14690_v6 = vunpack.i.h.bf16 %v14688_v25  ;;  %v14689_v7 = vunpack.i.l.bf16 %v14688_v25 }
0x2a9c   :  { %v15189_v42 = vpop.eup %15188  ;;  %v14232_v16 = vpack.c.bf16 %v14690_v6, %v14689_v7 }
0x2a9d   :  { %v10519_v49 = vsel %vm10512_vm2, %v15189_v42, 0.0 }
0x2a9e   :  { %10520 = vadd.xlane.f32.xlu0 %v10519_v49 }
0x2ab4   :  { %14667 = vrot.lane.b32.xlu0 %v20311_v53, %s16429_s10 }
0x2ab8   :  { %14682 = vrot.lane.b32.xlu0 %v20347_v38, %s16429_s10 }
0x2abc   :  { %10601 = vrot.lane.b32.xlu0 %v20370_v29, %s16429_s10 }
0x2ac0   :  { %14692 = vrot.lane.b32.xlu0 %v20313_v35, %s16429_s10 }
0x2ac4   :  { %14707 = vrot.lane.b32.xlu0 %v20349_v60, %s16429_s10 }
0x2b2b   :  { %v10521_v10 = vpop.xlane.xlu0 %10520 }
0x2b2c   :  { %15190 = vrcp.f32 %v10521_v10 }
0x2b2f   :  { %v14668_v15 = vpop.permute.xlu0 %14667 }
0x2b30   :  { %v14670_v48 = vunpack.i.h.bf16 %v14668_v15  ;;  %v14669_v39 = vunpack.i.l.bf16 %v14668_v15 }
0x2b32   :  { %v14216_v8 = vpack.c.bf16 %v14670_v48, %v14669_v39 }
0x2b33   :  { %v14683_v46 = vpop.permute.xlu0 %14682 }
0x2b34   :  { %v14685_v20 = vunpack.i.h.bf16 %v14683_v46  ;;  %v14684_v58 = vunpack.i.l.bf16 %v14683_v46 }
0x2b36   :  { %v15191_v22 = vpop.eup %15190  ;;  %v14228_v40 = vpack.c.bf16 %v14685_v20, %v14684_v58 }
0x2b37   :  { %v10523_v54 = vmul.f32 %v15191_v22, %v15189_v42  ;;  %v10602_v32 = vpop.permute.xlu0 %10601 }
0x2b39   :  { %13570 = vmatmul.mubr.msk.f32.vlgmr.msra.gmra.mrb[138].mxu0 %vm7959_vm13, %v10523_v54 }
0x2b3a   :  { %14218 = vmatpush3.bf16.xpose.msk.msra.mxu0 %vm18350_vm10, %v14216_v8  ;;  %13592 = vmatprep.mubr.msk.f32.mxu0 %vm16433_vm7, %v16434_v30 }
0x2b3b   :  { %v14693_v56 = vpop.permute.xlu0 %14692  ;;  %14219 = vmatprep.subr.bf16.mxu0 %v16432_v43 }
0x2b3c   :  { %v14695_v24 = vunpack.i.h.bf16 %v14693_v56  ;;  %v14694_v11 = vunpack.i.l.bf16 %v14693_v56 }
0x2b3e   :  { %v14236_v51 = vpack.c.bf16 %v14695_v24, %v14694_v11 }
0x2b3f   :  { %v14708_v13 = vpop.permute.xlu0 %14707 }
0x2b40   :  { %14237 = vmatpush3.bf16.msra.mxu1 %v14236_v51  ;;  %v14710_v18 = vunpack.i.h.bf16 %v14708_v13  ;;  %v14709_v31 = vunpack.i.l.bf16 %v14708_v13 }
0x2b41   :  { %14238 = vmatprep.subr.bf16.mxu1 %v16432_v43 }
0x2b42   :  { %14222 = vmatpush3.bf16.xpose.msk.msra.mxu0 %vm18350_vm10, %v14220_v37  ;;  %v14245_v15 = vpack.c.bf16 %v14710_v18, %v14709_v31 }
0x2b43   :  { %14223 = vmatprep.subr.bf16.mxu0 %v16432_v43 }
0x2b4a   :  { %14226 = vmatpush3.bf16.xpose.msk.msra.mxu0 %vm18350_vm10, %v14224_v59 }
0x2b4b   :  { %14227 = vmatprep.subr.bf16.mxu0 %v16432_v43 }
0x2b52   :  { %14230 = vmatpush3.bf16.xpose.msk.msra.mxu0 %vm18350_vm10, %v14228_v40 }
0x2b53   :  { %14231 = vmatprep.subr.bf16.mxu0 %v16432_v43 }
0x2b5a   :  { %14234 = vmatpush3.bf16.xpose.msk.msra.mxu0 %vm18350_vm10, %v14232_v16 }
0x2b5b   :  { %14271 = vmatprep.subr.bf16.mxu0 %v16432_v43 }
0x2b61   :  { %13593 = vmatmul.mubr.msk.f32.vlgmr.msra.gmra.mrb[140].mxu0 %vm21167_vm3, %v10602_v32 }
0x2b62   :  { %13661 = vmatprep.mubr.msk.f32.mxu0 %vm16433_vm7, %v16434_v30 }
0x2c0c   :  { %v20416_v50 = vpop.f32.mrb[138].mxu0 }
0x2c0d   :  { %v13571_v57 = vpop.f32.mrb[139].mxu0 }
0x2c34   :  { %v10711_v4 = vpop.f32.mrb[140].mxu0 }
0x2c35   :  { %v10715_v63 = vmul.f32 0.17677669, %v10711_v4  ;;  %v13594_v45 = vpop.f32.mrb[141].mxu0 }
0x2c37   :  { %v10716_v3 = vsel %vm10512_vm2, %v10715_v63, -inf }
0x2c38   :  { %10717 = vmax.xlane.f32.xlu1 %v10716_v3 }
0x2c49   :  { %14697 = vrot.lane.b32.xlu1 %v20325_v1, %s16429_s10 }
0x2c4d   :  { %14702 = vrot.lane.b32.xlu1 %v20337_v21, %s16429_s10 }
0x2c51   :  { %14712 = vrot.lane.b32.xlu1 %v20361_v23, %s16429_s10 }
0x2c55   :  { %14722 = vrot.lane.b32.xlu1 %v20323_v52, %s16428_s8 }
0x2c59   :  { %14732 = vrot.lane.b32.xlu1 %v20347_v38, %s16428_s8 }
0x2c5d   :  { %10845 = vrot.lane.b32.xlu1 %v20370_v29, %s16428_s8 }
0x2c61   :  { %14747 = vrot.lane.b32.xlu1 %v20325_v1, %s16428_s8 }
0x2c65   :  { %14757 = vrot.lane.b32.xlu1 %v20349_v60, %s16428_s8 }
0x2cc5   :  { %v10718_v55 = vpop.xlane.xlu1 %10717 }
0x2cc6   :  { %v10719_v0 = vsub.f32 %v10715_v63, %v10718_v55 }
0x2cc8   :  { %v10720_v5 = vmul.f32 1.442695, %v10719_v0 }
0x2cc9   :  { %v14698_v17 = vpop.permute.xlu1 %14697 }
0x2cca   :  { %15192 = vpow2.f32 %v10720_v5  ;;  %v14700_v36 = vunpack.i.h.bf16 %v14698_v17  ;;  %v14699_v41 = vunpack.i.l.bf16 %v14698_v17 }
0x2ccc   :  { %v14239_v26 = vpack.c.bf16 %v14700_v36, %v14699_v41 }
0x2ccd   :  { %v14703_v34 = vpop.permute.xlu1 %14702 }
0x2cce   :  { %v14705_v14 = vunpack.i.h.bf16 %v14703_v34  ;;  %v14704_v2 = vunpack.i.l.bf16 %v14703_v34  ;;  %14240 = vmatpush3.bf16.msra.mxu1 %v14239_v26 }
0x2ccf   :  { %14241 = vmatprep.subr.bf16.mxu1 %v16432_v43 }
0x2cd0   :  { %v14242_v42 = vpack.c.bf16 %v14705_v14, %v14704_v2 }
0x2cd1   :  { %v14713_v49 = vpop.permute.xlu1 %14712 }
0x2cd2   :  { %14243 = vmatpush3.bf16.msra.mxu1 %v14242_v42  ;;  %v14715_v46 = vunpack.i.h.bf16 %v14713_v49  ;;  %v14714_v48 = vunpack.i.l.bf16 %v14713_v49 }
0x2cd3   :  { %14244 = vmatprep.subr.bf16.mxu1 %v16432_v43 }
0x2cd4   :  { %v15193_v10 = vpop.eup %15192  ;;  %v14248_v22 = vpack.c.bf16 %v14715_v46, %v14714_v48 }
0x2cd5   :  { %v10722_v39 = vsel %vm10512_vm2, %v15193_v10, 0.0  ;;  %v14723_v24 = vpop.permute.xlu1 %14722 }
0x2cd6   :  { %10723 = vadd.xlane.f32.xlu0 %v10722_v39  ;;  %14246 = vmatpush3.bf16.msra.mxu1 %v14245_v15  ;;  %v14725_v11 = vunpack.i.h.bf16 %v14723_v24  ;;  %v14724_v51 = vunpack.i.l.bf16 %v14723_v24 }
0x2cd7   :  { %14247 = vmatprep.subr.bf16.mxu1 %v16432_v43 }
0x2cd8   :  { %v14256_v37 = vpack.c.bf16 %v14725_v11, %v14724_v51 }
0x2cd9   :  { %v14733_v20 = vpop.permute.xlu1 %14732 }
0x2cda   :  { %14250 = vmatpush3.bf16.msk.msra.mxu1 %vm19430_vm1, %v14248_v22  ;;  %v14735_v58 = vunpack.i.h.bf16 %v14733_v20  ;;  %v14734_v40 = vunpack.i.l.bf16 %v14733_v20 }
0x2cdb   :  { %14251 = vmatprep.subr.bf16.mxu1 %v16432_v43 }
0x2cdc   :  { %v14264_v25 = vpack.c.bf16 %v14735_v58, %v14734_v40 }
0x2cdd   :  { %v10846_v4 = vpop.permute.xlu1 %10845 }
0x2ce1   :  { %v14748_v26 = vpop.permute.xlu1 %14747 }
0x2ce2   :  { %v14750_v2 = vunpack.i.h.bf16 %v14748_v26  ;;  %v14749_v18 = vunpack.i.l.bf16 %v14748_v26 }
0x2cec   :  { %14717 = vrot.lane.b32.xlu0 %v20311_v53, %s16428_s8 }
0x2cf0   :  { %14727 = vrot.lane.b32.xlu0 %v20335_v44, %s16428_s8 }
0x2cf4   :  { %14737 = vrot.lane.b32.xlu0 %v20359_v19, %s16428_s8 }
0x2d63   :  { %v10724_v54 = vpop.xlane.xlu0 %10723 }
0x2d64   :  { %15194 = vrcp.f32 %v10724_v54 }
0x2d67   :  { %v14718_v32 = vpop.permute.xlu0 %14717 }
0x2d68   :  { %v14720_v8 = vunpack.i.h.bf16 %v14718_v32  ;;  %v14719_v61 = vunpack.i.l.bf16 %v14718_v32 }
0x2d6a   :  { %v14252_v27 = vpack.c.bf16 %v14720_v8, %v14719_v61 }
0x2d6b   :  { %v14728_v9 = vpop.permute.xlu0 %14727 }
0x2d6c   :  { %v14730_v47 = vunpack.i.h.bf16 %v14728_v9  ;;  %v14729_v62 = vunpack.i.l.bf16 %v14728_v9 }
0x2d6e   :  { %v15195_v56 = vpop.eup %15194  ;;  %v14260_v59 = vpack.c.bf16 %v14730_v47, %v14729_v62 }
0x2d6f   :  { %v10726_v28 = vmul.f32 %v15195_v56, %v15193_v10  ;;  %v14738_v6 = vpop.permute.xlu0 %14737  ;;  %v14758_v10 = vpop.permute.xlu1 %14757 }
0x2d70   :  { %v14740_v7 = vunpack.i.h.bf16 %v14738_v6  ;;  %v14739_v16 = vunpack.i.l.bf16 %v14738_v6  ;;  %v14760_v46 = vunpack.i.h.bf16 %v14758_v10  ;;  %v14759_v48 = vunpack.i.l.bf16 %v14758_v10 }
0x2d71   :  { %13616 = vmatmul.mubr.msk.f32.vlgmr.msra.gmra.mrb[136].mxu1 %vm7959_vm13, %v10726_v28 }
0x2d72   :  { %14254 = vmatpush3.bf16.xpose.msk.msra.mxu1 %vm18350_vm10, %v14252_v27  ;;  %13638 = vmatprep.mubr.msk.f32.mxu1 %vm16433_vm7, %v16434_v30  ;;  %v14268_v57 = vpack.c.bf16 %v14740_v7, %v14739_v16  ;;  %v14281_v32 = vpack.c.bf16 %v14760_v46, %v14759_v48 }
0x2d73   :  { %14255 = vmatprep.subr.bf16.mxu1 %v16432_v43 }
0x2d7a   :  { %14258 = vmatpush3.bf16.xpose.msk.msra.mxu1 %vm18350_vm10, %v14256_v37 }
0x2d7b   :  { %14259 = vmatprep.subr.bf16.mxu1 %v16432_v43 }
0x2d82   :  { %14262 = vmatpush3.bf16.xpose.msk.msra.mxu1 %vm18350_vm10, %v14260_v59 }
0x2d83   :  { %14263 = vmatprep.subr.bf16.mxu1 %v16432_v43 }
0x2d8a   :  { %14266 = vmatpush3.bf16.xpose.msk.msra.mxu1 %vm18350_vm10, %v14264_v25 }
0x2d8b   :  { %14267 = vmatprep.subr.bf16.mxu1 %v16432_v43 }
0x2d92   :  { %14270 = vmatpush3.bf16.xpose.msk.msra.mxu1 %vm18350_vm10, %v14268_v57 }
0x2d93   :  { %14307 = vmatprep.subr.bf16.mxu1 %v16432_v43 }
0x2d99   :  { %13639 = vmatmul.mubr.msk.f32.vlgmr.msra.gmra.mrb[138].mxu1 %vm21168_vm12, %v10846_v4 }
0x2d9a   :  { %13707 = vmatprep.mubr.msk.f32.mxu1 %vm16433_vm7, %v16434_v30 }
0x2e44   :  { %v20469_v63 = vpop.f32.mrb[136].mxu1 }
0x2e45   :  { %v13617_v45 = vpop.f32.mrb[137].mxu1 }
0x2e6c   :  { %v10955_v3 = vpop.f32.mrb[138].mxu1 }
0x2e6d   :  { %v10959_v55 = vmul.f32 0.17677669, %v10955_v3  ;;  %v13640_v0 = vpop.f32.mrb[139].mxu1 }
0x2e6f   :  { %v10960_v5 = vsel %vm10512_vm2, %v10959_v55, -inf }
0x2e70   :  { %10961 = vmax.xlane.f32.xlu0 %v10960_v5 }
0x2e86   :  { %14742 = vrot.lane.b32.xlu0 %v20313_v35, %s16428_s8 }
0x2e8a   :  { %14752 = vrot.lane.b32.xlu0 %v20337_v21, %s16428_s8 }
0x2e8e   :  { %14762 = vrot.lane.b32.xlu0 %v20361_v23, %s16428_s8 }
0x2e92   :  { %14772 = vrot.lane.b32.xlu0 %v20323_v52, %s16430_s30 }
0x2e96   :  { %14782 = vrot.lane.b32.xlu0 %v20347_v38, %s16430_s30  ;;  %v14275_v38 = vpack.c.bf16 %v14750_v2, %v14749_v18 }
0x2e9a   :  { %11080 = vrot.lane.b32.xlu0 %v20370_v29, %s16430_s30 }
0x2e9e   :  { %14792 = vrot.lane.b32.xlu0 %v20313_v35, %s16430_s30 }
0x2efd   :  { %v10962_v17 = vpop.xlane.xlu0 %10961 }
0x2efe   :  { %v10963_v36 = vsub.f32 %v10959_v55, %v10962_v17 }
0x2f00   :  { %v10964_v41 = vmul.f32 1.442695, %v10963_v36 }
0x2f01   :  { %v14743_v13 = vpop.permute.xlu0 %14742 }
0x2f02   :  { %15196 = vpow2.f32 %v10964_v41  ;;  %v14745_v34 = vunpack.i.h.bf16 %v14743_v13  ;;  %v14744_v14 = vunpack.i.l.bf16 %v14743_v13 }
0x2f04   :  { %v14272_v52 = vpack.c.bf16 %v14745_v34, %v14744_v14 }
0x2f05   :  { %v14753_v31 = vpop.permute.xlu0 %14752 }
0x2f06   :  { %14273 = vmatpush3.bf16.msra.mxu0 %v14272_v52  ;;  %v14755_v42 = vunpack.i.h.bf16 %v14753_v31  ;;  %v14754_v49 = vunpack.i.l.bf16 %v14753_v31 }
0x2f07   :  { %14274 = vmatprep.subr.bf16.mxu0 %v16432_v43 }
0x2f08   :  { %v14278_v39 = vpack.c.bf16 %v14755_v42, %v14754_v49 }
0x2f09   :  { %v14763_v35 = vpop.permute.xlu0 %14762 }
0x2f0a   :  { %14276 = vmatpush3.bf16.msra.mxu0 %v14275_v38  ;;  %v14765_v8 = vunpack.i.h.bf16 %v14763_v35  ;;  %v14764_v61 = vunpack.i.l.bf16 %v14763_v35 }
0x2f0b   :  { %14277 = vmatprep.subr.bf16.mxu0 %v16432_v43 }
0x2f0c   :  { %v15197_v15 = vpop.eup %15196  ;;  %v14284_v28 = vpack.c.bf16 %v14765_v8, %v14764_v61 }
0x2f0d   :  { %v14773_v22 = vpop.permute.xlu0 %14772  ;;  %v10966_v54 = vsel %vm10512_vm2, %v15197_v15, 0.0 }
0x2f0e   :  { %10967 = vadd.xlane.f32.xlu1 %v10966_v54  ;;  %14279 = vmatpush3.bf16.msra.mxu0 %v14278_v39 }
0x2f0f   :  { %14280 = vmatprep.subr.bf16.mxu0 %v16432_v43 }
0x2f11   :  { %v14783_v56 = vpop.permute.xlu0 %14782 }
0x2f12   :  { %14282 = vmatpush3.bf16.msra.mxu0 %v14281_v32  ;;  %v14785_v57 = vunpack.i.h.bf16 %v14783_v56  ;;  %v14784_v4 = vunpack.i.l.bf16 %v14783_v56  ;;  %v925_v56 = vld [vmem:[#allocation59 + $0x8] sm:$0xff] }
0x2f13   :  { %14283 = vmatprep.subr.bf16.mxu0 %v16432_v43 }
0x2f14   :  { %v14300_v45 = vpack.c.bf16 %v14785_v57, %v14784_v4  ;;  %v835_v57 = vld [vmem:[%s21171_s20 + $0x8] sm:$0xff] }
0x2f15   :  { %v11081_v27 = vpop.permute.xlu0 %11080 }
0x2f16   :  { %14286 = vmatpush3.bf16.msk.msra.mxu0 %vm19430_vm1, %v14284_v28 }
0x2f17   :  { %14287 = vmatprep.subr.bf16.mxu0 %v16432_v43 }
0x2f19   :  { %v14793_v24 = vpop.permute.xlu0 %14792 }
0x2f1a   :  { %v14795_v11 = vunpack.i.h.bf16 %v14793_v24  ;;  %v14794_v51 = vunpack.i.l.bf16 %v14793_v24  ;;  %v927_v24 = vld [vmem:[#allocation59 + $0x18] sm:$0xff] }
0x2f1c   :  { %v14308_v37 = vpack.c.bf16 %v14795_v11, %v14794_v51 }
0x2f1e   :  { %14309 = vmatpush3.bf16.msra.mxu1 %v14308_v37 }
0x2f1f   :  { %14767 = vrot.lane.b32.xlu1 %v20311_v53, %s16430_s30  ;;  %14310 = vmatprep.subr.bf16.mxu1 %v16432_v43  ;;  %v14775_v53 = vunpack.i.h.bf16 %v14773_v22 }
0x2f23   :  { %14777 = vrot.lane.b32.xlu1 %v20335_v44, %s16430_s30  ;;  %v14774_v44 = vunpack.i.l.bf16 %v14773_v22 }
0x2f27   :  { %14787 = vrot.lane.b32.xlu1 %v20359_v19, %s16430_s30  ;;  %v14292_v19 = vpack.c.bf16 %v14775_v53, %v14774_v44 }
0x2f9b   :  { %v10968_v9 = vpop.xlane.xlu1 %10967 }
0x2f9c   :  { %15198 = vrcp.f32 %v10968_v9 }
0x2f9f   :  { %v14768_v47 = vpop.permute.xlu1 %14767 }
0x2fa0   :  { %v14770_v62 = vunpack.i.h.bf16 %v14768_v47  ;;  %v14769_v59 = vunpack.i.l.bf16 %v14768_v47  ;;  %v10600_v47 = vadd.f32 %v20416_v50, %v20370_v29 }
0x2fa2   :  { %v14288_v40 = vpack.c.bf16 %v14770_v62, %v14769_v59 }
0x2fa3   :  { %v14778_v25 = vpop.permute.xlu1 %14777 }
0x2fa4   :  { %v14780_v6 = vunpack.i.h.bf16 %v14778_v25  ;;  %v14779_v7 = vunpack.i.l.bf16 %v14778_v25 }
0x2fa6   :  { %v15199_v20 = vpop.eup %15198  ;;  %v14296_v16 = vpack.c.bf16 %v14780_v6, %v14779_v7 }
0x2fa7   :  { %v10970_v58 = vmul.f32 %v15199_v20, %v15197_v15  ;;  %v14788_v3 = vpop.permute.xlu1 %14787 }
0x2fa8   :  { %v14790_v55 = vunpack.i.h.bf16 %v14788_v3  ;;  %v14789_v0 = vunpack.i.l.bf16 %v14788_v3 }
0x2fa9   :  { %13662 = vmatmul.mubr.msk.f32.vlgmr.msra.gmra.mrb[142].mxu0 %vm7959_vm13, %v10970_v58 }
0x2faa   :  { %14290 = vmatpush3.bf16.xpose.msk.msra.mxu0 %vm18350_vm10, %v14288_v40  ;;  %13684 = vmatprep.mubr.msk.f32.mxu0 %vm16433_vm7, %v16434_v30  ;;  %v14304_v5 = vpack.c.bf16 %v14790_v55, %v14789_v0 }
0x2fab   :  { %14291 = vmatprep.subr.bf16.mxu0 %v16432_v43 }
0x2fb2   :  { %14294 = vmatpush3.bf16.xpose.msk.msra.mxu0 %vm18350_vm10, %v14292_v19 }
0x2fb3   :  { %14295 = vmatprep.subr.bf16.mxu0 %v16432_v43 }
0x2fba   :  { %14298 = vmatpush3.bf16.xpose.msk.msra.mxu0 %vm18350_vm10, %v14296_v16  ;;  %v834_v16 = vld [vmem:[%s21171_s20] sm:$0xff] }
0x2fbb   :  { %14299 = vmatprep.subr.bf16.mxu0 %v16432_v43 }
0x2fc2   :  { %14302 = vmatpush3.bf16.xpose.msk.msra.mxu0 %vm18350_vm10, %v14300_v45  ;;  %v923_v45 = vld [vmem:[#allocation57] sm:$0x1] }
0x2fc3   :  { %14303 = vmatprep.subr.bf16.mxu0 %v16432_v43 }
0x2fca   :  { %14306 = vmatpush3.bf16.xpose.msk.msra.mxu0 %vm18350_vm10, %v14304_v5  ;;  %vm21172_vm10 = vmmov %vm21167_vm3 }
0x2fcb   :  { %14335 = vmatprep.subr.bf16.mxu0 %v16432_v43 }
0x2fd1   :  { %13685 = vmatmul.mubr.msk.f32.vlgmr.msra.gmra.mrb[144].mxu0 %vm21169_vm14, %v11081_v27  ;;  %v926_v27 = vld [vmem:[#allocation59 + $0x10] sm:$0xff] }
0x2fd2   :  { %13740 = vmatprep.mubr.msk.f32.mxu0 %vm16433_vm7, %v16434_v30  ;;  %v14327_v11 = vpack.c.bf16 %v927_v24, %v926_v27 }
0x307c   :  { %v11071_v17 = vpop.f32.mrb[142].mxu0 }
0x307d   :  { %v13663_v36 = vpop.f32.mrb[143].mxu0 }
0x307e   :  { %v836_v36 = vld [vmem:[%s21171_s20 + $0x10] sm:$0xff] }
0x30a4   :  { %v11190_v41 = vpop.f32.mrb[144].mxu0 }
0x30a5   :  { %v11194_v26 = vmul.f32 0.17677669, %v11190_v41  ;;  %v13686_v13 = vpop.f32.mrb[145].mxu0  ;;  %v837_v41 = vld [vmem:[%s21171_s20 + $0x18] sm:$0xff] }
0x30a6   :  { %v873_v13 = vld [vmem:[#allocation38] sm:$0x1] }
0x30a7   :  { %v11195_v34 = vsel %vm10512_vm2, %v11194_v26, -inf }
0x30a8   :  { %11196 = vmax.xlane.f32.xlu1 %v11195_v34 }
0x30b9   :  { %14797 = vrot.lane.b32.xlu1 %v20325_v1, %s16430_s30 }
0x30bd   :  { %14802 = vrot.lane.b32.xlu1 %v20337_v21, %s16430_s30 }
0x30c1   :  { %14812 = vrot.lane.b32.xlu1 %v20361_v23, %s16430_s30 }
0x30c5   :  { %11076 = vrot.lane.b32.xlu1 %v11071_v17, %s16425_s12 }
0x3135   :  { %v11197_v33 = vpop.xlane.xlu1 %11196 }
0x3136   :  { %v11198_v14 = vsub.f32 %v11194_v26, %v11197_v33  ;;  %v14339_v26 = vpack.c.bf16 %v837_v41, %v836_v36 }
0x3138   :  { %v11199_v2 = vmul.f32 1.442695, %v11198_v14 }
0x3139   :  { %v14798_v18 = vpop.permute.xlu1 %14797 }
0x313a   :  { %15200 = vpow2.f32 %v11199_v2  ;;  %v14800_v52 = vunpack.i.h.bf16 %v14798_v18  ;;  %v14799_v31 = vunpack.i.l.bf16 %v14798_v18  ;;  %v840_v2 = vld [vmem:[%s21175_s29] sm:$0xff]  ;;  %v841_v18 = vld [vmem:[%s21175_s29 + $0x8] sm:$0xff] }
0x313c   :  { %v14311_v38 = vpack.c.bf16 %v14800_v52, %v14799_v31  ;;  %v842_v52 = vld [vmem:[%s21175_s29 + $0x10] sm:$0xff]  ;;  %v14342_v31 = vpack.c.bf16 %v841_v18, %v840_v2 }
0x313d   :  { %v14803_v42 = vpop.permute.xlu1 %14802 }
0x313e   :  { %v14805_v49 = vunpack.i.h.bf16 %v14803_v42  ;;  %v14804_v10 = vunpack.i.l.bf16 %v14803_v42  ;;  %14312 = vmatpush3.bf16.msra.mxu1 %v14311_v38  ;;  %v843_v38 = vld [vmem:[%s21175_s29 + $0x18] sm:$0xff] }
0x313f   :  { %14313 = vmatprep.subr.bf16.mxu1 %v16432_v43  ;;  %v14345_v42 = vpack.c.bf16 %v843_v38, %v842_v52 }
0x3140   :  { %v14314_v1 = vpack.c.bf16 %v14805_v49, %v14804_v10  ;;  %v832_v49 = vld [vmem:[#allocation6] sm:$0x1]  ;;  %v833_v10 = vld [vmem:[#allocation8] sm:$0x1] }
0x3141   :  { %v14813_v15 = vpop.permute.xlu1 %14812 }
0x3142   :  { %14315 = vmatpush3.bf16.msra.mxu1 %v14314_v1  ;;  %v14815_v22 = vunpack.i.h.bf16 %v14813_v15  ;;  %v14814_v54 = vunpack.i.l.bf16 %v14813_v15 }
0x3143   :  { %14316 = vmatprep.subr.bf16.mxu1 %v16432_v43 }
0x3144   :  { %v15201_v21 = vpop.eup %15200  ;;  %v14320_v61 = vpack.c.bf16 %v14815_v22, %v14814_v54  ;;  %v839_v22 = vld [vmem:[#allocation11] sm:$0x1] }
0x3145   :  { %v11201_v23 = vsel %vm10512_vm2, %v15201_v21, 0.0  ;;  %v11077_v62 = vpop.permute.xlu1 %11076 }
0x3146   :  { %11202 = vadd.xlane.f32.xlu0 %v11201_v23  ;;  %v11079_v20 = vadd.f32 %v11077_v62, %v20370_v29 }
0x315c   :  { %14807 = vrot.lane.b32.xlu0 %v20349_v60, %s16430_s30 }
0x3160   :  { %10841 = vrot.lane.b32.xlu0 %v20469_v63, %s16395_s21  ;;  %v924_v63 = vld [vmem:[#allocation59] sm:$0xff]  ;;  %s21170_s21 = sld [smem:[#allocation118_spill]] }
0x3161   :  { %v14324_v28 = vpack.c.bf16 %v925_v56, %v924_v63 }
0x3166   :  { %v874_v19 = vld [vmem:[%s21170_s21] sm:$0xff]  ;;  %v875_v50 = vld [vmem:[%s21170_s21 + $0x8] sm:$0xff]  ;;  %v876_v25 = vld [vmem:[%s21170_s21 + $0x10] sm:$0xff] }
0x3167   :  { %v14330_v6 = vpack.c.bf16 %v875_v50, %v874_v19  ;;  %v877_v7 = vld [vmem:[%s21170_s21 + $0x18] sm:$0xff] }
0x3168   :  { %v14333_v4 = vpack.c.bf16 %v877_v7, %v876_v25 }
0x31d3   :  { %v11203_v35 = vpop.xlane.xlu0 %11202 }
0x31d4   :  { %15202 = vrcp.f32 %v11203_v35 }
0x31d7   :  { %v14808_v46 = vpop.permute.xlu0 %14807 }
0x31d8   :  { %v14810_v48 = vunpack.i.h.bf16 %v14808_v46  ;;  %v14809_v39 = vunpack.i.l.bf16 %v14808_v46  ;;  %v965_v46 = vld [vmem:[%s16762_s5 + $0x8] sm:$0xff] }
0x31da   :  { %v14317_v32 = vpack.c.bf16 %v14810_v48, %v14809_v39  ;;  %v838_v39 = vld [vmem:[#allocation9] sm:$0x1] }
0x31db   :  { %v10842_v37 = vpop.permute.xlu0 %10841 }
0x31dc   :  { %14318 = vmatpush3.bf16.msra.mxu1 %v14317_v32  ;;  %v10844_v9 = vadd.f32 %v10842_v37, %v20370_v29 }
0x31dd   :  { %14319 = vmatprep.subr.bf16.mxu1 %v16432_v43 }
0x31de   :  { %v15203_v8 = vpop.eup %15202  ;;  %v11315_v59 = vsel %vm21172_vm10, %v10600_v47, %v10844_v9 }
0x31df   :  { %v11205_v60 = vmul.f32 %v15203_v8, %v15201_v21 }
0x31e0   :  { %14322 = vmatpush3.bf16.msk.msra.mxu1 %vm19430_vm1, %v14320_v61  ;;  %vm21173_vm1 = vcmask 130048  }
0x31e1   :  { %14323 = vmatprep.subr.bf16.mxu1 %v16432_v43  ;;  %v11316_v53 = vsel %vm21173_vm1, %v11315_v59, %v11079_v20  ;;  %vm21179_vm4 = vmmov %vm21173_vm1 }
0x31e3   :  { %13708 = vmatmul.mubr.msk.f32.vlgmr.msra.gmra.mrb[140].mxu1 %vm7959_vm13, %v11205_v60  ;;  %vm21174_vm13 = vmmov %vm21151_vm0  ;;  %v963_v60 = vld [vmem:[#allocation2] sm:$0x1] }
0x31e4   :  { %13718 = vmatprep.mubr.msk.f32.mxu1 %vm16433_vm7, %v16434_v30  ;;  %14325 = vmatpush3.bf16.msra.mxu1 %v14324_v28 }
0x31e5   :  { %14326 = vmatprep.subr.bf16.mxu1 %v16432_v43 }
0x31e8   :  { %14328 = vmatpush3.bf16.msra.mxu1 %v14327_v11 }
0x31e9   :  { %14329 = vmatprep.subr.bf16.mxu1 %v16432_v43 }
0x32b6   :  { %v11306_v12 = vpop.f32.mrb[140].mxu1 }
0x32b7   :  { %11311 = vrot.lane.b32.xlu0 %v11306_v12, %s16431_s11  ;;  %v13709_v51 = vpop.f32.mrb[141].mxu1 }
0x3329   :  { %v11312_v58 = vpop.permute.xlu0 %11311 }
0x332a   :  { %v11314_v40 = vadd.f32 %v11312_v58, %v20370_v29  ;;  %v14336_v29 = vpack.c.bf16 %v835_v57, %v834_v16 }
0x332c   :  { %v11317_v44 = vsel %vm7199_vm8, %v11316_v53, %v11314_v40  ;;  %14337 = vmatpush3.bf16.msra.mxu0 %v14336_v29  ;;  %vm21176_vm8 = vmmov %vm21151_vm0 }
0x332d   :  { %13719 = vmatmul.mubr.msk.f32.vlgmr.msra.gmra.mrb[142].mxu1 %vm21174_vm13, %v11317_v44  ;;  %14338 = vmatprep.subr.bf16.mxu0 %v16432_v43 }
0x332e   :  { %13729 = vmatprep.mubr.msk.f32.mxu1 %vm16433_vm7, %v16434_v30  ;;  %14331 = vmatpush3.bf16.msra.mxu1 %v14330_v6 }
0x332f   :  { %14332 = vmatprep.subr.bf16.mxu1 %v16432_v43 }
0x3330   :  { %14340 = vmatpush3.bf16.msra.mxu0 %v14339_v26 }
0x3331   :  { %14347 = vmatprep.subr.bf16.mxu0 %v16432_v43 }
0x3332   :  { %14334 = vmatpush3.bf16.msra.mxu1 %v14333_v4 }
0x3333   :  { %14341 = vmatprep.subr.bf16.mxu1 %v16432_v43 }
0x3400   :  { %v11387_v3 = vpop.f32.mrb[142].mxu1 }
0x3401   :  { %v11388_v55 = vadd.f32 %v11387_v3, %v923_v45  ;;  %v13720_v0 = vpop.f32.mrb[143].mxu1 }
0x3403   :  { %v11391_v5 = vmax.f32 %v11388_v55, 0.0 }
0x3405   :  { %v11392_v17 = vadd.f32 %v11391_v5, %v11317_v44 }
0x3407   :  { %13730 = vmatmul.mubr.msk.f32.vlgmr.msra.gmra.mrb[144].mxu1 %vm21176_vm8, %v11392_v17 }
0x3408   :  { %13751 = vmatprep.mubr.msk.f32.mxu1 %vm16433_vm7, %v16434_v30  ;;  %14343 = vmatpush3.bf16.msra.mxu1 %v14342_v31 }
0x3409   :  { %14344 = vmatprep.subr.bf16.mxu1 %v16432_v43 }
0x340c   :  { %14346 = vmatpush3.bf16.msra.mxu1 %v14345_v42 }
0x34da   :  { %v11462_v34 = vpop.f32.mrb[144].mxu1 }
0x34db   :  { %v11463_v33 = vadd.f32 %v11462_v34, %v873_v13  ;;  %v13731_v14 = vpop.f32.mrb[145].mxu1 }
0x34dd   :  { %13741 = vmatmul.mubr.msk.f32.vlgmr.msra.gmra.mrb[146].mxu0 %vm21177_vm15, %v11463_v33 }
0x34de   :  { %13758 = vmatprep.mubr.msk.f32.mxu0 %vm16433_vm7, %v16434_v30  ;;  %vm21178_vm7 = vmmov %vm21151_vm0  ;;  %v964_v30 = vld [vmem:[%s16762_s5] sm:$0xff]  ;;  %vm11691_vm0 = vcmask 0   ;;  %s16238_s5 = scalar_lea.vmem %s11700_s3, 16 }
0x34df   :  { %v14348_v48 = vpack.c.bf16 %v965_v46, %v964_v30  ;;  %p16239_p12 = scmp.ne.s32.totalorder %s11700_s3, %s16238_s5  ;;  %p16244_p0 = scmp.lt.s32.totalorder %s16242_s18, %s16238_s5 }
0x34e1   :  { %14349 = vmatpush3.bf16.msra.mxu0 %v14348_v48  ;;  %p16245_p1 = por %p16244_p0, %p16243_p13 }
0x34e3   :  { %p16246_p2 = pnand %p16245_p1, %p16239_p12 }
0x35b0   :  { %v11535_v1 = vpop.f32.mrb[146].mxu0 }
0x35b1   :  { %v11539_v21 = vmul.f32 %v11535_v1, %v832_v49  ;;  %v13742_v23 = vpop.f32.mrb[147].mxu0 }
0x35b3   :  { %v11540_v35 = vadd.f32 %v11539_v21, %v833_v10 }
0x35b5   :  { %v11541_v15 = vmax.f32 %v11540_v35, 0.0 }
0x35b7   :  { %13752 = vmatmul.mubr.msk.f32.vlgmr.msra.gmra.mrb[146].mxu1 %vm21178_vm7, %v11541_v15 }
0x368a   :  { %v11611_v54 = vpop.f32.mrb[146].mxu1 }
0x368b   :  { %v11615_v32 = vmul.f32 %v11611_v54, %v838_v39  ;;  %v13753_v8 = vpop.f32.mrb[147].mxu1 }
0x368d   :  { %v11616_v43 = vadd.f32 %v11615_v32, %v839_v22 }
0x368f   :  { %v11617_v61 = vmax.f32 %v11616_v43, 0.0 }
0x3691   :  { %13759 = vmatmul.mubr.msk.f32.vlgmr.msra.gmra.mrb[148].mxu0 %vm21179_vm4, %v11617_v61 }
0x3764   :  { %v11687_v63 = vpop.f32.mrb[148].mxu0 }
0x3765   :  { %v11688_v56 = vadd.f32 %v11687_v63, %v963_v60  ;;  %v13760_v28 = vpop.f32.mrb[149].mxu0 }
0x3767   :  { %11692 = vst.msk [vmem:[#allocation75] sm:$0x1] %vm11691_vm0, %v11688_v56 }
0x3768   :  { %16249 = shalt.err (!%p16246_p2)
}
0x3769   :  { %s16250_s23 = scalar_lea.hbm %s16772_s13, 16 }
0x376a   :  { %p16251_p3 = scmp.ne.s32.totalorder %s16772_s13, %s16250_s23  ;;  %p16254_p4 = scmp.lt.u32.totalorder %s16250_s23, %s16772_s13 }
0x376c   :  { %p16256_p5 = pnand %p16254_p4, %p16251_p3 }
0x376e   :  { %16259 = shalt.err (!%p16256_p5)
}
0x376f   :  { %11702 = dma.vmem_to_hbm [thread:$0]  %s11700_s3, 16, %s16772_s13, [#allocation5]  }
0x3770   :  { %16308 = dma.done.wait [#allocation5], 16  }
0x3771   :  { %16309 = vsyncadd [#allocation5], 4294967280 }
0x3772   :  { %11706 = vsyncpa [#allocation4], 1 }
0x3773   :  { %11707 = vsyncpa [#allocation7], 1 }
0x3774   :  { %11708 = vsyncpa [#allocation10], 1 }
0x3775   :  { %11709 = vsyncpa [#allocation13], 1 }
0x3776   :  { %11710 = vsyncpa [#allocation16], 1 }
0x3777   :  { %11711 = vsyncpa [#allocation19], 1 }
0x3778   :  { %11712 = vsyncpa [#allocation22], 1 }
0x3779   :  { %11713 = vsyncpa [#allocation25], 1 }
0x377a   :  { %11714 = vsyncpa [#allocation28], 1 }
0x377b   :  { %11715 = vsyncpa [#allocation31], 1 }
0x377c   :  { %11716 = vsyncpa [#allocation34], 1 }
0x377d   :  { %11717 = vsyncpa [#allocation37], 1 }
0x377e   :  { %11718 = vsyncpa [#allocation40], 1 }
0x377f   :  { %11719 = vsyncpa [#allocation43], 1 }
0x3780   :  { %11720 = vsyncpa [#allocation46], 1 }
0x3781   :  { %11721 = vsyncpa [#allocation49], 1 }
0x3782   :  { %11722 = vsyncpa [#allocation52], 1 }
0x3783   :  { %11723 = vsyncpa [#allocation55], 1 }
0x3784   :  { %11724 = vsyncpa [#allocation58], 1 }
0x3785   :  { %11725 = vsyncpa [#allocation61], 1 }
0x3786   :  { %11726 = vsyncpa [#allocation64], 1 }
0x3787   :  { %11727 = vsyncpa [#allocation67], 1 }
0x3788   :  { %11728 = vsyncpa [#allocation70], 1 }
0x3789   :  { %11729 = vsyncpa [#allocation73], 1 }
0x378a   :  { %11730 = vsyncpa [#allocation5], 1 }

</bundles_post_ra>
